<compile_context>
chip_gen: v7x
topology: tpu7x:2x2x1
jax: 0.10.0
libtpu: 0.0.40
codegen_flags: <defaults>
</compile_context>

<pallas_src>
import functools

import jax
import jax.numpy as jnp
from jax.experimental import pallas as pl
from jax.experimental.pallas import tpu as pltpu


def _round_up(x, m):
    return (x + m - 1) // m * m


def _linear_kernel(x_ref, w_ref, b_ref, o_ref, acc_ref, *, apply_relu):
    """One (tm, tn) output tile of y = relu?(x @ w + b), accumulated over K tiles."""
    k = pl.program_id(2)

    @pl.when(k == 0)
    def _():
        acc_ref[...] = jnp.zeros_like(acc_ref)

    acc_ref[...] += jnp.dot(x_ref[...], w_ref[...],
                            preferred_element_type=jnp.float32)

    @pl.when(k == pl.num_programs(2) - 1)
    def _():
        y = acc_ref[...] + b_ref[...].astype(jnp.float32)
        if apply_relu:
            y = jnp.maximum(y, 0.0)
        o_ref[...] = y.astype(o_ref.dtype)


def pallas_linear(x, w, b, *, relu=False):
    """y = relu?(x @ w + b).  x: (M, K), w: (K, N), b: (N,).  Returns (M, N) f32."""
    M, K = x.shape
    Kw, N = w.shape
    assert K == Kw, (K, Kw)

    tk = 512
    M_pad = _round_up(max(M, 8), 8)
    K_pad = _round_up(K, tk)
    N_pad = _round_up(N, 128)

    tm = min(M_pad, 256)
    if M_pad % tm:
        tm = 8
    tn = 2048 if N_pad % 2048 == 0 else (512 if N_pad % 512 == 0 else 128)

    # bf16 operands for the MXU (f32 accumulation inside the kernel).
    xb = x.astype(jnp.bfloat16)
    if (M_pad, K_pad) != (M, K):
        xb = jnp.pad(xb, ((0, M_pad - M), (0, K_pad - K)))
    wb = w.astype(jnp.bfloat16)
    if (K_pad, N_pad) != (K, N):
        wb = jnp.pad(wb, ((0, K_pad - K), (0, N_pad - N)))
    bb = b.astype(jnp.float32).reshape(1, N)
    if N_pad != N:
        bb = jnp.pad(bb, ((0, 0), (0, N_pad - N)))

    grid = (M_pad // tm, N_pad // tn, K_pad // tk)

    out = pl.pallas_call(
        functools.partial(_linear_kernel, apply_relu=relu),
        out_shape=jax.ShapeDtypeStruct((M_pad, N_pad), jnp.float32),
        grid_spec=pltpu.PrefetchScalarGridSpec(
            num_scalar_prefetch=0,
            grid=grid,
            in_specs=[
                pl.BlockSpec((tm, tk), lambda i, j, k: (i, k)),   # activations
                pl.BlockSpec((tk, tn), lambda i, j, k: (k, j)),   # weights
                pl.BlockSpec((1, tn), lambda i, j, k: (0, j)),    # bias
            ],
            out_specs=pl.BlockSpec((tm, tn), lambda i, j, k: (i, j)),
            scratch_shapes=[pltpu.VMEM((tm, tn), jnp.float32)],   # f32 accumulator
        ),
        compiler_params=pltpu.CompilerParams(
            dimension_semantics=("parallel", "parallel", "arbitrary"),
            vmem_limit_bytes=32 * 1024 * 1024,
        ),
    )(xb, wb, bb)

    return out[:M, :N]


def vgg_forward(x, params):
    """VGG.forward (inference semantics for Dropout).

    x: (N, C, H, W) feature map in PyTorch NCHW layout. Returns (N, num_classes).
    """
    # TODO(synk): `self.features` is a constructor-injected nn.Sequential that is not
    # defined in the spec; it is treated as identity here (x must already be the
    # feature map whose flattened size matches the classifier input, e.g. (N,512,7,7)).
    n = x.shape[0]
    h = x.reshape(n, -1)                                            # x.view(x.size(0), -1)
    h = pallas_linear(h, params["w1"], params["b1"], relu=True)     # Linear + ReLU
    # TODO(synk): nn.Dropout is stochastic in training mode; eval-mode identity is used.
    h = pallas_linear(h, params["w2"], params["b2"], relu=True)     # Linear + ReLU
    h = pallas_linear(h, params["w3"], params["b3"], relu=False)    # final Linear
    return h


def init_params(key, in_features=512 * 7 * 7, hidden=4096, num_classes=10):
    """Matches VGG._initialize_weights for nn.Linear: weight ~ N(0, 0.01), bias = 0.

    Weights are stored as (in, out) — the transpose of PyTorch's (out, in) — and in
    bf16 so the kernel feeds the MXU directly.
    """
    k1, k2, k3 = jax.random.split(key, 3)

    def lin(k, fin, fout):
        w = (jax.random.normal(k, (fin, fout), jnp.float32) * 0.01).astype(jnp.bfloat16)
        b = jnp.zeros((fout,), jnp.float32)
        return w, b

    w1, b1 = lin(k1, in_features, hidden)
    w2, b2 = lin(k2, hidden, hidden)
    w3, b3 = lin(k3, hidden, num_classes)
    return {"w1": w1, "b1": b1, "w2": w2, "b2": b2, "w3": w3, "b3": b3}


if __name__ == "__main__":
    key = jax.random.PRNGKey(0)
    kx, kp = jax.random.split(key)

    # Feature-map shape implied by the hard-coded Linear(512 * 7 * 7, 4096).
    N, C, H, W = 2, 512, 7, 7
    num_classes = 10

    x = jax.random.normal(kx, (N, C, H, W), jnp.float32)
    params = init_params(kp, in_features=C * H * W, hidden=4096, num_classes=num_classes)

    out = jax.jit(vgg_forward)(x, params)
    jax.block_until_ready(out)

    assert out.shape == (N, num_classes), out.shape
    assert bool(jnp.all(jnp.isfinite(out)))
    print("KERNEL_OK")
</pallas_src>

<mosaic_0001>
module attributes {stable_mosaic.version = 11 : i64} {
  func.func @_linear_kernel(%arg0: i32, %arg1: i32, %arg2: i32, %arg3: memref<8x512xbf16, #tpu.memory_space<vmem>>, %arg4: memref<512x2048xbf16, #tpu.memory_space<vmem>>, %arg5: memref<1x2048xf32, #tpu.memory_space<vmem>>, %arg6: memref<8x2048xf32, #tpu.memory_space<vmem>>, %arg7: memref<8x2048xf32, #tpu.memory_space<vmem>>) attributes {dimension_semantics = [#tpu.dimension_semantics<parallel>, #tpu.dimension_semantics<parallel>, #tpu.dimension_semantics<arbitrary>], iteration_bounds = array<i64: 1, 2, 49>, scalar_prefetch = 0 : i64, scratch_operands = 1 : i64, tpu.core_type = #tpu.core_type<tc>, window_params = [{transform_indices = @transform_0, window_bounds = array<i64: 8, 512>}, {transform_indices = @transform_1, window_bounds = array<i64: 512, 2048>}, {transform_indices = @transform_2, window_bounds = array<i64: 1, 2048>}, {transform_indices = @transform_3, window_bounds = array<i64: 8, 2048>}]} {
    %c0_i32 = arith.constant 0 : i32
    %0 = arith.cmpi eq, %arg2, %c0_i32 : i32
    %1 = arith.extui %0 : i1 to i32
    %c0_i32_0 = arith.constant 0 : i32
    %2 = arith.cmpi ne, %1, %c0_i32_0 : i32
    scf.if %2 {
      %cst_9 = arith.constant 0.000000e+00 : f32
      %12 = vector.broadcast %cst_9 : f32 to vector<8x2048xf32>
      %c0_10 = arith.constant 0 : index
      %c0_11 = arith.constant 0 : index
      %13 = vector.load %arg7[%c0_10, %c0_11] : memref<8x2048xf32, #tpu.memory_space<vmem>>, vector<8x2048xf32>
      tpu.vector_store %arg7[%c0_10, %c0_11], %12 {strides = array<i32>} : memref<8x2048xf32, #tpu.memory_space<vmem>>, vector<8x2048xf32>,
    } else {
    }
    %c0 = arith.constant 0 : index
    %c0_1 = arith.constant 0 : index
    %3 = vector.load %arg7[%c0, %c0_1] : memref<8x2048xf32, #tpu.memory_space<vmem>>, vector<8x2048xf32>
    %c0_2 = arith.constant 0 : index
    %c0_3 = arith.constant 0 : index
    %4 = vector.load %arg3[%c0_2, %c0_3] : memref<8x512xbf16, #tpu.memory_space<vmem>>, vector<8x512xbf16>
    %c0_4 = arith.constant 0 : index
    %c0_5 = arith.constant 0 : index
    %5 = vector.load %arg4[%c0_4, %c0_5] : memref<512x2048xbf16, #tpu.memory_space<vmem>>, vector<512x2048xbf16>
    %cst = arith.constant dense<0.000000e+00> : vector<8x2048xf32>
    %6 = tpu.matmul %4, %5, %cst {dimension_numbers = #tpu.dot_dimension_numbers<[1], [0], [0], [1], [0, 0, 1, 1], [], []>} : vector<8x512xbf16>, vector<512x2048xbf16>, vector<8x2048xf32> -> vector<8x2048xf32>
    %7 = arith.addf %3, %6 : vector<8x2048xf32>
    %c0_6 = arith.constant 0 : index
    %c0_7 = arith.constant 0 : index
    %8 = vector.load %arg7[%c0_6, %c0_7] : memref<8x2048xf32, #tpu.memory_space<vmem>>, vector<8x2048xf32>
    tpu.vector_store %arg7[%c0_6, %c0_7], %7 {strides = array<i32>} : memref<8x2048xf32, #tpu.memory_space<vmem>>, vector<8x2048xf32>,
    %c48_i32 = arith.constant 48 : i32
    %9 = arith.cmpi eq, %arg2, %c48_i32 : i32
    %10 = arith.extui %9 : i1 to i32
    %c0_i32_8 = arith.constant 0 : i32
    %11 = arith.cmpi ne, %10, %c0_i32_8 : i32
    scf.if %11 {
      %c0_9 = arith.constant 0 : index
      %c0_10 = arith.constant 0 : index
      %12 = vector.load %arg7[%c0_9, %c0_10] : memref<8x2048xf32, #tpu.memory_space<vmem>>, vector<8x2048xf32>
      %c0_11 = arith.constant 0 : index
      %c0_12 = arith.constant 0 : index
      %13 = vector.load %arg5[%c0_11, %c0_12] : memref<1x2048xf32, #tpu.memory_space<vmem>>, vector<1x2048xf32>
      %14 = vector.broadcast %13 : vector<1x2048xf32> to vector<8x2048xf32>
      %15 = arith.addf %12, %14 : vector<8x2048xf32>
      %cst_13 = arith.constant 0.000000e+00 : f32
      %16 = vector.broadcast %cst_13 : f32 to vector<8x2048xf32>
      %17 = arith.maximumf %15, %16 : vector<8x2048xf32>
      %c0_14 = arith.constant 0 : index
      %c0_15 = arith.constant 0 : index
      %18 = vector.load %arg6[%c0_14, %c0_15] : memref<8x2048xf32, #tpu.memory_space<vmem>>, vector<8x2048xf32>
      tpu.vector_store %arg6[%c0_14, %c0_15], %17 {strides = array<i32>} : memref<8x2048xf32, #tpu.memory_space<vmem>>, vector<8x2048xf32>,
    } else {
    }
    return
  }
  func.func @transform_0(%arg0: i32, %arg1: i32, %arg2: i32) -> (i32, i32) {
    %c0_i32 = arith.constant 0 : i32
    return %arg0, %arg2 : i32, i32
  }
  func.func @transform_1(%arg0: i32, %arg1: i32, %arg2: i32) -> (i32, i32) {
    %c0_i32 = arith.constant 0 : i32
    return %arg2, %arg1 : i32, i32
  }
  func.func @transform_2(%arg0: i32, %arg1: i32, %arg2: i32) -> (i32, i32) {
    %c0_i32 = arith.constant 0 : i32
    %c0_i32_0 = arith.constant 0 : i32
    return %c0_i32, %arg1 : i32, i32
  }
  func.func @transform_3(%arg0: i32, %arg1: i32, %arg2: i32) -> (i32, i32) {
    %c0_i32 = arith.constant 0 : i32
    return %arg0, %arg1 : i32, i32
  }
}

module attributes {stable_mosaic.version = 11 : i64} {
  func.func @_linear_kernel(%arg0: i32, %arg1: i32, %arg2: i32, %arg3: memref<8x512xbf16, #tpu.memory_space<vmem>>, %arg4: memref<512x2048xbf16, #tpu.memory_space<vmem>>, %arg5: memref<1x2048xf32, #tpu.memory_space<vmem>>, %arg6: memref<8x2048xf32, #tpu.memory_space<vmem>>, %arg7: memref<8x2048xf32, #tpu.memory_space<vmem>>) attributes {dimension_semantics = [#tpu.dimension_semantics<parallel>, #tpu.dimension_semantics<parallel>, #tpu.dimension_semantics<arbitrary>], iteration_bounds = array<i64: 1, 2, 8>, scalar_prefetch = 0 : i64, scratch_operands = 1 : i64, tpu.core_type = #tpu.core_type<tc>, window_params = [{transform_indices = @transform_0, window_bounds = array<i64: 8, 512>}, {transform_indices = @transform_1, window_bounds = array<i64: 512, 2048>}, {transform_indices = @transform_2, window_bounds = array<i64: 1, 2048>}, {transform_indices = @transform_3, window_bounds = array<i64: 8, 2048>}]} {
    %c0_i32 = arith.constant 0 : i32
    %0 = arith.cmpi eq, %arg2, %c0_i32 : i32
    %1 = arith.extui %0 : i1 to i32
    %c0_i32_0 = arith.constant 0 : i32
    %2 = arith.cmpi ne, %1, %c0_i32_0 : i32
    scf.if %2 {
      %cst_9 = arith.constant 0.000000e+00 : f32
      %12 = vector.broadcast %cst_9 : f32 to vector<8x2048xf32>
      %c0_10 = arith.constant 0 : index
      %c0_11 = arith.constant 0 : index
      %13 = vector.load %arg7[%c0_10, %c0_11] : memref<8x2048xf32, #tpu.memory_space<vmem>>, vector<8x2048xf32>
      tpu.vector_store %arg7[%c0_10, %c0_11], %12 {strides = array<i32>} : memref<8x2048xf32, #tpu.memory_space<vmem>>, vector<8x2048xf32>,
    } else {
    }
    %c0 = arith.constant 0 : index
    %c0_1 = arith.constant 0 : index
    %3 = vector.load %arg7[%c0, %c0_1] : memref<8x2048xf32, #tpu.memory_space<vmem>>, vector<8x2048xf32>
    %c0_2 = arith.constant 0 : index
    %c0_3 = arith.constant 0 : index
    %4 = vector.load %arg3[%c0_2, %c0_3] : memref<8x512xbf16, #tpu.memory_space<vmem>>, vector<8x512xbf16>
    %c0_4 = arith.constant 0 : index
    %c0_5 = arith.constant 0 : index
    %5 = vector.load %arg4[%c0_4, %c0_5] : memref<512x2048xbf16, #tpu.memory_space<vmem>>, vector<512x2048xbf16>
    %cst = arith.constant dense<0.000000e+00> : vector<8x2048xf32>
    %6 = tpu.matmul %4, %5, %cst {dimension_numbers = #tpu.dot_dimension_numbers<[1], [0], [0], [1], [0, 0, 1, 1], [], []>} : vector<8x512xbf16>, vector<512x2048xbf16>, vector<8x2048xf32> -> vector<8x2048xf32>
    %7 = arith.addf %3, %6 : vector<8x2048xf32>
    %c0_6 = arith.constant 0 : index
    %c0_7 = arith.constant 0 : index
    %8 = vector.load %arg7[%c0_6, %c0_7] : memref<8x2048xf32, #tpu.memory_space<vmem>>, vector<8x2048xf32>
    tpu.vector_store %arg7[%c0_6, %c0_7], %7 {strides = array<i32>} : memref<8x2048xf32, #tpu.memory_space<vmem>>, vector<8x2048xf32>,
    %c7_i32 = arith.constant 7 : i32
    %9 = arith.cmpi eq, %arg2, %c7_i32 : i32
    %10 = arith.extui %9 : i1 to i32
    %c0_i32_8 = arith.constant 0 : i32
    %11 = arith.cmpi ne, %10, %c0_i32_8 : i32
    scf.if %11 {
      %c0_9 = arith.constant 0 : index
      %c0_10 = arith.constant 0 : index
      %12 = vector.load %arg7[%c0_9, %c0_10] : memref<8x2048xf32, #tpu.memory_space<vmem>>, vector<8x2048xf32>
      %c0_11 = arith.constant 0 : index
      %c0_12 = arith.constant 0 : index
      %13 = vector.load %arg5[%c0_11, %c0_12] : memref<1x2048xf32, #tpu.memory_space<vmem>>, vector<1x2048xf32>
      %14 = vector.broadcast %13 : vector<1x2048xf32> to vector<8x2048xf32>
      %15 = arith.addf %12, %14 : vector<8x2048xf32>
      %cst_13 = arith.constant 0.000000e+00 : f32
      %16 = vector.broadcast %cst_13 : f32 to vector<8x2048xf32>
      %17 = arith.maximumf %15, %16 : vector<8x2048xf32>
      %c0_14 = arith.constant 0 : index
      %c0_15 = arith.constant 0 : index
      %18 = vector.load %arg6[%c0_14, %c0_15] : memref<8x2048xf32, #tpu.memory_space<vmem>>, vector<8x2048xf32>
      tpu.vector_store %arg6[%c0_14, %c0_15], %17 {strides = array<i32>} : memref<8x2048xf32, #tpu.memory_space<vmem>>, vector<8x2048xf32>,
    } else {
    }
    return
  }
  func.func @transform_0(%arg0: i32, %arg1: i32, %arg2: i32) -> (i32, i32) {
    %c0_i32 = arith.constant 0 : i32
    return %arg0, %arg2 : i32, i32
  }
  func.func @transform_1(%arg0: i32, %arg1: i32, %arg2: i32) -> (i32, i32) {
    %c0_i32 = arith.constant 0 : i32
    return %arg2, %arg1 : i32, i32
  }
  func.func @transform_2(%arg0: i32, %arg1: i32, %arg2: i32) -> (i32, i32) {
    %c0_i32 = arith.constant 0 : i32
    %c0_i32_0 = arith.constant 0 : i32
    return %c0_i32, %arg1 : i32, i32
  }
  func.func @transform_3(%arg0: i32, %arg1: i32, %arg2: i32) -> (i32, i32) {
    %c0_i32 = arith.constant 0 : i32
    return %arg0, %arg1 : i32, i32
  }
}

module attributes {stable_mosaic.version = 11 : i64} {
  func.func @_linear_kernel(%arg0: i32, %arg1: i32, %arg2: i32, %arg3: memref<8x512xbf16, #tpu.memory_space<vmem>>, %arg4: memref<512x128xbf16, #tpu.memory_space<vmem>>, %arg5: memref<1x128xf32, #tpu.memory_space<vmem>>, %arg6: memref<8x128xf32, #tpu.memory_space<vmem>>, %arg7: memref<8x128xf32, #tpu.memory_space<vmem>>) attributes {dimension_semantics = [#tpu.dimension_semantics<parallel>, #tpu.dimension_semantics<parallel>, #tpu.dimension_semantics<arbitrary>], iteration_bounds = array<i64: 1, 1, 8>, scalar_prefetch = 0 : i64, scratch_operands = 1 : i64, tpu.core_type = #tpu.core_type<tc>, window_params = [{transform_indices = @transform_0, window_bounds = array<i64: 8, 512>}, {transform_indices = @transform_1, window_bounds = array<i64: 512, 128>}, {transform_indices = @transform_2, window_bounds = array<i64: 1, 128>}, {transform_indices = @transform_3, window_bounds = array<i64: 8, 128>}]} {
    %c0_i32 = arith.constant 0 : i32
    %0 = arith.cmpi eq, %arg2, %c0_i32 : i32
    %1 = arith.extui %0 : i1 to i32
    %c0_i32_0 = arith.constant 0 : i32
    %2 = arith.cmpi ne, %1, %c0_i32_0 : i32
    scf.if %2 {
      %cst_9 = arith.constant 0.000000e+00 : f32
      %12 = vector.broadcast %cst_9 : f32 to vector<8x128xf32>
      %c0_10 = arith.constant 0 : index
      %c0_11 = arith.constant 0 : index
      %13 = vector.load %arg7[%c0_10, %c0_11] : memref<8x128xf32, #tpu.memory_space<vmem>>, vector<8x128xf32>
      tpu.vector_store %arg7[%c0_10, %c0_11], %12 {strides = array<i32>} : memref<8x128xf32, #tpu.memory_space<vmem>>, vector<8x128xf32>,
    } else {
    }
    %c0 = arith.constant 0 : index
    %c0_1 = arith.constant 0 : index
    %3 = vector.load %arg7[%c0, %c0_1] : memref<8x128xf32, #tpu.memory_space<vmem>>, vector<8x128xf32>
    %c0_2 = arith.constant 0 : index
    %c0_3 = arith.constant 0 : index
    %4 = vector.load %arg3[%c0_2, %c0_3] : memref<8x512xbf16, #tpu.memory_space<vmem>>, vector<8x512xbf16>
    %c0_4 = arith.constant 0 : index
    %c0_5 = arith.constant 0 : index
    %5 = vector.load %arg4[%c0_4, %c0_5] : memref<512x128xbf16, #tpu.memory_space<vmem>>, vector<512x128xbf16>
    %cst = arith.constant dense<0.000000e+00> : vector<8x128xf32>
    %6 = tpu.matmul %4, %5, %cst {dimension_numbers = #tpu.dot_dimension_numbers<[1], [0], [0], [1], [0, 0, 1, 1], [], []>} : vector<8x512xbf16>, vector<512x128xbf16>, vector<8x128xf32> -> vector<8x128xf32>
    %7 = arith.addf %3, %6 : vector<8x128xf32>
    %c0_6 = arith.constant 0 : index
    %c0_7 = arith.constant 0 : index
    %8 = vector.load %arg7[%c0_6, %c0_7] : memref<8x128xf32, #tpu.memory_space<vmem>>, vector<8x128xf32>
    tpu.vector_store %arg7[%c0_6, %c0_7], %7 {strides = array<i32>} : memref<8x128xf32, #tpu.memory_space<vmem>>, vector<8x128xf32>,
    %c7_i32 = arith.constant 7 : i32
    %9 = arith.cmpi eq, %arg2, %c7_i32 : i32
    %10 = arith.extui %9 : i1 to i32
    %c0_i32_8 = arith.constant 0 : i32
    %11 = arith.cmpi ne, %10, %c0_i32_8 : i32
    scf.if %11 {
      %c0_9 = arith.constant 0 : index
      %c0_10 = arith.constant 0 : index
      %12 = vector.load %arg7[%c0_9, %c0_10] : memref<8x128xf32, #tpu.memory_space<vmem>>, vector<8x128xf32>
      %c0_11 = arith.constant 0 : index
      %c0_12 = arith.constant 0 : index
      %13 = vector.load %arg5[%c0_11, %c0_12] : memref<1x128xf32, #tpu.memory_space<vmem>>, vector<1x128xf32>
      %14 = vector.broadcast %13 : vector<1x128xf32> to vector<8x128xf32>
      %15 = arith.addf %12, %14 : vector<8x128xf32>
      %c0_13 = arith.constant 0 : index
      %c0_14 = arith.constant 0 : index
      %16 = vector.load %arg6[%c0_13, %c0_14] : memref<8x128xf32, #tpu.memory_space<vmem>>, vector<8x128xf32>
      tpu.vector_store %arg6[%c0_13, %c0_14], %15 {strides = array<i32>} : memref<8x128xf32, #tpu.memory_space<vmem>>, vector<8x128xf32>,
    } else {
    }
    return
  }
  func.func @transform_0(%arg0: i32, %arg1: i32, %arg2: i32) -> (i32, i32) {
    %c0_i32 = arith.constant 0 : i32
    return %arg0, %arg2 : i32, i32
  }
  func.func @transform_1(%arg0: i32, %arg1: i32, %arg2: i32) -> (i32, i32) {
    %c0_i32 = arith.constant 0 : i32
    return %arg2, %arg1 : i32, i32
  }
  func.func @transform_2(%arg0: i32, %arg1: i32, %arg2: i32) -> (i32, i32) {
    %c0_i32 = arith.constant 0 : i32
    %c0_i32_0 = arith.constant 0 : i32
    return %c0_i32, %arg1 : i32, i32
  }
  func.func @transform_3(%arg0: i32, %arg1: i32, %arg2: i32) -> (i32, i32) {
    %c0_i32 = arith.constant 0 : i32
    return %arg0, %arg1 : i32, i32
  }
}

</mosaic_0001>

<bundles_post_ra>
// kernel: vgg_forward.4
= control target key start
LH: loop header
LB: loop body
LE: loop exit
PB: predicated region body
PF: predicated region fallthrough
CT: control target
= control target key end

     0   :  { %s8258_s0 = inlined_call_operand.hbm [shape: bf16[8,4096], index: 0, kind: input, shape index: {}]   ;;  %s8259_s1 = inlined_call_operand.vmem [shape: bf16[4096,4096], index: 1, kind: input, shape index: {}]   ;;  %s8260_s2 = inlined_call_operand.hbm [shape: f32[1,4096], index: 2, kind: input, shape index: {}]   ;;  %s8261_s3 = inlined_call_operand.hbm [shape: f32[8,4096], index: 3, kind: output, shape index: {}]  }
   0x1   :  { %8275 = sst [smem:[#allocation22_spill]] %s8261_s3 }
   0x2   :  { %8 = vsyncpa [#allocation4], 0 }
   0x3   :  { %10 = vsyncpa [#allocation4 + $0x1], 0 }
   0x4   :  { %11 = vsyncpa [#allocation8], 0 }
   0x5   :  { %13 = vsyncpa [#allocation8 + $0x1], 0 }
   0x6   :  { %14 = vsyncpa [#allocation5], 0 }
   0x7   :  { %16 = vsyncpa [#allocation5 + $0x1], 0  ;;  %s6328_s12 = smov 0   ;;  %s6330_s13 = smov 0  }
   0x8   :  { %s6332_s14 = smov 0   ;;  %s6334_s15 = smov 0  }
   0x9   :  { %s6336_s16 = smov 0   ;;  %s6338_s17 = smov 0  }
   0xa   :  { %s6340_s18 = smov 0   ;;  %s6342_s19 = smov 0  }
   0xb   :  { %s6344_s20 = smov 0   ;;  %s6346_s21 = smov 0  }
   0xc   :  { %s6348_s22 = smov 0   ;;  %s6350_s23 = smov 0  }
   0xd   :  { %s6352_s24 = smov 0  }
   0xe LB: > { %8276 = sst [smem:[#allocation13_spill]] %s6254_s12  ;;  %s8262_s25 = sadd.s32 4294967295, %s6302_s24   ;;  %s6302_s24 = sphi %s6352_s24, %s22_s24   ;;  %s6298_s23 = sphi %s6350_s23, %s8322_s23   ;;  %s6294_s22 = sphi %s6348_s22, %s8321_s22   ;;  %s6290_s21 = sphi %s6346_s21, %s8320_s21   ;;  %s6286_s20 = sphi %s6344_s20, %s8319_s20   ;;  %s6282_s19 = sphi %s6342_s19, %s8309_s19   ;;  %s6278_s18 = sphi %s6340_s18, %s8318_s18   ;;  %s6274_s17 = sphi %s6338_s17, %s8317_s17   ;;  %s6270_s16 = sphi %s6336_s16, %s8316_s16   ;;  %s6266_s15 = sphi %s6334_s15, %s8315_s15   ;;  %s6262_s14 = sphi %s6332_s14, %s8314_s14   ;;  %s6258_s13 = sphi %s6330_s13, %s8313_s13   ;;  %s6254_s12 = sphi %s6328_s12, %s8312_s12  }
   0xf   : > { %8277 = sst [smem:[#allocation14_spill]] %s6282_s19  ;;  %s34_s27 = sadd.s32 1, %s6294_s22 }
  0x10   : > { %s37_s28 = sadd.s32 1, %s6298_s23  ;;  %p35_p0 = scmp.ge.s32.totalorder %s34_s27, 8 }
  0x11   : > { %s50_s29 = sadd.s32 1, %s6282_s19  ;;  %p57_p1 = scmp.ne.s32.totalorder %s6282_s19, %s6278_s18 }
  0x12   : > { %p58_p2 = scmp.eq.s32.totalorder %s6302_s24, 0  ;;  %s8324_s27 = smov (%p35_p0, %s34_s27), 0 }
  0x13   : > { %8278 = sst [smem:[#allocation15_spill]] %s8324_s27  ;;  %s8326_s28 = smov (!%p35_p0, %s37_s28), %s6298_s23 }
  0x14   : > { %s46_s30 = ssub.s32 %s6294_s22, %s8324_s27  ;;  %p6406_p3 = por %p58_p2, %p57_p1 }
  0x15   : > { %p39_p4 = scmp.ge.s32.totalorder %s8326_s28, 2  ;;  %p48_p5 = scmp.eq.s32.totalorder %s46_s30, 0 }
  0x16   : > { %p63_p6 = scmp.ne.s32.totalorder %s6278_s18, %s6274_s17  ;;  %p6413_p7 = scmp.eq.s32.totalorder %s8262_s25, 0 }
  0x17   : > { %s8328_s28 = smov (%p39_p4, %s8326_s28), 0  ;;  %s78_s10 = sadd.s32 1, %s6270_s16 }
  0x18   : > { %8281 = sst [smem:[#allocation16_spill]] %s8328_s28  ;;  %p6424_p8 = por %p6413_p7, %p63_p6 }
  0x19   : > { %s6420_s6 = scalar_select %p48_p5, %s6282_s19, %s50_s29  }
  0x1a   : > { %s8283_s7 = scalar_select %p6424_p8, 1, 0 }
  0x1b   : > { %8282 = sst [smem:[#allocation17_spill]] %s6420_s6  ;;  %s74_s8 = ssub.s32 %s6298_s23, %s8328_s28 }
  0x1c   : > { %s75_s9 = sor.u32 %s74_s8, %s46_s30  ;;  %p85_p10 = scmp.ne.s32.totalorder %s6270_s16, %s6266_s15 }
  0x1d   : > { %p76_p9 = scmp.eq.s32.totalorder %s75_s9, 0  ;;  %p102_p11 = scmp.eq.s32.totalorder %s74_s8, 0 }
  0x1e   : > { %s104_s11 = sadd.s32 1, %s6262_s14  ;;  %p6439_p12 = por %p85_p10, %p58_p2 }
  0x1f   : > { %s6435_s17 = scalar_select %p76_p9, %s6270_s16, %s78_s10  }
  0x20   : > { %s8285_s29 = scalar_select %p6439_p12, 1, 0 }
  0x21   : > { %8284 = sst [smem:[#allocation18_spill]] %s6435_s17  ;;  %p111_p13 = scmp.ne.s32.totalorder %s6262_s14, %s6258_s13 }
  0x22   : > { %s6446_s26 = scalar_select %p102_p11, %s6262_s14, %s104_s11  }
  0x23   : > { %p6450_p0 = por %p111_p13, %p58_p2  ;;  %p117_p1 = scmp.ne.s32.totalorder %s6258_s13, %s6254_s12 }
  0x24   : > { %8286 = sst [smem:[#allocation19_spill]] %s6446_s26  ;;  %s8288_s30 = sadd.s32 4294967295, %s6302_s24  }
  0x25   : > { %s8287_s25 = scalar_select %p6450_p0, 1, 0 }
  0x26   : > { %p143_p4 = scmp.eq.s32.totalorder %s8288_s30, 15  ;;  %s8289_s8 = sadd.s32 4294967294, %s6302_s24  }
  0x27   : > { %p149_p5 = scmp.eq.s32.totalorder %s8289_s8, 15  ;;  %p6462_p6 = por %p117_p1, %p6413_p7 }
  0x28   : > { %p6466_p9 = por %p143_p4, %p111_p13  ;;  %p5440_p2 = scmp.ge.s32.totalorder %s6302_s24, 16 }
  0x29   : > { %s8290_s9 = scalar_select %p6462_p6, 1, 0 }
  0x2a   : > { %s8291_s10 = scalar_select %p6466_p9, 1, 0 }
  0x2b   : > { %p6470_p10 = por %p149_p5, %p117_p1  ;;  %165 = sbr.rel (%p5440_p2) target bundleno = 361 (0x169), region = 16 }
  0x2c   : > { %8292 = sst [smem:[#allocation20_spill]] %s8291_s10  ;;  %s169_s30 = sand.u32 (!%p5440_p2), 1, %s6282_s19  }
  0x2d   : > { %s8293_s11 = scalar_select %p6470_p10, 1, 0 }
  0x2e   : > { %s5980_s5 = sshll.u32 (!%p5440_p2), %s6294_s22, 8  ;;  %s5441_s8 = sshll.u32 (!%p5440_p2), %s169_s30, 4 }
  0x2f   : > { %8294 = sst [smem:[#allocation21_spill]] %s8293_s11  ;;  %s6480_s6 = scalar_lea.hbm (!%p5440_p2), %s8258_s0, %s5980_s5 }
  0x30   : > { %s173_s17 = scalar_lea.vmem (!%p5440_p2), [#allocation3], %s5441_s8  ;;  %s170_s11 = scalar_lea.sflag (!%p5440_p2), [#allocation4], %s169_s30 }
  0x31   : > { %s183_s26 = sshll.u32 (!%p5440_p2), %s173_s17, 4  ;;  %s6104_s12 = scalar_lea.hbm (!%p5440_p2), %s6480_s6, 256  ;;  %s184_s26 = int_to_ptr.vmem [resolvable:$true] %s183_s26 }
  0x32   : > { %p6105_p7 = scmp.ne.s32.totalorder %s6480_s6, %s6104_s12  ;;  %s6108_s10 = scalar_lea.hbm %s8258_s0, 2048 }
  0x33   : > { %p6109_p1 = scmp.lt.u32.totalorder %s6480_s6, %s8258_s0  ;;  %p6110_p4 = scmp.lt.u32.totalorder %s6108_s10, %s6104_s12 }
  0x34   : > { %p6106_p11 = pnand %p6105_p7, %p6406_p3  ;;  %p6112_p2 = scmp.lt.u32.totalorder %s6104_s12, %s6480_s6 }
  0x35   : > { %p6111_p5 = por %p6110_p4, %p6109_p1 }
  0x36   : > { %p6107_p13 = pneg %p6106_p11 }
  0x37   : > { %p6113_p10 = por %p6112_p2, %p6111_p5 }
  0x39   : > { %p6114_p9 = pnand %p6113_p10, %p6107_p13 }
  0x3b   : > { %6117 = shalt.err (!%p6114_p9)
}
  0x3c   : > { %s6118_s17 = scalar_lea.vmem %s184_s26, 256  ;;  %s6304_s30 = smov [#allocation3]  }
  0x3d   : > { %p6119_p6 = scmp.ne.s32.totalorder %s184_s26, %s6118_s17  ;;  %s6122_s5 = sshll.u32 %s6304_s30, 4  ;;  %s6123_s5 = int_to_ptr.vmem [resolvable:$false] %s6122_s5 }
  0x3e   : > { %s6124_s3 = scalar_lea.vmem %s6123_s5, 512  ;;  %p6125_p8 = scmp.lt.s32.totalorder %s184_s26, %s6123_s5 }
  0x3f   : > { %p6120_p7 = pnand %p6119_p6, %p6406_p3  ;;  %p6126_p0 = scmp.lt.s32.totalorder %s6124_s3, %s6118_s17 }
  0x41   : > { %p6121_p11 = pneg %p6120_p7  ;;  %p6127_p12 = por %p6126_p0, %p6125_p8 }
  0x43   : > { %p6128_p1 = pnand %p6127_p12, %p6121_p11 }
  0x45   : > { %6131 = shalt.err (!%p6128_p1)
}
  0x46   : > { %5984 = dma.hbm_to_vmem [thread:$0]  (%p6406_p3), %s6480_s6, 256, %s184_s26, %s170_s11  }
  0x47   : > { %p8295_p9 = scmp.ne.s32.totalorder %s8285_s29, 0 }
  0x48   : > { %s191_s12 = sand.u32 (%p8295_p9), 1, %s6270_s16   ;;  %s5446_s19 = sshll.u32 (%p8295_p9), %s6298_s23, 4 }
  0x49   : > { %189 = sbr.rel (!%p8295_p9) target bundleno = 335 (0x14f), region = 24  ;;  %s5444_s10 = sshll.u32 (%p8295_p9), %s191_s12, 12 }
  0x4a   : > { %s5981_s8 = sshll.u32 (%p8295_p9), %s6294_s22, 11  ;;  %s6512_s26 = scalar_lea.vmem (%p8295_p9), [#allocation6], %s5444_s10 }
  0x4b   : > { %s197_s27 = sadd.s32 (%p8295_p9), %s5981_s8, %s5446_s19 }
  0x4c   : > { %s5448_s28 = sshll.u32 (%p8295_p9), %s197_s27, 2 }
  0x4d   : > { %s6507_s5 = scalar_lea.vmem (%p8295_p9), %s8259_s1, %s5448_s28 }
  0x4e   : > { %v212_v0 = vld [vmem:[%s6507_s5] sm:$0xff] (%p8295_p9)  ;;  %v214_v1 = vld [vmem:[%s6507_s5 + $0x8] sm:$0xff] (%p8295_p9)  ;;  %v216_v2 = vld [vmem:[%s6507_s5 + $0x10] sm:$0xff] (%p8295_p9) }
  0x4f   : > { %213 = vst [vmem:[%s6512_s26] sm:$0xff] (%p8295_p9), %v212_v0  ;;  %215 = vst [vmem:[%s6512_s26 + $0x8] sm:$0xff] (%p8295_p9), %v214_v1  ;;  %v218_v3 = vld [vmem:[%s6507_s5 + $0x18] sm:$0xff] (%p8295_p9)  ;;  %v220_v4 = vld [vmem:[%s6507_s5 + $0x20] sm:$0xff] (%p8295_p9) }
  0x50   : > { %217 = vst [vmem:[%s6512_s26 + $0x10] sm:$0xff] %v216_v2  ;;  %v222_v5 = vld [vmem:[%s6507_s5 + $0x28] sm:$0xff]  ;;  %219 = vst [vmem:[%s6512_s26 + $0x18] sm:$0xff] %v218_v3  ;;  %v224_v6 = vld [vmem:[%s6507_s5 + $0x30] sm:$0xff] }
  0x51   : > { %221 = vst [vmem:[%s6512_s26 + $0x20] sm:$0xff] %v220_v4  ;;  %223 = vst [vmem:[%s6512_s26 + $0x28] sm:$0xff] %v222_v5  ;;  %v226_v7 = vld [vmem:[%s6507_s5 + $0x38] sm:$0xff]  ;;  %v228_v8 = vld [vmem:[%s6507_s5 + $0x80] sm:$0xff] }
  0x52   : > { %225 = vst [vmem:[%s6512_s26 + $0x30] sm:$0xff] %v224_v6  ;;  %227 = vst [vmem:[%s6512_s26 + $0x38] sm:$0xff] %v226_v7  ;;  %v230_v9 = vld [vmem:[%s6507_s5 + $0x88] sm:$0xff]  ;;  %v232_v10 = vld [vmem:[%s6507_s5 + $0x90] sm:$0xff] }
  0x53   : > { %229 = vst [vmem:[%s6512_s26 + $0x40] sm:$0xff] %v228_v8  ;;  %v234_v11 = vld [vmem:[%s6507_s5 + $0x98] sm:$0xff]  ;;  %231 = vst [vmem:[%s6512_s26 + $0x48] sm:$0xff] %v230_v9  ;;  %v236_v12 = vld [vmem:[%s6507_s5 + $0xa0] sm:$0xff] }
  0x54   : > { %233 = vst [vmem:[%s6512_s26 + $0x50] sm:$0xff] %v232_v10  ;;  %235 = vst [vmem:[%s6512_s26 + $0x58] sm:$0xff] %v234_v11  ;;  %v238_v13 = vld [vmem:[%s6507_s5 + $0xa8] sm:$0xff]  ;;  %v240_v14 = vld [vmem:[%s6507_s5 + $0xb0] sm:$0xff] }
  0x55   : > { %237 = vst [vmem:[%s6512_s26 + $0x60] sm:$0xff] %v236_v12  ;;  %239 = vst [vmem:[%s6512_s26 + $0x68] sm:$0xff] %v238_v13  ;;  %v242_v15 = vld [vmem:[%s6507_s5 + $0xb8] sm:$0xff]  ;;  %v244_v16 = vld [vmem:[%s6507_s5 + $0x100] sm:$0xff] }
  0x56   : > { %241 = vst [vmem:[%s6512_s26 + $0x70] sm:$0xff] %v240_v14  ;;  %v246_v17 = vld [vmem:[%s6507_s5 + $0x108] sm:$0xff]  ;;  %243 = vst [vmem:[%s6512_s26 + $0x78] sm:$0xff] %v242_v15  ;;  %v248_v18 = vld [vmem:[%s6507_s5 + $0x110] sm:$0xff] }
  0x57   : > { %245 = vst [vmem:[%s6512_s26 + $0x80] sm:$0xff] %v244_v16  ;;  %247 = vst [vmem:[%s6512_s26 + $0x88] sm:$0xff] %v246_v17  ;;  %v250_v19 = vld [vmem:[%s6507_s5 + $0x118] sm:$0xff]  ;;  %v252_v20 = vld [vmem:[%s6507_s5 + $0x120] sm:$0xff] }
  0x58   : > { %249 = vst [vmem:[%s6512_s26 + $0x90] sm:$0xff] %v248_v18  ;;  %251 = vst [vmem:[%s6512_s26 + $0x98] sm:$0xff] %v250_v19  ;;  %v254_v21 = vld [vmem:[%s6507_s5 + $0x128] sm:$0xff]  ;;  %v256_v22 = vld [vmem:[%s6507_s5 + $0x130] sm:$0xff] }
  0x59   : > { %253 = vst [vmem:[%s6512_s26 + $0xa0] sm:$0xff] %v252_v20  ;;  %v258_v23 = vld [vmem:[%s6507_s5 + $0x138] sm:$0xff]  ;;  %255 = vst [vmem:[%s6512_s26 + $0xa8] sm:$0xff] %v254_v21  ;;  %v260_v24 = vld [vmem:[%s6507_s5 + $0x180] sm:$0xff] }
  0x5a   : > { %257 = vst [vmem:[%s6512_s26 + $0xb0] sm:$0xff] %v256_v22  ;;  %259 = vst [vmem:[%s6512_s26 + $0xb8] sm:$0xff] %v258_v23  ;;  %v262_v25 = vld [vmem:[%s6507_s5 + $0x188] sm:$0xff]  ;;  %v264_v26 = vld [vmem:[%s6507_s5 + $0x190] sm:$0xff] }
  0x5b   : > { %261 = vst [vmem:[%s6512_s26 + $0xc0] sm:$0xff] %v260_v24  ;;  %263 = vst [vmem:[%s6512_s26 + $0xc8] sm:$0xff] %v262_v25  ;;  %v266_v27 = vld [vmem:[%s6507_s5 + $0x198] sm:$0xff]  ;;  %v268_v28 = vld [vmem:[%s6507_s5 + $0x1a0] sm:$0xff] }
  0x5c   : > { %265 = vst [vmem:[%s6512_s26 + $0xd0] sm:$0xff] %v264_v26  ;;  %v270_v29 = vld [vmem:[%s6507_s5 + $0x1a8] sm:$0xff]  ;;  %267 = vst [vmem:[%s6512_s26 + $0xd8] sm:$0xff] %v266_v27  ;;  %v272_v30 = vld [vmem:[%s6507_s5 + $0x1b0] sm:$0xff] }
  0x5d   : > { %269 = vst [vmem:[%s6512_s26 + $0xe0] sm:$0xff] %v268_v28  ;;  %271 = vst [vmem:[%s6512_s26 + $0xe8] sm:$0xff] %v270_v29  ;;  %v274_v31 = vld [vmem:[%s6507_s5 + $0x1b8] sm:$0xff]  ;;  %v276_v32 = vld [vmem:[%s6507_s5 + $0x200] sm:$0xff] }
  0x5e   : > { %273 = vst [vmem:[%s6512_s26 + $0xf0] sm:$0xff] %v272_v30  ;;  %275 = vst [vmem:[%s6512_s26 + $0xf8] sm:$0xff] %v274_v31  ;;  %v278_v33 = vld [vmem:[%s6507_s5 + $0x208] sm:$0xff]  ;;  %v280_v34 = vld [vmem:[%s6507_s5 + $0x210] sm:$0xff] }
  0x5f   : > { %277 = vst [vmem:[%s6512_s26 + $0x100] sm:$0xff] %v276_v32  ;;  %v282_v35 = vld [vmem:[%s6507_s5 + $0x218] sm:$0xff]  ;;  %279 = vst [vmem:[%s6512_s26 + $0x108] sm:$0xff] %v278_v33  ;;  %v284_v36 = vld [vmem:[%s6507_s5 + $0x220] sm:$0xff] }
  0x60   : > { %281 = vst [vmem:[%s6512_s26 + $0x110] sm:$0xff] %v280_v34  ;;  %283 = vst [vmem:[%s6512_s26 + $0x118] sm:$0xff] %v282_v35  ;;  %v286_v37 = vld [vmem:[%s6507_s5 + $0x228] sm:$0xff]  ;;  %v288_v38 = vld [vmem:[%s6507_s5 + $0x230] sm:$0xff] }
  0x61   : > { %285 = vst [vmem:[%s6512_s26 + $0x120] sm:$0xff] %v284_v36  ;;  %287 = vst [vmem:[%s6512_s26 + $0x128] sm:$0xff] %v286_v37  ;;  %v290_v39 = vld [vmem:[%s6507_s5 + $0x238] sm:$0xff]  ;;  %v292_v40 = vld [vmem:[%s6507_s5 + $0x280] sm:$0xff] }
  0x62   : > { %289 = vst [vmem:[%s6512_s26 + $0x130] sm:$0xff] %v288_v38  ;;  %v294_v41 = vld [vmem:[%s6507_s5 + $0x288] sm:$0xff]  ;;  %291 = vst [vmem:[%s6512_s26 + $0x138] sm:$0xff] %v290_v39  ;;  %v296_v42 = vld [vmem:[%s6507_s5 + $0x290] sm:$0xff] }
  0x63   : > { %293 = vst [vmem:[%s6512_s26 + $0x140] sm:$0xff] %v292_v40  ;;  %295 = vst [vmem:[%s6512_s26 + $0x148] sm:$0xff] %v294_v41  ;;  %v298_v43 = vld [vmem:[%s6507_s5 + $0x298] sm:$0xff]  ;;  %v300_v44 = vld [vmem:[%s6507_s5 + $0x2a0] sm:$0xff] }
  0x64   : > { %297 = vst [vmem:[%s6512_s26 + $0x150] sm:$0xff] %v296_v42  ;;  %299 = vst [vmem:[%s6512_s26 + $0x158] sm:$0xff] %v298_v43  ;;  %v302_v45 = vld [vmem:[%s6507_s5 + $0x2a8] sm:$0xff]  ;;  %v304_v46 = vld [vmem:[%s6507_s5 + $0x2b0] sm:$0xff] }
  0x65   : > { %301 = vst [vmem:[%s6512_s26 + $0x160] sm:$0xff] %v300_v44  ;;  %v306_v47 = vld [vmem:[%s6507_s5 + $0x2b8] sm:$0xff]  ;;  %303 = vst [vmem:[%s6512_s26 + $0x168] sm:$0xff] %v302_v45  ;;  %v308_v48 = vld [vmem:[%s6507_s5 + $0x300] sm:$0xff] }
  0x66   : > { %305 = vst [vmem:[%s6512_s26 + $0x170] sm:$0xff] %v304_v46  ;;  %307 = vst [vmem:[%s6512_s26 + $0x178] sm:$0xff] %v306_v47  ;;  %v310_v49 = vld [vmem:[%s6507_s5 + $0x308] sm:$0xff]  ;;  %v312_v50 = vld [vmem:[%s6507_s5 + $0x310] sm:$0xff] }
  0x67   : > { %309 = vst [vmem:[%s6512_s26 + $0x180] sm:$0xff] %v308_v48  ;;  %311 = vst [vmem:[%s6512_s26 + $0x188] sm:$0xff] %v310_v49  ;;  %v314_v51 = vld [vmem:[%s6507_s5 + $0x318] sm:$0xff]  ;;  %v316_v52 = vld [vmem:[%s6507_s5 + $0x320] sm:$0xff] }
  0x68   : > { %313 = vst [vmem:[%s6512_s26 + $0x190] sm:$0xff] %v312_v50  ;;  %v318_v53 = vld [vmem:[%s6507_s5 + $0x328] sm:$0xff]  ;;  %315 = vst [vmem:[%s6512_s26 + $0x198] sm:$0xff] %v314_v51  ;;  %v320_v54 = vld [vmem:[%s6507_s5 + $0x330] sm:$0xff] }
  0x69   : > { %317 = vst [vmem:[%s6512_s26 + $0x1a0] sm:$0xff] %v316_v52  ;;  %319 = vst [vmem:[%s6512_s26 + $0x1a8] sm:$0xff] %v318_v53  ;;  %v322_v55 = vld [vmem:[%s6507_s5 + $0x338] sm:$0xff]  ;;  %v324_v56 = vld [vmem:[%s6507_s5 + $0x380] sm:$0xff] }
  0x6a   : > { %321 = vst [vmem:[%s6512_s26 + $0x1b0] sm:$0xff] %v320_v54  ;;  %323 = vst [vmem:[%s6512_s26 + $0x1b8] sm:$0xff] %v322_v55  ;;  %v326_v57 = vld [vmem:[%s6507_s5 + $0x388] sm:$0xff]  ;;  %v328_v58 = vld [vmem:[%s6507_s5 + $0x390] sm:$0xff] }
  0x6b   : > { %325 = vst [vmem:[%s6512_s26 + $0x1c0] sm:$0xff] %v324_v56  ;;  %v330_v59 = vld [vmem:[%s6507_s5 + $0x398] sm:$0xff]  ;;  %327 = vst [vmem:[%s6512_s26 + $0x1c8] sm:$0xff] %v326_v57  ;;  %v332_v60 = vld [vmem:[%s6507_s5 + $0x3a0] sm:$0xff] }
  0x6c   : > { %329 = vst [vmem:[%s6512_s26 + $0x1d0] sm:$0xff] %v328_v58  ;;  %331 = vst [vmem:[%s6512_s26 + $0x1d8] sm:$0xff] %v330_v59  ;;  %v334_v61 = vld [vmem:[%s6507_s5 + $0x3a8] sm:$0xff]  ;;  %v336_v62 = vld [vmem:[%s6507_s5 + $0x3b0] sm:$0xff] }
  0x6d   : > { %333 = vst [vmem:[%s6512_s26 + $0x1e0] sm:$0xff] %v332_v60  ;;  %335 = vst [vmem:[%s6512_s26 + $0x1e8] sm:$0xff] %v334_v61  ;;  %v338_v63 = vld [vmem:[%s6507_s5 + $0x3b8] sm:$0xff]  ;;  %v340_v0 = vld [vmem:[%s6507_s5 + $0x400] sm:$0xff] }
  0x6e   : > { %337 = vst [vmem:[%s6512_s26 + $0x1f0] sm:$0xff] %v336_v62  ;;  %v342_v1 = vld [vmem:[%s6507_s5 + $0x408] sm:$0xff]  ;;  %339 = vst [vmem:[%s6512_s26 + $0x1f8] sm:$0xff] %v338_v63  ;;  %v344_v2 = vld [vmem:[%s6507_s5 + $0x410] sm:$0xff] }
  0x6f   : > { %341 = vst [vmem:[%s6512_s26 + $0x200] sm:$0xff] %v340_v0  ;;  %343 = vst [vmem:[%s6512_s26 + $0x208] sm:$0xff] %v342_v1  ;;  %v346_v3 = vld [vmem:[%s6507_s5 + $0x418] sm:$0xff]  ;;  %v348_v4 = vld [vmem:[%s6507_s5 + $0x420] sm:$0xff] }
  0x70   : > { %345 = vst [vmem:[%s6512_s26 + $0x210] sm:$0xff] %v344_v2  ;;  %347 = vst [vmem:[%s6512_s26 + $0x218] sm:$0xff] %v346_v3  ;;  %v350_v5 = vld [vmem:[%s6507_s5 + $0x428] sm:$0xff]  ;;  %v352_v6 = vld [vmem:[%s6507_s5 + $0x430] sm:$0xff] }
  0x71   : > { %349 = vst [vmem:[%s6512_s26 + $0x220] sm:$0xff] %v348_v4  ;;  %v354_v7 = vld [vmem:[%s6507_s5 + $0x438] sm:$0xff]  ;;  %351 = vst [vmem:[%s6512_s26 + $0x228] sm:$0xff] %v350_v5  ;;  %v356_v8 = vld [vmem:[%s6507_s5 + $0x480] sm:$0xff] }
  0x72   : > { %353 = vst [vmem:[%s6512_s26 + $0x230] sm:$0xff] %v352_v6  ;;  %355 = vst [vmem:[%s6512_s26 + $0x238] sm:$0xff] %v354_v7  ;;  %v358_v9 = vld [vmem:[%s6507_s5 + $0x488] sm:$0xff]  ;;  %v360_v10 = vld [vmem:[%s6507_s5 + $0x490] sm:$0xff] }
  0x73   : > { %357 = vst [vmem:[%s6512_s26 + $0x240] sm:$0xff] %v356_v8  ;;  %359 = vst [vmem:[%s6512_s26 + $0x248] sm:$0xff] %v358_v9  ;;  %v362_v11 = vld [vmem:[%s6507_s5 + $0x498] sm:$0xff]  ;;  %v364_v12 = vld [vmem:[%s6507_s5 + $0x4a0] sm:$0xff] }
  0x74   : > { %361 = vst [vmem:[%s6512_s26 + $0x250] sm:$0xff] %v360_v10  ;;  %v366_v13 = vld [vmem:[%s6507_s5 + $0x4a8] sm:$0xff]  ;;  %363 = vst [vmem:[%s6512_s26 + $0x258] sm:$0xff] %v362_v11  ;;  %v368_v14 = vld [vmem:[%s6507_s5 + $0x4b0] sm:$0xff] }
  0x75   : > { %365 = vst [vmem:[%s6512_s26 + $0x260] sm:$0xff] %v364_v12  ;;  %367 = vst [vmem:[%s6512_s26 + $0x268] sm:$0xff] %v366_v13  ;;  %v370_v15 = vld [vmem:[%s6507_s5 + $0x4b8] sm:$0xff]  ;;  %v372_v16 = vld [vmem:[%s6507_s5 + $0x500] sm:$0xff] }
  0x76   : > { %369 = vst [vmem:[%s6512_s26 + $0x270] sm:$0xff] %v368_v14  ;;  %371 = vst [vmem:[%s6512_s26 + $0x278] sm:$0xff] %v370_v15  ;;  %v374_v17 = vld [vmem:[%s6507_s5 + $0x508] sm:$0xff]  ;;  %v376_v18 = vld [vmem:[%s6507_s5 + $0x510] sm:$0xff] }
  0x77   : > { %373 = vst [vmem:[%s6512_s26 + $0x280] sm:$0xff] %v372_v16  ;;  %v378_v19 = vld [vmem:[%s6507_s5 + $0x518] sm:$0xff]  ;;  %375 = vst [vmem:[%s6512_s26 + $0x288] sm:$0xff] %v374_v17  ;;  %v380_v20 = vld [vmem:[%s6507_s5 + $0x520] sm:$0xff] }
  0x78   : > { %377 = vst [vmem:[%s6512_s26 + $0x290] sm:$0xff] %v376_v18  ;;  %379 = vst [vmem:[%s6512_s26 + $0x298] sm:$0xff] %v378_v19  ;;  %v382_v21 = vld [vmem:[%s6507_s5 + $0x528] sm:$0xff]  ;;  %v384_v22 = vld [vmem:[%s6507_s5 + $0x530] sm:$0xff] }
  0x79   : > { %381 = vst [vmem:[%s6512_s26 + $0x2a0] sm:$0xff] %v380_v20  ;;  %383 = vst [vmem:[%s6512_s26 + $0x2a8] sm:$0xff] %v382_v21  ;;  %v386_v23 = vld [vmem:[%s6507_s5 + $0x538] sm:$0xff]  ;;  %v388_v24 = vld [vmem:[%s6507_s5 + $0x580] sm:$0xff] }
  0x7a   : > { %385 = vst [vmem:[%s6512_s26 + $0x2b0] sm:$0xff] %v384_v22  ;;  %v390_v25 = vld [vmem:[%s6507_s5 + $0x588] sm:$0xff]  ;;  %387 = vst [vmem:[%s6512_s26 + $0x2b8] sm:$0xff] %v386_v23  ;;  %v392_v26 = vld [vmem:[%s6507_s5 + $0x590] sm:$0xff] }
  0x7b   : > { %389 = vst [vmem:[%s6512_s26 + $0x2c0] sm:$0xff] %v388_v24  ;;  %391 = vst [vmem:[%s6512_s26 + $0x2c8] sm:$0xff] %v390_v25  ;;  %v394_v27 = vld [vmem:[%s6507_s5 + $0x598] sm:$0xff]  ;;  %v396_v28 = vld [vmem:[%s6507_s5 + $0x5a0] sm:$0xff] }
  0x7c   : > { %393 = vst [vmem:[%s6512_s26 + $0x2d0] sm:$0xff] %v392_v26  ;;  %395 = vst [vmem:[%s6512_s26 + $0x2d8] sm:$0xff] %v394_v27  ;;  %v398_v29 = vld [vmem:[%s6507_s5 + $0x5a8] sm:$0xff]  ;;  %v400_v30 = vld [vmem:[%s6507_s5 + $0x5b0] sm:$0xff] }
  0x7d   : > { %397 = vst [vmem:[%s6512_s26 + $0x2e0] sm:$0xff] %v396_v28  ;;  %v402_v31 = vld [vmem:[%s6507_s5 + $0x5b8] sm:$0xff]  ;;  %399 = vst [vmem:[%s6512_s26 + $0x2e8] sm:$0xff] %v398_v29  ;;  %v404_v32 = vld [vmem:[%s6507_s5 + $0x600] sm:$0xff] }
  0x7e   : > { %401 = vst [vmem:[%s6512_s26 + $0x2f0] sm:$0xff] %v400_v30  ;;  %403 = vst [vmem:[%s6512_s26 + $0x2f8] sm:$0xff] %v402_v31  ;;  %v406_v33 = vld [vmem:[%s6507_s5 + $0x608] sm:$0xff]  ;;  %v408_v34 = vld [vmem:[%s6507_s5 + $0x610] sm:$0xff] }
  0x7f   : > { %405 = vst [vmem:[%s6512_s26 + $0x300] sm:$0xff] %v404_v32  ;;  %407 = vst [vmem:[%s6512_s26 + $0x308] sm:$0xff] %v406_v33  ;;  %v410_v35 = vld [vmem:[%s6507_s5 + $0x618] sm:$0xff]  ;;  %v412_v36 = vld [vmem:[%s6507_s5 + $0x620] sm:$0xff] }
  0x80   : > { %409 = vst [vmem:[%s6512_s26 + $0x310] sm:$0xff] %v408_v34  ;;  %v414_v37 = vld [vmem:[%s6507_s5 + $0x628] sm:$0xff]  ;;  %411 = vst [vmem:[%s6512_s26 + $0x318] sm:$0xff] %v410_v35  ;;  %v416_v38 = vld [vmem:[%s6507_s5 + $0x630] sm:$0xff] }
  0x81   : > { %413 = vst [vmem:[%s6512_s26 + $0x320] sm:$0xff] %v412_v36  ;;  %415 = vst [vmem:[%s6512_s26 + $0x328] sm:$0xff] %v414_v37  ;;  %v418_v39 = vld [vmem:[%s6507_s5 + $0x638] sm:$0xff]  ;;  %v420_v40 = vld [vmem:[%s6507_s5 + $0x680] sm:$0xff] }
  0x82   : > { %417 = vst [vmem:[%s6512_s26 + $0x330] sm:$0xff] %v416_v38  ;;  %419 = vst [vmem:[%s6512_s26 + $0x338] sm:$0xff] %v418_v39  ;;  %v422_v41 = vld [vmem:[%s6507_s5 + $0x688] sm:$0xff]  ;;  %v424_v42 = vld [vmem:[%s6507_s5 + $0x690] sm:$0xff] }
  0x83   : > { %421 = vst [vmem:[%s6512_s26 + $0x340] sm:$0xff] %v420_v40  ;;  %v426_v43 = vld [vmem:[%s6507_s5 + $0x698] sm:$0xff]  ;;  %423 = vst [vmem:[%s6512_s26 + $0x348] sm:$0xff] %v422_v41  ;;  %v428_v44 = vld [vmem:[%s6507_s5 + $0x6a0] sm:$0xff] }
  0x84   : > { %425 = vst [vmem:[%s6512_s26 + $0x350] sm:$0xff] %v424_v42  ;;  %427 = vst [vmem:[%s6512_s26 + $0x358] sm:$0xff] %v426_v43  ;;  %v430_v45 = vld [vmem:[%s6507_s5 + $0x6a8] sm:$0xff]  ;;  %v432_v46 = vld [vmem:[%s6507_s5 + $0x6b0] sm:$0xff] }
  0x85   : > { %429 = vst [vmem:[%s6512_s26 + $0x360] sm:$0xff] %v428_v44  ;;  %431 = vst [vmem:[%s6512_s26 + $0x368] sm:$0xff] %v430_v45  ;;  %v434_v47 = vld [vmem:[%s6507_s5 + $0x6b8] sm:$0xff]  ;;  %v436_v48 = vld [vmem:[%s6507_s5 + $0x700] sm:$0xff] }
  0x86   : > { %433 = vst [vmem:[%s6512_s26 + $0x370] sm:$0xff] %v432_v46  ;;  %v438_v49 = vld [vmem:[%s6507_s5 + $0x708] sm:$0xff]  ;;  %435 = vst [vmem:[%s6512_s26 + $0x378] sm:$0xff] %v434_v47  ;;  %v440_v50 = vld [vmem:[%s6507_s5 + $0x710] sm:$0xff] }
  0x87   : > { %437 = vst [vmem:[%s6512_s26 + $0x380] sm:$0xff] %v436_v48  ;;  %439 = vst [vmem:[%s6512_s26 + $0x388] sm:$0xff] %v438_v49  ;;  %v442_v51 = vld [vmem:[%s6507_s5 + $0x718] sm:$0xff]  ;;  %v444_v52 = vld [vmem:[%s6507_s5 + $0x720] sm:$0xff] }
  0x88   : > { %441 = vst [vmem:[%s6512_s26 + $0x390] sm:$0xff] %v440_v50  ;;  %443 = vst [vmem:[%s6512_s26 + $0x398] sm:$0xff] %v442_v51  ;;  %v446_v53 = vld [vmem:[%s6507_s5 + $0x728] sm:$0xff]  ;;  %v448_v54 = vld [vmem:[%s6507_s5 + $0x730] sm:$0xff] }
  0x89   : > { %445 = vst [vmem:[%s6512_s26 + $0x3a0] sm:$0xff] %v444_v52  ;;  %v450_v55 = vld [vmem:[%s6507_s5 + $0x738] sm:$0xff]  ;;  %447 = vst [vmem:[%s6512_s26 + $0x3a8] sm:$0xff] %v446_v53  ;;  %v452_v56 = vld [vmem:[%s6507_s5 + $0x780] sm:$0xff] }
  0x8a   : > { %449 = vst [vmem:[%s6512_s26 + $0x3b0] sm:$0xff] %v448_v54  ;;  %451 = vst [vmem:[%s6512_s26 + $0x3b8] sm:$0xff] %v450_v55  ;;  %v454_v57 = vld [vmem:[%s6507_s5 + $0x788] sm:$0xff]  ;;  %v456_v58 = vld [vmem:[%s6507_s5 + $0x790] sm:$0xff] }
  0x8b   : > { %453 = vst [vmem:[%s6512_s26 + $0x3c0] sm:$0xff] %v452_v56  ;;  %455 = vst [vmem:[%s6512_s26 + $0x3c8] sm:$0xff] %v454_v57  ;;  %v458_v59 = vld [vmem:[%s6507_s5 + $0x798] sm:$0xff]  ;;  %v460_v60 = vld [vmem:[%s6507_s5 + $0x7a0] sm:$0xff] }
  0x8c   : > { %457 = vst [vmem:[%s6512_s26 + $0x3d0] sm:$0xff] %v456_v58  ;;  %v462_v61 = vld [vmem:[%s6507_s5 + $0x7a8] sm:$0xff]  ;;  %459 = vst [vmem:[%s6512_s26 + $0x3d8] sm:$0xff] %v458_v59  ;;  %v464_v62 = vld [vmem:[%s6507_s5 + $0x7b0] sm:$0xff] }
  0x8d   : > { %461 = vst [vmem:[%s6512_s26 + $0x3e0] sm:$0xff] %v460_v60  ;;  %463 = vst [vmem:[%s6512_s26 + $0x3e8] sm:$0xff] %v462_v61  ;;  %v466_v63 = vld [vmem:[%s6507_s5 + $0x7b8] sm:$0xff]  ;;  %v468_v0 = vld [vmem:[%s6507_s5 + $0x800] sm:$0xff] }
  0x8e   : > { %465 = vst [vmem:[%s6512_s26 + $0x3f0] sm:$0xff] %v464_v62  ;;  %467 = vst [vmem:[%s6512_s26 + $0x3f8] sm:$0xff] %v466_v63  ;;  %v470_v1 = vld [vmem:[%s6507_s5 + $0x808] sm:$0xff]  ;;  %v472_v2 = vld [vmem:[%s6507_s5 + $0x810] sm:$0xff] }
  0x8f   : > { %469 = vst [vmem:[%s6512_s26 + $0x400] sm:$0xff] %v468_v0  ;;  %v474_v3 = vld [vmem:[%s6507_s5 + $0x818] sm:$0xff]  ;;  %471 = vst [vmem:[%s6512_s26 + $0x408] sm:$0xff] %v470_v1  ;;  %v476_v4 = vld [vmem:[%s6507_s5 + $0x820] sm:$0xff] }
  0x90   : > { %473 = vst [vmem:[%s6512_s26 + $0x410] sm:$0xff] %v472_v2  ;;  %475 = vst [vmem:[%s6512_s26 + $0x418] sm:$0xff] %v474_v3  ;;  %v478_v5 = vld [vmem:[%s6507_s5 + $0x828] sm:$0xff]  ;;  %v480_v6 = vld [vmem:[%s6507_s5 + $0x830] sm:$0xff] }
  0x91   : > { %477 = vst [vmem:[%s6512_s26 + $0x420] sm:$0xff] %v476_v4  ;;  %479 = vst [vmem:[%s6512_s26 + $0x428] sm:$0xff] %v478_v5  ;;  %v482_v7 = vld [vmem:[%s6507_s5 + $0x838] sm:$0xff]  ;;  %v484_v8 = vld [vmem:[%s6507_s5 + $0x880] sm:$0xff] }
  0x92   : > { %481 = vst [vmem:[%s6512_s26 + $0x430] sm:$0xff] %v480_v6  ;;  %v486_v9 = vld [vmem:[%s6507_s5 + $0x888] sm:$0xff]  ;;  %483 = vst [vmem:[%s6512_s26 + $0x438] sm:$0xff] %v482_v7  ;;  %v488_v10 = vld [vmem:[%s6507_s5 + $0x890] sm:$0xff] }
  0x93   : > { %485 = vst [vmem:[%s6512_s26 + $0x440] sm:$0xff] %v484_v8  ;;  %487 = vst [vmem:[%s6512_s26 + $0x448] sm:$0xff] %v486_v9  ;;  %v490_v11 = vld [vmem:[%s6507_s5 + $0x898] sm:$0xff]  ;;  %v492_v12 = vld [vmem:[%s6507_s5 + $0x8a0] sm:$0xff] }
  0x94   : > { %489 = vst [vmem:[%s6512_s26 + $0x450] sm:$0xff] %v488_v10  ;;  %491 = vst [vmem:[%s6512_s26 + $0x458] sm:$0xff] %v490_v11  ;;  %v494_v13 = vld [vmem:[%s6507_s5 + $0x8a8] sm:$0xff]  ;;  %v496_v14 = vld [vmem:[%s6507_s5 + $0x8b0] sm:$0xff] }
  0x95   : > { %493 = vst [vmem:[%s6512_s26 + $0x460] sm:$0xff] %v492_v12  ;;  %v498_v15 = vld [vmem:[%s6507_s5 + $0x8b8] sm:$0xff]  ;;  %495 = vst [vmem:[%s6512_s26 + $0x468] sm:$0xff] %v494_v13  ;;  %v500_v16 = vld [vmem:[%s6507_s5 + $0x900] sm:$0xff] }
  0x96   : > { %497 = vst [vmem:[%s6512_s26 + $0x470] sm:$0xff] %v496_v14  ;;  %499 = vst [vmem:[%s6512_s26 + $0x478] sm:$0xff] %v498_v15  ;;  %v502_v17 = vld [vmem:[%s6507_s5 + $0x908] sm:$0xff]  ;;  %v504_v18 = vld [vmem:[%s6507_s5 + $0x910] sm:$0xff] }
  0x97   : > { %501 = vst [vmem:[%s6512_s26 + $0x480] sm:$0xff] %v500_v16  ;;  %503 = vst [vmem:[%s6512_s26 + $0x488] sm:$0xff] %v502_v17  ;;  %v506_v19 = vld [vmem:[%s6507_s5 + $0x918] sm:$0xff]  ;;  %v508_v20 = vld [vmem:[%s6507_s5 + $0x920] sm:$0xff] }
  0x98   : > { %505 = vst [vmem:[%s6512_s26 + $0x490] sm:$0xff] %v504_v18  ;;  %v510_v21 = vld [vmem:[%s6507_s5 + $0x928] sm:$0xff]  ;;  %507 = vst [vmem:[%s6512_s26 + $0x498] sm:$0xff] %v506_v19  ;;  %v512_v22 = vld [vmem:[%s6507_s5 + $0x930] sm:$0xff] }
  0x99   : > { %509 = vst [vmem:[%s6512_s26 + $0x4a0] sm:$0xff] %v508_v20  ;;  %511 = vst [vmem:[%s6512_s26 + $0x4a8] sm:$0xff] %v510_v21  ;;  %v514_v23 = vld [vmem:[%s6507_s5 + $0x938] sm:$0xff]  ;;  %v516_v24 = vld [vmem:[%s6507_s5 + $0x980] sm:$0xff] }
  0x9a   : > { %513 = vst [vmem:[%s6512_s26 + $0x4b0] sm:$0xff] %v512_v22  ;;  %515 = vst [vmem:[%s6512_s26 + $0x4b8] sm:$0xff] %v514_v23  ;;  %v518_v25 = vld [vmem:[%s6507_s5 + $0x988] sm:$0xff]  ;;  %v520_v26 = vld [vmem:[%s6507_s5 + $0x990] sm:$0xff] }
  0x9b   : > { %517 = vst [vmem:[%s6512_s26 + $0x4c0] sm:$0xff] %v516_v24  ;;  %v522_v27 = vld [vmem:[%s6507_s5 + $0x998] sm:$0xff]  ;;  %519 = vst [vmem:[%s6512_s26 + $0x4c8] sm:$0xff] %v518_v25  ;;  %v524_v28 = vld [vmem:[%s6507_s5 + $0x9a0] sm:$0xff] }
  0x9c   : > { %521 = vst [vmem:[%s6512_s26 + $0x4d0] sm:$0xff] %v520_v26  ;;  %523 = vst [vmem:[%s6512_s26 + $0x4d8] sm:$0xff] %v522_v27  ;;  %v526_v29 = vld [vmem:[%s6507_s5 + $0x9a8] sm:$0xff]  ;;  %v528_v30 = vld [vmem:[%s6507_s5 + $0x9b0] sm:$0xff] }
  0x9d   : > { %525 = vst [vmem:[%s6512_s26 + $0x4e0] sm:$0xff] %v524_v28  ;;  %527 = vst [vmem:[%s6512_s26 + $0x4e8] sm:$0xff] %v526_v29  ;;  %v530_v31 = vld [vmem:[%s6507_s5 + $0x9b8] sm:$0xff]  ;;  %v532_v32 = vld [vmem:[%s6507_s5 + $0xa00] sm:$0xff] }
  0x9e   : > { %529 = vst [vmem:[%s6512_s26 + $0x4f0] sm:$0xff] %v528_v30  ;;  %v534_v33 = vld [vmem:[%s6507_s5 + $0xa08] sm:$0xff]  ;;  %531 = vst [vmem:[%s6512_s26 + $0x4f8] sm:$0xff] %v530_v31  ;;  %v536_v34 = vld [vmem:[%s6507_s5 + $0xa10] sm:$0xff] }
  0x9f   : > { %533 = vst [vmem:[%s6512_s26 + $0x500] sm:$0xff] %v532_v32  ;;  %535 = vst [vmem:[%s6512_s26 + $0x508] sm:$0xff] %v534_v33  ;;  %v538_v35 = vld [vmem:[%s6507_s5 + $0xa18] sm:$0xff]  ;;  %v540_v36 = vld [vmem:[%s6507_s5 + $0xa20] sm:$0xff] }
  0xa0   : > { %537 = vst [vmem:[%s6512_s26 + $0x510] sm:$0xff] %v536_v34  ;;  %539 = vst [vmem:[%s6512_s26 + $0x518] sm:$0xff] %v538_v35  ;;  %v542_v37 = vld [vmem:[%s6507_s5 + $0xa28] sm:$0xff]  ;;  %v544_v38 = vld [vmem:[%s6507_s5 + $0xa30] sm:$0xff] }
  0xa1   : > { %541 = vst [vmem:[%s6512_s26 + $0x520] sm:$0xff] %v540_v36  ;;  %v546_v39 = vld [vmem:[%s6507_s5 + $0xa38] sm:$0xff]  ;;  %543 = vst [vmem:[%s6512_s26 + $0x528] sm:$0xff] %v542_v37  ;;  %v548_v40 = vld [vmem:[%s6507_s5 + $0xa80] sm:$0xff] }
  0xa2   : > { %545 = vst [vmem:[%s6512_s26 + $0x530] sm:$0xff] %v544_v38  ;;  %547 = vst [vmem:[%s6512_s26 + $0x538] sm:$0xff] %v546_v39  ;;  %v550_v41 = vld [vmem:[%s6507_s5 + $0xa88] sm:$0xff]  ;;  %v552_v42 = vld [vmem:[%s6507_s5 + $0xa90] sm:$0xff] }
  0xa3   : > { %549 = vst [vmem:[%s6512_s26 + $0x540] sm:$0xff] %v548_v40  ;;  %551 = vst [vmem:[%s6512_s26 + $0x548] sm:$0xff] %v550_v41  ;;  %v554_v43 = vld [vmem:[%s6507_s5 + $0xa98] sm:$0xff]  ;;  %v556_v44 = vld [vmem:[%s6507_s5 + $0xaa0] sm:$0xff] }
  0xa4   : > { %553 = vst [vmem:[%s6512_s26 + $0x550] sm:$0xff] %v552_v42  ;;  %v558_v45 = vld [vmem:[%s6507_s5 + $0xaa8] sm:$0xff]  ;;  %555 = vst [vmem:[%s6512_s26 + $0x558] sm:$0xff] %v554_v43  ;;  %v560_v46 = vld [vmem:[%s6507_s5 + $0xab0] sm:$0xff] }
  0xa5   : > { %557 = vst [vmem:[%s6512_s26 + $0x560] sm:$0xff] %v556_v44  ;;  %559 = vst [vmem:[%s6512_s26 + $0x568] sm:$0xff] %v558_v45  ;;  %v562_v47 = vld [vmem:[%s6507_s5 + $0xab8] sm:$0xff]  ;;  %v564_v48 = vld [vmem:[%s6507_s5 + $0xb00] sm:$0xff] }
  0xa6   : > { %561 = vst [vmem:[%s6512_s26 + $0x570] sm:$0xff] %v560_v46  ;;  %563 = vst [vmem:[%s6512_s26 + $0x578] sm:$0xff] %v562_v47  ;;  %v566_v49 = vld [vmem:[%s6507_s5 + $0xb08] sm:$0xff]  ;;  %v568_v50 = vld [vmem:[%s6507_s5 + $0xb10] sm:$0xff] }
  0xa7   : > { %565 = vst [vmem:[%s6512_s26 + $0x580] sm:$0xff] %v564_v48  ;;  %v570_v51 = vld [vmem:[%s6507_s5 + $0xb18] sm:$0xff]  ;;  %567 = vst [vmem:[%s6512_s26 + $0x588] sm:$0xff] %v566_v49  ;;  %v572_v52 = vld [vmem:[%s6507_s5 + $0xb20] sm:$0xff] }
  0xa8   : > { %569 = vst [vmem:[%s6512_s26 + $0x590] sm:$0xff] %v568_v50  ;;  %571 = vst [vmem:[%s6512_s26 + $0x598] sm:$0xff] %v570_v51  ;;  %v574_v53 = vld [vmem:[%s6507_s5 + $0xb28] sm:$0xff]  ;;  %v576_v54 = vld [vmem:[%s6507_s5 + $0xb30] sm:$0xff] }
  0xa9   : > { %573 = vst [vmem:[%s6512_s26 + $0x5a0] sm:$0xff] %v572_v52  ;;  %575 = vst [vmem:[%s6512_s26 + $0x5a8] sm:$0xff] %v574_v53  ;;  %v578_v55 = vld [vmem:[%s6507_s5 + $0xb38] sm:$0xff]  ;;  %v580_v56 = vld [vmem:[%s6507_s5 + $0xb80] sm:$0xff] }
  0xaa   : > { %577 = vst [vmem:[%s6512_s26 + $0x5b0] sm:$0xff] %v576_v54  ;;  %v582_v57 = vld [vmem:[%s6507_s5 + $0xb88] sm:$0xff]  ;;  %579 = vst [vmem:[%s6512_s26 + $0x5b8] sm:$0xff] %v578_v55  ;;  %v584_v58 = vld [vmem:[%s6507_s5 + $0xb90] sm:$0xff] }
  0xab   : > { %581 = vst [vmem:[%s6512_s26 + $0x5c0] sm:$0xff] %v580_v56  ;;  %583 = vst [vmem:[%s6512_s26 + $0x5c8] sm:$0xff] %v582_v57  ;;  %v586_v59 = vld [vmem:[%s6507_s5 + $0xb98] sm:$0xff]  ;;  %v588_v60 = vld [vmem:[%s6507_s5 + $0xba0] sm:$0xff] }
  0xac   : > { %585 = vst [vmem:[%s6512_s26 + $0x5d0] sm:$0xff] %v584_v58  ;;  %587 = vst [vmem:[%s6512_s26 + $0x5d8] sm:$0xff] %v586_v59  ;;  %v590_v61 = vld [vmem:[%s6507_s5 + $0xba8] sm:$0xff]  ;;  %v592_v62 = vld [vmem:[%s6507_s5 + $0xbb0] sm:$0xff] }
  0xad   : > { %589 = vst [vmem:[%s6512_s26 + $0x5e0] sm:$0xff] %v588_v60  ;;  %v594_v63 = vld [vmem:[%s6507_s5 + $0xbb8] sm:$0xff]  ;;  %591 = vst [vmem:[%s6512_s26 + $0x5e8] sm:$0xff] %v590_v61  ;;  %v596_v0 = vld [vmem:[%s6507_s5 + $0xc00] sm:$0xff] }
  0xae   : > { %593 = vst [vmem:[%s6512_s26 + $0x5f0] sm:$0xff] %v592_v62  ;;  %595 = vst [vmem:[%s6512_s26 + $0x5f8] sm:$0xff] %v594_v63  ;;  %v598_v1 = vld [vmem:[%s6507_s5 + $0xc08] sm:$0xff]  ;;  %v600_v2 = vld [vmem:[%s6507_s5 + $0xc10] sm:$0xff] }
  0xaf   : > { %597 = vst [vmem:[%s6512_s26 + $0x600] sm:$0xff] %v596_v0  ;;  %599 = vst [vmem:[%s6512_s26 + $0x608] sm:$0xff] %v598_v1  ;;  %v602_v3 = vld [vmem:[%s6507_s5 + $0xc18] sm:$0xff]  ;;  %v604_v4 = vld [vmem:[%s6507_s5 + $0xc20] sm:$0xff] }
  0xb0   : > { %601 = vst [vmem:[%s6512_s26 + $0x610] sm:$0xff] %v600_v2  ;;  %v606_v5 = vld [vmem:[%s6507_s5 + $0xc28] sm:$0xff]  ;;  %603 = vst [vmem:[%s6512_s26 + $0x618] sm:$0xff] %v602_v3  ;;  %v608_v6 = vld [vmem:[%s6507_s5 + $0xc30] sm:$0xff] }
  0xb1   : > { %605 = vst [vmem:[%s6512_s26 + $0x620] sm:$0xff] %v604_v4  ;;  %607 = vst [vmem:[%s6512_s26 + $0x628] sm:$0xff] %v606_v5  ;;  %v610_v7 = vld [vmem:[%s6507_s5 + $0xc38] sm:$0xff]  ;;  %v612_v8 = vld [vmem:[%s6507_s5 + $0xc80] sm:$0xff] }
  0xb2   : > { %609 = vst [vmem:[%s6512_s26 + $0x630] sm:$0xff] %v608_v6  ;;  %611 = vst [vmem:[%s6512_s26 + $0x638] sm:$0xff] %v610_v7  ;;  %v614_v9 = vld [vmem:[%s6507_s5 + $0xc88] sm:$0xff]  ;;  %v616_v10 = vld [vmem:[%s6507_s5 + $0xc90] sm:$0xff] }
  0xb3   : > { %613 = vst [vmem:[%s6512_s26 + $0x640] sm:$0xff] %v612_v8  ;;  %v618_v11 = vld [vmem:[%s6507_s5 + $0xc98] sm:$0xff]  ;;  %615 = vst [vmem:[%s6512_s26 + $0x648] sm:$0xff] %v614_v9  ;;  %v620_v12 = vld [vmem:[%s6507_s5 + $0xca0] sm:$0xff] }
  0xb4   : > { %617 = vst [vmem:[%s6512_s26 + $0x650] sm:$0xff] %v616_v10  ;;  %619 = vst [vmem:[%s6512_s26 + $0x658] sm:$0xff] %v618_v11  ;;  %v622_v13 = vld [vmem:[%s6507_s5 + $0xca8] sm:$0xff]  ;;  %v624_v14 = vld [vmem:[%s6507_s5 + $0xcb0] sm:$0xff] }
  0xb5   : > { %621 = vst [vmem:[%s6512_s26 + $0x660] sm:$0xff] %v620_v12  ;;  %623 = vst [vmem:[%s6512_s26 + $0x668] sm:$0xff] %v622_v13  ;;  %v626_v15 = vld [vmem:[%s6507_s5 + $0xcb8] sm:$0xff]  ;;  %v628_v16 = vld [vmem:[%s6507_s5 + $0xd00] sm:$0xff] }
  0xb6   : > { %625 = vst [vmem:[%s6512_s26 + $0x670] sm:$0xff] %v624_v14  ;;  %v630_v17 = vld [vmem:[%s6507_s5 + $0xd08] sm:$0xff]  ;;  %627 = vst [vmem:[%s6512_s26 + $0x678] sm:$0xff] %v626_v15  ;;  %v632_v18 = vld [vmem:[%s6507_s5 + $0xd10] sm:$0xff] }
  0xb7   : > { %629 = vst [vmem:[%s6512_s26 + $0x680] sm:$0xff] %v628_v16  ;;  %631 = vst [vmem:[%s6512_s26 + $0x688] sm:$0xff] %v630_v17  ;;  %v634_v19 = vld [vmem:[%s6507_s5 + $0xd18] sm:$0xff]  ;;  %v636_v20 = vld [vmem:[%s6507_s5 + $0xd20] sm:$0xff] }
  0xb8   : > { %633 = vst [vmem:[%s6512_s26 + $0x690] sm:$0xff] %v632_v18  ;;  %635 = vst [vmem:[%s6512_s26 + $0x698] sm:$0xff] %v634_v19  ;;  %v638_v21 = vld [vmem:[%s6507_s5 + $0xd28] sm:$0xff]  ;;  %v640_v22 = vld [vmem:[%s6507_s5 + $0xd30] sm:$0xff] }
  0xb9   : > { %637 = vst [vmem:[%s6512_s26 + $0x6a0] sm:$0xff] %v636_v20  ;;  %v642_v23 = vld [vmem:[%s6507_s5 + $0xd38] sm:$0xff]  ;;  %639 = vst [vmem:[%s6512_s26 + $0x6a8] sm:$0xff] %v638_v21  ;;  %v644_v24 = vld [vmem:[%s6507_s5 + $0xd80] sm:$0xff] }
  0xba   : > { %641 = vst [vmem:[%s6512_s26 + $0x6b0] sm:$0xff] %v640_v22  ;;  %643 = vst [vmem:[%s6512_s26 + $0x6b8] sm:$0xff] %v642_v23  ;;  %v646_v25 = vld [vmem:[%s6507_s5 + $0xd88] sm:$0xff]  ;;  %v648_v26 = vld [vmem:[%s6507_s5 + $0xd90] sm:$0xff] }
  0xbb   : > { %645 = vst [vmem:[%s6512_s26 + $0x6c0] sm:$0xff] %v644_v24  ;;  %647 = vst [vmem:[%s6512_s26 + $0x6c8] sm:$0xff] %v646_v25  ;;  %v650_v27 = vld [vmem:[%s6507_s5 + $0xd98] sm:$0xff]  ;;  %v652_v28 = vld [vmem:[%s6507_s5 + $0xda0] sm:$0xff] }
  0xbc   : > { %649 = vst [vmem:[%s6512_s26 + $0x6d0] sm:$0xff] %v648_v26  ;;  %v654_v29 = vld [vmem:[%s6507_s5 + $0xda8] sm:$0xff]  ;;  %651 = vst [vmem:[%s6512_s26 + $0x6d8] sm:$0xff] %v650_v27  ;;  %v656_v30 = vld [vmem:[%s6507_s5 + $0xdb0] sm:$0xff] }
  0xbd   : > { %653 = vst [vmem:[%s6512_s26 + $0x6e0] sm:$0xff] %v652_v28  ;;  %655 = vst [vmem:[%s6512_s26 + $0x6e8] sm:$0xff] %v654_v29  ;;  %v658_v31 = vld [vmem:[%s6507_s5 + $0xdb8] sm:$0xff]  ;;  %v660_v32 = vld [vmem:[%s6507_s5 + $0xe00] sm:$0xff] }
  0xbe   : > { %657 = vst [vmem:[%s6512_s26 + $0x6f0] sm:$0xff] %v656_v30  ;;  %659 = vst [vmem:[%s6512_s26 + $0x6f8] sm:$0xff] %v658_v31  ;;  %v662_v33 = vld [vmem:[%s6507_s5 + $0xe08] sm:$0xff]  ;;  %v664_v34 = vld [vmem:[%s6507_s5 + $0xe10] sm:$0xff] }
  0xbf   : > { %661 = vst [vmem:[%s6512_s26 + $0x700] sm:$0xff] %v660_v32  ;;  %v666_v35 = vld [vmem:[%s6507_s5 + $0xe18] sm:$0xff]  ;;  %663 = vst [vmem:[%s6512_s26 + $0x708] sm:$0xff] %v662_v33  ;;  %v668_v36 = vld [vmem:[%s6507_s5 + $0xe20] sm:$0xff] }
  0xc0   : > { %665 = vst [vmem:[%s6512_s26 + $0x710] sm:$0xff] %v664_v34  ;;  %667 = vst [vmem:[%s6512_s26 + $0x718] sm:$0xff] %v666_v35  ;;  %v670_v37 = vld [vmem:[%s6507_s5 + $0xe28] sm:$0xff]  ;;  %v672_v38 = vld [vmem:[%s6507_s5 + $0xe30] sm:$0xff] }
  0xc1   : > { %669 = vst [vmem:[%s6512_s26 + $0x720] sm:$0xff] %v668_v36  ;;  %671 = vst [vmem:[%s6512_s26 + $0x728] sm:$0xff] %v670_v37  ;;  %v674_v39 = vld [vmem:[%s6507_s5 + $0xe38] sm:$0xff]  ;;  %v676_v40 = vld [vmem:[%s6507_s5 + $0xe80] sm:$0xff] }
  0xc2   : > { %673 = vst [vmem:[%s6512_s26 + $0x730] sm:$0xff] %v672_v38  ;;  %v678_v41 = vld [vmem:[%s6507_s5 + $0xe88] sm:$0xff]  ;;  %675 = vst [vmem:[%s6512_s26 + $0x738] sm:$0xff] %v674_v39  ;;  %v680_v42 = vld [vmem:[%s6507_s5 + $0xe90] sm:$0xff] }
  0xc3   : > { %677 = vst [vmem:[%s6512_s26 + $0x740] sm:$0xff] %v676_v40  ;;  %679 = vst [vmem:[%s6512_s26 + $0x748] sm:$0xff] %v678_v41  ;;  %v682_v43 = vld [vmem:[%s6507_s5 + $0xe98] sm:$0xff]  ;;  %v684_v44 = vld [vmem:[%s6507_s5 + $0xea0] sm:$0xff] }
  0xc4   : > { %681 = vst [vmem:[%s6512_s26 + $0x750] sm:$0xff] %v680_v42  ;;  %683 = vst [vmem:[%s6512_s26 + $0x758] sm:$0xff] %v682_v43  ;;  %v686_v45 = vld [vmem:[%s6507_s5 + $0xea8] sm:$0xff]  ;;  %v688_v46 = vld [vmem:[%s6507_s5 + $0xeb0] sm:$0xff] }
  0xc5   : > { %685 = vst [vmem:[%s6512_s26 + $0x760] sm:$0xff] %v684_v44  ;;  %v690_v47 = vld [vmem:[%s6507_s5 + $0xeb8] sm:$0xff]  ;;  %687 = vst [vmem:[%s6512_s26 + $0x768] sm:$0xff] %v686_v45  ;;  %v692_v48 = vld [vmem:[%s6507_s5 + $0xf00] sm:$0xff] }
  0xc6   : > { %689 = vst [vmem:[%s6512_s26 + $0x770] sm:$0xff] %v688_v46  ;;  %691 = vst [vmem:[%s6512_s26 + $0x778] sm:$0xff] %v690_v47  ;;  %v694_v49 = vld [vmem:[%s6507_s5 + $0xf08] sm:$0xff]  ;;  %v696_v50 = vld [vmem:[%s6507_s5 + $0xf10] sm:$0xff] }
  0xc7   : > { %693 = vst [vmem:[%s6512_s26 + $0x780] sm:$0xff] %v692_v48  ;;  %695 = vst [vmem:[%s6512_s26 + $0x788] sm:$0xff] %v694_v49  ;;  %v698_v51 = vld [vmem:[%s6507_s5 + $0xf18] sm:$0xff]  ;;  %v700_v52 = vld [vmem:[%s6507_s5 + $0xf20] sm:$0xff] }
  0xc8   : > { %697 = vst [vmem:[%s6512_s26 + $0x790] sm:$0xff] %v696_v50  ;;  %v702_v53 = vld [vmem:[%s6507_s5 + $0xf28] sm:$0xff]  ;;  %699 = vst [vmem:[%s6512_s26 + $0x798] sm:$0xff] %v698_v51  ;;  %v704_v54 = vld [vmem:[%s6507_s5 + $0xf30] sm:$0xff] }
  0xc9   : > { %701 = vst [vmem:[%s6512_s26 + $0x7a0] sm:$0xff] %v700_v52  ;;  %703 = vst [vmem:[%s6512_s26 + $0x7a8] sm:$0xff] %v702_v53  ;;  %v706_v55 = vld [vmem:[%s6507_s5 + $0xf38] sm:$0xff]  ;;  %v708_v56 = vld [vmem:[%s6507_s5 + $0xf80] sm:$0xff] }
  0xca   : > { %705 = vst [vmem:[%s6512_s26 + $0x7b0] sm:$0xff] %v704_v54  ;;  %707 = vst [vmem:[%s6512_s26 + $0x7b8] sm:$0xff] %v706_v55  ;;  %v710_v57 = vld [vmem:[%s6507_s5 + $0xf88] sm:$0xff]  ;;  %v712_v58 = vld [vmem:[%s6507_s5 + $0xf90] sm:$0xff] }
  0xcb   : > { %709 = vst [vmem:[%s6512_s26 + $0x7c0] sm:$0xff] %v708_v56  ;;  %v714_v59 = vld [vmem:[%s6507_s5 + $0xf98] sm:$0xff]  ;;  %711 = vst [vmem:[%s6512_s26 + $0x7c8] sm:$0xff] %v710_v57  ;;  %v716_v60 = vld [vmem:[%s6507_s5 + $0xfa0] sm:$0xff] }
  0xcc   : > { %713 = vst [vmem:[%s6512_s26 + $0x7d0] sm:$0xff] %v712_v58  ;;  %715 = vst [vmem:[%s6512_s26 + $0x7d8] sm:$0xff] %v714_v59  ;;  %v718_v61 = vld [vmem:[%s6507_s5 + $0xfa8] sm:$0xff]  ;;  %v720_v62 = vld [vmem:[%s6507_s5 + $0xfb0] sm:$0xff] }
  0xcd   : > { %717 = vst [vmem:[%s6512_s26 + $0x7e0] sm:$0xff] %v716_v60  ;;  %719 = vst [vmem:[%s6512_s26 + $0x7e8] sm:$0xff] %v718_v61  ;;  %v722_v63 = vld [vmem:[%s6507_s5 + $0xfb8] sm:$0xff]  ;;  %v724_v0 = vld [vmem:[%s6507_s5 + $0x1000] sm:$0xff] }
  0xce   : > { %721 = vst [vmem:[%s6512_s26 + $0x7f0] sm:$0xff] %v720_v62  ;;  %v726_v1 = vld [vmem:[%s6507_s5 + $0x1008] sm:$0xff]  ;;  %723 = vst [vmem:[%s6512_s26 + $0x7f8] sm:$0xff] %v722_v63  ;;  %v728_v2 = vld [vmem:[%s6507_s5 + $0x1010] sm:$0xff] }
  0xcf   : > { %725 = vst [vmem:[%s6512_s26 + $0x800] sm:$0xff] %v724_v0  ;;  %727 = vst [vmem:[%s6512_s26 + $0x808] sm:$0xff] %v726_v1  ;;  %v730_v3 = vld [vmem:[%s6507_s5 + $0x1018] sm:$0xff]  ;;  %v732_v4 = vld [vmem:[%s6507_s5 + $0x1020] sm:$0xff] }
  0xd0   : > { %729 = vst [vmem:[%s6512_s26 + $0x810] sm:$0xff] %v728_v2  ;;  %731 = vst [vmem:[%s6512_s26 + $0x818] sm:$0xff] %v730_v3  ;;  %v734_v5 = vld [vmem:[%s6507_s5 + $0x1028] sm:$0xff]  ;;  %v736_v6 = vld [vmem:[%s6507_s5 + $0x1030] sm:$0xff] }
  0xd1   : > { %733 = vst [vmem:[%s6512_s26 + $0x820] sm:$0xff] %v732_v4  ;;  %v738_v7 = vld [vmem:[%s6507_s5 + $0x1038] sm:$0xff]  ;;  %735 = vst [vmem:[%s6512_s26 + $0x828] sm:$0xff] %v734_v5  ;;  %v740_v8 = vld [vmem:[%s6507_s5 + $0x1080] sm:$0xff] }
  0xd2   : > { %737 = vst [vmem:[%s6512_s26 + $0x830] sm:$0xff] %v736_v6  ;;  %739 = vst [vmem:[%s6512_s26 + $0x838] sm:$0xff] %v738_v7  ;;  %v742_v9 = vld [vmem:[%s6507_s5 + $0x1088] sm:$0xff]  ;;  %v744_v10 = vld [vmem:[%s6507_s5 + $0x1090] sm:$0xff] }
  0xd3   : > { %741 = vst [vmem:[%s6512_s26 + $0x840] sm:$0xff] %v740_v8  ;;  %743 = vst [vmem:[%s6512_s26 + $0x848] sm:$0xff] %v742_v9  ;;  %v746_v11 = vld [vmem:[%s6507_s5 + $0x1098] sm:$0xff]  ;;  %v748_v12 = vld [vmem:[%s6507_s5 + $0x10a0] sm:$0xff] }
  0xd4   : > { %745 = vst [vmem:[%s6512_s26 + $0x850] sm:$0xff] %v744_v10  ;;  %v750_v13 = vld [vmem:[%s6507_s5 + $0x10a8] sm:$0xff]  ;;  %747 = vst [vmem:[%s6512_s26 + $0x858] sm:$0xff] %v746_v11  ;;  %v752_v14 = vld [vmem:[%s6507_s5 + $0x10b0] sm:$0xff] }
  0xd5   : > { %749 = vst [vmem:[%s6512_s26 + $0x860] sm:$0xff] %v748_v12  ;;  %751 = vst [vmem:[%s6512_s26 + $0x868] sm:$0xff] %v750_v13  ;;  %v754_v15 = vld [vmem:[%s6507_s5 + $0x10b8] sm:$0xff]  ;;  %v756_v16 = vld [vmem:[%s6507_s5 + $0x1100] sm:$0xff] }
  0xd6   : > { %753 = vst [vmem:[%s6512_s26 + $0x870] sm:$0xff] %v752_v14  ;;  %755 = vst [vmem:[%s6512_s26 + $0x878] sm:$0xff] %v754_v15  ;;  %v758_v17 = vld [vmem:[%s6507_s5 + $0x1108] sm:$0xff]  ;;  %v760_v18 = vld [vmem:[%s6507_s5 + $0x1110] sm:$0xff] }
  0xd7   : > { %757 = vst [vmem:[%s6512_s26 + $0x880] sm:$0xff] %v756_v16  ;;  %v762_v19 = vld [vmem:[%s6507_s5 + $0x1118] sm:$0xff]  ;;  %759 = vst [vmem:[%s6512_s26 + $0x888] sm:$0xff] %v758_v17  ;;  %v764_v20 = vld [vmem:[%s6507_s5 + $0x1120] sm:$0xff] }
  0xd8   : > { %761 = vst [vmem:[%s6512_s26 + $0x890] sm:$0xff] %v760_v18  ;;  %763 = vst [vmem:[%s6512_s26 + $0x898] sm:$0xff] %v762_v19  ;;  %v766_v21 = vld [vmem:[%s6507_s5 + $0x1128] sm:$0xff]  ;;  %v768_v22 = vld [vmem:[%s6507_s5 + $0x1130] sm:$0xff] }
  0xd9   : > { %765 = vst [vmem:[%s6512_s26 + $0x8a0] sm:$0xff] %v764_v20  ;;  %767 = vst [vmem:[%s6512_s26 + $0x8a8] sm:$0xff] %v766_v21  ;;  %v770_v23 = vld [vmem:[%s6507_s5 + $0x1138] sm:$0xff]  ;;  %v772_v24 = vld [vmem:[%s6507_s5 + $0x1180] sm:$0xff] }
  0xda   : > { %769 = vst [vmem:[%s6512_s26 + $0x8b0] sm:$0xff] %v768_v22  ;;  %v774_v25 = vld [vmem:[%s6507_s5 + $0x1188] sm:$0xff]  ;;  %771 = vst [vmem:[%s6512_s26 + $0x8b8] sm:$0xff] %v770_v23  ;;  %v776_v26 = vld [vmem:[%s6507_s5 + $0x1190] sm:$0xff] }
  0xdb   : > { %773 = vst [vmem:[%s6512_s26 + $0x8c0] sm:$0xff] %v772_v24  ;;  %775 = vst [vmem:[%s6512_s26 + $0x8c8] sm:$0xff] %v774_v25  ;;  %v778_v27 = vld [vmem:[%s6507_s5 + $0x1198] sm:$0xff]  ;;  %v780_v28 = vld [vmem:[%s6507_s5 + $0x11a0] sm:$0xff] }
  0xdc   : > { %777 = vst [vmem:[%s6512_s26 + $0x8d0] sm:$0xff] %v776_v26  ;;  %779 = vst [vmem:[%s6512_s26 + $0x8d8] sm:$0xff] %v778_v27  ;;  %v782_v29 = vld [vmem:[%s6507_s5 + $0x11a8] sm:$0xff]  ;;  %v784_v30 = vld [vmem:[%s6507_s5 + $0x11b0] sm:$0xff] }
  0xdd   : > { %781 = vst [vmem:[%s6512_s26 + $0x8e0] sm:$0xff] %v780_v28  ;;  %v786_v31 = vld [vmem:[%s6507_s5 + $0x11b8] sm:$0xff]  ;;  %783 = vst [vmem:[%s6512_s26 + $0x8e8] sm:$0xff] %v782_v29  ;;  %v788_v32 = vld [vmem:[%s6507_s5 + $0x1200] sm:$0xff] }
  0xde   : > { %785 = vst [vmem:[%s6512_s26 + $0x8f0] sm:$0xff] %v784_v30  ;;  %787 = vst [vmem:[%s6512_s26 + $0x8f8] sm:$0xff] %v786_v31  ;;  %v790_v33 = vld [vmem:[%s6507_s5 + $0x1208] sm:$0xff]  ;;  %v792_v34 = vld [vmem:[%s6507_s5 + $0x1210] sm:$0xff] }
  0xdf   : > { %789 = vst [vmem:[%s6512_s26 + $0x900] sm:$0xff] %v788_v32  ;;  %791 = vst [vmem:[%s6512_s26 + $0x908] sm:$0xff] %v790_v33  ;;  %v794_v35 = vld [vmem:[%s6507_s5 + $0x1218] sm:$0xff]  ;;  %v796_v36 = vld [vmem:[%s6507_s5 + $0x1220] sm:$0xff] }
  0xe0   : > { %793 = vst [vmem:[%s6512_s26 + $0x910] sm:$0xff] %v792_v34  ;;  %v798_v37 = vld [vmem:[%s6507_s5 + $0x1228] sm:$0xff]  ;;  %795 = vst [vmem:[%s6512_s26 + $0x918] sm:$0xff] %v794_v35  ;;  %v800_v38 = vld [vmem:[%s6507_s5 + $0x1230] sm:$0xff] }
  0xe1   : > { %797 = vst [vmem:[%s6512_s26 + $0x920] sm:$0xff] %v796_v36  ;;  %799 = vst [vmem:[%s6512_s26 + $0x928] sm:$0xff] %v798_v37  ;;  %v802_v39 = vld [vmem:[%s6507_s5 + $0x1238] sm:$0xff]  ;;  %v804_v40 = vld [vmem:[%s6507_s5 + $0x1280] sm:$0xff] }
  0xe2   : > { %801 = vst [vmem:[%s6512_s26 + $0x930] sm:$0xff] %v800_v38  ;;  %803 = vst [vmem:[%s6512_s26 + $0x938] sm:$0xff] %v802_v39  ;;  %v806_v41 = vld [vmem:[%s6507_s5 + $0x1288] sm:$0xff]  ;;  %v808_v42 = vld [vmem:[%s6507_s5 + $0x1290] sm:$0xff] }
  0xe3   : > { %805 = vst [vmem:[%s6512_s26 + $0x940] sm:$0xff] %v804_v40  ;;  %v810_v43 = vld [vmem:[%s6507_s5 + $0x1298] sm:$0xff]  ;;  %807 = vst [vmem:[%s6512_s26 + $0x948] sm:$0xff] %v806_v41  ;;  %v812_v44 = vld [vmem:[%s6507_s5 + $0x12a0] sm:$0xff] }
  0xe4   : > { %809 = vst [vmem:[%s6512_s26 + $0x950] sm:$0xff] %v808_v42  ;;  %811 = vst [vmem:[%s6512_s26 + $0x958] sm:$0xff] %v810_v43  ;;  %v814_v45 = vld [vmem:[%s6507_s5 + $0x12a8] sm:$0xff]  ;;  %v816_v46 = vld [vmem:[%s6507_s5 + $0x12b0] sm:$0xff] }
  0xe5   : > { %813 = vst [vmem:[%s6512_s26 + $0x960] sm:$0xff] %v812_v44  ;;  %815 = vst [vmem:[%s6512_s26 + $0x968] sm:$0xff] %v814_v45  ;;  %v818_v47 = vld [vmem:[%s6507_s5 + $0x12b8] sm:$0xff]  ;;  %v820_v48 = vld [vmem:[%s6507_s5 + $0x1300] sm:$0xff] }
  0xe6   : > { %817 = vst [vmem:[%s6512_s26 + $0x970] sm:$0xff] %v816_v46  ;;  %v822_v49 = vld [vmem:[%s6507_s5 + $0x1308] sm:$0xff]  ;;  %819 = vst [vmem:[%s6512_s26 + $0x978] sm:$0xff] %v818_v47  ;;  %v824_v50 = vld [vmem:[%s6507_s5 + $0x1310] sm:$0xff] }
  0xe7   : > { %821 = vst [vmem:[%s6512_s26 + $0x980] sm:$0xff] %v820_v48  ;;  %823 = vst [vmem:[%s6512_s26 + $0x988] sm:$0xff] %v822_v49  ;;  %v826_v51 = vld [vmem:[%s6507_s5 + $0x1318] sm:$0xff]  ;;  %v828_v52 = vld [vmem:[%s6507_s5 + $0x1320] sm:$0xff] }
  0xe8   : > { %825 = vst [vmem:[%s6512_s26 + $0x990] sm:$0xff] %v824_v50  ;;  %827 = vst [vmem:[%s6512_s26 + $0x998] sm:$0xff] %v826_v51  ;;  %v830_v53 = vld [vmem:[%s6507_s5 + $0x1328] sm:$0xff]  ;;  %v832_v54 = vld [vmem:[%s6507_s5 + $0x1330] sm:$0xff] }
  0xe9   : > { %829 = vst [vmem:[%s6512_s26 + $0x9a0] sm:$0xff] %v828_v52  ;;  %v834_v55 = vld [vmem:[%s6507_s5 + $0x1338] sm:$0xff]  ;;  %831 = vst [vmem:[%s6512_s26 + $0x9a8] sm:$0xff] %v830_v53  ;;  %v836_v56 = vld [vmem:[%s6507_s5 + $0x1380] sm:$0xff] }
  0xea   : > { %833 = vst [vmem:[%s6512_s26 + $0x9b0] sm:$0xff] %v832_v54  ;;  %835 = vst [vmem:[%s6512_s26 + $0x9b8] sm:$0xff] %v834_v55  ;;  %v838_v57 = vld [vmem:[%s6507_s5 + $0x1388] sm:$0xff]  ;;  %v840_v58 = vld [vmem:[%s6507_s5 + $0x1390] sm:$0xff] }
  0xeb   : > { %837 = vst [vmem:[%s6512_s26 + $0x9c0] sm:$0xff] %v836_v56  ;;  %839 = vst [vmem:[%s6512_s26 + $0x9c8] sm:$0xff] %v838_v57  ;;  %v842_v59 = vld [vmem:[%s6507_s5 + $0x1398] sm:$0xff]  ;;  %v844_v60 = vld [vmem:[%s6507_s5 + $0x13a0] sm:$0xff] }
  0xec   : > { %841 = vst [vmem:[%s6512_s26 + $0x9d0] sm:$0xff] %v840_v58  ;;  %v846_v61 = vld [vmem:[%s6507_s5 + $0x13a8] sm:$0xff]  ;;  %843 = vst [vmem:[%s6512_s26 + $0x9d8] sm:$0xff] %v842_v59  ;;  %v848_v62 = vld [vmem:[%s6507_s5 + $0x13b0] sm:$0xff] }
  0xed   : > { %845 = vst [vmem:[%s6512_s26 + $0x9e0] sm:$0xff] %v844_v60  ;;  %847 = vst [vmem:[%s6512_s26 + $0x9e8] sm:$0xff] %v846_v61  ;;  %v850_v63 = vld [vmem:[%s6507_s5 + $0x13b8] sm:$0xff]  ;;  %v852_v0 = vld [vmem:[%s6507_s5 + $0x1400] sm:$0xff] }
  0xee   : > { %849 = vst [vmem:[%s6512_s26 + $0x9f0] sm:$0xff] %v848_v62  ;;  %851 = vst [vmem:[%s6512_s26 + $0x9f8] sm:$0xff] %v850_v63  ;;  %v854_v1 = vld [vmem:[%s6507_s5 + $0x1408] sm:$0xff]  ;;  %v856_v2 = vld [vmem:[%s6507_s5 + $0x1410] sm:$0xff] }
  0xef   : > { %853 = vst [vmem:[%s6512_s26 + $0xa00] sm:$0xff] %v852_v0  ;;  %v858_v3 = vld [vmem:[%s6507_s5 + $0x1418] sm:$0xff]  ;;  %855 = vst [vmem:[%s6512_s26 + $0xa08] sm:$0xff] %v854_v1  ;;  %v860_v4 = vld [vmem:[%s6507_s5 + $0x1420] sm:$0xff] }
  0xf0   : > { %857 = vst [vmem:[%s6512_s26 + $0xa10] sm:$0xff] %v856_v2  ;;  %859 = vst [vmem:[%s6512_s26 + $0xa18] sm:$0xff] %v858_v3  ;;  %v862_v5 = vld [vmem:[%s6507_s5 + $0x1428] sm:$0xff]  ;;  %v864_v6 = vld [vmem:[%s6507_s5 + $0x1430] sm:$0xff] }
  0xf1   : > { %861 = vst [vmem:[%s6512_s26 + $0xa20] sm:$0xff] %v860_v4  ;;  %863 = vst [vmem:[%s6512_s26 + $0xa28] sm:$0xff] %v862_v5  ;;  %v866_v7 = vld [vmem:[%s6507_s5 + $0x1438] sm:$0xff]  ;;  %v868_v8 = vld [vmem:[%s6507_s5 + $0x1480] sm:$0xff] }
  0xf2   : > { %865 = vst [vmem:[%s6512_s26 + $0xa30] sm:$0xff] %v864_v6  ;;  %v870_v9 = vld [vmem:[%s6507_s5 + $0x1488] sm:$0xff]  ;;  %867 = vst [vmem:[%s6512_s26 + $0xa38] sm:$0xff] %v866_v7  ;;  %v872_v10 = vld [vmem:[%s6507_s5 + $0x1490] sm:$0xff] }
  0xf3   : > { %869 = vst [vmem:[%s6512_s26 + $0xa40] sm:$0xff] %v868_v8  ;;  %871 = vst [vmem:[%s6512_s26 + $0xa48] sm:$0xff] %v870_v9  ;;  %v874_v11 = vld [vmem:[%s6507_s5 + $0x1498] sm:$0xff]  ;;  %v876_v12 = vld [vmem:[%s6507_s5 + $0x14a0] sm:$0xff] }
  0xf4   : > { %873 = vst [vmem:[%s6512_s26 + $0xa50] sm:$0xff] %v872_v10  ;;  %875 = vst [vmem:[%s6512_s26 + $0xa58] sm:$0xff] %v874_v11  ;;  %v878_v13 = vld [vmem:[%s6507_s5 + $0x14a8] sm:$0xff]  ;;  %v880_v14 = vld [vmem:[%s6507_s5 + $0x14b0] sm:$0xff] }
  0xf5   : > { %877 = vst [vmem:[%s6512_s26 + $0xa60] sm:$0xff] %v876_v12  ;;  %v882_v15 = vld [vmem:[%s6507_s5 + $0x14b8] sm:$0xff]  ;;  %879 = vst [vmem:[%s6512_s26 + $0xa68] sm:$0xff] %v878_v13  ;;  %v884_v16 = vld [vmem:[%s6507_s5 + $0x1500] sm:$0xff] }
  0xf6   : > { %881 = vst [vmem:[%s6512_s26 + $0xa70] sm:$0xff] %v880_v14  ;;  %883 = vst [vmem:[%s6512_s26 + $0xa78] sm:$0xff] %v882_v15  ;;  %v886_v17 = vld [vmem:[%s6507_s5 + $0x1508] sm:$0xff]  ;;  %v888_v18 = vld [vmem:[%s6507_s5 + $0x1510] sm:$0xff] }
  0xf7   : > { %885 = vst [vmem:[%s6512_s26 + $0xa80] sm:$0xff] %v884_v16  ;;  %887 = vst [vmem:[%s6512_s26 + $0xa88] sm:$0xff] %v886_v17  ;;  %v890_v19 = vld [vmem:[%s6507_s5 + $0x1518] sm:$0xff]  ;;  %v892_v20 = vld [vmem:[%s6507_s5 + $0x1520] sm:$0xff] }
  0xf8   : > { %889 = vst [vmem:[%s6512_s26 + $0xa90] sm:$0xff] %v888_v18  ;;  %v894_v21 = vld [vmem:[%s6507_s5 + $0x1528] sm:$0xff]  ;;  %891 = vst [vmem:[%s6512_s26 + $0xa98] sm:$0xff] %v890_v19  ;;  %v896_v22 = vld [vmem:[%s6507_s5 + $0x1530] sm:$0xff] }
  0xf9   : > { %893 = vst [vmem:[%s6512_s26 + $0xaa0] sm:$0xff] %v892_v20  ;;  %895 = vst [vmem:[%s6512_s26 + $0xaa8] sm:$0xff] %v894_v21  ;;  %v898_v23 = vld [vmem:[%s6507_s5 + $0x1538] sm:$0xff]  ;;  %v900_v24 = vld [vmem:[%s6507_s5 + $0x1580] sm:$0xff] }
  0xfa   : > { %897 = vst [vmem:[%s6512_s26 + $0xab0] sm:$0xff] %v896_v22  ;;  %899 = vst [vmem:[%s6512_s26 + $0xab8] sm:$0xff] %v898_v23  ;;  %v902_v25 = vld [vmem:[%s6507_s5 + $0x1588] sm:$0xff]  ;;  %v904_v26 = vld [vmem:[%s6507_s5 + $0x1590] sm:$0xff] }
  0xfb   : > { %901 = vst [vmem:[%s6512_s26 + $0xac0] sm:$0xff] %v900_v24  ;;  %v906_v27 = vld [vmem:[%s6507_s5 + $0x1598] sm:$0xff]  ;;  %903 = vst [vmem:[%s6512_s26 + $0xac8] sm:$0xff] %v902_v25  ;;  %v908_v28 = vld [vmem:[%s6507_s5 + $0x15a0] sm:$0xff] }
  0xfc   : > { %905 = vst [vmem:[%s6512_s26 + $0xad0] sm:$0xff] %v904_v26  ;;  %907 = vst [vmem:[%s6512_s26 + $0xad8] sm:$0xff] %v906_v27  ;;  %v910_v29 = vld [vmem:[%s6507_s5 + $0x15a8] sm:$0xff]  ;;  %v912_v30 = vld [vmem:[%s6507_s5 + $0x15b0] sm:$0xff] }
  0xfd   : > { %909 = vst [vmem:[%s6512_s26 + $0xae0] sm:$0xff] %v908_v28  ;;  %911 = vst [vmem:[%s6512_s26 + $0xae8] sm:$0xff] %v910_v29  ;;  %v914_v31 = vld [vmem:[%s6507_s5 + $0x15b8] sm:$0xff]  ;;  %v916_v32 = vld [vmem:[%s6507_s5 + $0x1600] sm:$0xff] }
  0xfe   : > { %913 = vst [vmem:[%s6512_s26 + $0xaf0] sm:$0xff] %v912_v30  ;;  %v918_v33 = vld [vmem:[%s6507_s5 + $0x1608] sm:$0xff]  ;;  %915 = vst [vmem:[%s6512_s26 + $0xaf8] sm:$0xff] %v914_v31  ;;  %v920_v34 = vld [vmem:[%s6507_s5 + $0x1610] sm:$0xff] }
  0xff   : > { %917 = vst [vmem:[%s6512_s26 + $0xb00] sm:$0xff] %v916_v32  ;;  %919 = vst [vmem:[%s6512_s26 + $0xb08] sm:$0xff] %v918_v33  ;;  %v922_v35 = vld [vmem:[%s6507_s5 + $0x1618] sm:$0xff]  ;;  %v924_v36 = vld [vmem:[%s6507_s5 + $0x1620] sm:$0xff] }
 0x100   : > { %921 = vst [vmem:[%s6512_s26 + $0xb10] sm:$0xff] %v920_v34  ;;  %923 = vst [vmem:[%s6512_s26 + $0xb18] sm:$0xff] %v922_v35  ;;  %v926_v37 = vld [vmem:[%s6507_s5 + $0x1628] sm:$0xff]  ;;  %v928_v38 = vld [vmem:[%s6507_s5 + $0x1630] sm:$0xff] }
 0x101   : > { %925 = vst [vmem:[%s6512_s26 + $0xb20] sm:$0xff] %v924_v36  ;;  %v930_v39 = vld [vmem:[%s6507_s5 + $0x1638] sm:$0xff]  ;;  %927 = vst [vmem:[%s6512_s26 + $0xb28] sm:$0xff] %v926_v37  ;;  %v932_v40 = vld [vmem:[%s6507_s5 + $0x1680] sm:$0xff] }
 0x102   : > { %929 = vst [vmem:[%s6512_s26 + $0xb30] sm:$0xff] %v928_v38  ;;  %931 = vst [vmem:[%s6512_s26 + $0xb38] sm:$0xff] %v930_v39  ;;  %v934_v41 = vld [vmem:[%s6507_s5 + $0x1688] sm:$0xff]  ;;  %v936_v42 = vld [vmem:[%s6507_s5 + $0x1690] sm:$0xff] }
 0x103   : > { %933 = vst [vmem:[%s6512_s26 + $0xb40] sm:$0xff] %v932_v40  ;;  %935 = vst [vmem:[%s6512_s26 + $0xb48] sm:$0xff] %v934_v41  ;;  %v938_v43 = vld [vmem:[%s6507_s5 + $0x1698] sm:$0xff]  ;;  %v940_v44 = vld [vmem:[%s6507_s5 + $0x16a0] sm:$0xff] }
 0x104   : > { %937 = vst [vmem:[%s6512_s26 + $0xb50] sm:$0xff] %v936_v42  ;;  %v942_v45 = vld [vmem:[%s6507_s5 + $0x16a8] sm:$0xff]  ;;  %939 = vst [vmem:[%s6512_s26 + $0xb58] sm:$0xff] %v938_v43  ;;  %v944_v46 = vld [vmem:[%s6507_s5 + $0x16b0] sm:$0xff] }
 0x105   : > { %941 = vst [vmem:[%s6512_s26 + $0xb60] sm:$0xff] %v940_v44  ;;  %943 = vst [vmem:[%s6512_s26 + $0xb68] sm:$0xff] %v942_v45  ;;  %v946_v47 = vld [vmem:[%s6507_s5 + $0x16b8] sm:$0xff]  ;;  %v948_v48 = vld [vmem:[%s6507_s5 + $0x1700] sm:$0xff] }
 0x106   : > { %945 = vst [vmem:[%s6512_s26 + $0xb70] sm:$0xff] %v944_v46  ;;  %947 = vst [vmem:[%s6512_s26 + $0xb78] sm:$0xff] %v946_v47  ;;  %v950_v49 = vld [vmem:[%s6507_s5 + $0x1708] sm:$0xff]  ;;  %v952_v50 = vld [vmem:[%s6507_s5 + $0x1710] sm:$0xff] }
 0x107   : > { %949 = vst [vmem:[%s6512_s26 + $0xb80] sm:$0xff] %v948_v48  ;;  %v954_v51 = vld [vmem:[%s6507_s5 + $0x1718] sm:$0xff]  ;;  %951 = vst [vmem:[%s6512_s26 + $0xb88] sm:$0xff] %v950_v49  ;;  %v956_v52 = vld [vmem:[%s6507_s5 + $0x1720] sm:$0xff] }
 0x108   : > { %953 = vst [vmem:[%s6512_s26 + $0xb90] sm:$0xff] %v952_v50  ;;  %955 = vst [vmem:[%s6512_s26 + $0xb98] sm:$0xff] %v954_v51  ;;  %v958_v53 = vld [vmem:[%s6507_s5 + $0x1728] sm:$0xff]  ;;  %v960_v54 = vld [vmem:[%s6507_s5 + $0x1730] sm:$0xff] }
 0x109   : > { %957 = vst [vmem:[%s6512_s26 + $0xba0] sm:$0xff] %v956_v52  ;;  %959 = vst [vmem:[%s6512_s26 + $0xba8] sm:$0xff] %v958_v53  ;;  %v962_v55 = vld [vmem:[%s6507_s5 + $0x1738] sm:$0xff]  ;;  %v964_v56 = vld [vmem:[%s6507_s5 + $0x1780] sm:$0xff] }
 0x10a   : > { %961 = vst [vmem:[%s6512_s26 + $0xbb0] sm:$0xff] %v960_v54  ;;  %v966_v57 = vld [vmem:[%s6507_s5 + $0x1788] sm:$0xff]  ;;  %963 = vst [vmem:[%s6512_s26 + $0xbb8] sm:$0xff] %v962_v55  ;;  %v968_v58 = vld [vmem:[%s6507_s5 + $0x1790] sm:$0xff] }
 0x10b   : > { %965 = vst [vmem:[%s6512_s26 + $0xbc0] sm:$0xff] %v964_v56  ;;  %967 = vst [vmem:[%s6512_s26 + $0xbc8] sm:$0xff] %v966_v57  ;;  %v970_v59 = vld [vmem:[%s6507_s5 + $0x1798] sm:$0xff]  ;;  %v972_v60 = vld [vmem:[%s6507_s5 + $0x17a0] sm:$0xff] }
 0x10c   : > { %969 = vst [vmem:[%s6512_s26 + $0xbd0] sm:$0xff] %v968_v58  ;;  %971 = vst [vmem:[%s6512_s26 + $0xbd8] sm:$0xff] %v970_v59  ;;  %v974_v61 = vld [vmem:[%s6507_s5 + $0x17a8] sm:$0xff]  ;;  %v976_v62 = vld [vmem:[%s6507_s5 + $0x17b0] sm:$0xff] }
 0x10d   : > { %973 = vst [vmem:[%s6512_s26 + $0xbe0] sm:$0xff] %v972_v60  ;;  %v978_v63 = vld [vmem:[%s6507_s5 + $0x17b8] sm:$0xff]  ;;  %975 = vst [vmem:[%s6512_s26 + $0xbe8] sm:$0xff] %v974_v61  ;;  %v980_v0 = vld [vmem:[%s6507_s5 + $0x1800] sm:$0xff] }
 0x10e   : > { %977 = vst [vmem:[%s6512_s26 + $0xbf0] sm:$0xff] %v976_v62  ;;  %979 = vst [vmem:[%s6512_s26 + $0xbf8] sm:$0xff] %v978_v63  ;;  %v982_v1 = vld [vmem:[%s6507_s5 + $0x1808] sm:$0xff]  ;;  %v984_v2 = vld [vmem:[%s6507_s5 + $0x1810] sm:$0xff] }
 0x10f   : > { %981 = vst [vmem:[%s6512_s26 + $0xc00] sm:$0xff] %v980_v0  ;;  %983 = vst [vmem:[%s6512_s26 + $0xc08] sm:$0xff] %v982_v1  ;;  %v986_v3 = vld [vmem:[%s6507_s5 + $0x1818] sm:$0xff]  ;;  %v988_v4 = vld [vmem:[%s6507_s5 + $0x1820] sm:$0xff] }
 0x110   : > { %985 = vst [vmem:[%s6512_s26 + $0xc10] sm:$0xff] %v984_v2  ;;  %v990_v5 = vld [vmem:[%s6507_s5 + $0x1828] sm:$0xff]  ;;  %987 = vst [vmem:[%s6512_s26 + $0xc18] sm:$0xff] %v986_v3  ;;  %v992_v6 = vld [vmem:[%s6507_s5 + $0x1830] sm:$0xff] }
 0x111   : > { %989 = vst [vmem:[%s6512_s26 + $0xc20] sm:$0xff] %v988_v4  ;;  %991 = vst [vmem:[%s6512_s26 + $0xc28] sm:$0xff] %v990_v5  ;;  %v994_v7 = vld [vmem:[%s6507_s5 + $0x1838] sm:$0xff]  ;;  %v996_v8 = vld [vmem:[%s6507_s5 + $0x1880] sm:$0xff] }
 0x112   : > { %993 = vst [vmem:[%s6512_s26 + $0xc30] sm:$0xff] %v992_v6  ;;  %995 = vst [vmem:[%s6512_s26 + $0xc38] sm:$0xff] %v994_v7  ;;  %v998_v9 = vld [vmem:[%s6507_s5 + $0x1888] sm:$0xff]  ;;  %v1000_v10 = vld [vmem:[%s6507_s5 + $0x1890] sm:$0xff] }
 0x113   : > { %997 = vst [vmem:[%s6512_s26 + $0xc40] sm:$0xff] %v996_v8  ;;  %v1002_v11 = vld [vmem:[%s6507_s5 + $0x1898] sm:$0xff]  ;;  %999 = vst [vmem:[%s6512_s26 + $0xc48] sm:$0xff] %v998_v9  ;;  %v1004_v12 = vld [vmem:[%s6507_s5 + $0x18a0] sm:$0xff] }
 0x114   : > { %1001 = vst [vmem:[%s6512_s26 + $0xc50] sm:$0xff] %v1000_v10  ;;  %1003 = vst [vmem:[%s6512_s26 + $0xc58] sm:$0xff] %v1002_v11  ;;  %v1006_v13 = vld [vmem:[%s6507_s5 + $0x18a8] sm:$0xff]  ;;  %v1008_v14 = vld [vmem:[%s6507_s5 + $0x18b0] sm:$0xff] }
 0x115   : > { %1005 = vst [vmem:[%s6512_s26 + $0xc60] sm:$0xff] %v1004_v12  ;;  %1007 = vst [vmem:[%s6512_s26 + $0xc68] sm:$0xff] %v1006_v13  ;;  %v1010_v15 = vld [vmem:[%s6507_s5 + $0x18b8] sm:$0xff]  ;;  %v1012_v16 = vld [vmem:[%s6507_s5 + $0x1900] sm:$0xff] }
 0x116   : > { %1009 = vst [vmem:[%s6512_s26 + $0xc70] sm:$0xff] %v1008_v14  ;;  %v1014_v17 = vld [vmem:[%s6507_s5 + $0x1908] sm:$0xff]  ;;  %1011 = vst [vmem:[%s6512_s26 + $0xc78] sm:$0xff] %v1010_v15  ;;  %v1016_v18 = vld [vmem:[%s6507_s5 + $0x1910] sm:$0xff] }
 0x117   : > { %1013 = vst [vmem:[%s6512_s26 + $0xc80] sm:$0xff] %v1012_v16  ;;  %1015 = vst [vmem:[%s6512_s26 + $0xc88] sm:$0xff] %v1014_v17  ;;  %v1018_v19 = vld [vmem:[%s6507_s5 + $0x1918] sm:$0xff]  ;;  %v1020_v20 = vld [vmem:[%s6507_s5 + $0x1920] sm:$0xff] }
 0x118   : > { %1017 = vst [vmem:[%s6512_s26 + $0xc90] sm:$0xff] %v1016_v18  ;;  %1019 = vst [vmem:[%s6512_s26 + $0xc98] sm:$0xff] %v1018_v19  ;;  %v1022_v21 = vld [vmem:[%s6507_s5 + $0x1928] sm:$0xff]  ;;  %v1024_v22 = vld [vmem:[%s6507_s5 + $0x1930] sm:$0xff] }
 0x119   : > { %1021 = vst [vmem:[%s6512_s26 + $0xca0] sm:$0xff] %v1020_v20  ;;  %v1026_v23 = vld [vmem:[%s6507_s5 + $0x1938] sm:$0xff]  ;;  %1023 = vst [vmem:[%s6512_s26 + $0xca8] sm:$0xff] %v1022_v21  ;;  %v1028_v24 = vld [vmem:[%s6507_s5 + $0x1980] sm:$0xff] }
 0x11a   : > { %1025 = vst [vmem:[%s6512_s26 + $0xcb0] sm:$0xff] %v1024_v22  ;;  %1027 = vst [vmem:[%s6512_s26 + $0xcb8] sm:$0xff] %v1026_v23  ;;  %v1030_v25 = vld [vmem:[%s6507_s5 + $0x1988] sm:$0xff]  ;;  %v1032_v26 = vld [vmem:[%s6507_s5 + $0x1990] sm:$0xff] }
 0x11b   : > { %1029 = vst [vmem:[%s6512_s26 + $0xcc0] sm:$0xff] %v1028_v24  ;;  %1031 = vst [vmem:[%s6512_s26 + $0xcc8] sm:$0xff] %v1030_v25  ;;  %v1034_v27 = vld [vmem:[%s6507_s5 + $0x1998] sm:$0xff]  ;;  %v1036_v28 = vld [vmem:[%s6507_s5 + $0x19a0] sm:$0xff] }
 0x11c   : > { %1033 = vst [vmem:[%s6512_s26 + $0xcd0] sm:$0xff] %v1032_v26  ;;  %v1038_v29 = vld [vmem:[%s6507_s5 + $0x19a8] sm:$0xff]  ;;  %1035 = vst [vmem:[%s6512_s26 + $0xcd8] sm:$0xff] %v1034_v27  ;;  %v1040_v30 = vld [vmem:[%s6507_s5 + $0x19b0] sm:$0xff] }
 0x11d   : > { %1037 = vst [vmem:[%s6512_s26 + $0xce0] sm:$0xff] %v1036_v28  ;;  %1039 = vst [vmem:[%s6512_s26 + $0xce8] sm:$0xff] %v1038_v29  ;;  %v1042_v31 = vld [vmem:[%s6507_s5 + $0x19b8] sm:$0xff]  ;;  %v1044_v32 = vld [vmem:[%s6507_s5 + $0x1a00] sm:$0xff] }
 0x11e   : > { %1041 = vst [vmem:[%s6512_s26 + $0xcf0] sm:$0xff] %v1040_v30  ;;  %1043 = vst [vmem:[%s6512_s26 + $0xcf8] sm:$0xff] %v1042_v31  ;;  %v1046_v33 = vld [vmem:[%s6507_s5 + $0x1a08] sm:$0xff]  ;;  %v1048_v34 = vld [vmem:[%s6507_s5 + $0x1a10] sm:$0xff] }
 0x11f   : > { %1045 = vst [vmem:[%s6512_s26 + $0xd00] sm:$0xff] %v1044_v32  ;;  %v1050_v35 = vld [vmem:[%s6507_s5 + $0x1a18] sm:$0xff]  ;;  %1047 = vst [vmem:[%s6512_s26 + $0xd08] sm:$0xff] %v1046_v33  ;;  %v1052_v36 = vld [vmem:[%s6507_s5 + $0x1a20] sm:$0xff] }
 0x120   : > { %1049 = vst [vmem:[%s6512_s26 + $0xd10] sm:$0xff] %v1048_v34  ;;  %1051 = vst [vmem:[%s6512_s26 + $0xd18] sm:$0xff] %v1050_v35  ;;  %v1054_v37 = vld [vmem:[%s6507_s5 + $0x1a28] sm:$0xff]  ;;  %v1056_v38 = vld [vmem:[%s6507_s5 + $0x1a30] sm:$0xff] }
 0x121   : > { %1053 = vst [vmem:[%s6512_s26 + $0xd20] sm:$0xff] %v1052_v36  ;;  %1055 = vst [vmem:[%s6512_s26 + $0xd28] sm:$0xff] %v1054_v37  ;;  %v1058_v39 = vld [vmem:[%s6507_s5 + $0x1a38] sm:$0xff]  ;;  %v1060_v40 = vld [vmem:[%s6507_s5 + $0x1a80] sm:$0xff] }
 0x122   : > { %1057 = vst [vmem:[%s6512_s26 + $0xd30] sm:$0xff] %v1056_v38  ;;  %v1062_v41 = vld [vmem:[%s6507_s5 + $0x1a88] sm:$0xff]  ;;  %1059 = vst [vmem:[%s6512_s26 + $0xd38] sm:$0xff] %v1058_v39  ;;  %v1064_v42 = vld [vmem:[%s6507_s5 + $0x1a90] sm:$0xff] }
 0x123   : > { %1061 = vst [vmem:[%s6512_s26 + $0xd40] sm:$0xff] %v1060_v40  ;;  %1063 = vst [vmem:[%s6512_s26 + $0xd48] sm:$0xff] %v1062_v41  ;;  %v1066_v43 = vld [vmem:[%s6507_s5 + $0x1a98] sm:$0xff]  ;;  %v1068_v44 = vld [vmem:[%s6507_s5 + $0x1aa0] sm:$0xff] }
 0x124   : > { %1065 = vst [vmem:[%s6512_s26 + $0xd50] sm:$0xff] %v1064_v42  ;;  %1067 = vst [vmem:[%s6512_s26 + $0xd58] sm:$0xff] %v1066_v43  ;;  %v1070_v45 = vld [vmem:[%s6507_s5 + $0x1aa8] sm:$0xff]  ;;  %v1072_v46 = vld [vmem:[%s6507_s5 + $0x1ab0] sm:$0xff] }
 0x125   : > { %1069 = vst [vmem:[%s6512_s26 + $0xd60] sm:$0xff] %v1068_v44  ;;  %v1074_v47 = vld [vmem:[%s6507_s5 + $0x1ab8] sm:$0xff]  ;;  %1071 = vst [vmem:[%s6512_s26 + $0xd68] sm:$0xff] %v1070_v45  ;;  %v1076_v48 = vld [vmem:[%s6507_s5 + $0x1b00] sm:$0xff] }
 0x126   : > { %1073 = vst [vmem:[%s6512_s26 + $0xd70] sm:$0xff] %v1072_v46  ;;  %1075 = vst [vmem:[%s6512_s26 + $0xd78] sm:$0xff] %v1074_v47  ;;  %v1078_v49 = vld [vmem:[%s6507_s5 + $0x1b08] sm:$0xff]  ;;  %v1080_v50 = vld [vmem:[%s6507_s5 + $0x1b10] sm:$0xff] }
 0x127   : > { %1077 = vst [vmem:[%s6512_s26 + $0xd80] sm:$0xff] %v1076_v48  ;;  %1079 = vst [vmem:[%s6512_s26 + $0xd88] sm:$0xff] %v1078_v49  ;;  %v1082_v51 = vld [vmem:[%s6507_s5 + $0x1b18] sm:$0xff]  ;;  %v1084_v52 = vld [vmem:[%s6507_s5 + $0x1b20] sm:$0xff] }
 0x128   : > { %1081 = vst [vmem:[%s6512_s26 + $0xd90] sm:$0xff] %v1080_v50  ;;  %v1086_v53 = vld [vmem:[%s6507_s5 + $0x1b28] sm:$0xff]  ;;  %1083 = vst [vmem:[%s6512_s26 + $0xd98] sm:$0xff] %v1082_v51  ;;  %v1088_v54 = vld [vmem:[%s6507_s5 + $0x1b30] sm:$0xff] }
 0x129   : > { %1085 = vst [vmem:[%s6512_s26 + $0xda0] sm:$0xff] %v1084_v52  ;;  %1087 = vst [vmem:[%s6512_s26 + $0xda8] sm:$0xff] %v1086_v53  ;;  %v1090_v55 = vld [vmem:[%s6507_s5 + $0x1b38] sm:$0xff]  ;;  %v1092_v56 = vld [vmem:[%s6507_s5 + $0x1b80] sm:$0xff] }
 0x12a   : > { %1089 = vst [vmem:[%s6512_s26 + $0xdb0] sm:$0xff] %v1088_v54  ;;  %1091 = vst [vmem:[%s6512_s26 + $0xdb8] sm:$0xff] %v1090_v55  ;;  %v1094_v57 = vld [vmem:[%s6507_s5 + $0x1b88] sm:$0xff]  ;;  %v1096_v58 = vld [vmem:[%s6507_s5 + $0x1b90] sm:$0xff] }
 0x12b   : > { %1093 = vst [vmem:[%s6512_s26 + $0xdc0] sm:$0xff] %v1092_v56  ;;  %v1098_v59 = vld [vmem:[%s6507_s5 + $0x1b98] sm:$0xff]  ;;  %1095 = vst [vmem:[%s6512_s26 + $0xdc8] sm:$0xff] %v1094_v57  ;;  %v1100_v60 = vld [vmem:[%s6507_s5 + $0x1ba0] sm:$0xff] }
 0x12c   : > { %1097 = vst [vmem:[%s6512_s26 + $0xdd0] sm:$0xff] %v1096_v58  ;;  %1099 = vst [vmem:[%s6512_s26 + $0xdd8] sm:$0xff] %v1098_v59  ;;  %v1102_v61 = vld [vmem:[%s6507_s5 + $0x1ba8] sm:$0xff]  ;;  %v1104_v62 = vld [vmem:[%s6507_s5 + $0x1bb0] sm:$0xff] }
 0x12d   : > { %1101 = vst [vmem:[%s6512_s26 + $0xde0] sm:$0xff] %v1100_v60  ;;  %1103 = vst [vmem:[%s6512_s26 + $0xde8] sm:$0xff] %v1102_v61  ;;  %v1106_v63 = vld [vmem:[%s6507_s5 + $0x1bb8] sm:$0xff]  ;;  %v1108_v0 = vld [vmem:[%s6507_s5 + $0x1c00] sm:$0xff] }
 0x12e   : > { %1105 = vst [vmem:[%s6512_s26 + $0xdf0] sm:$0xff] %v1104_v62  ;;  %v1110_v1 = vld [vmem:[%s6507_s5 + $0x1c08] sm:$0xff]  ;;  %1107 = vst [vmem:[%s6512_s26 + $0xdf8] sm:$0xff] %v1106_v63  ;;  %v1112_v2 = vld [vmem:[%s6507_s5 + $0x1c10] sm:$0xff] }
 0x12f   : > { %1109 = vst [vmem:[%s6512_s26 + $0xe00] sm:$0xff] %v1108_v0  ;;  %1111 = vst [vmem:[%s6512_s26 + $0xe08] sm:$0xff] %v1110_v1  ;;  %v1114_v3 = vld [vmem:[%s6507_s5 + $0x1c18] sm:$0xff]  ;;  %v1116_v4 = vld [vmem:[%s6507_s5 + $0x1c20] sm:$0xff] }
 0x130   : > { %1113 = vst [vmem:[%s6512_s26 + $0xe10] sm:$0xff] %v1112_v2  ;;  %1115 = vst [vmem:[%s6512_s26 + $0xe18] sm:$0xff] %v1114_v3  ;;  %v1118_v5 = vld [vmem:[%s6507_s5 + $0x1c28] sm:$0xff]  ;;  %v1120_v6 = vld [vmem:[%s6507_s5 + $0x1c30] sm:$0xff] }
 0x131   : > { %1117 = vst [vmem:[%s6512_s26 + $0xe20] sm:$0xff] %v1116_v4  ;;  %v1122_v7 = vld [vmem:[%s6507_s5 + $0x1c38] sm:$0xff]  ;;  %1119 = vst [vmem:[%s6512_s26 + $0xe28] sm:$0xff] %v1118_v5  ;;  %v1124_v8 = vld [vmem:[%s6507_s5 + $0x1c80] sm:$0xff] }
 0x132   : > { %1121 = vst [vmem:[%s6512_s26 + $0xe30] sm:$0xff] %v1120_v6  ;;  %1123 = vst [vmem:[%s6512_s26 + $0xe38] sm:$0xff] %v1122_v7  ;;  %v1126_v9 = vld [vmem:[%s6507_s5 + $0x1c88] sm:$0xff]  ;;  %v1128_v10 = vld [vmem:[%s6507_s5 + $0x1c90] sm:$0xff] }
 0x133   : > { %1125 = vst [vmem:[%s6512_s26 + $0xe40] sm:$0xff] %v1124_v8  ;;  %1127 = vst [vmem:[%s6512_s26 + $0xe48] sm:$0xff] %v1126_v9  ;;  %v1130_v11 = vld [vmem:[%s6507_s5 + $0x1c98] sm:$0xff]  ;;  %v1132_v12 = vld [vmem:[%s6507_s5 + $0x1ca0] sm:$0xff] }
 0x134   : > { %1129 = vst [vmem:[%s6512_s26 + $0xe50] sm:$0xff] %v1128_v10  ;;  %v1134_v13 = vld [vmem:[%s6507_s5 + $0x1ca8] sm:$0xff]  ;;  %1131 = vst [vmem:[%s6512_s26 + $0xe58] sm:$0xff] %v1130_v11  ;;  %v1136_v14 = vld [vmem:[%s6507_s5 + $0x1cb0] sm:$0xff] }
 0x135   : > { %1133 = vst [vmem:[%s6512_s26 + $0xe60] sm:$0xff] %v1132_v12  ;;  %1135 = vst [vmem:[%s6512_s26 + $0xe68] sm:$0xff] %v1134_v13  ;;  %v1138_v15 = vld [vmem:[%s6507_s5 + $0x1cb8] sm:$0xff]  ;;  %v1140_v16 = vld [vmem:[%s6507_s5 + $0x1d00] sm:$0xff] }
 0x136   : > { %1137 = vst [vmem:[%s6512_s26 + $0xe70] sm:$0xff] %v1136_v14  ;;  %1139 = vst [vmem:[%s6512_s26 + $0xe78] sm:$0xff] %v1138_v15  ;;  %v1142_v17 = vld [vmem:[%s6507_s5 + $0x1d08] sm:$0xff]  ;;  %v1144_v18 = vld [vmem:[%s6507_s5 + $0x1d10] sm:$0xff] }
 0x137   : > { %1141 = vst [vmem:[%s6512_s26 + $0xe80] sm:$0xff] %v1140_v16  ;;  %v1146_v19 = vld [vmem:[%s6507_s5 + $0x1d18] sm:$0xff]  ;;  %1143 = vst [vmem:[%s6512_s26 + $0xe88] sm:$0xff] %v1142_v17  ;;  %v1148_v20 = vld [vmem:[%s6507_s5 + $0x1d20] sm:$0xff] }
 0x138   : > { %1145 = vst [vmem:[%s6512_s26 + $0xe90] sm:$0xff] %v1144_v18  ;;  %1147 = vst [vmem:[%s6512_s26 + $0xe98] sm:$0xff] %v1146_v19  ;;  %v1150_v21 = vld [vmem:[%s6507_s5 + $0x1d28] sm:$0xff]  ;;  %v1152_v22 = vld [vmem:[%s6507_s5 + $0x1d30] sm:$0xff] }
 0x139   : > { %1149 = vst [vmem:[%s6512_s26 + $0xea0] sm:$0xff] %v1148_v20  ;;  %1151 = vst [vmem:[%s6512_s26 + $0xea8] sm:$0xff] %v1150_v21  ;;  %v1154_v23 = vld [vmem:[%s6507_s5 + $0x1d38] sm:$0xff]  ;;  %v1156_v24 = vld [vmem:[%s6507_s5 + $0x1d80] sm:$0xff] }
 0x13a   : > { %1153 = vst [vmem:[%s6512_s26 + $0xeb0] sm:$0xff] %v1152_v22  ;;  %v1158_v25 = vld [vmem:[%s6507_s5 + $0x1d88] sm:$0xff]  ;;  %1155 = vst [vmem:[%s6512_s26 + $0xeb8] sm:$0xff] %v1154_v23  ;;  %v1160_v26 = vld [vmem:[%s6507_s5 + $0x1d90] sm:$0xff] }
 0x13b   : > { %1157 = vst [vmem:[%s6512_s26 + $0xec0] sm:$0xff] %v1156_v24  ;;  %1159 = vst [vmem:[%s6512_s26 + $0xec8] sm:$0xff] %v1158_v25  ;;  %v1162_v27 = vld [vmem:[%s6507_s5 + $0x1d98] sm:$0xff]  ;;  %v1164_v28 = vld [vmem:[%s6507_s5 + $0x1da0] sm:$0xff] }
 0x13c   : > { %1161 = vst [vmem:[%s6512_s26 + $0xed0] sm:$0xff] %v1160_v26  ;;  %1163 = vst [vmem:[%s6512_s26 + $0xed8] sm:$0xff] %v1162_v27  ;;  %v1166_v29 = vld [vmem:[%s6507_s5 + $0x1da8] sm:$0xff]  ;;  %v1168_v30 = vld [vmem:[%s6507_s5 + $0x1db0] sm:$0xff] }
 0x13d   : > { %1165 = vst [vmem:[%s6512_s26 + $0xee0] sm:$0xff] %v1164_v28  ;;  %v1170_v31 = vld [vmem:[%s6507_s5 + $0x1db8] sm:$0xff]  ;;  %1167 = vst [vmem:[%s6512_s26 + $0xee8] sm:$0xff] %v1166_v29  ;;  %v1172_v32 = vld [vmem:[%s6507_s5 + $0x1e00] sm:$0xff] }
 0x13e   : > { %1169 = vst [vmem:[%s6512_s26 + $0xef0] sm:$0xff] %v1168_v30  ;;  %1171 = vst [vmem:[%s6512_s26 + $0xef8] sm:$0xff] %v1170_v31  ;;  %v1174_v33 = vld [vmem:[%s6507_s5 + $0x1e08] sm:$0xff]  ;;  %v1176_v34 = vld [vmem:[%s6507_s5 + $0x1e10] sm:$0xff] }
 0x13f   : > { %1173 = vst [vmem:[%s6512_s26 + $0xf00] sm:$0xff] %v1172_v32  ;;  %1175 = vst [vmem:[%s6512_s26 + $0xf08] sm:$0xff] %v1174_v33  ;;  %v1178_v35 = vld [vmem:[%s6507_s5 + $0x1e18] sm:$0xff]  ;;  %v1180_v36 = vld [vmem:[%s6507_s5 + $0x1e20] sm:$0xff] }
 0x140   : > { %1177 = vst [vmem:[%s6512_s26 + $0xf10] sm:$0xff] %v1176_v34  ;;  %v1182_v37 = vld [vmem:[%s6507_s5 + $0x1e28] sm:$0xff]  ;;  %1179 = vst [vmem:[%s6512_s26 + $0xf18] sm:$0xff] %v1178_v35  ;;  %v1184_v38 = vld [vmem:[%s6507_s5 + $0x1e30] sm:$0xff] }
 0x141   : > { %1181 = vst [vmem:[%s6512_s26 + $0xf20] sm:$0xff] %v1180_v36  ;;  %1183 = vst [vmem:[%s6512_s26 + $0xf28] sm:$0xff] %v1182_v37  ;;  %v1186_v39 = vld [vmem:[%s6507_s5 + $0x1e38] sm:$0xff]  ;;  %v1188_v40 = vld [vmem:[%s6507_s5 + $0x1e80] sm:$0xff] }
 0x142   : > { %1185 = vst [vmem:[%s6512_s26 + $0xf30] sm:$0xff] %v1184_v38  ;;  %1187 = vst [vmem:[%s6512_s26 + $0xf38] sm:$0xff] %v1186_v39  ;;  %v1190_v41 = vld [vmem:[%s6507_s5 + $0x1e88] sm:$0xff]  ;;  %v1192_v42 = vld [vmem:[%s6507_s5 + $0x1e90] sm:$0xff] }
 0x143   : > { %1189 = vst [vmem:[%s6512_s26 + $0xf40] sm:$0xff] %v1188_v40  ;;  %v1194_v43 = vld [vmem:[%s6507_s5 + $0x1e98] sm:$0xff]  ;;  %1191 = vst [vmem:[%s6512_s26 + $0xf48] sm:$0xff] %v1190_v41  ;;  %v1196_v44 = vld [vmem:[%s6507_s5 + $0x1ea0] sm:$0xff] }
 0x144   : > { %1193 = vst [vmem:[%s6512_s26 + $0xf50] sm:$0xff] %v1192_v42  ;;  %1195 = vst [vmem:[%s6512_s26 + $0xf58] sm:$0xff] %v1194_v43  ;;  %v1198_v45 = vld [vmem:[%s6507_s5 + $0x1ea8] sm:$0xff]  ;;  %v1200_v46 = vld [vmem:[%s6507_s5 + $0x1eb0] sm:$0xff] }
 0x145   : > { %1197 = vst [vmem:[%s6512_s26 + $0xf60] sm:$0xff] %v1196_v44  ;;  %1199 = vst [vmem:[%s6512_s26 + $0xf68] sm:$0xff] %v1198_v45  ;;  %v1202_v47 = vld [vmem:[%s6507_s5 + $0x1eb8] sm:$0xff]  ;;  %v1204_v48 = vld [vmem:[%s6507_s5 + $0x1f00] sm:$0xff] }
 0x146   : > { %1201 = vst [vmem:[%s6512_s26 + $0xf70] sm:$0xff] %v1200_v46  ;;  %v1206_v49 = vld [vmem:[%s6507_s5 + $0x1f08] sm:$0xff]  ;;  %1203 = vst [vmem:[%s6512_s26 + $0xf78] sm:$0xff] %v1202_v47  ;;  %v1208_v50 = vld [vmem:[%s6507_s5 + $0x1f10] sm:$0xff] }
 0x147   : > { %1205 = vst [vmem:[%s6512_s26 + $0xf80] sm:$0xff] %v1204_v48  ;;  %1207 = vst [vmem:[%s6512_s26 + $0xf88] sm:$0xff] %v1206_v49  ;;  %v1210_v51 = vld [vmem:[%s6507_s5 + $0x1f18] sm:$0xff]  ;;  %v1212_v52 = vld [vmem:[%s6507_s5 + $0x1f20] sm:$0xff] }
 0x148   : > { %1209 = vst [vmem:[%s6512_s26 + $0xf90] sm:$0xff] %v1208_v50  ;;  %1211 = vst [vmem:[%s6512_s26 + $0xf98] sm:$0xff] %v1210_v51  ;;  %v1214_v53 = vld [vmem:[%s6507_s5 + $0x1f28] sm:$0xff]  ;;  %v1216_v54 = vld [vmem:[%s6507_s5 + $0x1f30] sm:$0xff] }
 0x149   : > { %1213 = vst [vmem:[%s6512_s26 + $0xfa0] sm:$0xff] %v1212_v52  ;;  %v1218_v55 = vld [vmem:[%s6507_s5 + $0x1f38] sm:$0xff]  ;;  %1215 = vst [vmem:[%s6512_s26 + $0xfa8] sm:$0xff] %v1214_v53  ;;  %v1220_v56 = vld [vmem:[%s6507_s5 + $0x1f80] sm:$0xff] }
 0x14a   : > { %1217 = vst [vmem:[%s6512_s26 + $0xfb0] sm:$0xff] %v1216_v54  ;;  %1219 = vst [vmem:[%s6512_s26 + $0xfb8] sm:$0xff] %v1218_v55  ;;  %v1222_v57 = vld [vmem:[%s6507_s5 + $0x1f88] sm:$0xff]  ;;  %v1224_v58 = vld [vmem:[%s6507_s5 + $0x1f90] sm:$0xff] }
 0x14b   : > { %1221 = vst [vmem:[%s6512_s26 + $0xfc0] sm:$0xff] %v1220_v56  ;;  %1223 = vst [vmem:[%s6512_s26 + $0xfc8] sm:$0xff] %v1222_v57  ;;  %v1226_v59 = vld [vmem:[%s6507_s5 + $0x1f98] sm:$0xff]  ;;  %v1228_v60 = vld [vmem:[%s6507_s5 + $0x1fa0] sm:$0xff] }
 0x14c   : > { %1225 = vst [vmem:[%s6512_s26 + $0xfd0] sm:$0xff] %v1224_v58  ;;  %v1230_v61 = vld [vmem:[%s6507_s5 + $0x1fa8] sm:$0xff]  ;;  %1227 = vst [vmem:[%s6512_s26 + $0xfd8] sm:$0xff] %v1226_v59  ;;  %v1232_v62 = vld [vmem:[%s6507_s5 + $0x1fb0] sm:$0xff] }
 0x14d   : > { %1229 = vst [vmem:[%s6512_s26 + $0xfe0] sm:$0xff] %v1228_v60  ;;  %1231 = vst [vmem:[%s6512_s26 + $0xfe8] sm:$0xff] %v1230_v61  ;;  %v1234_v63 = vld [vmem:[%s6507_s5 + $0x1fb8] sm:$0xff] }
 0x14e   : > { %1233 = vst [vmem:[%s6512_s26 + $0xff0] sm:$0xff] %v1232_v62  ;;  %1235 = vst [vmem:[%s6512_s26 + $0xff8] sm:$0xff] %v1234_v63 }
 0x14f PF: > { %s1242_s4 = sand.u32 1, %s6262_s14   ;;  %s5982_s6 = sshll.u32 %s6298_s23, 8 }
 0x150   : > { %s5449_s29 = sshll.u32 %s1242_s4, 4  ;;  %s7540_s12 = scalar_lea.hbm %s8260_s2, %s5982_s6 }
 0x151   : > { %s1246_s19 = scalar_lea.vmem [#allocation7], %s5449_s29  ;;  %s1243_s8 = scalar_lea.sflag [#allocation8], %s1242_s4 }
 0x152   : > { %s1254_s10 = sshll.u32 %s1246_s19, 4  ;;  %s6132_s27 = scalar_lea.hbm %s7540_s12, 256  ;;  %s1255_s10 = int_to_ptr.vmem [resolvable:$true] %s1254_s10 }
 0x153   : > { %p6133_p3 = scmp.ne.s32.totalorder %s7540_s12, %s6132_s27  ;;  %p8296_p8 = scmp.ne.s32.totalorder %s8287_s25, 0 }
 0x154   : > { %s6136_s30 = scalar_lea.hbm %s8260_s2, 512  ;;  %p6137_p6 = scmp.lt.u32.totalorder %s7540_s12, %s8260_s2 }
 0x155   : > { %p6134_p12 = pnand %p6133_p3, %p8296_p8  ;;  %p6138_p10 = scmp.lt.u32.totalorder %s6136_s30, %s6132_s27 }
 0x156   : > { %p6140_p4 = scmp.lt.u32.totalorder %s6132_s27, %s7540_s12 }
 0x157   : > { %p6135_p0 = pneg %p6134_p12  ;;  %p6139_p13 = por %p6138_p10, %p6137_p6 }
 0x159   : > { %p6141_p5 = por %p6140_p4, %p6139_p13 }
 0x15b   : > { %p6142_p2 = pnand %p6141_p5, %p6135_p0 }
 0x15d   : > { %6145 = shalt.err (!%p6142_p2)
}
 0x15e   : > { %s6146_s4 = scalar_lea.vmem %s1255_s10, 256  ;;  %s6305_s6 = smov [#allocation7]  }
 0x15f   : > { %p6147_p7 = scmp.ne.s32.totalorder %s1255_s10, %s6146_s4  ;;  %s6150_s29 = sshll.u32 %s6305_s6, 4  ;;  %s6151_s29 = int_to_ptr.vmem [resolvable:$false] %s6150_s29 }
 0x160   : > { %s6152_s11 = scalar_lea.vmem %s6151_s29, 512  ;;  %p6153_p9 = scmp.lt.s32.totalorder %s1255_s10, %s6151_s29 }
 0x161   : > { %p6148_p11 = pnand %p6147_p7, %p8296_p8  ;;  %p6154_p3 = scmp.lt.s32.totalorder %s6152_s11, %s6146_s4 }
 0x163   : > { %p6149_p1 = pneg %p6148_p11  ;;  %p6155_p12 = por %p6154_p3, %p6153_p9 }
 0x165   : > { %p6156_p6 = pnand %p6155_p12, %p6149_p1 }
 0x167   : > { %6159 = shalt.err (!%p6156_p6)
}
 0x168   : > { %5985 = dma.hbm_to_vmem [thread:$0]  (%p8296_p8), %s7540_s12, 256, %s1255_s10, %s1243_s8  }
 0x169 PF: > { %p5452_p0 = scmp.ge.s32.totalorder %s6302_s24, 1  ;;  %p1259_p10 = scmp.lt.s32.totalorder %s6302_s24, 17 }
 0x16b   : > { %p1260_p13 = pnand %p5452_p0, %p1259_p10 }
 0x16c   : > { %s1265_s3 = sand.u32 (!%p1260_p13), 1, %s6278_s18   ;;  %p8297_p4 = scmp.ne.s32.totalorder (!%p1260_p13), %s8283_s7, 0 }
 0x16d   : > { %1263 = sbr.rel (%p1260_p13) target bundleno = 1165 (0x48d), region = 51  ;;  %s7562_s19 = sshll.u32 (!%p1260_p13), %s1265_s3, 4 }
 0x16e   : > { %s1266_s27 = scalar_lea.sflag (!%p1260_p13), [#allocation4], %s1265_s3  ;;  %s1269_s28 = scalar_lea.vmem (!%p1260_p13), [#allocation3], %s7562_s19 }
 0x174   : > { %6241 = dma.done.wait (%p8297_p4), %s1266_s27, 256  }
 0x175   : > { %6243 = vsyncadd (%p8297_p4), %s1266_s27, 4294967040  ;;  %s1275_s25 = sand.u32 1, %s6266_s15   ;;  %s7571_s12 = sand.u32 1, %s6258_s13  }
 0x176   : > { %s5454_s10 = sshll.u32 %s1275_s25, 12  ;;  %s5455_s8 = sshll.u32 %s7571_s12, 4 }
 0x177   : > { %s7574_s17 = scalar_lea.vmem [#allocation6], %s5454_s10  ;;  %s1282_s30 = scalar_lea.sflag [#allocation8], %s7571_s12 }
 0x178   : > { %s7577_s5 = scalar_lea.vmem [#allocation7], %s5455_s8  ;;  %p8298_p8 = scmp.ne.s32.totalorder %s8290_s9, 0 }
 0x17a   : > { %6245 = dma.done.wait (%p8298_p8), %s1282_s30, 256  }
 0x17b   : > { %6247 = vsyncadd (%p8298_p8), %s1282_s30, 4294967040  ;;  %s5456_s7 = sshll.u32 %s7571_s12, 7  ;;  %p5457_p5 = scmp.ne.s32.totalorder %s6286_s20, 0 }
 0x17c   : > { %s7584_s26 = scalar_lea.vmem [#allocation9], %s5456_s7  ;;  %v6306_v0 = vmov (!%p5457_p5), 0.0  }
 0x17d   : > { %1325 = sbr.rel (%p5457_p5) target bundleno = 389 (0x185), region = 67  ;;  %1326 = vst [vmem:[#allocation2] sm:$0xff] (!%p5457_p5), %v6306_v0  ;;  %1327 = vst [vmem:[#allocation2 + $0x8] sm:$0xff] (!%p5457_p5), %v6306_v0 }
 0x17e   : > { %1328 = vst [vmem:[#allocation2 + $0x10] sm:$0xff] (!%p5457_p5), %v6306_v0  ;;  %1329 = vst [vmem:[#allocation2 + $0x18] sm:$0xff] (!%p5457_p5), %v6306_v0 }
 0x17f   : > { %1330 = vst [vmem:[#allocation2 + $0x20] sm:$0xff] (!%p5457_p5), %v6306_v0  ;;  %1331 = vst [vmem:[#allocation2 + $0x28] sm:$0xff] (!%p5457_p5), %v6306_v0 }
 0x180   : > { %1332 = vst [vmem:[#allocation2 + $0x30] sm:$0xff] (!%p5457_p5), %v6306_v0  ;;  %1333 = vst [vmem:[#allocation2 + $0x38] sm:$0xff] (!%p5457_p5), %v6306_v0 }
 0x181   : > { %1334 = vst [vmem:[#allocation2 + $0x40] sm:$0xff] (!%p5457_p5), %v6306_v0  ;;  %1335 = vst [vmem:[#allocation2 + $0x48] sm:$0xff] (!%p5457_p5), %v6306_v0 }
 0x182   : > { %1336 = vst [vmem:[#allocation2 + $0x50] sm:$0xff] (!%p5457_p5), %v6306_v0  ;;  %1337 = vst [vmem:[#allocation2 + $0x58] sm:$0xff] (!%p5457_p5), %v6306_v0 }
 0x183   : > { %1338 = vst [vmem:[#allocation2 + $0x60] sm:$0xff] (!%p5457_p5), %v6306_v0  ;;  %1339 = vst [vmem:[#allocation2 + $0x68] sm:$0xff] (!%p5457_p5), %v6306_v0 }
 0x184   : > { %1340 = vst [vmem:[#allocation2 + $0x70] sm:$0xff] %v6306_v0  ;;  %1341 = vst [vmem:[#allocation2 + $0x78] sm:$0xff] %v6306_v0 }
 0x185 PF: > { %v1360_v1 = vld [vmem:[%s7574_s17] sm:$0xff]  ;;  %v7621_v55 = vld [vmem:[%s1269_s28 + $0x8] sm:$0xff]  ;;  %p5974_p2 = scmp.ne.s32.totalorder %s6286_s20, 7 }
 0x186   : > { %v1368_v2 = vld [vmem:[%s7574_s17 + $0x40] sm:$0xff]  ;;  %v7631_v60 = vcombine.high %v7621_v55, %v7621_v55 }
 0x187   : > { %v1616_v3 = vld [vmem:[%s7574_s17 + $0x800] sm:$0xff]  ;;  %v5463_v4 = vcombine.high %v1360_v1, %v1368_v2  ;;  %v5462_v6 = vcombine.low %v1360_v1, %v1368_v2 }
 0x188   : > { %v1624_v5 = vld [vmem:[%s7574_s17 + $0x840] sm:$0xff]  ;;  %4519 = vmatprep.mubr.bf16.mxu1 %v7631_v60 }
 0x189   : > { %v1376_v7 = vld [vmem:[%s7574_s17 + $0x80] sm:$0xff]  ;;  %v5719_v9 = vcombine.high %v1616_v3, %v1624_v5  ;;  %v5718_v10 = vcombine.low %v1616_v3, %v1624_v5  ;;  %4446 = vmatprep.subr.bf16.mxu0 %v5463_v4 }
 0x18a   : > { %v1384_v8 = vld [vmem:[%s7574_s17 + $0xc0] sm:$0xff]  ;;  %4447 = vmatpush1.bf16.msra.mxu0 %v5462_v6 }
 0x18b   : > { %v5479_v11 = vcombine.high %v1376_v7, %v1384_v8  ;;  %v1632_v12 = vld [vmem:[%s7574_s17 + $0x880] sm:$0xff]  ;;  %4487 = vmatprep.subr.bf16.mxu1 %v5719_v9  ;;  %v5478_v19 = vcombine.low %v1376_v7, %v1384_v8 }
 0x18c   : > { %v1640_v13 = vld [vmem:[%s7574_s17 + $0x8c0] sm:$0xff]  ;;  %4488 = vmatpush1.bf16.msra.mxu1 %v5718_v10 }
 0x18d   : > { %v1392_v14 = vld [vmem:[%s7574_s17 + $0x100] sm:$0xff]  ;;  %v5735_v15 = vcombine.high %v1632_v12, %v1640_v13  ;;  %4448 = vmatprep.subr.bf16.mxu0 %v5479_v11  ;;  %v5734_v20 = vcombine.low %v1632_v12, %v1640_v13 }
 0x18e   : > { %v1400_v16 = vld [vmem:[%s7574_s17 + $0x140] sm:$0xff]  ;;  %4449 = vmatpush1.bf16.msra.mxu0 %v5478_v19 }
 0x18f   : > { %v1648_v17 = vld [vmem:[%s7574_s17 + $0x900] sm:$0xff]  ;;  %v5495_v21 = vcombine.high %v1392_v14, %v1400_v16  ;;  %4489 = vmatprep.subr.bf16.mxu1 %v5735_v15  ;;  %v5494_v27 = vcombine.low %v1392_v14, %v1400_v16 }
 0x190   : > { %v1656_v18 = vld [vmem:[%s7574_s17 + $0x940] sm:$0xff]  ;;  %4490 = vmatpush1.bf16.msra.mxu1 %v5734_v20 }
 0x191   : > { %v5751_v22 = vcombine.high %v1648_v17, %v1656_v18  ;;  %v1408_v23 = vld [vmem:[%s7574_s17 + $0x180] sm:$0xff]  ;;  %4450 = vmatprep.subr.bf16.mxu0 %v5495_v21  ;;  %v5750_v28 = vcombine.low %v1648_v17, %v1656_v18 }
 0x192   : > { %v1416_v24 = vld [vmem:[%s7574_s17 + $0x1c0] sm:$0xff]  ;;  %4451 = vmatpush1.bf16.msra.mxu0 %v5494_v27 }
 0x193   : > { %v1664_v25 = vld [vmem:[%s7574_s17 + $0x980] sm:$0xff]  ;;  %v5511_v29 = vcombine.high %v1408_v23, %v1416_v24  ;;  %4491 = vmatprep.subr.bf16.mxu1 %v5751_v22  ;;  %v5510_v35 = vcombine.low %v1408_v23, %v1416_v24 }
 0x194   : > { %v1672_v26 = vld [vmem:[%s7574_s17 + $0x9c0] sm:$0xff]  ;;  %4492 = vmatpush1.bf16.msra.mxu1 %v5750_v28 }
 0x195   : > { %v5767_v30 = vcombine.high %v1664_v25, %v1672_v26  ;;  %v1424_v31 = vld [vmem:[%s7574_s17 + $0x200] sm:$0xff]  ;;  %4452 = vmatprep.subr.bf16.mxu0 %v5511_v29  ;;  %v5766_v36 = vcombine.low %v1664_v25, %v1672_v26 }
 0x196   : > { %v1432_v32 = vld [vmem:[%s7574_s17 + $0x240] sm:$0xff]  ;;  %4453 = vmatpush1.bf16.msra.mxu0 %v5510_v35 }
 0x197   : > { %v1680_v33 = vld [vmem:[%s7574_s17 + $0xa00] sm:$0xff]  ;;  %v5527_v37 = vcombine.high %v1424_v31, %v1432_v32  ;;  %4493 = vmatprep.subr.bf16.mxu1 %v5767_v30  ;;  %v5526_v43 = vcombine.low %v1424_v31, %v1432_v32 }
 0x198   : > { %v1688_v34 = vld [vmem:[%s7574_s17 + $0xa40] sm:$0xff]  ;;  %4494 = vmatpush1.bf16.msra.mxu1 %v5766_v36 }
 0x199   : > { %v5783_v38 = vcombine.high %v1680_v33, %v1688_v34  ;;  %v1440_v39 = vld [vmem:[%s7574_s17 + $0x280] sm:$0xff]  ;;  %4454 = vmatprep.subr.bf16.mxu0 %v5527_v37  ;;  %v5782_v44 = vcombine.low %v1680_v33, %v1688_v34 }
 0x19a   : > { %v1448_v40 = vld [vmem:[%s7574_s17 + $0x2c0] sm:$0xff]  ;;  %4455 = vmatpush1.bf16.msra.mxu0 %v5526_v43 }
 0x19b   : > { %v1696_v41 = vld [vmem:[%s7574_s17 + $0xa80] sm:$0xff]  ;;  %v5543_v45 = vcombine.high %v1440_v39, %v1448_v40  ;;  %4495 = vmatprep.subr.bf16.mxu1 %v5783_v38  ;;  %v5542_v51 = vcombine.low %v1440_v39, %v1448_v40 }
 0x19c   : > { %v1704_v42 = vld [vmem:[%s7574_s17 + $0xac0] sm:$0xff]  ;;  %4496 = vmatpush1.bf16.msra.mxu1 %v5782_v44 }
 0x19d   : > { %v5799_v46 = vcombine.high %v1696_v41, %v1704_v42  ;;  %v1456_v47 = vld [vmem:[%s7574_s17 + $0x300] sm:$0xff]  ;;  %4456 = vmatprep.subr.bf16.mxu0 %v5543_v45  ;;  %v5798_v52 = vcombine.low %v1696_v41, %v1704_v42 }
 0x19e   : > { %v1464_v48 = vld [vmem:[%s7574_s17 + $0x340] sm:$0xff]  ;;  %4457 = vmatpush1.bf16.msra.mxu0 %v5542_v51 }
 0x19f   : > { %v1712_v49 = vld [vmem:[%s7574_s17 + $0xb00] sm:$0xff]  ;;  %v5559_v53 = vcombine.high %v1456_v47, %v1464_v48  ;;  %4497 = vmatprep.subr.bf16.mxu1 %v5799_v46  ;;  %v5558_v63 = vcombine.low %v1456_v47, %v1464_v48 }
 0x1a0   : > { %v1720_v50 = vld [vmem:[%s7574_s17 + $0xb40] sm:$0xff]  ;;  %4498 = vmatpush1.bf16.msra.mxu1 %v5798_v52 }
 0x1a1   : > { %v7617_v54 = vld [vmem:[%s1269_s28] sm:$0xff]  ;;  %v5815_v56 = vcombine.high %v1712_v49, %v1720_v50  ;;  %4458 = vmatprep.subr.bf16.mxu0 %v5559_v53  ;;  %v5814_v0 = vcombine.low %v1712_v49, %v1720_v50 }
 0x1a2   : > { %v1472_v57 = vld [vmem:[%s7574_s17 + $0x380] sm:$0xff]  ;;  %v7627_v59 = vcombine.high %v7617_v54, %v7617_v54  ;;  %4459 = vmatpush1.bf16.msra.mxu0 %v5558_v63 }
 0x1a3   : > { %v1480_v58 = vld [vmem:[%s7574_s17 + $0x3c0] sm:$0xff]  ;;  %4499 = vmatprep.subr.bf16.mxu1 %v5815_v56 }
 0x1a4   : > { %v1728_v61 = vld [vmem:[%s7574_s17 + $0xb80] sm:$0xff]  ;;  %4478 = vmatprep.mubr.bf16.mxu0 %v7627_v59  ;;  %v5575_v1 = vcombine.high %v1472_v57, %v1480_v58  ;;  %v5574_v7 = vcombine.low %v1472_v57, %v1480_v58  ;;  %4500 = vmatpush1.bf16.msra.mxu1 %v5814_v0 }
 0x1a5   : > { %v1736_v62 = vld [vmem:[%s7574_s17 + $0xbc0] sm:$0xff] }
 0x1a6   : > { %v5831_v2 = vcombine.high %v1728_v61, %v1736_v62  ;;  %v1488_v3 = vld [vmem:[%s7574_s17 + $0x400] sm:$0xff]  ;;  %4460 = vmatprep.subr.bf16.mxu0 %v5575_v1  ;;  %v5830_v8 = vcombine.low %v1728_v61, %v1736_v62 }
 0x1a7   : > { %v1496_v4 = vld [vmem:[%s7574_s17 + $0x440] sm:$0xff]  ;;  %4461 = vmatpush1.bf16.msra.mxu0 %v5574_v7  ;;  %v1361_v7 = vld [vmem:[%s7574_s17 + $0x8] sm:$0xff] }
 0x1a8   : > { %v1744_v5 = vld [vmem:[%s7574_s17 + $0xc00] sm:$0xff]  ;;  %v5591_v9 = vcombine.high %v1488_v3, %v1496_v4  ;;  %4501 = vmatprep.subr.bf16.mxu1 %v5831_v2  ;;  %v5590_v15 = vcombine.low %v1488_v3, %v1496_v4 }
 0x1a9   : > { %v1752_v6 = vld [vmem:[%s7574_s17 + $0xc40] sm:$0xff]  ;;  %4502 = vmatpush1.bf16.msra.mxu1 %v5830_v8  ;;  %v1369_v8 = vld [vmem:[%s7574_s17 + $0x48] sm:$0xff] }
 0x1aa   : > { %v5847_v10 = vcombine.high %v1744_v5, %v1752_v6  ;;  %v1504_v11 = vld [vmem:[%s7574_s17 + $0x480] sm:$0xff]  ;;  %4462 = vmatprep.subr.bf16.mxu0 %v5591_v9  ;;  %v5846_v16 = vcombine.low %v1744_v5, %v1752_v6  ;;  %v1617_v9 = vld [vmem:[%s7574_s17 + $0x808] sm:$0xff] }
 0x1ab   : > { %v1512_v12 = vld [vmem:[%s7574_s17 + $0x4c0] sm:$0xff]  ;;  %4463 = vmatpush1.bf16.msra.mxu0 %v5590_v15  ;;  %v1377_v15 = vld [vmem:[%s7574_s17 + $0x88] sm:$0xff] }
 0x1ac   : > { %v1760_v13 = vld [vmem:[%s7574_s17 + $0xc80] sm:$0xff]  ;;  %v5607_v17 = vcombine.high %v1504_v11, %v1512_v12  ;;  %4503 = vmatprep.subr.bf16.mxu1 %v5847_v10  ;;  %v5606_v23 = vcombine.low %v1504_v11, %v1512_v12  ;;  %v1625_v10 = vld [vmem:[%s7574_s17 + $0x848] sm:$0xff] }
 0x1ad   : > { %v1768_v14 = vld [vmem:[%s7574_s17 + $0xcc0] sm:$0xff]  ;;  %4504 = vmatpush1.bf16.msra.mxu1 %v5846_v16  ;;  %v1385_v16 = vld [vmem:[%s7574_s17 + $0xc8] sm:$0xff] }
 0x1ae   : > { %v5863_v18 = vcombine.high %v1760_v13, %v1768_v14  ;;  %v1520_v19 = vld [vmem:[%s7574_s17 + $0x500] sm:$0xff]  ;;  %4464 = vmatprep.subr.bf16.mxu0 %v5607_v17  ;;  %v5862_v24 = vcombine.low %v1760_v13, %v1768_v14  ;;  %v5465_v13 = vcombine.high %v1361_v7, %v1369_v8  ;;  %v5721_v14 = vcombine.high %v1617_v9, %v1625_v10 }
 0x1af   : > { %v1528_v20 = vld [vmem:[%s7574_s17 + $0x540] sm:$0xff]  ;;  %4465 = vmatpush1.bf16.msra.mxu0 %v5606_v23  ;;  %v7677_v17 = vcombine.low %v7617_v54, %v7617_v54  ;;  %v5481_v23 = vcombine.high %v1377_v15, %v1385_v16  ;;  %v1401_v54 = vld [vmem:[%s7574_s17 + $0x148] sm:$0xff] }
 0x1b0   : > { %v1776_v21 = vld [vmem:[%s7574_s17 + $0xd00] sm:$0xff]  ;;  %v5623_v25 = vcombine.high %v1520_v19, %v1528_v20  ;;  %4505 = vmatprep.subr.bf16.mxu1 %v5863_v18  ;;  %v5622_v31 = vcombine.low %v1520_v19, %v1528_v20  ;;  %v1633_v18 = vld [vmem:[%s7574_s17 + $0x888] sm:$0xff]  ;;  %v7683_v20 = vcombine.low %v7621_v55, %v7621_v55  ;;  %v5480_v55 = vcombine.low %v1377_v15, %v1385_v16 }
 0x1b1   : > { %v1784_v22 = vld [vmem:[%s7574_s17 + $0xd40] sm:$0xff]  ;;  %4506 = vmatpush1.bf16.msra.mxu1 %v5862_v24  ;;  %v1641_v19 = vld [vmem:[%s7574_s17 + $0x8c8] sm:$0xff] }
 0x1b2   : > { %v5879_v26 = vcombine.high %v1776_v21, %v1784_v22  ;;  %v1536_v27 = vld [vmem:[%s7574_s17 + $0x580] sm:$0xff]  ;;  %4466 = vmatprep.subr.bf16.mxu0 %v5623_v25  ;;  %v5878_v32 = vcombine.low %v1776_v21, %v1784_v22  ;;  %v5464_v21 = vcombine.low %v1361_v7, %v1369_v8  ;;  %v5720_v22 = vcombine.low %v1617_v9, %v1625_v10  ;;  %v1393_v25 = vld [vmem:[%s7574_s17 + $0x108] sm:$0xff] }
 0x1b3   : > { %v1544_v28 = vld [vmem:[%s7574_s17 + $0x5c0] sm:$0xff]  ;;  %4467 = vmatpush1.bf16.msra.mxu0 %v5622_v31  ;;  %v5737_v24 = vcombine.high %v1633_v18, %v1641_v19  ;;  %v1409_v31 = vld [vmem:[%s7574_s17 + $0x188] sm:$0xff] }
 0x1b4   : > { %v1792_v29 = vld [vmem:[%s7574_s17 + $0xd80] sm:$0xff]  ;;  %v5639_v33 = vcombine.high %v1536_v27, %v1544_v28  ;;  %4507 = vmatprep.subr.bf16.mxu1 %v5879_v26  ;;  %v5638_v39 = vcombine.low %v1536_v27, %v1544_v28  ;;  %v1649_v26 = vld [vmem:[%s7574_s17 + $0x908] sm:$0xff]  ;;  %v5736_v28 = vcombine.low %v1633_v18, %v1641_v19 }
 0x1b5   : > { %v1800_v30 = vld [vmem:[%s7574_s17 + $0xdc0] sm:$0xff]  ;;  %4508 = vmatpush1.bf16.msra.mxu1 %v5878_v32  ;;  %v1657_v27 = vld [vmem:[%s7574_s17 + $0x948] sm:$0xff] }
 0x1b6   : > { %v5895_v34 = vcombine.high %v1792_v29, %v1800_v30  ;;  %v1552_v35 = vld [vmem:[%s7574_s17 + $0x600] sm:$0xff]  ;;  %4468 = vmatprep.subr.bf16.mxu0 %v5639_v33  ;;  %v5894_v40 = vcombine.low %v1792_v29, %v1800_v30  ;;  %v5497_v29 = vcombine.high %v1393_v25, %v1401_v54  ;;  %v5753_v30 = vcombine.high %v1649_v26, %v1657_v27  ;;  %v1417_v32 = vld [vmem:[%s7574_s17 + $0x1c8] sm:$0xff] }
 0x1b7   : > { %v1560_v36 = vld [vmem:[%s7574_s17 + $0x640] sm:$0xff]  ;;  %4469 = vmatpush1.bf16.msra.mxu0 %v5638_v39  ;;  %v1665_v33 = vld [vmem:[%s7574_s17 + $0x988] sm:$0xff] }
 0x1b8   : > { %v1808_v37 = vld [vmem:[%s7574_s17 + $0xe00] sm:$0xff]  ;;  %v5655_v41 = vcombine.high %v1552_v35, %v1560_v36  ;;  %4509 = vmatprep.subr.bf16.mxu1 %v5895_v34  ;;  %v5654_v47 = vcombine.low %v1552_v35, %v1560_v36  ;;  %v1673_v34 = vld [vmem:[%s7574_s17 + $0x9c8] sm:$0xff]  ;;  %v5496_v35 = vcombine.low %v1393_v25, %v1401_v54  ;;  %v5752_v36 = vcombine.low %v1649_v26, %v1657_v27 }
 0x1b9   : > { %v1816_v38 = vld [vmem:[%s7574_s17 + $0xe40] sm:$0xff]  ;;  %4510 = vmatpush1.bf16.msra.mxu1 %v5894_v40  ;;  %v1425_v39 = vld [vmem:[%s7574_s17 + $0x208] sm:$0xff] }
 0x1ba   : > { %v5911_v42 = vcombine.high %v1808_v37, %v1816_v38  ;;  %v1568_v43 = vld [vmem:[%s7574_s17 + $0x680] sm:$0xff]  ;;  %4470 = vmatprep.subr.bf16.mxu0 %v5655_v41  ;;  %v5910_v48 = vcombine.low %v1808_v37, %v1816_v38  ;;  %v5513_v37 = vcombine.high %v1409_v31, %v1417_v32  ;;  %v5769_v38 = vcombine.high %v1665_v33, %v1673_v34  ;;  %v1433_v40 = vld [vmem:[%s7574_s17 + $0x248] sm:$0xff] }
 0x1bb   : > { %v1576_v44 = vld [vmem:[%s7574_s17 + $0x6c0] sm:$0xff]  ;;  %4471 = vmatpush1.bf16.msra.mxu0 %v5654_v47  ;;  %v1681_v41 = vld [vmem:[%s7574_s17 + $0xa08] sm:$0xff] }
 0x1bc   : > { %v1824_v45 = vld [vmem:[%s7574_s17 + $0xe80] sm:$0xff]  ;;  %v5671_v49 = vcombine.high %v1568_v43, %v1576_v44  ;;  %4511 = vmatprep.subr.bf16.mxu1 %v5911_v42  ;;  %v5670_v57 = vcombine.low %v1568_v43, %v1576_v44  ;;  %v1689_v42 = vld [vmem:[%s7574_s17 + $0xa48] sm:$0xff]  ;;  %v5512_v43 = vcombine.low %v1409_v31, %v1417_v32  ;;  %v5768_v44 = vcombine.low %v1665_v33, %v1673_v34 }
 0x1bd   : > { %v1832_v46 = vld [vmem:[%s7574_s17 + $0xec0] sm:$0xff]  ;;  %4512 = vmatpush1.bf16.msra.mxu1 %v5910_v48  ;;  %v1441_v47 = vld [vmem:[%s7574_s17 + $0x288] sm:$0xff] }
 0x1be   : > { %v5927_v50 = vcombine.high %v1824_v45, %v1832_v46  ;;  %v1584_v51 = vld [vmem:[%s7574_s17 + $0x700] sm:$0xff]  ;;  %4472 = vmatprep.subr.bf16.mxu0 %v5671_v49  ;;  %v5926_v58 = vcombine.low %v1824_v45, %v1832_v46  ;;  %v5529_v45 = vcombine.high %v1425_v39, %v1433_v40  ;;  %v5785_v46 = vcombine.high %v1681_v41, %v1689_v42  ;;  %v1449_v48 = vld [vmem:[%s7574_s17 + $0x2c8] sm:$0xff] }
 0x1bf   : > { %v1592_v52 = vld [vmem:[%s7574_s17 + $0x740] sm:$0xff]  ;;  %4473 = vmatpush1.bf16.msra.mxu0 %v5670_v57  ;;  %v1697_v49 = vld [vmem:[%s7574_s17 + $0xa88] sm:$0xff] }
 0x1c0   : > { %v1840_v53 = vld [vmem:[%s7574_s17 + $0xf00] sm:$0xff]  ;;  %v5687_v61 = vcombine.high %v1584_v51, %v1592_v52  ;;  %4513 = vmatprep.subr.bf16.mxu1 %v5927_v50  ;;  %v5686_v3 = vcombine.low %v1584_v51, %v1592_v52  ;;  %v1705_v50 = vld [vmem:[%s7574_s17 + $0xac8] sm:$0xff]  ;;  %v5528_v51 = vcombine.low %v1425_v39, %v1433_v40  ;;  %v5784_v52 = vcombine.low %v1681_v41, %v1689_v42 }
 0x1c1   : > { %v1848_v56 = vld [vmem:[%s7574_s17 + $0xf40] sm:$0xff]  ;;  %4514 = vmatpush1.bf16.msra.mxu1 %v5926_v58  ;;  %v1457_v57 = vld [vmem:[%s7574_s17 + $0x308] sm:$0xff] }
 0x1c2   : > { %v5943_v62 = vcombine.high %v1840_v53, %v1848_v56  ;;  %v1600_v63 = vld [vmem:[%s7574_s17 + $0x780] sm:$0xff]  ;;  %4474 = vmatprep.subr.bf16.mxu0 %v5687_v61  ;;  %v5942_v4 = vcombine.low %v1840_v53, %v1848_v56  ;;  %v5545_v53 = vcombine.high %v1441_v47, %v1449_v48  ;;  %v5801_v56 = vcombine.high %v1697_v49, %v1705_v50  ;;  %v1465_v58 = vld [vmem:[%s7574_s17 + $0x348] sm:$0xff] }
 0x1c3   : > { %v1608_v0 = vld [vmem:[%s7574_s17 + $0x7c0] sm:$0xff]  ;;  %4475 = vmatpush1.bf16.msra.mxu0 %v5686_v3  ;;  %v1713_v61 = vld [vmem:[%s7574_s17 + $0xb08] sm:$0xff]  ;;  %v5560_v7 = vcombine.low %v1457_v57, %v1465_v58 }
 0x1c4   : > { %v1856_v1 = vld [vmem:[%s7574_s17 + $0xf80] sm:$0xff]  ;;  %v5703_v5 = vcombine.high %v1600_v63, %v1608_v0  ;;  %4515 = vmatprep.subr.bf16.mxu1 %v5943_v62  ;;  %v5702_v11 = vcombine.low %v1600_v63, %v1608_v0  ;;  %v1721_v62 = vld [vmem:[%s7574_s17 + $0xb48] sm:$0xff]  ;;  %v5544_v63 = vcombine.low %v1441_v47, %v1449_v48  ;;  %v5800_v0 = vcombine.low %v1697_v49, %v1705_v50 }
 0x1c5   : > { %v1864_v2 = vld [vmem:[%s7574_s17 + $0xfc0] sm:$0xff]  ;;  %4516 = vmatpush1.bf16.msra.mxu1 %v5942_v4  ;;  %v1473_v3 = vld [vmem:[%s7574_s17 + $0x388] sm:$0xff]  ;;  %v5816_v8 = vcombine.low %v1713_v61, %v1721_v62 }
 0x1c6   : > { %v5959_v6 = vcombine.high %v1856_v1, %v1864_v2  ;;  %4476 = vmatprep.subr.bf16.mxu0 %v5703_v5  ;;  %v5958_v12 = vcombine.low %v1856_v1, %v1864_v2  ;;  %v5561_v1 = vcombine.high %v1457_v57, %v1465_v58  ;;  %v5817_v2 = vcombine.high %v1713_v61, %v1721_v62  ;;  %v1481_v4 = vld [vmem:[%s7574_s17 + $0x3c8] sm:$0xff] }
 0x1c7   : > { %4477 = vmatpush1.bf16.msra.mxu0 %v5702_v11  ;;  %v1729_v5 = vld [vmem:[%s7574_s17 + $0xb88] sm:$0xff]  ;;  %v5577_v9 = vcombine.high %v1473_v3, %v1481_v4  ;;  %v5576_v15 = vcombine.low %v1473_v3, %v1481_v4 }
 0x1c8   : > { %4517 = vmatprep.subr.bf16.mxu1 %v5959_v6  ;;  %4528 = vmatprep.subr.bf16.mxu0 %v5465_v13  ;;  %v1737_v6 = vld [vmem:[%s7574_s17 + $0xbc8] sm:$0xff] }
 0x1c9   : > { %4518 = vmatpush1.bf16.msra.mxu1 %v5958_v12  ;;  %v5833_v10 = vcombine.high %v1729_v5, %v1737_v6  ;;  %v1489_v11 = vld [vmem:[%s7574_s17 + $0x408] sm:$0xff]  ;;  %v5832_v16 = vcombine.low %v1729_v5, %v1737_v6 }
 0x1ca   : > { %4569 = vmatprep.subr.bf16.mxu1 %v5721_v14  ;;  %4479 = vmatmul.mubr.bf16.vlgmr.msra.gmra.mrb[0].mxu0 %v7677_v17  ;;  %v1497_v12 = vld [vmem:[%s7574_s17 + $0x448] sm:$0xff] }
 0x1cb   : > { %4529 = vmatpush1.bf16.msra.mxu0 %v5464_v21  ;;  %4560 = vmatprep.mubr.bf16.mxu0 %v7627_v59  ;;  %v1745_v13 = vld [vmem:[%s7574_s17 + $0xc08] sm:$0xff]  ;;  %v5593_v18 = vcombine.high %v1489_v11, %v1497_v12  ;;  %v5592_v25 = vcombine.low %v1489_v11, %v1497_v12 }
 0x1cc   : > { %4520 = vmatmul.mubr.bf16.vlgmr.msra.gmra.mrb[0].mxu1 %v7683_v20  ;;  %4530 = vmatprep.subr.bf16.mxu0 %v5481_v23  ;;  %v1753_v14 = vld [vmem:[%s7574_s17 + $0xc48] sm:$0xff] }
 0x1cd   : > { %4570 = vmatpush1.bf16.msra.mxu1 %v5720_v22  ;;  %4601 = vmatprep.mubr.bf16.mxu1 %v7631_v60  ;;  %v5849_v19 = vcombine.high %v1745_v13, %v1753_v14  ;;  %v1505_v21 = vld [vmem:[%s7574_s17 + $0x488] sm:$0xff]  ;;  %v5848_v54 = vcombine.low %v1745_v13, %v1753_v14 }
 0x1ce   : > { %4571 = vmatprep.subr.bf16.mxu1 %v5737_v24  ;;  %v1513_v22 = vld [vmem:[%s7574_s17 + $0x4c8] sm:$0xff] }
 0x1cf   : > { %4531 = vmatpush1.bf16.msra.mxu0 %v5480_v55  ;;  %v1761_v23 = vld [vmem:[%s7574_s17 + $0xc88] sm:$0xff]  ;;  %v5609_v26 = vcombine.high %v1505_v21, %v1513_v22  ;;  %v5608_v31 = vcombine.low %v1505_v21, %v1513_v22 }
 0x1d0   : > { %4532 = vmatprep.subr.bf16.mxu0 %v5497_v29  ;;  %v1769_v24 = vld [vmem:[%s7574_s17 + $0xcc8] sm:$0xff] }
 0x1d1   : > { %4572 = vmatpush1.bf16.msra.mxu1 %v5736_v28  ;;  %v5865_v27 = vcombine.high %v1761_v23, %v1769_v24  ;;  %v1521_v55 = vld [vmem:[%s7574_s17 + $0x508] sm:$0xff]  ;;  %v5864_v32 = vcombine.low %v1761_v23, %v1769_v24 }
 0x1d2   : > { %4573 = vmatprep.subr.bf16.mxu1 %v5753_v30  ;;  %v1529_v28 = vld [vmem:[%s7574_s17 + $0x548] sm:$0xff] }
 0x1d3   : > { %4533 = vmatpush1.bf16.msra.mxu0 %v5496_v35  ;;  %v1777_v29 = vld [vmem:[%s7574_s17 + $0xd08] sm:$0xff]  ;;  %v5625_v33 = vcombine.high %v1521_v55, %v1529_v28  ;;  %v5624_v39 = vcombine.low %v1521_v55, %v1529_v28 }
 0x1d4   : > { %4534 = vmatprep.subr.bf16.mxu0 %v5513_v37  ;;  %v1785_v30 = vld [vmem:[%s7574_s17 + $0xd48] sm:$0xff] }
 0x1d5   : > { %4574 = vmatpush1.bf16.msra.mxu1 %v5752_v36  ;;  %v5881_v34 = vcombine.high %v1777_v29, %v1785_v30  ;;  %v1537_v35 = vld [vmem:[%s7574_s17 + $0x588] sm:$0xff]  ;;  %v5880_v40 = vcombine.low %v1777_v29, %v1785_v30 }
 0x1d6   : > { %4575 = vmatprep.subr.bf16.mxu1 %v5769_v38  ;;  %v1545_v36 = vld [vmem:[%s7574_s17 + $0x5c8] sm:$0xff] }
 0x1d7   : > { %4535 = vmatpush1.bf16.msra.mxu0 %v5512_v43  ;;  %v1793_v37 = vld [vmem:[%s7574_s17 + $0xd88] sm:$0xff]  ;;  %v5641_v41 = vcombine.high %v1537_v35, %v1545_v36  ;;  %v5640_v47 = vcombine.low %v1537_v35, %v1545_v36 }
 0x1d8   : > { %4536 = vmatprep.subr.bf16.mxu0 %v5529_v45  ;;  %v1801_v38 = vld [vmem:[%s7574_s17 + $0xdc8] sm:$0xff] }
 0x1d9   : > { %4576 = vmatpush1.bf16.msra.mxu1 %v5768_v44  ;;  %v5897_v42 = vcombine.high %v1793_v37, %v1801_v38  ;;  %v1553_v43 = vld [vmem:[%s7574_s17 + $0x608] sm:$0xff]  ;;  %v5896_v48 = vcombine.low %v1793_v37, %v1801_v38 }
 0x1da   : > { %4577 = vmatprep.subr.bf16.mxu1 %v5785_v46  ;;  %v1561_v44 = vld [vmem:[%s7574_s17 + $0x648] sm:$0xff] }
 0x1db   : > { %4537 = vmatpush1.bf16.msra.mxu0 %v5528_v51  ;;  %v1809_v45 = vld [vmem:[%s7574_s17 + $0xe08] sm:$0xff]  ;;  %v5657_v49 = vcombine.high %v1553_v43, %v1561_v44  ;;  %v5656_v57 = vcombine.low %v1553_v43, %v1561_v44 }
 0x1dc   : > { %4538 = vmatprep.subr.bf16.mxu0 %v5545_v53  ;;  %v1817_v46 = vld [vmem:[%s7574_s17 + $0xe48] sm:$0xff] }
 0x1dd   : > { %4578 = vmatpush1.bf16.msra.mxu1 %v5784_v52  ;;  %v5913_v50 = vcombine.high %v1809_v45, %v1817_v46  ;;  %v1569_v51 = vld [vmem:[%s7574_s17 + $0x688] sm:$0xff]  ;;  %v5912_v58 = vcombine.low %v1809_v45, %v1817_v46 }
 0x1de   : > { %4579 = vmatprep.subr.bf16.mxu1 %v5801_v56  ;;  %v1577_v52 = vld [vmem:[%s7574_s17 + $0x6c8] sm:$0xff] }
 0x1df   : > { %4539 = vmatpush1.bf16.msra.mxu0 %v5544_v63  ;;  %v1825_v53 = vld [vmem:[%s7574_s17 + $0xe88] sm:$0xff]  ;;  %v5673_v61 = vcombine.high %v1569_v51, %v1577_v52  ;;  %v5672_v3 = vcombine.low %v1569_v51, %v1577_v52 }
 0x1e0   : > { %4540 = vmatprep.subr.bf16.mxu0 %v5561_v1  ;;  %v1833_v56 = vld [vmem:[%s7574_s17 + $0xec8] sm:$0xff] }
 0x1e1   : > { %4580 = vmatpush1.bf16.msra.mxu1 %v5800_v0  ;;  %v5929_v62 = vcombine.high %v1825_v53, %v1833_v56  ;;  %v1585_v63 = vld [vmem:[%s7574_s17 + $0x708] sm:$0xff]  ;;  %v5928_v4 = vcombine.low %v1825_v53, %v1833_v56 }
 0x1e2   : > { %4581 = vmatprep.subr.bf16.mxu1 %v5817_v2  ;;  %v1593_v0 = vld [vmem:[%s7574_s17 + $0x748] sm:$0xff] }
 0x1e3   : > { %4541 = vmatpush1.bf16.msra.mxu0 %v5560_v7  ;;  %v1841_v1 = vld [vmem:[%s7574_s17 + $0xf08] sm:$0xff]  ;;  %v5689_v5 = vcombine.high %v1585_v63, %v1593_v0  ;;  %v5688_v11 = vcombine.low %v1585_v63, %v1593_v0 }
 0x1e4   : > { %4542 = vmatprep.subr.bf16.mxu0 %v5577_v9  ;;  %v1849_v2 = vld [vmem:[%s7574_s17 + $0xf48] sm:$0xff] }
 0x1e5   : > { %4582 = vmatpush1.bf16.msra.mxu1 %v5816_v8  ;;  %v5945_v6 = vcombine.high %v1841_v1, %v1849_v2  ;;  %v1601_v7 = vld [vmem:[%s7574_s17 + $0x788] sm:$0xff]  ;;  %v5944_v12 = vcombine.low %v1841_v1, %v1849_v2 }
 0x1e6   : > { %4583 = vmatprep.subr.bf16.mxu1 %v5833_v10  ;;  %v1609_v8 = vld [vmem:[%s7574_s17 + $0x7c8] sm:$0xff] }
 0x1e7   : > { %4543 = vmatpush1.bf16.msra.mxu0 %v5576_v15  ;;  %v1857_v9 = vld [vmem:[%s7574_s17 + $0xf88] sm:$0xff]  ;;  %v5705_v13 = vcombine.high %v1601_v7, %v1609_v8  ;;  %v1362_v15 = vld [vmem:[%s7574_s17 + $0x10] sm:$0xff]  ;;  %v5704_v21 = vcombine.low %v1601_v7, %v1609_v8 }
 0x1e8   : > { %4544 = vmatprep.subr.bf16.mxu0 %v5593_v18  ;;  %v1865_v10 = vld [vmem:[%s7574_s17 + $0xfc8] sm:$0xff]  ;;  %v1618_v18 = vld [vmem:[%s7574_s17 + $0x810] sm:$0xff] }
 0x1e9   : > { %4584 = vmatpush1.bf16.msra.mxu1 %v5832_v16  ;;  %v5961_v14 = vcombine.high %v1857_v9, %v1865_v10  ;;  %v1370_v16 = vld [vmem:[%s7574_s17 + $0x50] sm:$0xff]  ;;  %v5960_v22 = vcombine.low %v1857_v9, %v1865_v10 }
 0x1ea   : > { %4585 = vmatprep.subr.bf16.mxu1 %v5849_v19  ;;  %v1626_v19 = vld [vmem:[%s7574_s17 + $0x850] sm:$0xff]  ;;  %v5467_v23 = vcombine.high %v1362_v15, %v1370_v16  ;;  %v5466_v55 = vcombine.low %v1362_v15, %v1370_v16 }
 0x1eb   : > { %4545 = vmatpush1.bf16.msra.mxu0 %v5592_v25  ;;  %v5723_v24 = vcombine.high %v1618_v18, %v1626_v19  ;;  %v1378_v25 = vld [vmem:[%s7574_s17 + $0x90] sm:$0xff]  ;;  %v5722_v28 = vcombine.low %v1618_v18, %v1626_v19 }
 0x1ec   : > { %4546 = vmatprep.subr.bf16.mxu0 %v5609_v26  ;;  %v1634_v26 = vld [vmem:[%s7574_s17 + $0x890] sm:$0xff] }
 0x1ed   : > { %4586 = vmatpush1.bf16.msra.mxu1 %v5848_v54  ;;  %v1386_v54 = vld [vmem:[%s7574_s17 + $0xd0] sm:$0xff] }
 0x1ee   : > { %4587 = vmatprep.subr.bf16.mxu1 %v5865_v27  ;;  %v1642_v27 = vld [vmem:[%s7574_s17 + $0x8d0] sm:$0xff]  ;;  %v5483_v29 = vcombine.high %v1378_v25, %v1386_v54  ;;  %v5482_v35 = vcombine.low %v1378_v25, %v1386_v54 }
 0x1ef   : > { %4547 = vmatpush1.bf16.msra.mxu0 %v5608_v31  ;;  %v5739_v30 = vcombine.high %v1634_v26, %v1642_v27  ;;  %v1394_v31 = vld [vmem:[%s7574_s17 + $0x110] sm:$0xff]  ;;  %v5738_v36 = vcombine.low %v1634_v26, %v1642_v27 }
 0x1f0   : > { %4548 = vmatprep.subr.bf16.mxu0 %v5625_v33  ;;  %v1650_v33 = vld [vmem:[%s7574_s17 + $0x910] sm:$0xff] }
 0x1f1   : > { %4588 = vmatpush1.bf16.msra.mxu1 %v5864_v32  ;;  %v1402_v32 = vld [vmem:[%s7574_s17 + $0x150] sm:$0xff] }
 0x1f2   : > { %4589 = vmatprep.subr.bf16.mxu1 %v5881_v34  ;;  %v1658_v34 = vld [vmem:[%s7574_s17 + $0x950] sm:$0xff]  ;;  %v5499_v37 = vcombine.high %v1394_v31, %v1402_v32  ;;  %v5498_v43 = vcombine.low %v1394_v31, %v1402_v32 }
 0x1f3   : > { %4549 = vmatpush1.bf16.msra.mxu0 %v5624_v39  ;;  %v5755_v38 = vcombine.high %v1650_v33, %v1658_v34  ;;  %v1410_v39 = vld [vmem:[%s7574_s17 + $0x190] sm:$0xff]  ;;  %v5754_v44 = vcombine.low %v1650_v33, %v1658_v34 }
 0x1f4   : > { %4550 = vmatprep.subr.bf16.mxu0 %v5641_v41  ;;  %v1666_v41 = vld [vmem:[%s7574_s17 + $0x990] sm:$0xff] }
 0x1f5   : > { %4590 = vmatpush1.bf16.msra.mxu1 %v5880_v40  ;;  %v1418_v40 = vld [vmem:[%s7574_s17 + $0x1d0] sm:$0xff] }
 0x1f6   : > { %4591 = vmatprep.subr.bf16.mxu1 %v5897_v42  ;;  %v1674_v42 = vld [vmem:[%s7574_s17 + $0x9d0] sm:$0xff]  ;;  %v5515_v45 = vcombine.high %v1410_v39, %v1418_v40  ;;  %v5514_v51 = vcombine.low %v1410_v39, %v1418_v40 }
 0x1f7   : > { %4551 = vmatpush1.bf16.msra.mxu0 %v5640_v47  ;;  %v5771_v46 = vcombine.high %v1666_v41, %v1674_v42  ;;  %v1426_v47 = vld [vmem:[%s7574_s17 + $0x210] sm:$0xff]  ;;  %v5770_v52 = vcombine.low %v1666_v41, %v1674_v42 }
 0x1f8   : > { %4552 = vmatprep.subr.bf16.mxu0 %v5657_v49  ;;  %v1682_v49 = vld [vmem:[%s7574_s17 + $0xa10] sm:$0xff] }
 0x1f9   : > { %4592 = vmatpush1.bf16.msra.mxu1 %v5896_v48  ;;  %v1434_v48 = vld [vmem:[%s7574_s17 + $0x250] sm:$0xff] }
 0x1fa   : > { %4593 = vmatprep.subr.bf16.mxu1 %v5913_v50  ;;  %v1690_v50 = vld [vmem:[%s7574_s17 + $0xa50] sm:$0xff]  ;;  %v5531_v53 = vcombine.high %v1426_v47, %v1434_v48  ;;  %v5530_v63 = vcombine.low %v1426_v47, %v1434_v48 }
 0x1fb   : > { %4553 = vmatpush1.bf16.msra.mxu0 %v5656_v57  ;;  %v5787_v56 = vcombine.high %v1682_v49, %v1690_v50  ;;  %v1442_v57 = vld [vmem:[%s7574_s17 + $0x290] sm:$0xff]  ;;  %v5786_v0 = vcombine.low %v1682_v49, %v1690_v50 }
 0x1fc   : > { %4554 = vmatprep.subr.bf16.mxu0 %v5673_v61  ;;  %v1698_v61 = vld [vmem:[%s7574_s17 + $0xa90] sm:$0xff] }
 0x1fd   : > { %4594 = vmatpush1.bf16.msra.mxu1 %v5912_v58  ;;  %v1450_v58 = vld [vmem:[%s7574_s17 + $0x2d0] sm:$0xff] }
 0x1fe   : > { %4595 = vmatprep.subr.bf16.mxu1 %v5929_v62  ;;  %v1706_v62 = vld [vmem:[%s7574_s17 + $0xad0] sm:$0xff]  ;;  %v5547_v1 = vcombine.high %v1442_v57, %v1450_v58  ;;  %v5546_v7 = vcombine.low %v1442_v57, %v1450_v58 }
 0x1ff   : > { %4555 = vmatpush1.bf16.msra.mxu0 %v5672_v3  ;;  %v5803_v2 = vcombine.high %v1698_v61, %v1706_v62  ;;  %v1458_v3 = vld [vmem:[%s7574_s17 + $0x310] sm:$0xff]  ;;  %v5802_v8 = vcombine.low %v1698_v61, %v1706_v62 }
 0x200   : > { %4556 = vmatprep.subr.bf16.mxu0 %v5689_v5  ;;  %v1714_v5 = vld [vmem:[%s7574_s17 + $0xb10] sm:$0xff] }
 0x201   : > { %4596 = vmatpush1.bf16.msra.mxu1 %v5928_v4  ;;  %v1466_v4 = vld [vmem:[%s7574_s17 + $0x350] sm:$0xff] }
 0x202   : > { %4597 = vmatprep.subr.bf16.mxu1 %v5945_v6  ;;  %v1722_v6 = vld [vmem:[%s7574_s17 + $0xb50] sm:$0xff]  ;;  %v5563_v9 = vcombine.high %v1458_v3, %v1466_v4  ;;  %v5562_v15 = vcombine.low %v1458_v3, %v1466_v4 }
 0x203   : > { %4557 = vmatpush1.bf16.msra.mxu0 %v5688_v11  ;;  %v5819_v10 = vcombine.high %v1714_v5, %v1722_v6  ;;  %v1474_v11 = vld [vmem:[%s7574_s17 + $0x390] sm:$0xff]  ;;  %v5818_v16 = vcombine.low %v1714_v5, %v1722_v6 }
 0x204   : > { %4558 = vmatprep.subr.bf16.mxu0 %v5705_v13  ;;  %v1730_v13 = vld [vmem:[%s7574_s17 + $0xb90] sm:$0xff] }
 0x205   : > { %4598 = vmatpush1.bf16.msra.mxu1 %v5944_v12  ;;  %v1482_v12 = vld [vmem:[%s7574_s17 + $0x3d0] sm:$0xff] }
 0x206   : > { %4599 = vmatprep.subr.bf16.mxu1 %v5961_v14  ;;  %v1738_v14 = vld [vmem:[%s7574_s17 + $0xbd0] sm:$0xff]  ;;  %v5579_v18 = vcombine.high %v1474_v11, %v1482_v12  ;;  %v5578_v25 = vcombine.low %v1474_v11, %v1482_v12 }
 0x207   : > { %4559 = vmatpush1.bf16.msra.mxu0 %v5704_v21  ;;  %v5835_v19 = vcombine.high %v1730_v13, %v1738_v14  ;;  %v1490_v21 = vld [vmem:[%s7574_s17 + $0x410] sm:$0xff]  ;;  %v5834_v54 = vcombine.low %v1730_v13, %v1738_v14 }
 0x208   : > { %4610 = vmatprep.subr.bf16.mxu0 %v5467_v23  ;;  %v1746_v23 = vld [vmem:[%s7574_s17 + $0xc10] sm:$0xff] }
 0x209   : > { %4600 = vmatpush1.bf16.msra.mxu1 %v5960_v22  ;;  %v1498_v22 = vld [vmem:[%s7574_s17 + $0x450] sm:$0xff] }
 0x20a   : > { %4651 = vmatprep.subr.bf16.mxu1 %v5723_v24  ;;  %4561 = vmatmul.mubr.bf16.vlgmr.msra.gmra.mrb[4].mxu0 %v7677_v17  ;;  %v1754_v24 = vld [vmem:[%s7574_s17 + $0xc50] sm:$0xff]  ;;  %v5595_v26 = vcombine.high %v1490_v21, %v1498_v22  ;;  %v5594_v31 = vcombine.low %v1490_v21, %v1498_v22 }
 0x20b   : > { %4611 = vmatpush1.bf16.msra.mxu0 %v5466_v55  ;;  %4642 = vmatprep.mubr.bf16.mxu0 %v7627_v59  ;;  %v5851_v27 = vcombine.high %v1746_v23, %v1754_v24  ;;  %v1506_v55 = vld [vmem:[%s7574_s17 + $0x490] sm:$0xff]  ;;  %v5850_v32 = vcombine.low %v1746_v23, %v1754_v24 }
 0x20c   : > { %4602 = vmatmul.mubr.bf16.vlgmr.msra.gmra.mrb[4].mxu1 %v7683_v20  ;;  %4612 = vmatprep.subr.bf16.mxu0 %v5483_v29  ;;  %v1762_v29 = vld [vmem:[%s7574_s17 + $0xc90] sm:$0xff] }
 0x20d   : > { %4652 = vmatpush1.bf16.msra.mxu1 %v5722_v28  ;;  %4683 = vmatprep.mubr.bf16.mxu1 %v7631_v60  ;;  %v1514_v28 = vld [vmem:[%s7574_s17 + $0x4d0] sm:$0xff] }
 0x20e   : > { %4653 = vmatprep.subr.bf16.mxu1 %v5739_v30  ;;  %v1770_v30 = vld [vmem:[%s7574_s17 + $0xcd0] sm:$0xff]  ;;  %v5611_v33 = vcombine.high %v1506_v55, %v1514_v28  ;;  %v5610_v39 = vcombine.low %v1506_v55, %v1514_v28 }
 0x20f   : > { %4613 = vmatpush1.bf16.msra.mxu0 %v5482_v35  ;;  %v5867_v34 = vcombine.high %v1762_v29, %v1770_v30  ;;  %v1522_v35 = vld [vmem:[%s7574_s17 + $0x510] sm:$0xff]  ;;  %v5866_v40 = vcombine.low %v1762_v29, %v1770_v30 }
 0x210   : > { %4614 = vmatprep.subr.bf16.mxu0 %v5499_v37  ;;  %v1778_v37 = vld [vmem:[%s7574_s17 + $0xd10] sm:$0xff] }
 0x211   : > { %4654 = vmatpush1.bf16.msra.mxu1 %v5738_v36  ;;  %v1530_v36 = vld [vmem:[%s7574_s17 + $0x550] sm:$0xff] }
 0x212   : > { %4655 = vmatprep.subr.bf16.mxu1 %v5755_v38  ;;  %v1786_v38 = vld [vmem:[%s7574_s17 + $0xd50] sm:$0xff]  ;;  %v5627_v41 = vcombine.high %v1522_v35, %v1530_v36  ;;  %v5626_v47 = vcombine.low %v1522_v35, %v1530_v36 }
 0x213   : > { %4615 = vmatpush1.bf16.msra.mxu0 %v5498_v43  ;;  %v5883_v42 = vcombine.high %v1778_v37, %v1786_v38  ;;  %v1538_v43 = vld [vmem:[%s7574_s17 + $0x590] sm:$0xff]  ;;  %v5882_v48 = vcombine.low %v1778_v37, %v1786_v38 }
 0x214   : > { %4616 = vmatprep.subr.bf16.mxu0 %v5515_v45  ;;  %v1794_v45 = vld [vmem:[%s7574_s17 + $0xd90] sm:$0xff] }
 0x215   : > { %4656 = vmatpush1.bf16.msra.mxu1 %v5754_v44  ;;  %v1546_v44 = vld [vmem:[%s7574_s17 + $0x5d0] sm:$0xff] }
 0x216   : > { %4657 = vmatprep.subr.bf16.mxu1 %v5771_v46  ;;  %v1802_v46 = vld [vmem:[%s7574_s17 + $0xdd0] sm:$0xff]  ;;  %v5643_v49 = vcombine.high %v1538_v43, %v1546_v44  ;;  %v5642_v57 = vcombine.low %v1538_v43, %v1546_v44 }
 0x217   : > { %4617 = vmatpush1.bf16.msra.mxu0 %v5514_v51  ;;  %v5899_v50 = vcombine.high %v1794_v45, %v1802_v46  ;;  %v1554_v51 = vld [vmem:[%s7574_s17 + $0x610] sm:$0xff]  ;;  %v5898_v58 = vcombine.low %v1794_v45, %v1802_v46 }
 0x218   : > { %4618 = vmatprep.subr.bf16.mxu0 %v5531_v53  ;;  %v1810_v53 = vld [vmem:[%s7574_s17 + $0xe10] sm:$0xff] }
 0x219   : > { %4658 = vmatpush1.bf16.msra.mxu1 %v5770_v52  ;;  %v1562_v52 = vld [vmem:[%s7574_s17 + $0x650] sm:$0xff] }
 0x21a   : > { %4659 = vmatprep.subr.bf16.mxu1 %v5787_v56  ;;  %v1818_v56 = vld [vmem:[%s7574_s17 + $0xe50] sm:$0xff]  ;;  %v5659_v61 = vcombine.high %v1554_v51, %v1562_v52  ;;  %v5658_v3 = vcombine.low %v1554_v51, %v1562_v52 }
 0x21b   : > { %4619 = vmatpush1.bf16.msra.mxu0 %v5530_v63  ;;  %v5915_v62 = vcombine.high %v1810_v53, %v1818_v56  ;;  %v1570_v63 = vld [vmem:[%s7574_s17 + $0x690] sm:$0xff]  ;;  %v5914_v4 = vcombine.low %v1810_v53, %v1818_v56 }
 0x21c   : > { %4620 = vmatprep.subr.bf16.mxu0 %v5547_v1  ;;  %v1826_v1 = vld [vmem:[%s7574_s17 + $0xe90] sm:$0xff] }
 0x21d   : > { %4660 = vmatpush1.bf16.msra.mxu1 %v5786_v0  ;;  %v1578_v0 = vld [vmem:[%s7574_s17 + $0x6d0] sm:$0xff] }
 0x21e   : > { %4661 = vmatprep.subr.bf16.mxu1 %v5803_v2  ;;  %v1834_v2 = vld [vmem:[%s7574_s17 + $0xed0] sm:$0xff]  ;;  %v5675_v5 = vcombine.high %v1570_v63, %v1578_v0  ;;  %v5674_v11 = vcombine.low %v1570_v63, %v1578_v0 }
 0x21f   : > { %4621 = vmatpush1.bf16.msra.mxu0 %v5546_v7  ;;  %v5931_v6 = vcombine.high %v1826_v1, %v1834_v2  ;;  %v1586_v7 = vld [vmem:[%s7574_s17 + $0x710] sm:$0xff]  ;;  %v5930_v12 = vcombine.low %v1826_v1, %v1834_v2 }
 0x220   : > { %4622 = vmatprep.subr.bf16.mxu0 %v5563_v9  ;;  %v1842_v9 = vld [vmem:[%s7574_s17 + $0xf10] sm:$0xff] }
 0x221   : > { %4662 = vmatpush1.bf16.msra.mxu1 %v5802_v8  ;;  %v1594_v8 = vld [vmem:[%s7574_s17 + $0x750] sm:$0xff] }
 0x222   : > { %4663 = vmatprep.subr.bf16.mxu1 %v5819_v10  ;;  %v1850_v10 = vld [vmem:[%s7574_s17 + $0xf50] sm:$0xff]  ;;  %v5691_v13 = vcombine.high %v1586_v7, %v1594_v8  ;;  %v5690_v21 = vcombine.low %v1586_v7, %v1594_v8 }
 0x223   : > { %4623 = vmatpush1.bf16.msra.mxu0 %v5562_v15  ;;  %v5947_v14 = vcombine.high %v1842_v9, %v1850_v10  ;;  %v1602_v15 = vld [vmem:[%s7574_s17 + $0x790] sm:$0xff]  ;;  %v5946_v22 = vcombine.low %v1842_v9, %v1850_v10 }
 0x224   : > { %4624 = vmatprep.subr.bf16.mxu0 %v5579_v18  ;;  %v1858_v18 = vld [vmem:[%s7574_s17 + $0xf90] sm:$0xff] }
 0x225   : > { %4664 = vmatpush1.bf16.msra.mxu1 %v5818_v16  ;;  %v1610_v16 = vld [vmem:[%s7574_s17 + $0x7d0] sm:$0xff] }
 0x226   : > { %4665 = vmatprep.subr.bf16.mxu1 %v5835_v19  ;;  %v1866_v19 = vld [vmem:[%s7574_s17 + $0xfd0] sm:$0xff]  ;;  %v5707_v23 = vcombine.high %v1602_v15, %v1610_v16  ;;  %v5706_v55 = vcombine.low %v1602_v15, %v1610_v16 }
 0x227   : > { %4625 = vmatpush1.bf16.msra.mxu0 %v5578_v25  ;;  %v5963_v24 = vcombine.high %v1858_v18, %v1866_v19  ;;  %v1363_v25 = vld [vmem:[%s7574_s17 + $0x18] sm:$0xff]  ;;  %v5962_v28 = vcombine.low %v1858_v18, %v1866_v19 }
 0x228   : > { %4626 = vmatprep.subr.bf16.mxu0 %v5595_v26  ;;  %v1619_v26 = vld [vmem:[%s7574_s17 + $0x818] sm:$0xff] }
 0x229   : > { %4666 = vmatpush1.bf16.msra.mxu1 %v5834_v54  ;;  %v1371_v54 = vld [vmem:[%s7574_s17 + $0x58] sm:$0xff] }
 0x22a   : > { %4667 = vmatprep.subr.bf16.mxu1 %v5851_v27  ;;  %v1627_v27 = vld [vmem:[%s7574_s17 + $0x858] sm:$0xff]  ;;  %v5469_v29 = vcombine.high %v1363_v25, %v1371_v54  ;;  %v5468_v35 = vcombine.low %v1363_v25, %v1371_v54 }
 0x22b   : > { %4627 = vmatpush1.bf16.msra.mxu0 %v5594_v31  ;;  %v5725_v30 = vcombine.high %v1619_v26, %v1627_v27  ;;  %v1379_v31 = vld [vmem:[%s7574_s17 + $0x98] sm:$0xff]  ;;  %v5724_v36 = vcombine.low %v1619_v26, %v1627_v27 }
 0x22c   : > { %4628 = vmatprep.subr.bf16.mxu0 %v5611_v33  ;;  %v1635_v33 = vld [vmem:[%s7574_s17 + $0x898] sm:$0xff] }
 0x22d   : > { %4668 = vmatpush1.bf16.msra.mxu1 %v5850_v32  ;;  %v1387_v32 = vld [vmem:[%s7574_s17 + $0xd8] sm:$0xff] }
 0x22e   : > { %4669 = vmatprep.subr.bf16.mxu1 %v5867_v34  ;;  %v1643_v34 = vld [vmem:[%s7574_s17 + $0x8d8] sm:$0xff]  ;;  %v5485_v37 = vcombine.high %v1379_v31, %v1387_v32  ;;  %v5484_v43 = vcombine.low %v1379_v31, %v1387_v32 }
 0x22f   : > { %4629 = vmatpush1.bf16.msra.mxu0 %v5610_v39  ;;  %v5741_v38 = vcombine.high %v1635_v33, %v1643_v34  ;;  %v1395_v39 = vld [vmem:[%s7574_s17 + $0x118] sm:$0xff]  ;;  %v5740_v44 = vcombine.low %v1635_v33, %v1643_v34 }
 0x230   : > { %4630 = vmatprep.subr.bf16.mxu0 %v5627_v41  ;;  %v1651_v41 = vld [vmem:[%s7574_s17 + $0x918] sm:$0xff] }
 0x231   : > { %4670 = vmatpush1.bf16.msra.mxu1 %v5866_v40  ;;  %v1403_v40 = vld [vmem:[%s7574_s17 + $0x158] sm:$0xff] }
 0x232   : > { %4671 = vmatprep.subr.bf16.mxu1 %v5883_v42  ;;  %v1659_v42 = vld [vmem:[%s7574_s17 + $0x958] sm:$0xff]  ;;  %v5501_v45 = vcombine.high %v1395_v39, %v1403_v40  ;;  %v5500_v51 = vcombine.low %v1395_v39, %v1403_v40 }
 0x233   : > { %4631 = vmatpush1.bf16.msra.mxu0 %v5626_v47  ;;  %v5757_v46 = vcombine.high %v1651_v41, %v1659_v42  ;;  %v1411_v47 = vld [vmem:[%s7574_s17 + $0x198] sm:$0xff]  ;;  %v5756_v52 = vcombine.low %v1651_v41, %v1659_v42 }
 0x234   : > { %4632 = vmatprep.subr.bf16.mxu0 %v5643_v49  ;;  %v1667_v49 = vld [vmem:[%s7574_s17 + $0x998] sm:$0xff] }
 0x235   : > { %4672 = vmatpush1.bf16.msra.mxu1 %v5882_v48  ;;  %v1419_v48 = vld [vmem:[%s7574_s17 + $0x1d8] sm:$0xff] }
 0x236   : > { %4673 = vmatprep.subr.bf16.mxu1 %v5899_v50  ;;  %v1675_v50 = vld [vmem:[%s7574_s17 + $0x9d8] sm:$0xff]  ;;  %v5517_v53 = vcombine.high %v1411_v47, %v1419_v48  ;;  %v5516_v63 = vcombine.low %v1411_v47, %v1419_v48 }
 0x237   : > { %4633 = vmatpush1.bf16.msra.mxu0 %v5642_v57  ;;  %v5773_v56 = vcombine.high %v1667_v49, %v1675_v50  ;;  %v1427_v57 = vld [vmem:[%s7574_s17 + $0x218] sm:$0xff]  ;;  %v5772_v0 = vcombine.low %v1667_v49, %v1675_v50 }
 0x238   : > { %4634 = vmatprep.subr.bf16.mxu0 %v5659_v61  ;;  %v1683_v61 = vld [vmem:[%s7574_s17 + $0xa18] sm:$0xff] }
 0x239   : > { %4674 = vmatpush1.bf16.msra.mxu1 %v5898_v58  ;;  %v1435_v58 = vld [vmem:[%s7574_s17 + $0x258] sm:$0xff] }
 0x23a   : > { %4675 = vmatprep.subr.bf16.mxu1 %v5915_v62  ;;  %v1691_v62 = vld [vmem:[%s7574_s17 + $0xa58] sm:$0xff]  ;;  %v5533_v1 = vcombine.high %v1427_v57, %v1435_v58  ;;  %v5532_v7 = vcombine.low %v1427_v57, %v1435_v58 }
 0x23b   : > { %4635 = vmatpush1.bf16.msra.mxu0 %v5658_v3  ;;  %v5789_v2 = vcombine.high %v1683_v61, %v1691_v62  ;;  %v1443_v3 = vld [vmem:[%s7574_s17 + $0x298] sm:$0xff]  ;;  %v5788_v8 = vcombine.low %v1683_v61, %v1691_v62 }
 0x23c   : > { %4636 = vmatprep.subr.bf16.mxu0 %v5675_v5  ;;  %v1699_v5 = vld [vmem:[%s7574_s17 + $0xa98] sm:$0xff] }
 0x23d   : > { %4676 = vmatpush1.bf16.msra.mxu1 %v5914_v4  ;;  %v1451_v4 = vld [vmem:[%s7574_s17 + $0x2d8] sm:$0xff] }
 0x23e   : > { %4677 = vmatprep.subr.bf16.mxu1 %v5931_v6  ;;  %v1707_v6 = vld [vmem:[%s7574_s17 + $0xad8] sm:$0xff]  ;;  %v5549_v9 = vcombine.high %v1443_v3, %v1451_v4  ;;  %v5548_v15 = vcombine.low %v1443_v3, %v1451_v4 }
 0x23f   : > { %4637 = vmatpush1.bf16.msra.mxu0 %v5674_v11  ;;  %v5805_v10 = vcombine.high %v1699_v5, %v1707_v6  ;;  %v1459_v11 = vld [vmem:[%s7574_s17 + $0x318] sm:$0xff]  ;;  %v5804_v16 = vcombine.low %v1699_v5, %v1707_v6 }
 0x240   : > { %4638 = vmatprep.subr.bf16.mxu0 %v5691_v13  ;;  %v1715_v13 = vld [vmem:[%s7574_s17 + $0xb18] sm:$0xff] }
 0x241   : > { %4678 = vmatpush1.bf16.msra.mxu1 %v5930_v12  ;;  %v1467_v12 = vld [vmem:[%s7574_s17 + $0x358] sm:$0xff] }
 0x242   : > { %4679 = vmatprep.subr.bf16.mxu1 %v5947_v14  ;;  %v1723_v14 = vld [vmem:[%s7574_s17 + $0xb58] sm:$0xff]  ;;  %v5565_v18 = vcombine.high %v1459_v11, %v1467_v12  ;;  %v5564_v25 = vcombine.low %v1459_v11, %v1467_v12 }
 0x243   : > { %4639 = vmatpush1.bf16.msra.mxu0 %v5690_v21  ;;  %v5821_v19 = vcombine.high %v1715_v13, %v1723_v14  ;;  %v1475_v21 = vld [vmem:[%s7574_s17 + $0x398] sm:$0xff]  ;;  %v5820_v54 = vcombine.low %v1715_v13, %v1723_v14 }
 0x244   : > { %4640 = vmatprep.subr.bf16.mxu0 %v5707_v23  ;;  %v1731_v23 = vld [vmem:[%s7574_s17 + $0xb98] sm:$0xff] }
 0x245   : > { %4680 = vmatpush1.bf16.msra.mxu1 %v5946_v22  ;;  %v1483_v22 = vld [vmem:[%s7574_s17 + $0x3d8] sm:$0xff] }
 0x246   : > { %4681 = vmatprep.subr.bf16.mxu1 %v5963_v24  ;;  %v1739_v24 = vld [vmem:[%s7574_s17 + $0xbd8] sm:$0xff]  ;;  %v5581_v26 = vcombine.high %v1475_v21, %v1483_v22  ;;  %v5580_v31 = vcombine.low %v1475_v21, %v1483_v22 }
 0x247   : > { %4641 = vmatpush1.bf16.msra.mxu0 %v5706_v55  ;;  %v5837_v27 = vcombine.high %v1731_v23, %v1739_v24  ;;  %v1491_v55 = vld [vmem:[%s7574_s17 + $0x418] sm:$0xff]  ;;  %v5836_v32 = vcombine.low %v1731_v23, %v1739_v24 }
 0x248   : > { %4692 = vmatprep.subr.bf16.mxu0 %v5469_v29  ;;  %v1747_v29 = vld [vmem:[%s7574_s17 + $0xc18] sm:$0xff] }
 0x249   : > { %4682 = vmatpush1.bf16.msra.mxu1 %v5962_v28  ;;  %v1499_v28 = vld [vmem:[%s7574_s17 + $0x458] sm:$0xff] }
 0x24a   : > { %4733 = vmatprep.subr.bf16.mxu1 %v5725_v30  ;;  %4643 = vmatmul.mubr.bf16.vlgmr.msra.gmra.mrb[8].mxu0 %v7677_v17  ;;  %v1755_v30 = vld [vmem:[%s7574_s17 + $0xc58] sm:$0xff]  ;;  %v5597_v33 = vcombine.high %v1491_v55, %v1499_v28  ;;  %v5596_v39 = vcombine.low %v1491_v55, %v1499_v28 }
 0x24b   : > { %4693 = vmatpush1.bf16.msra.mxu0 %v5468_v35  ;;  %4724 = vmatprep.mubr.bf16.mxu0 %v7627_v59  ;;  %v5853_v34 = vcombine.high %v1747_v29, %v1755_v30  ;;  %v1507_v35 = vld [vmem:[%s7574_s17 + $0x498] sm:$0xff]  ;;  %v5852_v40 = vcombine.low %v1747_v29, %v1755_v30 }
 0x24c   : > { %4684 = vmatmul.mubr.bf16.vlgmr.msra.gmra.mrb[8].mxu1 %v7683_v20  ;;  %4694 = vmatprep.subr.bf16.mxu0 %v5485_v37  ;;  %v1763_v37 = vld [vmem:[%s7574_s17 + $0xc98] sm:$0xff] }
 0x24d   : > { %4734 = vmatpush1.bf16.msra.mxu1 %v5724_v36  ;;  %4765 = vmatprep.mubr.bf16.mxu1 %v7631_v60  ;;  %v1515_v36 = vld [vmem:[%s7574_s17 + $0x4d8] sm:$0xff] }
 0x24e   : > { %4735 = vmatprep.subr.bf16.mxu1 %v5741_v38  ;;  %v1771_v38 = vld [vmem:[%s7574_s17 + $0xcd8] sm:$0xff]  ;;  %v5613_v41 = vcombine.high %v1507_v35, %v1515_v36  ;;  %v5612_v47 = vcombine.low %v1507_v35, %v1515_v36 }
 0x24f   : > { %4695 = vmatpush1.bf16.msra.mxu0 %v5484_v43  ;;  %v5869_v42 = vcombine.high %v1763_v37, %v1771_v38  ;;  %v1523_v43 = vld [vmem:[%s7574_s17 + $0x518] sm:$0xff]  ;;  %v5868_v48 = vcombine.low %v1763_v37, %v1771_v38 }
 0x250   : > { %4696 = vmatprep.subr.bf16.mxu0 %v5501_v45  ;;  %v1779_v45 = vld [vmem:[%s7574_s17 + $0xd18] sm:$0xff] }
 0x251   : > { %4736 = vmatpush1.bf16.msra.mxu1 %v5740_v44  ;;  %v1531_v44 = vld [vmem:[%s7574_s17 + $0x558] sm:$0xff] }
 0x252   : > { %4737 = vmatprep.subr.bf16.mxu1 %v5757_v46  ;;  %v1787_v46 = vld [vmem:[%s7574_s17 + $0xd58] sm:$0xff]  ;;  %v5629_v49 = vcombine.high %v1523_v43, %v1531_v44  ;;  %v5628_v57 = vcombine.low %v1523_v43, %v1531_v44 }
 0x253   : > { %4697 = vmatpush1.bf16.msra.mxu0 %v5500_v51  ;;  %v5885_v50 = vcombine.high %v1779_v45, %v1787_v46  ;;  %v1539_v51 = vld [vmem:[%s7574_s17 + $0x598] sm:$0xff]  ;;  %v5884_v58 = vcombine.low %v1779_v45, %v1787_v46 }
 0x254   : > { %4698 = vmatprep.subr.bf16.mxu0 %v5517_v53  ;;  %v1795_v53 = vld [vmem:[%s7574_s17 + $0xd98] sm:$0xff] }
 0x255   : > { %4738 = vmatpush1.bf16.msra.mxu1 %v5756_v52  ;;  %v1547_v52 = vld [vmem:[%s7574_s17 + $0x5d8] sm:$0xff] }
 0x256   : > { %4739 = vmatprep.subr.bf16.mxu1 %v5773_v56  ;;  %v1803_v56 = vld [vmem:[%s7574_s17 + $0xdd8] sm:$0xff]  ;;  %v5645_v61 = vcombine.high %v1539_v51, %v1547_v52  ;;  %v5644_v3 = vcombine.low %v1539_v51, %v1547_v52 }
 0x257   : > { %4699 = vmatpush1.bf16.msra.mxu0 %v5516_v63  ;;  %v5901_v62 = vcombine.high %v1795_v53, %v1803_v56  ;;  %v1555_v63 = vld [vmem:[%s7574_s17 + $0x618] sm:$0xff]  ;;  %v5900_v4 = vcombine.low %v1795_v53, %v1803_v56 }
 0x258   : > { %4700 = vmatprep.subr.bf16.mxu0 %v5533_v1  ;;  %v1811_v1 = vld [vmem:[%s7574_s17 + $0xe18] sm:$0xff] }
 0x259   : > { %4740 = vmatpush1.bf16.msra.mxu1 %v5772_v0  ;;  %v1563_v0 = vld [vmem:[%s7574_s17 + $0x658] sm:$0xff] }
 0x25a   : > { %4741 = vmatprep.subr.bf16.mxu1 %v5789_v2  ;;  %v1819_v2 = vld [vmem:[%s7574_s17 + $0xe58] sm:$0xff]  ;;  %v5661_v5 = vcombine.high %v1555_v63, %v1563_v0  ;;  %v5660_v11 = vcombine.low %v1555_v63, %v1563_v0 }
 0x25b   : > { %4701 = vmatpush1.bf16.msra.mxu0 %v5532_v7  ;;  %v5917_v6 = vcombine.high %v1811_v1, %v1819_v2  ;;  %v1571_v7 = vld [vmem:[%s7574_s17 + $0x698] sm:$0xff]  ;;  %v5916_v12 = vcombine.low %v1811_v1, %v1819_v2 }
 0x25c   : > { %4702 = vmatprep.subr.bf16.mxu0 %v5549_v9  ;;  %v1827_v9 = vld [vmem:[%s7574_s17 + $0xe98] sm:$0xff] }
 0x25d   : > { %4742 = vmatpush1.bf16.msra.mxu1 %v5788_v8  ;;  %v1579_v8 = vld [vmem:[%s7574_s17 + $0x6d8] sm:$0xff] }
 0x25e   : > { %4743 = vmatprep.subr.bf16.mxu1 %v5805_v10  ;;  %v1835_v10 = vld [vmem:[%s7574_s17 + $0xed8] sm:$0xff]  ;;  %v5677_v13 = vcombine.high %v1571_v7, %v1579_v8  ;;  %v5676_v21 = vcombine.low %v1571_v7, %v1579_v8 }
 0x25f   : > { %4703 = vmatpush1.bf16.msra.mxu0 %v5548_v15  ;;  %v5933_v14 = vcombine.high %v1827_v9, %v1835_v10  ;;  %v1587_v15 = vld [vmem:[%s7574_s17 + $0x718] sm:$0xff]  ;;  %v5932_v22 = vcombine.low %v1827_v9, %v1835_v10 }
 0x260   : > { %4704 = vmatprep.subr.bf16.mxu0 %v5565_v18  ;;  %v1843_v18 = vld [vmem:[%s7574_s17 + $0xf18] sm:$0xff] }
 0x261   : > { %4744 = vmatpush1.bf16.msra.mxu1 %v5804_v16  ;;  %v1595_v16 = vld [vmem:[%s7574_s17 + $0x758] sm:$0xff] }
 0x262   : > { %4745 = vmatprep.subr.bf16.mxu1 %v5821_v19  ;;  %v1851_v19 = vld [vmem:[%s7574_s17 + $0xf58] sm:$0xff]  ;;  %v5693_v23 = vcombine.high %v1587_v15, %v1595_v16  ;;  %v5692_v55 = vcombine.low %v1587_v15, %v1595_v16 }
 0x263   : > { %4705 = vmatpush1.bf16.msra.mxu0 %v5564_v25  ;;  %v5949_v24 = vcombine.high %v1843_v18, %v1851_v19  ;;  %v1603_v25 = vld [vmem:[%s7574_s17 + $0x798] sm:$0xff]  ;;  %v5948_v28 = vcombine.low %v1843_v18, %v1851_v19 }
 0x264   : > { %4706 = vmatprep.subr.bf16.mxu0 %v5581_v26  ;;  %v1859_v26 = vld [vmem:[%s7574_s17 + $0xf98] sm:$0xff] }
 0x265   : > { %4746 = vmatpush1.bf16.msra.mxu1 %v5820_v54  ;;  %v1611_v54 = vld [vmem:[%s7574_s17 + $0x7d8] sm:$0xff] }
 0x266   : > { %4747 = vmatprep.subr.bf16.mxu1 %v5837_v27  ;;  %v1867_v27 = vld [vmem:[%s7574_s17 + $0xfd8] sm:$0xff]  ;;  %v5709_v29 = vcombine.high %v1603_v25, %v1611_v54  ;;  %v5708_v35 = vcombine.low %v1603_v25, %v1611_v54 }
 0x267   : > { %4707 = vmatpush1.bf16.msra.mxu0 %v5580_v31  ;;  %v5965_v30 = vcombine.high %v1859_v26, %v1867_v27  ;;  %v1364_v31 = vld [vmem:[%s7574_s17 + $0x20] sm:$0xff]  ;;  %v5964_v36 = vcombine.low %v1859_v26, %v1867_v27 }
 0x268   : > { %4708 = vmatprep.subr.bf16.mxu0 %v5597_v33  ;;  %v1620_v33 = vld [vmem:[%s7574_s17 + $0x820] sm:$0xff] }
 0x269   : > { %4748 = vmatpush1.bf16.msra.mxu1 %v5836_v32  ;;  %v1372_v32 = vld [vmem:[%s7574_s17 + $0x60] sm:$0xff] }
 0x26a   : > { %4749 = vmatprep.subr.bf16.mxu1 %v5853_v34  ;;  %v1628_v34 = vld [vmem:[%s7574_s17 + $0x860] sm:$0xff]  ;;  %v5471_v37 = vcombine.high %v1364_v31, %v1372_v32  ;;  %v5470_v43 = vcombine.low %v1364_v31, %v1372_v32 }
 0x26b   : > { %4709 = vmatpush1.bf16.msra.mxu0 %v5596_v39  ;;  %v5727_v38 = vcombine.high %v1620_v33, %v1628_v34  ;;  %v1380_v39 = vld [vmem:[%s7574_s17 + $0xa0] sm:$0xff]  ;;  %v5726_v44 = vcombine.low %v1620_v33, %v1628_v34 }
 0x26c   : > { %4710 = vmatprep.subr.bf16.mxu0 %v5613_v41  ;;  %v1636_v41 = vld [vmem:[%s7574_s17 + $0x8a0] sm:$0xff] }
 0x26d   : > { %4750 = vmatpush1.bf16.msra.mxu1 %v5852_v40  ;;  %v1388_v40 = vld [vmem:[%s7574_s17 + $0xe0] sm:$0xff] }
 0x26e   : > { %4751 = vmatprep.subr.bf16.mxu1 %v5869_v42  ;;  %v1644_v42 = vld [vmem:[%s7574_s17 + $0x8e0] sm:$0xff]  ;;  %v5487_v45 = vcombine.high %v1380_v39, %v1388_v40  ;;  %v5486_v51 = vcombine.low %v1380_v39, %v1388_v40 }
 0x26f   : > { %4711 = vmatpush1.bf16.msra.mxu0 %v5612_v47  ;;  %v5743_v46 = vcombine.high %v1636_v41, %v1644_v42  ;;  %v1396_v47 = vld [vmem:[%s7574_s17 + $0x120] sm:$0xff]  ;;  %v5742_v52 = vcombine.low %v1636_v41, %v1644_v42 }
 0x270   : > { %4712 = vmatprep.subr.bf16.mxu0 %v5629_v49  ;;  %v1652_v49 = vld [vmem:[%s7574_s17 + $0x920] sm:$0xff] }
 0x271   : > { %4752 = vmatpush1.bf16.msra.mxu1 %v5868_v48  ;;  %v1404_v48 = vld [vmem:[%s7574_s17 + $0x160] sm:$0xff] }
 0x272   : > { %4753 = vmatprep.subr.bf16.mxu1 %v5885_v50  ;;  %v1660_v50 = vld [vmem:[%s7574_s17 + $0x960] sm:$0xff]  ;;  %v5503_v53 = vcombine.high %v1396_v47, %v1404_v48  ;;  %v5502_v63 = vcombine.low %v1396_v47, %v1404_v48 }
 0x273   : > { %4713 = vmatpush1.bf16.msra.mxu0 %v5628_v57  ;;  %v5759_v56 = vcombine.high %v1652_v49, %v1660_v50  ;;  %v1412_v57 = vld [vmem:[%s7574_s17 + $0x1a0] sm:$0xff]  ;;  %v5758_v0 = vcombine.low %v1652_v49, %v1660_v50 }
 0x274   : > { %4714 = vmatprep.subr.bf16.mxu0 %v5645_v61  ;;  %v1668_v61 = vld [vmem:[%s7574_s17 + $0x9a0] sm:$0xff] }
 0x275   : > { %4754 = vmatpush1.bf16.msra.mxu1 %v5884_v58  ;;  %v1420_v58 = vld [vmem:[%s7574_s17 + $0x1e0] sm:$0xff] }
 0x276   : > { %4755 = vmatprep.subr.bf16.mxu1 %v5901_v62  ;;  %v1676_v62 = vld [vmem:[%s7574_s17 + $0x9e0] sm:$0xff]  ;;  %v5519_v1 = vcombine.high %v1412_v57, %v1420_v58  ;;  %v5518_v7 = vcombine.low %v1412_v57, %v1420_v58 }
 0x277   : > { %4715 = vmatpush1.bf16.msra.mxu0 %v5644_v3  ;;  %v5775_v2 = vcombine.high %v1668_v61, %v1676_v62  ;;  %v1428_v3 = vld [vmem:[%s7574_s17 + $0x220] sm:$0xff]  ;;  %v5774_v8 = vcombine.low %v1668_v61, %v1676_v62 }
 0x278   : > { %4716 = vmatprep.subr.bf16.mxu0 %v5661_v5  ;;  %v1684_v5 = vld [vmem:[%s7574_s17 + $0xa20] sm:$0xff] }
 0x279   : > { %4756 = vmatpush1.bf16.msra.mxu1 %v5900_v4  ;;  %v1436_v4 = vld [vmem:[%s7574_s17 + $0x260] sm:$0xff] }
 0x27a   : > { %4757 = vmatprep.subr.bf16.mxu1 %v5917_v6  ;;  %v1692_v6 = vld [vmem:[%s7574_s17 + $0xa60] sm:$0xff]  ;;  %v5535_v9 = vcombine.high %v1428_v3, %v1436_v4  ;;  %v5534_v15 = vcombine.low %v1428_v3, %v1436_v4 }
 0x27b   : > { %4717 = vmatpush1.bf16.msra.mxu0 %v5660_v11  ;;  %v5791_v10 = vcombine.high %v1684_v5, %v1692_v6  ;;  %v1444_v11 = vld [vmem:[%s7574_s17 + $0x2a0] sm:$0xff]  ;;  %v5790_v16 = vcombine.low %v1684_v5, %v1692_v6 }
 0x27c   : > { %4718 = vmatprep.subr.bf16.mxu0 %v5677_v13  ;;  %v1700_v13 = vld [vmem:[%s7574_s17 + $0xaa0] sm:$0xff] }
 0x27d   : > { %4758 = vmatpush1.bf16.msra.mxu1 %v5916_v12  ;;  %v1452_v12 = vld [vmem:[%s7574_s17 + $0x2e0] sm:$0xff] }
 0x27e   : > { %4759 = vmatprep.subr.bf16.mxu1 %v5933_v14  ;;  %v1708_v14 = vld [vmem:[%s7574_s17 + $0xae0] sm:$0xff]  ;;  %v5551_v18 = vcombine.high %v1444_v11, %v1452_v12  ;;  %v5550_v25 = vcombine.low %v1444_v11, %v1452_v12 }
 0x27f   : > { %4719 = vmatpush1.bf16.msra.mxu0 %v5676_v21  ;;  %v5807_v19 = vcombine.high %v1700_v13, %v1708_v14  ;;  %v1460_v21 = vld [vmem:[%s7574_s17 + $0x320] sm:$0xff]  ;;  %v5806_v54 = vcombine.low %v1700_v13, %v1708_v14 }
 0x280   : > { %4720 = vmatprep.subr.bf16.mxu0 %v5693_v23  ;;  %v1716_v23 = vld [vmem:[%s7574_s17 + $0xb20] sm:$0xff] }
 0x281   : > { %4760 = vmatpush1.bf16.msra.mxu1 %v5932_v22  ;;  %v1468_v22 = vld [vmem:[%s7574_s17 + $0x360] sm:$0xff] }
 0x282   : > { %4761 = vmatprep.subr.bf16.mxu1 %v5949_v24  ;;  %v1724_v24 = vld [vmem:[%s7574_s17 + $0xb60] sm:$0xff]  ;;  %v5567_v26 = vcombine.high %v1460_v21, %v1468_v22  ;;  %v5566_v39 = vcombine.low %v1460_v21, %v1468_v22 }
 0x283   : > { %4721 = vmatpush1.bf16.msra.mxu0 %v5692_v55  ;;  %v5823_v55 = vcombine.high %v1716_v23, %v1724_v24  ;;  %v1732_v33 = vld [vmem:[%s7574_s17 + $0xba0] sm:$0xff] }
 0x284   : > { %4722 = vmatprep.subr.bf16.mxu0 %v5709_v29  ;;  %v1484_v29 = vld [vmem:[%s7574_s17 + $0x3e0] sm:$0xff] }
 0x285   : > { %4762 = vmatpush1.bf16.msra.mxu1 %v5948_v28  ;;  %v1476_v28 = vld [vmem:[%s7574_s17 + $0x3a0] sm:$0xff] }
 0x286   : > { %4763 = vmatprep.subr.bf16.mxu1 %v5965_v30  ;;  %v1342_v30 = vld [vmem:[#allocation2] sm:$0xff] }
 0x287   : > { %4723 = vmatpush1.bf16.msra.mxu0 %v5708_v35  ;;  %v1740_v34 = vld [vmem:[%s7574_s17 + $0xbe0] sm:$0xff] }
 0x288   : > { %4774 = vmatprep.subr.bf16.mxu0 %v5471_v37  ;;  %v5839_v47 = vcombine.high %v1732_v33, %v1740_v34  ;;  %v1492_v48 = vld [vmem:[%s7574_s17 + $0x420] sm:$0xff] }
 0x289   : > { %4764 = vmatpush1.bf16.msra.mxu1 %v5964_v36  ;;  %v1343_v36 = vld [vmem:[#allocation2 + $0x8] sm:$0xff]  ;;  %v1500_v49 = vld [vmem:[%s7574_s17 + $0x460] sm:$0xff] }
 0x28a   : > { %4815 = vmatprep.subr.bf16.mxu1 %v5727_v38  ;;  %4725 = vmatmul.mubr.bf16.vlgmr.msra.gmra.mrb[12].mxu0 %v7677_v17  ;;  %v5599_v57 = vcombine.high %v1492_v48, %v1500_v49  ;;  %v1508_v61 = vld [vmem:[%s7574_s17 + $0x4a0] sm:$0xff] }
 0x28b   : > { %4775 = vmatpush1.bf16.msra.mxu0 %v5470_v43  ;;  %4806 = vmatprep.mubr.bf16.mxu0 %v7627_v59  ;;  %v5822_v43 = vcombine.low %v1716_v23, %v1724_v24  ;;  %v1516_v62 = vld [vmem:[%s7574_s17 + $0x4e0] sm:$0xff] }
 0x28c   : > { %4766 = vmatmul.mubr.bf16.vlgmr.msra.gmra.mrb[12].mxu1 %v7683_v20  ;;  %4776 = vmatprep.subr.bf16.mxu0 %v5487_v45  ;;  %v5615_v3 = vcombine.high %v1508_v61, %v1516_v62  ;;  %v1524_v5 = vld [vmem:[%s7574_s17 + $0x520] sm:$0xff] }
 0x28d   : > { %4816 = vmatpush1.bf16.msra.mxu1 %v5726_v44  ;;  %4847 = vmatprep.mubr.bf16.mxu1 %v7631_v60  ;;  %v5583_v44 = vcombine.high %v1476_v28, %v1484_v29  ;;  %v1532_v6 = vld [vmem:[%s7574_s17 + $0x560] sm:$0xff] }
 0x28e   : > { %4817 = vmatprep.subr.bf16.mxu1 %v5743_v46  ;;  %v5631_v11 = vcombine.high %v1524_v5, %v1532_v6  ;;  %v1540_v13 = vld [vmem:[%s7574_s17 + $0x5a0] sm:$0xff] }
 0x28f   : > { %4777 = vmatpush1.bf16.msra.mxu0 %v5486_v51  ;;  %v1748_v51 = vld [vmem:[%s7574_s17 + $0xc20] sm:$0xff] }
 0x290   : > { %4778 = vmatprep.subr.bf16.mxu0 %v5503_v53  ;;  %v5582_v53 = vcombine.low %v1476_v28, %v1484_v29  ;;  %v1548_v14 = vld [vmem:[%s7574_s17 + $0x5e0] sm:$0xff] }
 0x291   : > { %4818 = vmatpush1.bf16.msra.mxu1 %v5742_v52  ;;  %v1756_v52 = vld [vmem:[%s7574_s17 + $0xc60] sm:$0xff]  ;;  %v5647_v21 = vcombine.high %v1540_v13, %v1548_v14 }
 0x292   : > { %4819 = vmatprep.subr.bf16.mxu1 %v5759_v56  ;;  %v5838_v56 = vcombine.low %v1732_v33, %v1740_v34  ;;  %v5855_v58 = vcombine.high %v1748_v51, %v1756_v52  ;;  %v1556_v23 = vld [vmem:[%s7574_s17 + $0x620] sm:$0xff] }
 0x293   : > { %4779 = vmatpush1.bf16.msra.mxu0 %v5502_v63  ;;  %v1764_v63 = vld [vmem:[%s7574_s17 + $0xca0] sm:$0xff] }
 0x294   : > { %4780 = vmatprep.subr.bf16.mxu0 %v5519_v1  ;;  %v5598_v1 = vcombine.low %v1492_v48, %v1500_v49  ;;  %v1564_v24 = vld [vmem:[%s7574_s17 + $0x660] sm:$0xff] }
 0x295   : > { %4820 = vmatpush1.bf16.msra.mxu1 %v5758_v0  ;;  %v1772_v0 = vld [vmem:[%s7574_s17 + $0xce0] sm:$0xff]  ;;  %v5662_v33 = vcombine.low %v1556_v23, %v1564_v24 }
 0x296   : > { %4821 = vmatprep.subr.bf16.mxu1 %v5775_v2  ;;  %v5854_v2 = vcombine.low %v1748_v51, %v1756_v52  ;;  %v5871_v4 = vcombine.high %v1764_v63, %v1772_v0  ;;  %v1572_v29 = vld [vmem:[%s7574_s17 + $0x6a0] sm:$0xff] }
 0x297   : > { %4781 = vmatpush1.bf16.msra.mxu0 %v5518_v7  ;;  %v1780_v7 = vld [vmem:[%s7574_s17 + $0xd20] sm:$0xff] }
 0x298   : > { %4782 = vmatprep.subr.bf16.mxu0 %v5535_v9  ;;  %v5614_v9 = vcombine.low %v1508_v61, %v1516_v62  ;;  %v1868_v48 = vld [vmem:[%s7574_s17 + $0xfe0] sm:$0xff] }
 0x299   : > { %4822 = vmatpush1.bf16.msra.mxu1 %v5774_v8  ;;  %v1788_v8 = vld [vmem:[%s7574_s17 + $0xd60] sm:$0xff] }
 0x29a   : > { %4823 = vmatprep.subr.bf16.mxu1 %v5791_v10  ;;  %v5870_v10 = vcombine.low %v1764_v63, %v1772_v0  ;;  %v5887_v12 = vcombine.high %v1780_v7, %v1788_v8 }
 0x29b   : > { %4783 = vmatpush1.bf16.msra.mxu0 %v5534_v15  ;;  %v1796_v15 = vld [vmem:[%s7574_s17 + $0xda0] sm:$0xff] }
 0x29c   : > { %4784 = vmatprep.subr.bf16.mxu0 %v5551_v18  ;;  %v5630_v18 = vcombine.low %v1524_v5, %v1532_v6 }
 0x29d   : > { %4824 = vmatpush1.bf16.msra.mxu1 %v5790_v16  ;;  %v4480_v27 = vpop.f32.mrb[0].mxu0  ;;  %v1804_v16 = vld [vmem:[%s7574_s17 + $0xde0] sm:$0xff] }
 0x29e   : > { %4825 = vmatprep.subr.bf16.mxu1 %v5807_v19  ;;  %v4482_v32 = vpop.f32.mrb[1].mxu0  ;;  %v5886_v19 = vcombine.low %v1780_v7, %v1788_v8  ;;  %v5903_v22 = vcombine.high %v1796_v15, %v1804_v16 }
 0x29f   : > { %v4521_v31 = vpop.f32.mrb[0].mxu1  ;;  %v4484_v38 = vpop.f32.mrb[2].mxu0  ;;  %4785 = vmatpush1.bf16.msra.mxu0 %v5550_v25  ;;  %v1812_v25 = vld [vmem:[%s7574_s17 + $0xe20] sm:$0xff] }
 0x2a0   : > { %v4522_v35 = vadd.f32 %v4521_v31, %v4480_v27  ;;  %v4523_v37 = vpop.f32.mrb[1].mxu1  ;;  %v4485_v42 = vpop.f32.mrb[3].mxu0  ;;  %4786 = vmatprep.subr.bf16.mxu0 %v5567_v26  ;;  %v5646_v26 = vcombine.low %v1540_v13, %v1548_v14  ;;  %v5902_v27 = vcombine.low %v1796_v15, %v1804_v16  ;;  %v1828_v31 = vld [vmem:[%s7574_s17 + $0xea0] sm:$0xff] }
 0x2a1   : > { %v4524_v40 = vadd.f32 %v4523_v37, %v4482_v32  ;;  %v4525_v41 = vpop.f32.mrb[2].mxu1  ;;  %4826 = vmatpush1.bf16.msra.mxu1 %v5806_v54  ;;  %v1820_v54 = vld [vmem:[%s7574_s17 + $0xe60] sm:$0xff] }
 0x2a2   : > { %v5102_v45 = vadd.f32 %v4522_v35, %v1342_v30  ;;  %v4526_v46 = vpop.f32.mrb[3].mxu1  ;;  %4827 = vmatprep.subr.bf16.mxu1 %v5823_v55  ;;  %v5663_v55 = vcombine.high %v1556_v23, %v1564_v24  ;;  %v5919_v28 = vcombine.high %v1812_v25, %v1820_v54  ;;  %v1580_v30 = vld [vmem:[%s7574_s17 + $0x6e0] sm:$0xff]  ;;  %v5918_v34 = vcombine.low %v1812_v25, %v1820_v54 }
 0x2a3   : > { %v5103_v50 = vadd.f32 %v4524_v40, %v1343_v36  ;;  %4787 = vmatpush1.bf16.msra.mxu0 %v5566_v39  ;;  %v1836_v32 = vld [vmem:[%s7574_s17 + $0xee0] sm:$0xff]  ;;  %v5679_v35 = vcombine.high %v1572_v29, %v1580_v30  ;;  %v5678_v41 = vcombine.low %v1572_v29, %v1580_v30 }
 0x2a4   : > { %5118 = vst [vmem:[#allocation2] sm:$0xff] %v5102_v45  ;;  %4788 = vmatprep.subr.bf16.mxu0 %v5583_v44  ;;  %v5935_v36 = vcombine.high %v1828_v31, %v1836_v32  ;;  %v1588_v37 = vld [vmem:[%s7574_s17 + $0x720] sm:$0xff]  ;;  %v5934_v42 = vcombine.low %v1828_v31, %v1836_v32 }
 0x2a5   : > { %5119 = vst [vmem:[#allocation2 + $0x8] sm:$0xff] %v5103_v50  ;;  %4828 = vmatpush1.bf16.msra.mxu1 %v5822_v43  ;;  %v1596_v38 = vld [vmem:[%s7574_s17 + $0x760] sm:$0xff] }
 0x2a6   : > { %4829 = vmatprep.subr.bf16.mxu1 %v5839_v47  ;;  %v1844_v39 = vld [vmem:[%s7574_s17 + $0xf20] sm:$0xff]  ;;  %v5695_v43 = vcombine.high %v1588_v37, %v1596_v38  ;;  %v5694_v49 = vcombine.low %v1588_v37, %v1596_v38 }
 0x2a7   : > { %4789 = vmatpush1.bf16.msra.mxu0 %v5582_v53  ;;  %v1852_v40 = vld [vmem:[%s7574_s17 + $0xf60] sm:$0xff]  ;;  %v1365_v53 = vld [vmem:[%s7574_s17 + $0x28] sm:$0xff] }
 0x2a8   : > { %4790 = vmatprep.subr.bf16.mxu0 %v5599_v57  ;;  %v5951_v44 = vcombine.high %v1844_v39, %v1852_v40  ;;  %v1604_v45 = vld [vmem:[%s7574_s17 + $0x7a0] sm:$0xff]  ;;  %v5950_v50 = vcombine.low %v1844_v39, %v1852_v40  ;;  %v1621_v57 = vld [vmem:[%s7574_s17 + $0x828] sm:$0xff] }
 0x2a9   : > { %4830 = vmatpush1.bf16.msra.mxu1 %v5838_v56  ;;  %v1612_v46 = vld [vmem:[%s7574_s17 + $0x7e0] sm:$0xff]  ;;  %v1373_v56 = vld [vmem:[%s7574_s17 + $0x68] sm:$0xff] }
 0x2aa   : > { %4831 = vmatprep.subr.bf16.mxu1 %v5855_v58  ;;  %v1860_v47 = vld [vmem:[%s7574_s17 + $0xfa0] sm:$0xff]  ;;  %v5711_v51 = vcombine.high %v1604_v45, %v1612_v46  ;;  %v1629_v58 = vld [vmem:[%s7574_s17 + $0x868] sm:$0xff]  ;;  %v5710_v61 = vcombine.low %v1604_v45, %v1612_v46  ;;  %v5473_v63 = vcombine.high %v1365_v53, %v1373_v56  ;;  %v5472_v5 = vcombine.low %v1365_v53, %v1373_v56 }
 0x2ab   : > { %4791 = vmatpush1.bf16.msra.mxu0 %v5598_v1  ;;  %v5967_v52 = vcombine.high %v1860_v47, %v1868_v48  ;;  %v5966_v62 = vcombine.low %v1860_v47, %v1868_v48  ;;  %v5729_v0 = vcombine.high %v1621_v57, %v1629_v58  ;;  %v1381_v1 = vld [vmem:[%s7574_s17 + $0xa8] sm:$0xff]  ;;  %v5728_v6 = vcombine.low %v1621_v57, %v1629_v58 }
 0x2ac   : > { %4792 = vmatprep.subr.bf16.mxu0 %v5615_v3  ;;  %v1637_v3 = vld [vmem:[%s7574_s17 + $0x8a8] sm:$0xff] }
 0x2ad   : > { %4832 = vmatpush1.bf16.msra.mxu1 %v5854_v2  ;;  %v1389_v2 = vld [vmem:[%s7574_s17 + $0xe8] sm:$0xff] }
 0x2ae   : > { %4833 = vmatprep.subr.bf16.mxu1 %v5871_v4  ;;  %v1645_v4 = vld [vmem:[%s7574_s17 + $0x8e8] sm:$0xff]  ;;  %v5489_v7 = vcombine.high %v1381_v1, %v1389_v2  ;;  %v5488_v13 = vcombine.low %v1381_v1, %v1389_v2 }
 0x2af   : > { %4793 = vmatpush1.bf16.msra.mxu0 %v5614_v9  ;;  %v5745_v8 = vcombine.high %v1637_v3, %v1645_v4  ;;  %v1397_v9 = vld [vmem:[%s7574_s17 + $0x128] sm:$0xff]  ;;  %v5744_v14 = vcombine.low %v1637_v3, %v1645_v4 }
 0x2b0   : > { %4794 = vmatprep.subr.bf16.mxu0 %v5631_v11  ;;  %v1653_v11 = vld [vmem:[%s7574_s17 + $0x928] sm:$0xff] }
 0x2b1   : > { %4834 = vmatpush1.bf16.msra.mxu1 %v5870_v10  ;;  %v1405_v10 = vld [vmem:[%s7574_s17 + $0x168] sm:$0xff] }
 0x2b2   : > { %4835 = vmatprep.subr.bf16.mxu1 %v5887_v12  ;;  %v1661_v12 = vld [vmem:[%s7574_s17 + $0x968] sm:$0xff]  ;;  %v5505_v15 = vcombine.high %v1397_v9, %v1405_v10  ;;  %v5504_v23 = vcombine.low %v1397_v9, %v1405_v10 }
 0x2b3   : > { %4795 = vmatpush1.bf16.msra.mxu0 %v5630_v18  ;;  %v5761_v16 = vcombine.high %v1653_v11, %v1661_v12  ;;  %v1413_v18 = vld [vmem:[%s7574_s17 + $0x1a8] sm:$0xff]  ;;  %v5760_v24 = vcombine.low %v1653_v11, %v1661_v12 }
 0x2b4   : > { %4796 = vmatprep.subr.bf16.mxu0 %v5647_v21  ;;  %v1669_v21 = vld [vmem:[%s7574_s17 + $0x9a8] sm:$0xff] }
 0x2b5   : > { %4836 = vmatpush1.bf16.msra.mxu1 %v5886_v19  ;;  %v1421_v19 = vld [vmem:[%s7574_s17 + $0x1e8] sm:$0xff] }
 0x2b6   : > { %4837 = vmatprep.subr.bf16.mxu1 %v5903_v22  ;;  %v1677_v22 = vld [vmem:[%s7574_s17 + $0x9e8] sm:$0xff]  ;;  %v5521_v25 = vcombine.high %v1413_v18, %v1421_v19  ;;  %v5520_v29 = vcombine.low %v1413_v18, %v1421_v19 }
 0x2b7   : > { %4797 = vmatpush1.bf16.msra.mxu0 %v5646_v26  ;;  %v5777_v54 = vcombine.high %v1669_v21, %v1677_v22  ;;  %v1429_v26 = vld [vmem:[%s7574_s17 + $0x228] sm:$0xff]  ;;  %v5776_v30 = vcombine.low %v1669_v21, %v1677_v22 }
 0x2b8   : > { %4798 = vmatprep.subr.bf16.mxu0 %v5663_v55  ;;  %v1685_v55 = vld [vmem:[%s7574_s17 + $0xa28] sm:$0xff] }
 0x2b9   : > { %4838 = vmatpush1.bf16.msra.mxu1 %v5902_v27  ;;  %v1437_v27 = vld [vmem:[%s7574_s17 + $0x268] sm:$0xff] }
 0x2ba   : > { %4839 = vmatprep.subr.bf16.mxu1 %v5919_v28  ;;  %v1693_v28 = vld [vmem:[%s7574_s17 + $0xa68] sm:$0xff]  ;;  %v5537_v31 = vcombine.high %v1429_v26, %v1437_v27  ;;  %v5536_v37 = vcombine.low %v1429_v26, %v1437_v27 }
 0x2bb   : > { %4799 = vmatpush1.bf16.msra.mxu0 %v5662_v33  ;;  %v5793_v32 = vcombine.high %v1685_v55, %v1693_v28  ;;  %v1445_v33 = vld [vmem:[%s7574_s17 + $0x2a8] sm:$0xff]  ;;  %v5792_v38 = vcombine.low %v1685_v55, %v1693_v28 }
 0x2bc   : > { %4800 = vmatprep.subr.bf16.mxu0 %v5679_v35  ;;  %v1701_v35 = vld [vmem:[%s7574_s17 + $0xaa8] sm:$0xff] }
 0x2bd   : > { %4840 = vmatpush1.bf16.msra.mxu1 %v5918_v34  ;;  %v1453_v34 = vld [vmem:[%s7574_s17 + $0x2e8] sm:$0xff] }
 0x2be   : > { %4841 = vmatprep.subr.bf16.mxu1 %v5935_v36  ;;  %v1709_v36 = vld [vmem:[%s7574_s17 + $0xae8] sm:$0xff]  ;;  %v5553_v39 = vcombine.high %v1445_v33, %v1453_v34  ;;  %v5552_v45 = vcombine.low %v1445_v33, %v1453_v34 }
 0x2bf   : > { %4801 = vmatpush1.bf16.msra.mxu0 %v5678_v41  ;;  %v5809_v40 = vcombine.high %v1701_v35, %v1709_v36  ;;  %v1461_v41 = vld [vmem:[%s7574_s17 + $0x328] sm:$0xff]  ;;  %v5808_v46 = vcombine.low %v1701_v35, %v1709_v36 }
 0x2c0   : > { %4802 = vmatprep.subr.bf16.mxu0 %v5695_v43  ;;  %v1717_v43 = vld [vmem:[%s7574_s17 + $0xb28] sm:$0xff] }
 0x2c1   : > { %4842 = vmatpush1.bf16.msra.mxu1 %v5934_v42  ;;  %v1469_v42 = vld [vmem:[%s7574_s17 + $0x368] sm:$0xff] }
 0x2c2   : > { %4843 = vmatprep.subr.bf16.mxu1 %v5951_v44  ;;  %v1725_v44 = vld [vmem:[%s7574_s17 + $0xb68] sm:$0xff]  ;;  %v5569_v47 = vcombine.high %v1461_v41, %v1469_v42  ;;  %v5568_v1 = vcombine.low %v1461_v41, %v1469_v42 }
 0x2c3   : > { %4803 = vmatpush1.bf16.msra.mxu0 %v5694_v49  ;;  %v5825_v49 = vcombine.high %v1717_v43, %v1725_v44  ;;  %v1733_v57 = vld [vmem:[%s7574_s17 + $0xba8] sm:$0xff] }
 0x2c4   : > { %4804 = vmatprep.subr.bf16.mxu0 %v5711_v51  ;;  %v1485_v51 = vld [vmem:[%s7574_s17 + $0x3e8] sm:$0xff] }
 0x2c5   : > { %4844 = vmatpush1.bf16.msra.mxu1 %v5950_v50  ;;  %v1477_v50 = vld [vmem:[%s7574_s17 + $0x3a8] sm:$0xff] }
 0x2c6   : > { %4845 = vmatprep.subr.bf16.mxu1 %v5967_v52  ;;  %v1344_v52 = vld [vmem:[#allocation2 + $0x10] sm:$0xff]  ;;  %v1741_v58 = vld [vmem:[%s7574_s17 + $0xbe8] sm:$0xff] }
 0x2c7   : > { %4805 = vmatpush1.bf16.msra.mxu0 %v5710_v61  ;;  %v5841_v9 = vcombine.high %v1733_v57, %v1741_v58  ;;  %v1493_v10 = vld [vmem:[%s7574_s17 + $0x428] sm:$0xff] }
 0x2c8   : > { %4856 = vmatprep.subr.bf16.mxu0 %v5473_v63  ;;  %v1501_v11 = vld [vmem:[%s7574_s17 + $0x468] sm:$0xff] }
 0x2c9   : > { %4846 = vmatpush1.bf16.msra.mxu1 %v5966_v62  ;;  %v1345_v62 = vld [vmem:[#allocation2 + $0x18] sm:$0xff]  ;;  %v5601_v18 = vcombine.high %v1493_v10, %v1501_v11  ;;  %v1509_v21 = vld [vmem:[%s7574_s17 + $0x4a8] sm:$0xff] }
 0x2ca   : > { %4897 = vmatprep.subr.bf16.mxu1 %v5729_v0  ;;  %4807 = vmatmul.mubr.bf16.vlgmr.msra.gmra.mrb[16].mxu0 %v7677_v17  ;;  %v1517_v22 = vld [vmem:[%s7574_s17 + $0x4e8] sm:$0xff] }
 0x2cb   : > { %4857 = vmatpush1.bf16.msra.mxu0 %v5472_v5  ;;  %4888 = vmatprep.mubr.bf16.mxu0 %v7627_v59  ;;  %v5824_v5 = vcombine.low %v1717_v43, %v1725_v44  ;;  %v5617_v26 = vcombine.high %v1509_v21, %v1517_v22  ;;  %v1525_v55 = vld [vmem:[%s7574_s17 + $0x528] sm:$0xff] }
 0x2cc   : > { %4848 = vmatmul.mubr.bf16.vlgmr.msra.gmra.mrb[16].mxu1 %v7683_v20  ;;  %4858 = vmatprep.subr.bf16.mxu0 %v5489_v7  ;;  %v1533_v28 = vld [vmem:[%s7574_s17 + $0x568] sm:$0xff] }
 0x2cd   : > { %4898 = vmatpush1.bf16.msra.mxu1 %v5728_v6  ;;  %4929 = vmatprep.mubr.bf16.mxu1 %v7631_v60  ;;  %v5585_v6 = vcombine.high %v1477_v50, %v1485_v51  ;;  %v5633_v33 = vcombine.high %v1525_v55, %v1533_v28  ;;  %v1541_v35 = vld [vmem:[%s7574_s17 + $0x5a8] sm:$0xff] }
 0x2ce   : > { %4899 = vmatprep.subr.bf16.mxu1 %v5745_v8  ;;  %v1549_v36 = vld [vmem:[%s7574_s17 + $0x5e8] sm:$0xff] }
 0x2cf   : > { %4859 = vmatpush1.bf16.msra.mxu0 %v5488_v13  ;;  %v1749_v13 = vld [vmem:[%s7574_s17 + $0xc28] sm:$0xff]  ;;  %v5649_v41 = vcombine.high %v1541_v35, %v1549_v36 }
 0x2d0   : > { %4860 = vmatprep.subr.bf16.mxu0 %v5505_v15  ;;  %v5584_v15 = vcombine.low %v1477_v50, %v1485_v51  ;;  %v1557_v43 = vld [vmem:[%s7574_s17 + $0x628] sm:$0xff] }
 0x2d1   : > { %4900 = vmatpush1.bf16.msra.mxu1 %v5744_v14  ;;  %v1757_v14 = vld [vmem:[%s7574_s17 + $0xc68] sm:$0xff] }
 0x2d2   : > { %4901 = vmatprep.subr.bf16.mxu1 %v5761_v16  ;;  %v5840_v16 = vcombine.low %v1733_v57, %v1741_v58  ;;  %v5857_v19 = vcombine.high %v1749_v13, %v1757_v14  ;;  %v1565_v44 = vld [vmem:[%s7574_s17 + $0x668] sm:$0xff] }
 0x2d3   : > { %4861 = vmatpush1.bf16.msra.mxu0 %v5504_v23  ;;  %v1765_v23 = vld [vmem:[%s7574_s17 + $0xca8] sm:$0xff]  ;;  %v5664_v57 = vcombine.low %v1557_v43, %v1565_v44 }
 0x2d4   : > { %4862 = vmatprep.subr.bf16.mxu0 %v5521_v25  ;;  %v5600_v25 = vcombine.low %v1493_v10, %v1501_v11  ;;  %v1573_v51 = vld [vmem:[%s7574_s17 + $0x6a8] sm:$0xff] }
 0x2d5   : > { %4902 = vmatpush1.bf16.msra.mxu1 %v5760_v24  ;;  %v1773_v24 = vld [vmem:[%s7574_s17 + $0xce8] sm:$0xff] }
 0x2d6   : > { %4903 = vmatprep.subr.bf16.mxu1 %v5777_v54  ;;  %v5856_v54 = vcombine.low %v1749_v13, %v1757_v14  ;;  %v5873_v27 = vcombine.high %v1765_v23, %v1773_v24  ;;  %v1869_v10 = vld [vmem:[%s7574_s17 + $0xfe8] sm:$0xff] }
 0x2d7   : > { %4863 = vmatpush1.bf16.msra.mxu0 %v5520_v29  ;;  %v1781_v29 = vld [vmem:[%s7574_s17 + $0xd28] sm:$0xff] }
 0x2d8   : > { %4864 = vmatprep.subr.bf16.mxu0 %v5537_v31  ;;  %v5616_v31 = vcombine.low %v1509_v21, %v1517_v22 }
 0x2d9   : > { %4904 = vmatpush1.bf16.msra.mxu1 %v5776_v30  ;;  %v1789_v30 = vld [vmem:[%s7574_s17 + $0xd68] sm:$0xff] }
 0x2da   : > { %4905 = vmatprep.subr.bf16.mxu1 %v5793_v32  ;;  %v5872_v32 = vcombine.low %v1765_v23, %v1773_v24  ;;  %v5889_v34 = vcombine.high %v1781_v29, %v1789_v30 }
 0x2db   : > { %4865 = vmatpush1.bf16.msra.mxu0 %v5536_v37  ;;  %v1797_v37 = vld [vmem:[%s7574_s17 + $0xda8] sm:$0xff] }
 0x2dc   : > { %4866 = vmatprep.subr.bf16.mxu0 %v5553_v39  ;;  %v5632_v39 = vcombine.low %v1525_v55, %v1533_v28 }
 0x2dd   : > { %4906 = vmatpush1.bf16.msra.mxu1 %v5792_v38  ;;  %v4562_v48 = vpop.f32.mrb[4].mxu0  ;;  %v1805_v38 = vld [vmem:[%s7574_s17 + $0xde8] sm:$0xff] }
 0x2de   : > { %4907 = vmatprep.subr.bf16.mxu1 %v5809_v40  ;;  %v4564_v56 = vpop.f32.mrb[5].mxu0  ;;  %v5888_v40 = vcombine.low %v1781_v29, %v1789_v30  ;;  %v5905_v42 = vcombine.high %v1797_v37, %v1805_v38 }
 0x2df   : > { %v4603_v53 = vpop.f32.mrb[4].mxu1  ;;  %v4566_v0 = vpop.f32.mrb[6].mxu0  ;;  %4867 = vmatpush1.bf16.msra.mxu0 %v5552_v45  ;;  %v1813_v45 = vld [vmem:[%s7574_s17 + $0xe28] sm:$0xff] }
 0x2e0   : > { %v4604_v61 = vadd.f32 %v4603_v53, %v4562_v48  ;;  %v4605_v63 = vpop.f32.mrb[5].mxu1  ;;  %v4567_v4 = vpop.f32.mrb[7].mxu0  ;;  %4868 = vmatprep.subr.bf16.mxu0 %v5569_v47  ;;  %v5648_v47 = vcombine.low %v1541_v35, %v1549_v36  ;;  %v5904_v48 = vcombine.low %v1797_v37, %v1805_v38  ;;  %v1829_v53 = vld [vmem:[%s7574_s17 + $0xea8] sm:$0xff] }
 0x2e1   : > { %v4606_v2 = vadd.f32 %v4605_v63, %v4564_v56  ;;  %v4607_v3 = vpop.f32.mrb[6].mxu1  ;;  %4908 = vmatpush1.bf16.msra.mxu1 %v5808_v46  ;;  %v1821_v46 = vld [vmem:[%s7574_s17 + $0xe68] sm:$0xff] }
 0x2e2   : > { %v5104_v7 = vadd.f32 %v4604_v61, %v1344_v52  ;;  %v4608_v8 = vpop.f32.mrb[7].mxu1  ;;  %4909 = vmatprep.subr.bf16.mxu1 %v5825_v49  ;;  %v5665_v49 = vcombine.high %v1557_v43, %v1565_v44  ;;  %v5921_v50 = vcombine.high %v1813_v45, %v1821_v46  ;;  %v1581_v52 = vld [vmem:[%s7574_s17 + $0x6e8] sm:$0xff]  ;;  %v5920_v58 = vcombine.low %v1813_v45, %v1821_v46 }
 0x2e3   : > { %v5105_v12 = vadd.f32 %v4606_v2, %v1345_v62  ;;  %4869 = vmatpush1.bf16.msra.mxu0 %v5568_v1  ;;  %v1837_v56 = vld [vmem:[%s7574_s17 + $0xee8] sm:$0xff]  ;;  %v5681_v61 = vcombine.high %v1573_v51, %v1581_v52  ;;  %v5680_v3 = vcombine.low %v1573_v51, %v1581_v52 }
 0x2e4   : > { %5120 = vst [vmem:[#allocation2 + $0x10] sm:$0xff] %v5104_v7  ;;  %4870 = vmatprep.subr.bf16.mxu0 %v5585_v6  ;;  %v5937_v62 = vcombine.high %v1829_v53, %v1837_v56  ;;  %v1589_v63 = vld [vmem:[%s7574_s17 + $0x728] sm:$0xff]  ;;  %v5936_v4 = vcombine.low %v1829_v53, %v1837_v56 }
 0x2e5   : > { %5121 = vst [vmem:[#allocation2 + $0x18] sm:$0xff] %v5105_v12  ;;  %4910 = vmatpush1.bf16.msra.mxu1 %v5824_v5  ;;  %v1597_v0 = vld [vmem:[%s7574_s17 + $0x768] sm:$0xff] }
 0x2e6   : > { %4911 = vmatprep.subr.bf16.mxu1 %v5841_v9  ;;  %v1845_v1 = vld [vmem:[%s7574_s17 + $0xf28] sm:$0xff]  ;;  %v5697_v5 = vcombine.high %v1589_v63, %v1597_v0  ;;  %v5696_v11 = vcombine.low %v1589_v63, %v1597_v0 }
 0x2e7   : > { %4871 = vmatpush1.bf16.msra.mxu0 %v5584_v15  ;;  %v1853_v2 = vld [vmem:[%s7574_s17 + $0xf68] sm:$0xff]  ;;  %v1366_v15 = vld [vmem:[%s7574_s17 + $0x30] sm:$0xff] }
 0x2e8   : > { %4872 = vmatprep.subr.bf16.mxu0 %v5601_v18  ;;  %v5953_v6 = vcombine.high %v1845_v1, %v1853_v2  ;;  %v1605_v7 = vld [vmem:[%s7574_s17 + $0x7a8] sm:$0xff]  ;;  %v5952_v12 = vcombine.low %v1845_v1, %v1853_v2  ;;  %v1622_v18 = vld [vmem:[%s7574_s17 + $0x830] sm:$0xff] }
 0x2e9   : > { %4912 = vmatpush1.bf16.msra.mxu1 %v5840_v16  ;;  %v1613_v8 = vld [vmem:[%s7574_s17 + $0x7e8] sm:$0xff]  ;;  %v1374_v16 = vld [vmem:[%s7574_s17 + $0x70] sm:$0xff] }
 0x2ea   : > { %4913 = vmatprep.subr.bf16.mxu1 %v5857_v19  ;;  %v1861_v9 = vld [vmem:[%s7574_s17 + $0xfa8] sm:$0xff]  ;;  %v5713_v13 = vcombine.high %v1605_v7, %v1613_v8  ;;  %v1630_v19 = vld [vmem:[%s7574_s17 + $0x870] sm:$0xff]  ;;  %v5712_v21 = vcombine.low %v1605_v7, %v1613_v8  ;;  %v5475_v23 = vcombine.high %v1366_v15, %v1374_v16  ;;  %v5474_v55 = vcombine.low %v1366_v15, %v1374_v16 }
 0x2eb   : > { %4873 = vmatpush1.bf16.msra.mxu0 %v5600_v25  ;;  %v5969_v14 = vcombine.high %v1861_v9, %v1869_v10  ;;  %v5968_v22 = vcombine.low %v1861_v9, %v1869_v10  ;;  %v5731_v24 = vcombine.high %v1622_v18, %v1630_v19  ;;  %v1382_v25 = vld [vmem:[%s7574_s17 + $0xb0] sm:$0xff]  ;;  %v5730_v28 = vcombine.low %v1622_v18, %v1630_v19 }
 0x2ec   : > { %4874 = vmatprep.subr.bf16.mxu0 %v5617_v26  ;;  %v1638_v26 = vld [vmem:[%s7574_s17 + $0x8b0] sm:$0xff] }
 0x2ed   : > { %4914 = vmatpush1.bf16.msra.mxu1 %v5856_v54  ;;  %v1390_v54 = vld [vmem:[%s7574_s17 + $0xf0] sm:$0xff] }
 0x2ee   : > { %4915 = vmatprep.subr.bf16.mxu1 %v5873_v27  ;;  %v1646_v27 = vld [vmem:[%s7574_s17 + $0x8f0] sm:$0xff]  ;;  %v5491_v29 = vcombine.high %v1382_v25, %v1390_v54  ;;  %v5490_v35 = vcombine.low %v1382_v25, %v1390_v54 }
 0x2ef   : > { %4875 = vmatpush1.bf16.msra.mxu0 %v5616_v31  ;;  %v5747_v30 = vcombine.high %v1638_v26, %v1646_v27  ;;  %v1398_v31 = vld [vmem:[%s7574_s17 + $0x130] sm:$0xff]  ;;  %v5746_v36 = vcombine.low %v1638_v26, %v1646_v27 }
 0x2f0   : > { %4876 = vmatprep.subr.bf16.mxu0 %v5633_v33  ;;  %v1654_v33 = vld [vmem:[%s7574_s17 + $0x930] sm:$0xff] }
 0x2f1   : > { %4916 = vmatpush1.bf16.msra.mxu1 %v5872_v32  ;;  %v1406_v32 = vld [vmem:[%s7574_s17 + $0x170] sm:$0xff] }
 0x2f2   : > { %4917 = vmatprep.subr.bf16.mxu1 %v5889_v34  ;;  %v1662_v34 = vld [vmem:[%s7574_s17 + $0x970] sm:$0xff]  ;;  %v5507_v37 = vcombine.high %v1398_v31, %v1406_v32  ;;  %v5506_v43 = vcombine.low %v1398_v31, %v1406_v32 }
 0x2f3   : > { %4877 = vmatpush1.bf16.msra.mxu0 %v5632_v39  ;;  %v5763_v38 = vcombine.high %v1654_v33, %v1662_v34  ;;  %v1414_v39 = vld [vmem:[%s7574_s17 + $0x1b0] sm:$0xff]  ;;  %v5762_v44 = vcombine.low %v1654_v33, %v1662_v34 }
 0x2f4   : > { %4878 = vmatprep.subr.bf16.mxu0 %v5649_v41  ;;  %v1670_v41 = vld [vmem:[%s7574_s17 + $0x9b0] sm:$0xff] }
 0x2f5   : > { %4918 = vmatpush1.bf16.msra.mxu1 %v5888_v40  ;;  %v1422_v40 = vld [vmem:[%s7574_s17 + $0x1f0] sm:$0xff] }
 0x2f6   : > { %4919 = vmatprep.subr.bf16.mxu1 %v5905_v42  ;;  %v1678_v42 = vld [vmem:[%s7574_s17 + $0x9f0] sm:$0xff]  ;;  %v5523_v45 = vcombine.high %v1414_v39, %v1422_v40  ;;  %v5522_v51 = vcombine.low %v1414_v39, %v1422_v40 }
 0x2f7   : > { %4879 = vmatpush1.bf16.msra.mxu0 %v5648_v47  ;;  %v5779_v46 = vcombine.high %v1670_v41, %v1678_v42  ;;  %v1430_v47 = vld [vmem:[%s7574_s17 + $0x230] sm:$0xff]  ;;  %v5778_v52 = vcombine.low %v1670_v41, %v1678_v42 }
 0x2f8   : > { %4880 = vmatprep.subr.bf16.mxu0 %v5665_v49  ;;  %v1686_v49 = vld [vmem:[%s7574_s17 + $0xa30] sm:$0xff] }
 0x2f9   : > { %4920 = vmatpush1.bf16.msra.mxu1 %v5904_v48  ;;  %v1438_v48 = vld [vmem:[%s7574_s17 + $0x270] sm:$0xff] }
 0x2fa   : > { %4921 = vmatprep.subr.bf16.mxu1 %v5921_v50  ;;  %v1694_v50 = vld [vmem:[%s7574_s17 + $0xa70] sm:$0xff]  ;;  %v5539_v53 = vcombine.high %v1430_v47, %v1438_v48  ;;  %v5538_v63 = vcombine.low %v1430_v47, %v1438_v48 }
 0x2fb   : > { %4881 = vmatpush1.bf16.msra.mxu0 %v5664_v57  ;;  %v5795_v56 = vcombine.high %v1686_v49, %v1694_v50  ;;  %v1446_v57 = vld [vmem:[%s7574_s17 + $0x2b0] sm:$0xff]  ;;  %v5794_v0 = vcombine.low %v1686_v49, %v1694_v50 }
 0x2fc   : > { %4882 = vmatprep.subr.bf16.mxu0 %v5681_v61  ;;  %v1702_v61 = vld [vmem:[%s7574_s17 + $0xab0] sm:$0xff] }
 0x2fd   : > { %4922 = vmatpush1.bf16.msra.mxu1 %v5920_v58  ;;  %v1454_v58 = vld [vmem:[%s7574_s17 + $0x2f0] sm:$0xff] }
 0x2fe   : > { %4923 = vmatprep.subr.bf16.mxu1 %v5937_v62  ;;  %v1710_v62 = vld [vmem:[%s7574_s17 + $0xaf0] sm:$0xff]  ;;  %v5555_v1 = vcombine.high %v1446_v57, %v1454_v58  ;;  %v5554_v7 = vcombine.low %v1446_v57, %v1454_v58 }
 0x2ff   : > { %4883 = vmatpush1.bf16.msra.mxu0 %v5680_v3  ;;  %v5811_v2 = vcombine.high %v1702_v61, %v1710_v62  ;;  %v1462_v3 = vld [vmem:[%s7574_s17 + $0x330] sm:$0xff]  ;;  %v5810_v8 = vcombine.low %v1702_v61, %v1710_v62 }
 0x300   : > { %4884 = vmatprep.subr.bf16.mxu0 %v5697_v5  ;;  %v1718_v5 = vld [vmem:[%s7574_s17 + $0xb30] sm:$0xff] }
 0x301   : > { %4924 = vmatpush1.bf16.msra.mxu1 %v5936_v4  ;;  %v1470_v4 = vld [vmem:[%s7574_s17 + $0x370] sm:$0xff] }
 0x302   : > { %4925 = vmatprep.subr.bf16.mxu1 %v5953_v6  ;;  %v1726_v6 = vld [vmem:[%s7574_s17 + $0xb70] sm:$0xff]  ;;  %v5571_v9 = vcombine.high %v1462_v3, %v1470_v4  ;;  %v5570_v25 = vcombine.low %v1462_v3, %v1470_v4 }
 0x303   : > { %4885 = vmatpush1.bf16.msra.mxu0 %v5696_v11  ;;  %v5827_v11 = vcombine.high %v1718_v5, %v1726_v6  ;;  %v1734_v18 = vld [vmem:[%s7574_s17 + $0xbb0] sm:$0xff] }
 0x304   : > { %4886 = vmatprep.subr.bf16.mxu0 %v5713_v13  ;;  %v1486_v13 = vld [vmem:[%s7574_s17 + $0x3f0] sm:$0xff] }
 0x305   : > { %4926 = vmatpush1.bf16.msra.mxu1 %v5952_v12  ;;  %v1478_v12 = vld [vmem:[%s7574_s17 + $0x3b0] sm:$0xff] }
 0x306   : > { %4927 = vmatprep.subr.bf16.mxu1 %v5969_v14  ;;  %v1346_v14 = vld [vmem:[#allocation2 + $0x20] sm:$0xff]  ;;  %v1742_v19 = vld [vmem:[%s7574_s17 + $0xbf0] sm:$0xff] }
 0x307   : > { %4887 = vmatpush1.bf16.msra.mxu0 %v5712_v21  ;;  %v5843_v31 = vcombine.high %v1734_v18, %v1742_v19  ;;  %v1494_v32 = vld [vmem:[%s7574_s17 + $0x430] sm:$0xff] }
 0x308   : > { %4938 = vmatprep.subr.bf16.mxu0 %v5475_v23  ;;  %v1502_v33 = vld [vmem:[%s7574_s17 + $0x470] sm:$0xff] }
 0x309   : > { %4928 = vmatpush1.bf16.msra.mxu1 %v5968_v22  ;;  %v1347_v22 = vld [vmem:[#allocation2 + $0x28] sm:$0xff]  ;;  %v5603_v39 = vcombine.high %v1494_v32, %v1502_v33  ;;  %v1510_v41 = vld [vmem:[%s7574_s17 + $0x4b0] sm:$0xff] }
 0x30a   : > { %4979 = vmatprep.subr.bf16.mxu1 %v5731_v24  ;;  %4889 = vmatmul.mubr.bf16.vlgmr.msra.gmra.mrb[20].mxu0 %v7677_v17  ;;  %v1518_v42 = vld [vmem:[%s7574_s17 + $0x4f0] sm:$0xff] }
 0x30b   : > { %4939 = vmatpush1.bf16.msra.mxu0 %v5474_v55  ;;  %4970 = vmatprep.mubr.bf16.mxu0 %v7627_v59  ;;  %v5826_v55 = vcombine.low %v1718_v5, %v1726_v6  ;;  %v5619_v47 = vcombine.high %v1510_v41, %v1518_v42  ;;  %v1526_v49 = vld [vmem:[%s7574_s17 + $0x530] sm:$0xff] }
 0x30c   : > { %4930 = vmatmul.mubr.bf16.vlgmr.msra.gmra.mrb[20].mxu1 %v7683_v20  ;;  %4940 = vmatprep.subr.bf16.mxu0 %v5491_v29  ;;  %v1534_v50 = vld [vmem:[%s7574_s17 + $0x570] sm:$0xff] }
 0x30d   : > { %4980 = vmatpush1.bf16.msra.mxu1 %v5730_v28  ;;  %5011 = vmatprep.mubr.bf16.mxu1 %v7631_v60  ;;  %v5587_v28 = vcombine.high %v1478_v12, %v1486_v13  ;;  %v5635_v57 = vcombine.high %v1526_v49, %v1534_v50  ;;  %v1542_v61 = vld [vmem:[%s7574_s17 + $0x5b0] sm:$0xff] }
 0x30e   : > { %4981 = vmatprep.subr.bf16.mxu1 %v5747_v30  ;;  %v1550_v62 = vld [vmem:[%s7574_s17 + $0x5f0] sm:$0xff] }
 0x30f   : > { %4941 = vmatpush1.bf16.msra.mxu0 %v5490_v35  ;;  %v1750_v35 = vld [vmem:[%s7574_s17 + $0xc30] sm:$0xff]  ;;  %v5651_v3 = vcombine.high %v1542_v61, %v1550_v62 }
 0x310   : > { %4942 = vmatprep.subr.bf16.mxu0 %v5507_v37  ;;  %v5586_v37 = vcombine.low %v1478_v12, %v1486_v13  ;;  %v1558_v5 = vld [vmem:[%s7574_s17 + $0x630] sm:$0xff] }
 0x311   : > { %4982 = vmatpush1.bf16.msra.mxu1 %v5746_v36  ;;  %v1758_v36 = vld [vmem:[%s7574_s17 + $0xc70] sm:$0xff] }
 0x312   : > { %4983 = vmatprep.subr.bf16.mxu1 %v5763_v38  ;;  %v5842_v38 = vcombine.low %v1734_v18, %v1742_v19  ;;  %v5859_v40 = vcombine.high %v1750_v35, %v1758_v36  ;;  %v1566_v6 = vld [vmem:[%s7574_s17 + $0x670] sm:$0xff] }
 0x313   : > { %4943 = vmatpush1.bf16.msra.mxu0 %v5506_v43  ;;  %v1766_v43 = vld [vmem:[%s7574_s17 + $0xcb0] sm:$0xff]  ;;  %v5666_v18 = vcombine.low %v1558_v5, %v1566_v6 }
 0x314   : > { %4944 = vmatprep.subr.bf16.mxu0 %v5523_v45  ;;  %v5602_v45 = vcombine.low %v1494_v32, %v1502_v33  ;;  %v1574_v13 = vld [vmem:[%s7574_s17 + $0x6b0] sm:$0xff] }
 0x315   : > { %4984 = vmatpush1.bf16.msra.mxu1 %v5762_v44  ;;  %v1774_v44 = vld [vmem:[%s7574_s17 + $0xcf0] sm:$0xff] }
 0x316   : > { %4985 = vmatprep.subr.bf16.mxu1 %v5779_v46  ;;  %v5858_v46 = vcombine.low %v1750_v35, %v1758_v36  ;;  %v5875_v48 = vcombine.high %v1766_v43, %v1774_v44  ;;  %v1870_v32 = vld [vmem:[%s7574_s17 + $0xff0] sm:$0xff] }
 0x317   : > { %4945 = vmatpush1.bf16.msra.mxu0 %v5522_v51  ;;  %v1782_v51 = vld [vmem:[%s7574_s17 + $0xd30] sm:$0xff] }
 0x318   : > { %4946 = vmatprep.subr.bf16.mxu0 %v5539_v53  ;;  %v5618_v53 = vcombine.low %v1510_v41, %v1518_v42 }
 0x319   : > { %4986 = vmatpush1.bf16.msra.mxu1 %v5778_v52  ;;  %v1790_v52 = vld [vmem:[%s7574_s17 + $0xd70] sm:$0xff] }
 0x31a   : > { %4987 = vmatprep.subr.bf16.mxu1 %v5795_v56  ;;  %v5874_v56 = vcombine.low %v1766_v43, %v1774_v44  ;;  %v5891_v58 = vcombine.high %v1782_v51, %v1790_v52 }
 0x31b   : > { %4947 = vmatpush1.bf16.msra.mxu0 %v5538_v63  ;;  %v1798_v63 = vld [vmem:[%s7574_s17 + $0xdb0] sm:$0xff] }
 0x31c   : > { %4948 = vmatprep.subr.bf16.mxu0 %v5555_v1  ;;  %v5634_v1 = vcombine.low %v1526_v49, %v1534_v50 }
 0x31d   : > { %4988 = vmatpush1.bf16.msra.mxu1 %v5794_v0  ;;  %v4644_v10 = vpop.f32.mrb[8].mxu0  ;;  %v1806_v0 = vld [vmem:[%s7574_s17 + $0xdf0] sm:$0xff] }
 0x31e   : > { %4989 = vmatprep.subr.bf16.mxu1 %v5811_v2  ;;  %v4646_v16 = vpop.f32.mrb[9].mxu0  ;;  %v5890_v2 = vcombine.low %v1782_v51, %v1790_v52  ;;  %v5907_v4 = vcombine.high %v1798_v63, %v1806_v0 }
 0x31f   : > { %v4685_v15 = vpop.f32.mrb[8].mxu1  ;;  %v4648_v24 = vpop.f32.mrb[10].mxu0  ;;  %4949 = vmatpush1.bf16.msra.mxu0 %v5554_v7  ;;  %v1814_v7 = vld [vmem:[%s7574_s17 + $0xe30] sm:$0xff] }
 0x320   : > { %v4686_v21 = vadd.f32 %v4685_v15, %v4644_v10  ;;  %v4687_v23 = vpop.f32.mrb[9].mxu1  ;;  %v4649_v27 = vpop.f32.mrb[11].mxu0  ;;  %4950 = vmatprep.subr.bf16.mxu0 %v5571_v9  ;;  %v5650_v9 = vcombine.low %v1542_v61, %v1550_v62  ;;  %v5906_v10 = vcombine.low %v1798_v63, %v1806_v0  ;;  %v1830_v15 = vld [vmem:[%s7574_s17 + $0xeb0] sm:$0xff] }
 0x321   : > { %v4688_v54 = vadd.f32 %v4687_v23, %v4646_v16  ;;  %v4689_v26 = vpop.f32.mrb[10].mxu1  ;;  %4990 = vmatpush1.bf16.msra.mxu1 %v5810_v8  ;;  %v1822_v8 = vld [vmem:[%s7574_s17 + $0xe70] sm:$0xff] }
 0x322   : > { %v5106_v29 = vadd.f32 %v4686_v21, %v1346_v14  ;;  %v4690_v30 = vpop.f32.mrb[11].mxu1  ;;  %4991 = vmatprep.subr.bf16.mxu1 %v5827_v11  ;;  %v5667_v11 = vcombine.high %v1558_v5, %v1566_v6  ;;  %v5923_v12 = vcombine.high %v1814_v7, %v1822_v8  ;;  %v1582_v14 = vld [vmem:[%s7574_s17 + $0x6f0] sm:$0xff]  ;;  %v5922_v19 = vcombine.low %v1814_v7, %v1822_v8 }
 0x323   : > { %v5107_v34 = vadd.f32 %v4688_v54, %v1347_v22  ;;  %4951 = vmatpush1.bf16.msra.mxu0 %v5570_v25  ;;  %v1838_v16 = vld [vmem:[%s7574_s17 + $0xef0] sm:$0xff]  ;;  %v5683_v21 = vcombine.high %v1574_v13, %v1582_v14  ;;  %v5682_v26 = vcombine.low %v1574_v13, %v1582_v14 }
 0x324   : > { %5122 = vst [vmem:[#allocation2 + $0x20] sm:$0xff] %v5106_v29  ;;  %4952 = vmatprep.subr.bf16.mxu0 %v5587_v28  ;;  %v5939_v22 = vcombine.high %v1830_v15, %v1838_v16  ;;  %v1590_v23 = vld [vmem:[%s7574_s17 + $0x730] sm:$0xff]  ;;  %v5938_v27 = vcombine.low %v1830_v15, %v1838_v16  ;;  %v1447_v15 = vld [vmem:[%s7574_s17 + $0x2b8] sm:$0xff] }
 0x325   : > { %5123 = vst [vmem:[#allocation2 + $0x28] sm:$0xff] %v5107_v34  ;;  %4992 = vmatpush1.bf16.msra.mxu1 %v5826_v55  ;;  %v1598_v24 = vld [vmem:[%s7574_s17 + $0x770] sm:$0xff]  ;;  %v1455_v16 = vld [vmem:[%s7574_s17 + $0x2f8] sm:$0xff] }
 0x326   : > { %4993 = vmatprep.subr.bf16.mxu1 %v5843_v31  ;;  %v1846_v25 = vld [vmem:[%s7574_s17 + $0xf30] sm:$0xff]  ;;  %v5699_v55 = vcombine.high %v1590_v23, %v1598_v24  ;;  %v5698_v33 = vcombine.low %v1590_v23, %v1598_v24  ;;  %v5557_v23 = vcombine.high %v1447_v15, %v1455_v16 }
 0x327   : > { %4953 = vmatpush1.bf16.msra.mxu0 %v5586_v37  ;;  %v1854_v54 = vld [vmem:[%s7574_s17 + $0xf70] sm:$0xff]  ;;  %v1367_v37 = vld [vmem:[%s7574_s17 + $0x38] sm:$0xff] }
 0x328   : > { %4954 = vmatprep.subr.bf16.mxu0 %v5603_v39  ;;  %v5955_v28 = vcombine.high %v1846_v25, %v1854_v54  ;;  %v1606_v29 = vld [vmem:[%s7574_s17 + $0x7b0] sm:$0xff]  ;;  %v5954_v34 = vcombine.low %v1846_v25, %v1854_v54  ;;  %v1623_v39 = vld [vmem:[%s7574_s17 + $0x838] sm:$0xff] }
 0x329   : > { %4994 = vmatpush1.bf16.msra.mxu1 %v5842_v38  ;;  %v1614_v30 = vld [vmem:[%s7574_s17 + $0x7f0] sm:$0xff]  ;;  %v1375_v38 = vld [vmem:[%s7574_s17 + $0x78] sm:$0xff] }
 0x32a   : > { %4995 = vmatprep.subr.bf16.mxu1 %v5859_v40  ;;  %v1862_v31 = vld [vmem:[%s7574_s17 + $0xfb0] sm:$0xff]  ;;  %v5715_v35 = vcombine.high %v1606_v29, %v1614_v30  ;;  %v1631_v40 = vld [vmem:[%s7574_s17 + $0x878] sm:$0xff]  ;;  %v5714_v41 = vcombine.low %v1606_v29, %v1614_v30  ;;  %v5477_v43 = vcombine.high %v1367_v37, %v1375_v38  ;;  %v5476_v49 = vcombine.low %v1367_v37, %v1375_v38 }
 0x32b   : > { %4955 = vmatpush1.bf16.msra.mxu0 %v5602_v45  ;;  %v5971_v36 = vcombine.high %v1862_v31, %v1870_v32  ;;  %v5970_v42 = vcombine.low %v1862_v31, %v1870_v32  ;;  %v5733_v44 = vcombine.high %v1623_v39, %v1631_v40  ;;  %v1383_v45 = vld [vmem:[%s7574_s17 + $0xb8] sm:$0xff]  ;;  %v5732_v50 = vcombine.low %v1623_v39, %v1631_v40 }
 0x32c   : > { %4956 = vmatprep.subr.bf16.mxu0 %v5619_v47  ;;  %v1639_v47 = vld [vmem:[%s7574_s17 + $0x8b8] sm:$0xff] }
 0x32d   : > { %4996 = vmatpush1.bf16.msra.mxu1 %v5858_v46  ;;  %v1391_v46 = vld [vmem:[%s7574_s17 + $0xf8] sm:$0xff] }
 0x32e   : > { %4997 = vmatprep.subr.bf16.mxu1 %v5875_v48  ;;  %v1647_v48 = vld [vmem:[%s7574_s17 + $0x8f8] sm:$0xff]  ;;  %v5493_v51 = vcombine.high %v1383_v45, %v1391_v46  ;;  %v5492_v61 = vcombine.low %v1383_v45, %v1391_v46 }
 0x32f   : > { %4957 = vmatpush1.bf16.msra.mxu0 %v5618_v53  ;;  %v5749_v52 = vcombine.high %v1639_v47, %v1647_v48  ;;  %v1399_v53 = vld [vmem:[%s7574_s17 + $0x138] sm:$0xff]  ;;  %v5748_v62 = vcombine.low %v1639_v47, %v1647_v48 }
 0x330   : > { %4958 = vmatprep.subr.bf16.mxu0 %v5635_v57  ;;  %v1655_v57 = vld [vmem:[%s7574_s17 + $0x938] sm:$0xff] }
 0x331   : > { %4998 = vmatpush1.bf16.msra.mxu1 %v5874_v56  ;;  %v1407_v56 = vld [vmem:[%s7574_s17 + $0x178] sm:$0xff] }
 0x332   : > { %4999 = vmatprep.subr.bf16.mxu1 %v5891_v58  ;;  %v1663_v58 = vld [vmem:[%s7574_s17 + $0x978] sm:$0xff]  ;;  %v5509_v63 = vcombine.high %v1399_v53, %v1407_v56  ;;  %v5508_v5 = vcombine.low %v1399_v53, %v1407_v56 }
 0x333   : > { %4959 = vmatpush1.bf16.msra.mxu0 %v5634_v1  ;;  %v5765_v0 = vcombine.high %v1655_v57, %v1663_v58  ;;  %v1415_v1 = vld [vmem:[%s7574_s17 + $0x1b8] sm:$0xff]  ;;  %v5764_v6 = vcombine.low %v1655_v57, %v1663_v58 }
 0x334   : > { %4960 = vmatprep.subr.bf16.mxu0 %v5651_v3  ;;  %v1671_v3 = vld [vmem:[%s7574_s17 + $0x9b8] sm:$0xff] }
 0x335   : > { %5000 = vmatpush1.bf16.msra.mxu1 %v5890_v2  ;;  %v1423_v2 = vld [vmem:[%s7574_s17 + $0x1f8] sm:$0xff] }
 0x336   : > { %5001 = vmatprep.subr.bf16.mxu1 %v5907_v4  ;;  %v1679_v4 = vld [vmem:[%s7574_s17 + $0x9f8] sm:$0xff]  ;;  %v5525_v7 = vcombine.high %v1415_v1, %v1423_v2 }
 0x337   : > { %4961 = vmatpush1.bf16.msra.mxu0 %v5650_v9  ;;  %v5781_v8 = vcombine.high %v1671_v3, %v1679_v4  ;;  %v1431_v9 = vld [vmem:[%s7574_s17 + $0x238] sm:$0xff] }
 0x338   : > { %4962 = vmatprep.subr.bf16.mxu0 %v5667_v11  ;;  %v1687_v11 = vld [vmem:[%s7574_s17 + $0xa38] sm:$0xff] }
 0x339   : > { %5002 = vmatpush1.bf16.msra.mxu1 %v5906_v10  ;;  %v1439_v10 = vld [vmem:[%s7574_s17 + $0x278] sm:$0xff] }
 0x33a   : > { %5003 = vmatprep.subr.bf16.mxu1 %v5923_v12  ;;  %v5524_v12 = vcombine.low %v1415_v1, %v1423_v2  ;;  %v5541_v13 = vcombine.high %v1431_v9, %v1439_v10  ;;  %v1463_v25 = vld [vmem:[%s7574_s17 + $0x338] sm:$0xff] }
 0x33b   : > { %4963 = vmatpush1.bf16.msra.mxu0 %v5666_v18  ;;  %v1703_v18 = vld [vmem:[%s7574_s17 + $0xab8] sm:$0xff] }
 0x33c   : > { %4964 = vmatprep.subr.bf16.mxu0 %v5683_v21  ;;  %v5540_v21 = vcombine.low %v1431_v9, %v1439_v10  ;;  %v1471_v54 = vld [vmem:[%s7574_s17 + $0x378] sm:$0xff] }
 0x33d   : > { %5004 = vmatpush1.bf16.msra.mxu1 %v5922_v19  ;;  %v1711_v19 = vld [vmem:[%s7574_s17 + $0xaf8] sm:$0xff]  ;;  %v5573_v29 = vcombine.high %v1463_v25, %v1471_v54 }
 0x33e   : > { %5005 = vmatprep.subr.bf16.mxu1 %v5939_v22  ;;  %v5813_v24 = vcombine.high %v1703_v18, %v1711_v19  ;;  %v1479_v32 = vld [vmem:[%s7574_s17 + $0x3b8] sm:$0xff] }
 0x33f   : > { %4965 = vmatpush1.bf16.msra.mxu0 %v5682_v26  ;;  %v1719_v26 = vld [vmem:[%s7574_s17 + $0xb38] sm:$0xff] }
 0x340   : > { %4966 = vmatprep.subr.bf16.mxu0 %v5699_v55  ;;  %v5556_v55 = vcombine.low %v1447_v15, %v1455_v16  ;;  %v1735_v37 = vld [vmem:[%s7574_s17 + $0xbb8] sm:$0xff] }
 0x341   : > { %5006 = vmatpush1.bf16.msra.mxu1 %v5938_v27  ;;  %v1727_v27 = vld [vmem:[%s7574_s17 + $0xb78] sm:$0xff] }
 0x342   : > { %5007 = vmatprep.subr.bf16.mxu1 %v5955_v28  ;;  %v5812_v28 = vcombine.low %v1703_v18, %v1711_v19  ;;  %v5829_v31 = vcombine.high %v1719_v26, %v1727_v27  ;;  %v1743_v38 = vld [vmem:[%s7574_s17 + $0xbf8] sm:$0xff]  ;;  %v5828_v47 = vcombine.low %v1719_v26, %v1727_v27 }
 0x343   : > { %4967 = vmatpush1.bf16.msra.mxu0 %v5698_v33  ;;  %v1487_v33 = vld [vmem:[%s7574_s17 + $0x3f8] sm:$0xff] }
 0x344   : > { %4968 = vmatprep.subr.bf16.mxu0 %v5715_v35  ;;  %v1349_v40 = vld [vmem:[#allocation2 + $0x38] sm:$0xff]  ;;  %v5589_v48 = vcombine.high %v1479_v32, %v1487_v33 }
 0x345   : > { %5008 = vmatpush1.bf16.msra.mxu1 %v5954_v34  ;;  %v1348_v34 = vld [vmem:[#allocation2 + $0x30] sm:$0xff]  ;;  %v1503_v53 = vld [vmem:[%s7574_s17 + $0x478] sm:$0xff] }
 0x346   : > { %5009 = vmatprep.subr.bf16.mxu1 %v5971_v36  ;;  %v1751_v57 = vld [vmem:[%s7574_s17 + $0xc38] sm:$0xff] }
 0x347   : > { %4969 = vmatpush1.bf16.msra.mxu0 %v5714_v41  ;;  %v1759_v58 = vld [vmem:[%s7574_s17 + $0xc78] sm:$0xff] }
 0x348   : > { %5020 = vmatprep.subr.bf16.mxu0 %v5477_v43  ;;  %v5572_v43 = vcombine.low %v1463_v25, %v1471_v54  ;;  %v1511_v1 = vld [vmem:[%s7574_s17 + $0x4b8] sm:$0xff] }
 0x349   : > { %5010 = vmatpush1.bf16.msra.mxu1 %v5970_v42  ;;  %v1519_v2 = vld [vmem:[%s7574_s17 + $0x4f8] sm:$0xff] }
 0x34a   : > { %5061 = vmatprep.subr.bf16.mxu1 %v5733_v44  ;;  %4971 = vmatmul.mubr.bf16.vlgmr.msra.gmra.mrb[24].mxu0 %v7677_v17  ;;  %v1527_v9 = vld [vmem:[%s7574_s17 + $0x538] sm:$0xff] }
 0x34b   : > { %5021 = vmatpush1.bf16.msra.mxu0 %v5476_v49  ;;  %5052 = vmatprep.mubr.bf16.mxu0 %v7627_v59  ;;  %v1695_v59 = vld [vmem:[%s7574_s17 + $0xa78] sm:$0xff] }
 0x34c   : > { %5012 = vmatmul.mubr.bf16.vlgmr.msra.gmra.mrb[24].mxu1 %v7683_v20  ;;  %5022 = vmatprep.subr.bf16.mxu0 %v5493_v51  ;;  %v5797_v14 = vcombine.high %v1687_v11, %v1695_v59  ;;  %v5796_v22 = vcombine.low %v1687_v11, %v1695_v59  ;;  %v5845_v51 = vcombine.high %v1735_v37, %v1743_v38  ;;  %v1535_v10 = vld [vmem:[%s7574_s17 + $0x578] sm:$0xff] }
 0x34d   : > { %5062 = vmatpush1.bf16.msra.mxu1 %v5732_v50  ;;  %5093 = vmatprep.mubr.bf16.mxu1 %v7631_v60  ;;  %v5780_v60 = vcombine.low %v1671_v3, %v1679_v4  ;;  %v1767_v3 = vld [vmem:[%s7574_s17 + $0xcb8] sm:$0xff] }
 0x34e   : > { %5063 = vmatprep.subr.bf16.mxu1 %v5749_v52  ;;  %v1495_v52 = vld [vmem:[%s7574_s17 + $0x438] sm:$0xff] }
 0x34f   : > { %5023 = vmatpush1.bf16.msra.mxu0 %v5492_v61  ;;  %v5588_v61 = vcombine.low %v1479_v32, %v1487_v33  ;;  %v1775_v4 = vld [vmem:[%s7574_s17 + $0xcf8] sm:$0xff] }
 0x350   : > { %5024 = vmatprep.subr.bf16.mxu0 %v5509_v63  ;;  %v5605_v63 = vcombine.high %v1495_v52, %v1503_v53  ;;  %v1783_v11 = vld [vmem:[%s7574_s17 + $0xd38] sm:$0xff] }
 0x351   : > { %5064 = vmatpush1.bf16.msra.mxu1 %v5748_v62  ;;  %v5844_v62 = vcombine.low %v1735_v37, %v1743_v38  ;;  %v1791_v59 = vld [vmem:[%s7574_s17 + $0xd78] sm:$0xff] }
 0x352   : > { %5065 = vmatprep.subr.bf16.mxu1 %v5765_v0  ;;  %v5861_v0 = vcombine.high %v1751_v57, %v1759_v58  ;;  %v1543_v15 = vld [vmem:[%s7574_s17 + $0x5b8] sm:$0xff] }
 0x353   : > { %5025 = vmatpush1.bf16.msra.mxu0 %v5508_v5  ;;  %v5604_v5 = vcombine.low %v1495_v52, %v1503_v53  ;;  %v1551_v16 = vld [vmem:[%s7574_s17 + $0x5f8] sm:$0xff] }
 0x354   : > { %5026 = vmatprep.subr.bf16.mxu0 %v5525_v7  ;;  %v5621_v7 = vcombine.high %v1511_v1, %v1519_v2  ;;  %v1799_v18 = vld [vmem:[%s7574_s17 + $0xdb8] sm:$0xff] }
 0x355   : > { %5066 = vmatpush1.bf16.msra.mxu1 %v5764_v6  ;;  %v5860_v6 = vcombine.low %v1751_v57, %v1759_v58  ;;  %v1807_v19 = vld [vmem:[%s7574_s17 + $0xdf8] sm:$0xff] }
 0x356   : > { %5067 = vmatprep.subr.bf16.mxu1 %v5781_v8  ;;  %v5877_v8 = vcombine.high %v1767_v3, %v1775_v4  ;;  %v1559_v25 = vld [vmem:[%s7574_s17 + $0x638] sm:$0xff] }
 0x357   : > { %5027 = vmatpush1.bf16.msra.mxu0 %v5524_v12  ;;  %v5620_v12 = vcombine.low %v1511_v1, %v1519_v2  ;;  %v1567_v54 = vld [vmem:[%s7574_s17 + $0x678] sm:$0xff]  ;;  %v1351_v2 = vld [vmem:[#allocation2 + $0x48] sm:$0xff] }
 0x358   : > { %5028 = vmatprep.subr.bf16.mxu0 %v5541_v13  ;;  %v5637_v13 = vcombine.high %v1527_v9, %v1535_v10  ;;  %v1815_v26 = vld [vmem:[%s7574_s17 + $0xe38] sm:$0xff] }
 0x359   : > { %5068 = vmatpush1.bf16.msra.mxu1 %v5780_v60  ;;  %v5876_v60 = vcombine.low %v1767_v3, %v1775_v4  ;;  %v1823_v27 = vld [vmem:[%s7574_s17 + $0xe78] sm:$0xff] }
 0x35a   : > { %5069 = vmatprep.subr.bf16.mxu1 %v5797_v14  ;;  %v5893_v14 = vcombine.high %v1783_v11, %v1791_v59  ;;  %v1583_v32 = vld [vmem:[%s7574_s17 + $0x6f8] sm:$0xff] }
 0x35b   : > { %5029 = vmatpush1.bf16.msra.mxu0 %v5540_v21  ;;  %v5636_v21 = vcombine.low %v1527_v9, %v1535_v10  ;;  %v1831_v33 = vld [vmem:[%s7574_s17 + $0xeb8] sm:$0xff] }
 0x35c   : > { %5030 = vmatprep.subr.bf16.mxu0 %v5557_v23  ;;  %v5653_v23 = vcombine.high %v1543_v15, %v1551_v16 }
 0x35d   : > { %5070 = vmatpush1.bf16.msra.mxu1 %v5796_v22  ;;  %v4726_v30 = vpop.f32.mrb[12].mxu0  ;;  %v5892_v22 = vcombine.low %v1783_v11, %v1791_v59 }
 0x35e   : > { %5071 = vmatprep.subr.bf16.mxu1 %v5813_v24  ;;  %v4728_v36 = vpop.f32.mrb[13].mxu0  ;;  %v5909_v24 = vcombine.high %v1799_v18, %v1807_v19 }
 0x35f   : > { %v4767_v35 = vpop.f32.mrb[12].mxu1  ;;  %v4730_v42 = vpop.f32.mrb[14].mxu0  ;;  %5031 = vmatpush1.bf16.msra.mxu0 %v5556_v55  ;;  %v5652_v55 = vcombine.low %v1543_v15, %v1551_v16 }
 0x360   : > { %v4768_v39 = vadd.f32 %v4767_v35, %v4726_v30  ;;  %v4769_v41 = vpop.f32.mrb[13].mxu1  ;;  %v4731_v46 = vpop.f32.mrb[15].mxu0  ;;  %5032 = vmatprep.subr.bf16.mxu0 %v5573_v29  ;;  %v5669_v29 = vcombine.high %v1559_v25, %v1567_v54  ;;  %v5925_v30 = vcombine.high %v1815_v26, %v1823_v27  ;;  %v5668_v35 = vcombine.low %v1559_v25, %v1567_v54  ;;  %v1855_v42 = vld [vmem:[%s7574_s17 + $0xf78] sm:$0xff] }
 0x361   : > { %v4770_v44 = vadd.f32 %v4769_v41, %v4728_v36  ;;  %v4771_v45 = vpop.f32.mrb[14].mxu1  ;;  %5072 = vmatpush1.bf16.msra.mxu1 %v5812_v28  ;;  %v5908_v28 = vcombine.low %v1799_v18, %v1807_v19  ;;  %v5924_v36 = vcombine.low %v1815_v26, %v1823_v27  ;;  %v1847_v41 = vld [vmem:[%s7574_s17 + $0xf38] sm:$0xff]  ;;  %v1355_v27 = vld [vmem:[#allocation2 + $0x68] sm:$0xff] }
 0x362   : > { %v5108_v49 = vadd.f32 %v4768_v39, %v1348_v34  ;;  %v4772_v50 = vpop.f32.mrb[15].mxu1  ;;  %5073 = vmatprep.subr.bf16.mxu1 %v5829_v31  ;;  %v1575_v31 = vld [vmem:[%s7574_s17 + $0x6b8] sm:$0xff]  ;;  %v5957_v46 = vcombine.high %v1847_v41, %v1855_v42  ;;  %v5956_v52 = vcombine.low %v1847_v41, %v1855_v42 }
 0x363   : > { %v5109_v56 = vadd.f32 %v4770_v44, %v1349_v40  ;;  %5033 = vmatpush1.bf16.msra.mxu0 %v5572_v43  ;;  %v1839_v34 = vld [vmem:[%s7574_s17 + $0xef8] sm:$0xff]  ;;  %v5685_v37 = vcombine.high %v1575_v31, %v1583_v32  ;;  %v5684_v43 = vcombine.low %v1575_v31, %v1583_v32 }
 0x364   : > { %5124 = vst [vmem:[#allocation2 + $0x30] sm:$0xff] %v5108_v49  ;;  %5034 = vmatprep.subr.bf16.mxu0 %v5589_v48  ;;  %v5941_v38 = vcombine.high %v1831_v33, %v1839_v34  ;;  %v1591_v39 = vld [vmem:[%s7574_s17 + $0x738] sm:$0xff]  ;;  %v5940_v44 = vcombine.low %v1831_v33, %v1839_v34 }
 0x365   : > { %5125 = vst [vmem:[#allocation2 + $0x38] sm:$0xff] %v5109_v56  ;;  %5074 = vmatpush1.bf16.msra.mxu1 %v5828_v47  ;;  %v1599_v40 = vld [vmem:[%s7574_s17 + $0x778] sm:$0xff] }
 0x366   : > { %5075 = vmatprep.subr.bf16.mxu1 %v5845_v51  ;;  %v5701_v45 = vcombine.high %v1591_v39, %v1599_v40  ;;  %v1607_v47 = vld [vmem:[%s7574_s17 + $0x7b8] sm:$0xff]  ;;  %v5700_v51 = vcombine.low %v1591_v39, %v1599_v40 }
 0x367   : > { %5035 = vmatpush1.bf16.msra.mxu0 %v5588_v61  ;;  %v1615_v48 = vld [vmem:[%s7574_s17 + $0x7f8] sm:$0xff] }
 0x368   : > { %5036 = vmatprep.subr.bf16.mxu0 %v5605_v63  ;;  %v1863_v49 = vld [vmem:[%s7574_s17 + $0xfb8] sm:$0xff]  ;;  %v5717_v53 = vcombine.high %v1607_v47, %v1615_v48  ;;  %v5716_v57 = vcombine.low %v1607_v47, %v1615_v48 }
 0x369   : > { %5076 = vmatpush1.bf16.msra.mxu1 %v5844_v62  ;;  %v1871_v50 = vld [vmem:[%s7574_s17 + $0xff8] sm:$0xff]  ;;  %v1350_v62 = vld [vmem:[#allocation2 + $0x40] sm:$0xff] }
 0x36a   : > { %5077 = vmatprep.subr.bf16.mxu1 %v5861_v0  ;;  %v5973_v56 = vcombine.high %v1863_v49, %v1871_v50  ;;  %v5972_v58 = vcombine.low %v1863_v49, %v1871_v50  ;;  %v1357_v40 = vld [vmem:[#allocation2 + $0x78] sm:$0xff]  ;;  %v5158_v49 = vlaneseq (!%p5974_p2) }
 0x36b   : > { %5037 = vmatpush1.bf16.msra.mxu0 %v5604_v5 }
 0x36c   : > { %5038 = vmatprep.subr.bf16.mxu0 %v5621_v7  ;;  %v8156_v50 = vshrl.u32 (!%p5974_p2), %v5158_v49, 7 }
 0x36d   : > { %5078 = vmatpush1.bf16.msra.mxu1 %v5860_v6 }
 0x36e   : > { %5079 = vmatprep.subr.bf16.mxu1 %v5877_v8 }
 0x36f   : > { %5039 = vmatpush1.bf16.msra.mxu0 %v5620_v12 }
 0x370   : > { %5040 = vmatprep.subr.bf16.mxu0 %v5637_v13 }
 0x371   : > { %5080 = vmatpush1.bf16.msra.mxu1 %v5876_v60  ;;  %v1353_v60 = vld [vmem:[#allocation2 + $0x58] sm:$0xff] }
 0x372   : > { %5081 = vmatprep.subr.bf16.mxu1 %v5893_v14 }
 0x373   : > { %5041 = vmatpush1.bf16.msra.mxu0 %v5636_v21 }
 0x374   : > { %5042 = vmatprep.subr.bf16.mxu0 %v5653_v23 }
 0x375   : > { %5082 = vmatpush1.bf16.msra.mxu1 %v5892_v22 }
 0x376   : > { %5083 = vmatprep.subr.bf16.mxu1 %v5909_v24  ;;  %v1354_v24 = vld [vmem:[#allocation2 + $0x60] sm:$0xff] }
 0x377   : > { %5043 = vmatpush1.bf16.msra.mxu0 %v5652_v55 }
 0x378   : > { %5044 = vmatprep.subr.bf16.mxu0 %v5669_v29 }
 0x379   : > { %5084 = vmatpush1.bf16.msra.mxu1 %v5908_v28 }
 0x37a   : > { %5085 = vmatprep.subr.bf16.mxu1 %v5925_v30 }
 0x37b   : > { %5045 = vmatpush1.bf16.msra.mxu0 %v5668_v35 }
 0x37c   : > { %5046 = vmatprep.subr.bf16.mxu0 %v5685_v37 }
 0x37d   : > { %5086 = vmatpush1.bf16.msra.mxu1 %v5924_v36  ;;  %v1356_v36 = vld [vmem:[#allocation2 + $0x70] sm:$0xff] }
 0x37e   : > { %5087 = vmatprep.subr.bf16.mxu1 %v5941_v38 }
 0x37f   : > { %5047 = vmatpush1.bf16.msra.mxu0 %v5684_v43 }
 0x380   : > { %5048 = vmatprep.subr.bf16.mxu0 %v5701_v45 }
 0x381   : > { %5088 = vmatpush1.bf16.msra.mxu1 %v5940_v44 }
 0x382   : > { %5089 = vmatprep.subr.bf16.mxu1 %v5957_v46 }
 0x383   : > { %5049 = vmatpush1.bf16.msra.mxu0 %v5700_v51  ;;  %v5138_v51 = vld [vmem:[#allocation2] sm:$0xff] (!%p5974_p2) }
 0x384   : > { %5050 = vmatprep.subr.bf16.mxu0 %v5717_v53  ;;  %v5160_v53 = vsub.s32 (!%p5974_p2), 0, %v8156_v50 }
 0x385   : > { %5090 = vmatpush1.bf16.msra.mxu1 %v5956_v52  ;;  %v5154_v52 = vld [vmem:[%s7577_s5] sm:$0xff] (!%p5974_p2) }
 0x386   : > { %5091 = vmatprep.subr.bf16.mxu1 %v5973_v56  ;;  %v5139_v56 = vld [vmem:[#allocation2 + $0x8] sm:$0xff] (!%p5974_p2) }
 0x387   : > { %5051 = vmatpush1.bf16.msra.mxu0 %v5716_v57  ;;  %v5164_v57 = vsub.s32 (!%p5974_p2), 1, %v8156_v50 }
 0x389   : > { %5092 = vmatpush1.bf16.msra.mxu1 %v5972_v58  ;;  %v5140_v58 = vld [vmem:[#allocation2 + $0x10] sm:$0xff] (!%p5974_p2) }
 0x38a   : > { %5053 = vmatmul.mubr.bf16.vlgmr.msra.gmra.mrb[28].mxu0 %v7677_v17  ;;  %v1352_v17 = vld [vmem:[#allocation2 + $0x50] sm:$0xff] }
 0x38c   : > { %5094 = vmatmul.mubr.bf16.vlgmr.msra.gmra.mrb[28].mxu1 %v7683_v20 }
 0x39d   : > { %v4808_v61 = vpop.f32.mrb[16].mxu0 }
 0x39e   : > { %v4810_v0 = vpop.f32.mrb[17].mxu0 }
 0x39f   : > { %v4849_v63 = vpop.f32.mrb[16].mxu1  ;;  %v4812_v4 = vpop.f32.mrb[18].mxu0 }
 0x3a0   : > { %v4850_v1 = vadd.f32 %v4849_v63, %v4808_v61  ;;  %v4851_v3 = vpop.f32.mrb[17].mxu1  ;;  %v4813_v7 = vpop.f32.mrb[19].mxu0  ;;  %v5168_v61 = vsub.s32 (!%p5974_p2), 2, %v8156_v50  ;;  %v5141_v63 = vld [vmem:[#allocation2 + $0x18] sm:$0xff] (!%p5974_p2)  ;;  %v5188_v4 = vsub.s32 (!%p5974_p2), 7, %v8156_v50 }
 0x3a1   : > { %v4852_v5 = vadd.f32 %v4851_v3, %v4810_v0  ;;  %v4853_v6 = vpop.f32.mrb[18].mxu1  ;;  %v5142_v0 = vld [vmem:[#allocation2 + $0x20] sm:$0xff] (!%p5974_p2)  ;;  %v5184_v3 = vsub.s32 (!%p5974_p2), 6, %v8156_v50 }
 0x3a2   : > { %v5110_v8 = vadd.f32 %v4850_v1, %v1350_v62  ;;  %v4854_v9 = vpop.f32.mrb[19].mxu1  ;;  %v5172_v62 = vsub.s32 (!%p5974_p2), 3, %v8156_v50  ;;  %v5176_v1 = vsub.s32 (!%p5974_p2), 4, %v8156_v50  ;;  %v5165_v6 = vrot.slane (!%p5974_p2), %v5154_v52, %v5164_v57 }
 0x3a3   : > { %v5111_v10 = vadd.f32 %v4852_v5, %v1351_v2  ;;  %v5180_v2 = vsub.s32 (!%p5974_p2), 5, %v8156_v50  ;;  %v5161_v5 = vrot.slane (!%p5974_p2), %v5154_v52, %v5160_v53  ;;  %v5169_v7 = vrot.slane (!%p5974_p2), %v5154_v52, %v5168_v61  ;;  %v5143_v9 = vld [vmem:[#allocation2 + $0x28] sm:$0xff] (!%p5974_p2) }
 0x3a4   : > { %5126 = vst [vmem:[#allocation2 + $0x40] sm:$0xff] %v5110_v8  ;;  %v5173_v8 = vrot.slane (!%p5974_p2), %v5154_v52, %v5172_v62 }
 0x3a5   : > { %5127 = vst [vmem:[#allocation2 + $0x48] sm:$0xff] %v5111_v10  ;;  %v5144_v10 = vld [vmem:[#allocation2 + $0x30] sm:$0xff] (!%p5974_p2) }
 0x3dd   : > { %v4890_v11 = vpop.f32.mrb[20].mxu0 }
 0x3de   : > { %v4892_v20 = vpop.f32.mrb[21].mxu0 }
 0x3df   : > { %v4931_v59 = vpop.f32.mrb[20].mxu1  ;;  %v4894_v14 = vpop.f32.mrb[22].mxu0 }
 0x3e0   : > { %v4932_v12 = vadd.f32 %v4931_v59, %v4890_v11  ;;  %v4933_v13 = vpop.f32.mrb[21].mxu1  ;;  %v4895_v18 = vpop.f32.mrb[23].mxu0  ;;  %v5145_v11 = vld [vmem:[#allocation2 + $0x38] sm:$0xff] (!%p5974_p2)  ;;  %v5181_v59 = vrot.slane (!%p5974_p2), %v5154_v52, %v5180_v2  ;;  %v5240_v14 = vadd.f32 (!%p5974_p2), %v5169_v7, %v5140_v58 }
 0x3e1   : > { %v4934_v15 = vadd.f32 %v4933_v13, %v4892_v20  ;;  %v4935_v16 = vpop.f32.mrb[22].mxu1  ;;  %v5185_v20 = vrot.slane (!%p5974_p2), %v5154_v52, %v5184_v3  ;;  %v5239_v13 = vadd.f32 (!%p5974_p2), %v5165_v6, %v5139_v56 }
 0x3e2   : > { %v5112_v19 = vadd.f32 %v4932_v12, %v1352_v17  ;;  %v4936_v21 = vpop.f32.mrb[23].mxu1  ;;  %v5177_v17 = vrot.slane (!%p5974_p2), %v5154_v52, %v5176_v1  ;;  %v5189_v12 = vrot.slane (!%p5974_p2), %v5154_v52, %v5188_v4  ;;  %v5243_v18 = vadd.f32 (!%p5974_p2), %v5181_v59, %v5143_v9 }
 0x3e3   : > { %v5113_v22 = vadd.f32 %v4934_v15, %v1353_v60  ;;  %v5238_v60 = vadd.f32 (!%p5974_p2), %v5161_v5, %v5138_v51  ;;  %v5241_v15 = vadd.f32 (!%p5974_p2), %v5173_v8, %v5141_v63 }
 0x3e4   : > { %5128 = vst [vmem:[#allocation2 + $0x50] sm:$0xff] %v5112_v19  ;;  %v5242_v16 = vadd.f32 (!%p5974_p2), %v5177_v17, %v5142_v0  ;;  %v5244_v19 = vadd.f32 (!%p5974_p2), %v5185_v20, %v5144_v10  ;;  %v5245_v21 = vadd.f32 (!%p5974_p2), %v5189_v12, %v5145_v11 }
 0x3e5   : > { %5129 = vst [vmem:[#allocation2 + $0x58] sm:$0xff] %v5113_v22  ;;  %v5146_v22 = vld [vmem:[#allocation2 + $0x40] sm:$0xff] (!%p5974_p2) }
 0x41d   : > { %v4972_v23 = vpop.f32.mrb[24].mxu0 }
 0x41e   : > { %v4974_v54 = vpop.f32.mrb[25].mxu0 }
 0x41f   : > { %v5013_v25 = vpop.f32.mrb[24].mxu1  ;;  %v4976_v28 = vpop.f32.mrb[26].mxu0 }
 0x420   : > { %v5014_v26 = vadd.f32 %v5013_v25, %v4972_v23  ;;  %v5015_v55 = vpop.f32.mrb[25].mxu1  ;;  %v4977_v31 = vpop.f32.mrb[27].mxu0  ;;  %v5155_v23 = vld [vmem:[%s7577_s5 + $0x8] sm:$0xff] (!%p5974_p2)  ;;  %v5255_v25 = vmax.f32 (!%p5974_p2), %v5239_v13, 0.0  ;;  %v5258_v28 = vmax.f32 (!%p5974_p2), %v5242_v16, 0.0 }
 0x421   : > { %v5016_v29 = vadd.f32 %v5015_v55, %v4974_v54  ;;  %v5017_v30 = vpop.f32.mrb[26].mxu1  ;;  %v5256_v54 = vmax.f32 (!%p5974_p2), %v5240_v14, 0.0  ;;  %v5148_v55 = vld [vmem:[#allocation2 + $0x50] sm:$0xff] (!%p5974_p2)  ;;  %v5261_v31 = vmax.f32 (!%p5974_p2), %v5245_v21, 0.0 }
 0x422   : > { %v5114_v32 = vadd.f32 %v5014_v26, %v1354_v24  ;;  %v5018_v33 = vpop.f32.mrb[27].mxu1  ;;  %v5254_v24 = vmax.f32 (!%p5974_p2), %v5238_v60, 0.0  ;;  %v5257_v26 = vmax.f32 (!%p5974_p2), %v5241_v15, 0.0  ;;  %v5260_v30 = vmax.f32 (!%p5974_p2), %v5244_v19, 0.0  ;;  %5271 = vst [vmem:[%s7584_s26 + $0x8] sm:$0xff] (!%p5974_p2), %v5255_v25  ;;  %5274 = vst [vmem:[%s7584_s26 + $0x20] sm:$0xff] (!%p5974_p2), %v5258_v28 }
 0x423   : > { %v5115_v34 = vadd.f32 %v5016_v29, %v1355_v27  ;;  %v5147_v27 = vld [vmem:[#allocation2 + $0x48] sm:$0xff] (!%p5974_p2)  ;;  %v5259_v29 = vmax.f32 (!%p5974_p2), %v5243_v18, 0.0  ;;  %5272 = vst [vmem:[%s7584_s26 + $0x10] sm:$0xff] (!%p5974_p2), %v5256_v54  ;;  %5277 = vst [vmem:[%s7584_s26 + $0x38] sm:$0xff] (!%p5974_p2), %v5261_v31 }
 0x424   : > { %5130 = vst [vmem:[#allocation2 + $0x60] sm:$0xff] %v5114_v32  ;;  %v5149_v32 = vld [vmem:[#allocation2 + $0x58] sm:$0xff] (!%p5974_p2)  ;;  %5270 = vst [vmem:[%s7584_s26] sm:$0xff] (!%p5974_p2), %v5254_v24 }
 0x425   : > { %5131 = vst [vmem:[#allocation2 + $0x68] sm:$0xff] %v5115_v34  ;;  %5273 = vst [vmem:[%s7584_s26 + $0x18] sm:$0xff] (!%p5974_p2), %v5257_v26  ;;  %v5193_v34 = vrot.slane (!%p5974_p2), %v5155_v23, %v5160_v53 }
 0x426   : > { %5275 = vst [vmem:[%s7584_s26 + $0x28] sm:$0xff] (!%p5974_p2), %v5259_v29  ;;  %5276 = vst [vmem:[%s7584_s26 + $0x30] sm:$0xff] (!%p5974_p2), %v5260_v30 }
 0x42b   : > { %v5150_v33 = vld [vmem:[#allocation2 + $0x60] sm:$0xff] (!%p5974_p2) }
 0x45d   : > { %v5054_v35 = vpop.f32.mrb[28].mxu0 }
 0x45e   : > { %v5056_v38 = vpop.f32.mrb[29].mxu0 }
 0x45f   : > { %v5095_v37 = vpop.f32.mrb[28].mxu1  ;;  %v5058_v42 = vpop.f32.mrb[30].mxu0  ;;  %5137 = sbr.rel (%p5974_p2) target bundleno = 1138 (0x472), region = 71 }
 0x460   : > { %v5096_v39 = vadd.f32 %v5095_v37, %v5054_v35  ;;  %v5097_v41 = vpop.f32.mrb[29].mxu1  ;;  %v5059_v45 = vpop.f32.mrb[31].mxu0  ;;  %v5197_v35 = vrot.slane (!%p5974_p2), %v5155_v23, %v5164_v57  ;;  %v5205_v37 = vrot.slane (!%p5974_p2), %v5155_v23, %v5172_v62  ;;  %v5213_v42 = vrot.slane (!%p5974_p2), %v5155_v23, %v5180_v2 }
 0x461   : > { %v5098_v43 = vadd.f32 %v5097_v41, %v5056_v38  ;;  %v5099_v44 = vpop.f32.mrb[30].mxu1  ;;  %v5151_v38 = vld [vmem:[#allocation2 + $0x68] sm:$0xff] (!%p5974_p2)  ;;  %v5209_v41 = vrot.slane (!%p5974_p2), %v5155_v23, %v5176_v1  ;;  %v5246_v45 = vadd.f32 (!%p5974_p2), %v5193_v34, %v5146_v22 }
 0x462   : > { %v5116_v46 = vadd.f32 %v5096_v39, %v1356_v36  ;;  %v5100_v47 = vpop.f32.mrb[31].mxu1  ;;  %v5201_v36 = vrot.slane (!%p5974_p2), %v5155_v23, %v5168_v61  ;;  %v5221_v44 = vrot.slane (!%p5974_p2), %v5155_v23, %v5188_v4  ;;  %v5251_v50 = vadd.f32 (!%p5974_p2), %v5213_v42, %v5151_v38 }
 0x463   : > { %v5117_v48 = vadd.f32 %v5098_v43, %v1357_v40  ;;  %v5217_v43 = vrot.slane (!%p5974_p2), %v5155_v23, %v5184_v3  ;;  %v5250_v49 = vadd.f32 (!%p5974_p2), %v5209_v41, %v5150_v33  ;;  %v5262_v53 = vmax.f32 (!%p5974_p2), %v5246_v45, 0.0 }
 0x464   : > { %5132 = vst [vmem:[#allocation2 + $0x70] sm:$0xff] %v5116_v46  ;;  %v5247_v46 = vadd.f32 (!%p5974_p2), %v5197_v35, %v5147_v27  ;;  %v5248_v47 = vadd.f32 (!%p5974_p2), %v5201_v36, %v5148_v55  ;;  %v5267_v62 = vmax.f32 (!%p5974_p2), %v5251_v50, 0.0 }
 0x465   : > { %5133 = vst [vmem:[#allocation2 + $0x78] sm:$0xff] %v5117_v48  ;;  %v5249_v48 = vadd.f32 (!%p5974_p2), %v5205_v37, %v5149_v32  ;;  %v5266_v61 = vmax.f32 (!%p5974_p2), %v5250_v49, 0.0  ;;  %5278 = vst [vmem:[%s7584_s26 + $0x40] sm:$0xff] (!%p5974_p2), %v5262_v53 }
 0x466   : > { %v5263_v56 = vmax.f32 %v5247_v46, 0.0  ;;  %v5264_v57 = vmax.f32 %v5248_v47, 0.0  ;;  %5283 = vst [vmem:[%s7584_s26 + $0x68] sm:$0xff] %v5267_v62 }
 0x467   : > { %v5265_v58 = vmax.f32 %v5249_v48, 0.0  ;;  %5282 = vst [vmem:[%s7584_s26 + $0x60] sm:$0xff] %v5266_v61 }
 0x468   : > { %5279 = vst [vmem:[%s7584_s26 + $0x48] sm:$0xff] %v5263_v56  ;;  %5280 = vst [vmem:[%s7584_s26 + $0x50] sm:$0xff] %v5264_v57 }
 0x469   : > { %5281 = vst [vmem:[%s7584_s26 + $0x58] sm:$0xff] %v5265_v58 }
 0x46b   : > { %v5152_v39 = vld [vmem:[#allocation2 + $0x70] sm:$0xff] }
 0x46c   : > { %v5153_v40 = vld [vmem:[#allocation2 + $0x78] sm:$0xff]  ;;  %v5252_v51 = vadd.f32 %v5217_v43, %v5152_v39 }
 0x46d   : > { %v5253_v52 = vadd.f32 %v5221_v44, %v5153_v40 }
 0x46e   : > { %v5268_v63 = vmax.f32 %v5252_v51, 0.0 }
 0x46f   : > { %v5269_v0 = vmax.f32 %v5253_v52, 0.0 }
 0x470   : > { %5284 = vst [vmem:[%s7584_s26 + $0x70] sm:$0xff] %v5268_v63 }
 0x471   : > { %5285 = vst [vmem:[%s7584_s26 + $0x78] sm:$0xff] %v5269_v0 }
 0x472 PF: > { %s8299_s15 = sld [smem:[#allocation20_spill]]  ;;  %s5983_s20 = sshll.u32 %s6290_s21, 11 }
 0x473   : > { %s8300_s6 = sld [smem:[#allocation22_spill]]  ;;  %s5303_s11 = sshll.u32 %s7584_s26, 4  ;;  %s5304_s11 = int_to_ptr.vmem [resolvable:$true] %s5303_s11 }
 0x474   : > { %s5287_s3 = scalar_lea.sflag [#allocation5], %s7571_s12  ;;  %s6160_s19 = scalar_lea.vmem %s5304_s11, 2048 }
 0x475   : > { %p6161_p7 = scmp.ne.s32.totalorder %s5304_s11, %s6160_s19  ;;  %s6307_s27 = smov [#allocation9]  }
 0x476   : > { %s6164_s28 = sshll.u32 %s6307_s27, 4  ;;  %s6165_s28 = int_to_ptr.vmem [resolvable:$false] %s6164_s28 }
 0x477   : > { %s6166_s25 = scalar_lea.vmem %s6165_s28, 4096  ;;  %p6167_p3 = scmp.lt.s32.totalorder %s5304_s11, %s6165_s28 }
 0x478   : > { %p8301_p11 = scmp.ne.s32.totalorder %s8299_s15, 0  ;;  %p6168_p12 = scmp.lt.s32.totalorder %s6166_s25, %s6160_s19 }
 0x479   : > { %s8188_s29 = scalar_lea.hbm %s8300_s6, %s5983_s20 }
 0x47a   : > { %p6162_p1 = pnand %p6161_p7, %p8301_p11  ;;  %p6169_p6 = por %p6168_p12, %p6167_p3 }
 0x47c   : > { %p6163_p9 = pneg %p6162_p1 }
 0x47e   : > { %p6170_p0 = pnand %p6169_p6, %p6163_p9 }
 0x480   : > { %6173 = shalt.err (!%p6170_p0)
}
 0x481   : > { %s6174_s21 = scalar_lea.hbm %s8188_s29, 2048  ;;  %s6178_s8 = scalar_lea.hbm %s8300_s6, 4096 }
 0x482   : > { %p6175_p10 = scmp.ne.s32.totalorder %s8188_s29, %s6174_s21  ;;  %p6179_p8 = scmp.lt.u32.totalorder %s8188_s29, %s8300_s6 }
 0x483   : > { %p6180_p5 = scmp.lt.u32.totalorder %s6178_s8, %s6174_s21  ;;  %p6182_p7 = scmp.lt.u32.totalorder %s6174_s21, %s8188_s29 }
 0x484   : > { %p6176_p13 = pnand %p6175_p10, %p8301_p11 }
 0x485   : > { %p6181_p2 = por %p6180_p5, %p6179_p8 }
 0x486   : > { %p6177_p4 = pneg %p6176_p13 }
 0x487   : > { %p6183_p1 = por %p6182_p7, %p6181_p2 }
 0x489   : > { %p6184_p9 = pnand %p6183_p1, %p6177_p4 }
 0x48b   : > { %6187 = shalt.err (!%p6184_p9)
}
 0x48c   : > { %5988 = dma.vmem_to_hbm [thread:$0]  (%p8301_p11), %s5304_s11, 2048, %s8188_s29, %s5287_s3  }
 0x48d PF: > { %s8302_s5 = sld [smem:[#allocation13_spill]]  ;;  %s8303_s7 = sld [smem:[#allocation21_spill]] }
 0x48e   : > { %p5994_p3 = scmp.ge.s32.totalorder %s6302_s24, 2 }
 0x493   : > { %s5315_s26 = sand.u32 1, %s8302_s5   ;;  %p8304_p12 = scmp.ne.s32.totalorder %s8303_s7, 0 }
 0x494   : > { %s5316_s20 = scalar_lea.sflag [#allocation5], %s5315_s26 }
 0x495   : > { %p5991_p6 = pnand %p5994_p3, %p8304_p12 }
 0x497   : > { %6249 = dma.done.wait (!%p5991_p6), %s5316_s20, 2048  }
 0x498   : > { %6251 = vsyncadd (!%p5991_p6), %s5316_s20, 4294965248  ;;  %s22_s24 = sadd.s32 1, %s6302_s24   ;;  %s8306_s15 = sld [smem:[#allocation19_spill]] }
 0x499   : > { %p8214_p0 = scmp.ge.s32.totalorder %s22_s24, 18   ;;  %s8307_s4 = sld [smem:[#allocation18_spill]] }
 0x49a   : > { %s8308_s29 = sld [smem:[#allocation14_spill]]  ;;  %s8309_s19 = sld [smem:[#allocation17_spill]] }
 0x49b   : > { %s8310_s11 = sld [smem:[#allocation15_spill]]  ;;  %s8311_s3 = sld [smem:[#allocation16_spill]] }
 0x49c   : > { %s8312_s12 = smov %s6258_s13  ;;  %s8313_s13 = smov %s6262_s14 }
 0x49d   : > { %s8317_s17 = smov %s6278_s18  ;;  %s8319_s20 = smov %s6294_s22 }
 0x49e   : > { %s8314_s14 = smov %s8306_s15  ;;  %s8315_s15 = smov %s6270_s16 }
 0x49f   : > { %s8316_s16 = smov %s8307_s4  ;;  %s8320_s21 = smov %s6298_s23 }
 0x4a0   : > { %s8318_s18 = smov %s8308_s29  ;;  %21 = sbr.rel (!%p8214_p0) target bundleno = 14 (0xe), region = 129 }
 0x4a1   : > { %s8321_s22 = smov %s8310_s11  ;;  %s8322_s23 = smov %s8311_s3 }
 0x4a7   :  { %5321 = vsyncpa [#allocation4], 1 }
 0x4a8   :  { %5323 = vsyncpa [#allocation4 + $0x1], 1 }
 0x4a9   :  { %5324 = vsyncpa [#allocation8], 1 }
 0x4aa   :  { %5326 = vsyncpa [#allocation8 + $0x1], 1 }
 0x4ab   :  { %5327 = vsyncpa [#allocation5], 1 }
 0x4ac   :  { %5329 = vsyncpa [#allocation5 + $0x1], 1 }

// kernel: vgg_forward.3
= control target key start
LH: loop header
LB: loop body
LE: loop exit
PB: predicated region body
PF: predicated region fallthrough
CT: control target
= control target key end

     0   :  { %s6381_s0 = inlined_call_operand.hbm [shape: bf16[8,25088], index: 0, kind: input, shape index: {}]   ;;  %s6382_s1 = inlined_call_operand.hbm [shape: bf16[25088,4096], index: 1, kind: input, shape index: {}]   ;;  %s6383_s2 = inlined_call_operand.hbm [shape: f32[1,4096], index: 2, kind: input, shape index: {}]   ;;  %s6384_s3 = inlined_call_operand.hbm [shape: f32[8,4096], index: 3, kind: output, shape index: {}]  }
   0x1   :  { %6397 = sst [smem:[#allocation20_spill]] %s6381_s0 }
   0x2   :  { %6398 = sst [smem:[#allocation21_spill]] %s6382_s1 }
   0x3   :  { %6399 = sst [smem:[#allocation22_spill]] %s6384_s3 }
   0x4   :  { %8 = vsyncpa [#allocation4], 0 }
   0x5   :  { %10 = vsyncpa [#allocation4 + $0x1], 0 }
   0x6   :  { %11 = vsyncpa [#allocation7], 0 }
   0x7   :  { %13 = vsyncpa [#allocation7 + $0x1], 0 }
   0x8   :  { %14 = vsyncpa [#allocation5], 0 }
   0x9   :  { %16 = vsyncpa [#allocation5 + $0x1], 0  ;;  %s5379_s12 = smov 0   ;;  %s5381_s13 = smov 0  }
   0xa   :  { %s5383_s14 = smov 0   ;;  %s5385_s15 = smov 0  }
   0xb   :  { %s5387_s16 = smov 0   ;;  %s5389_s17 = smov 0  }
   0xc   :  { %s5391_s18 = smov 0   ;;  %s5393_s19 = smov 0  }
   0xd   :  { %s5395_s20 = smov 0   ;;  %s5397_s21 = smov 0  }
   0xe   :  { %s5399_s22 = smov 0   ;;  %s5401_s23 = smov 0  }
   0xf   :  { %s5403_s24 = smov 0   ;;  %s5405_s25 = smov 0  }
  0x10 LB: > { %6400 = sst [smem:[#allocation14_spill]] %s5329_s20  ;;  %p6386_p0 = scmp.eq.s32.totalorder %s5349_s25, 0  ;;  %s5349_s25 = sphi %s5405_s25, %s22_s25   ;;  %s5345_s24 = sphi %s5403_s24, %s6441_s24   ;;  %s5341_s23 = sphi %s5401_s23, %s6451_s23   ;;  %s5337_s22 = sphi %s5399_s22, %s6439_s22   ;;  %s5333_s21 = sphi %s5397_s21, %s6450_s21   ;;  %s5329_s20 = sphi %s5395_s20, %s6438_s20   ;;  %s5325_s19 = sphi %s5393_s19, %s6449_s19   ;;  %s5321_s18 = sphi %s5391_s18, %s6448_s18   ;;  %s5317_s17 = sphi %s5389_s17, %s6447_s17   ;;  %s5313_s16 = sphi %s5387_s16, %s6446_s16   ;;  %s5309_s15 = sphi %s5385_s15, %s6445_s15   ;;  %s5305_s14 = sphi %s5383_s14, %s6444_s14   ;;  %s5301_s13 = sphi %s5381_s13, %s6443_s13   ;;  %s5297_s12 = sphi %s5379_s12, %s6442_s12  }
  0x11   : > { %6401 = sst [smem:[#allocation15_spill]] %s5337_s22  ;;  %p85_p1 = scmp.ne.s32.totalorder %s5317_s17, %s5313_s16 }
  0x12   : > { %6402 = sst [smem:[#allocation16_spill]] %s5345_s24  ;;  %p6385_p4 = scmp.lt.s32.totalorder %s5349_s25, 98 }
  0x13   : > { %p87_p3 = por %p85_p1, %p6386_p0  ;;  %s190_s28 = sand.u32 1, %s5349_s25  }
  0x14   : > { %s192_s29 = sand.u32 1, %s5317_s17   ;;  %s4423_s4 = sshll.u32 %s5345_s24, 4 }
  0x15   : > { %s4421_s30 = sshll.u32 %s192_s29, 12  ;;  %s4958_s5 = sshll.u32 %s5341_s23, 11 }
  0x16   : > { %s194_s6 = scalar_lea.vmem [#allocation6], %s4421_s30  ;;  %s201_s8 = sadd.s32 %s4958_s5, %s4423_s4 }
  0x17   : > { %s204_s7 = sshll.u32 %s194_s6, 4  ;;  %s4425_s9 = sshll.u32 %s201_s8, 6  ;;  %s5463_s7 = int_to_ptr.vmem [resolvable:$true] %s204_s7 }
  0x18   : > { %p5467_p5 = pnand %p6385_p4, %p87_p3  ;;  %s6404_s1 = sld [smem:[#allocation21_spill]] }
  0x19   : > { %p4429_p6 = scmp.ge.s32.totalorder %s5349_s25, 1  ;;  %s5477_s29 = scalar_lea.sflag [#allocation7], %s190_s28 }
  0x1a   : > { %p5107_p8 = pneg %p5467_p5 }
  0x1e   : > { %s5474_s26 = scalar_lea.hbm %s6404_s1, %s4425_s9  ;;  %s5110_s5 = scalar_lea.hbm %s6404_s1, 6422528 }
  0x1f   : > { %s5105_s30 = scalar_lea.hbm %s5474_s26, 65536  ;;  %p5111_p11 = scmp.lt.u32.totalorder %s5474_s26, %s6404_s1 }
  0x20   : > { %p5106_p7 = scmp.ne.s32.totalorder %s5474_s26, %s5105_s30  ;;  %p5112_p12 = scmp.lt.u32.totalorder %s5110_s5, %s5105_s30 }
  0x21   : > { %p5114_p1 = scmp.lt.u32.totalorder %s5105_s30, %s5474_s26 }
  0x22   : > { %p5108_p9 = pnand %p5107_p8, %p5106_p7  ;;  %p5113_p13 = por %p5112_p12, %p5111_p11 }
  0x24   : > { %p5109_p10 = pneg %p5108_p9  ;;  %p5115_p3 = por %p5114_p1, %p5113_p13 }
  0x26   : > { %p5116_p4 = pnand %p5115_p3, %p5109_p10 }
  0x28   : > { %5119 = shalt.err (!%p5116_p4)
}
  0x29   : > { %s5120_s28 = scalar_lea.vmem %s5463_s7, 65536  ;;  %s5351_s9 = smov [#allocation6]  }
  0x2a   : > { %p5121_p7 = scmp.ne.s32.totalorder %s5463_s7, %s5120_s28  ;;  %s5125_s11 = sshll.u32 %s5351_s9, 4  ;;  %s5126_s11 = int_to_ptr.vmem [resolvable:$false] %s5125_s11 }
  0x2b   : > { %s5127_s27 = scalar_lea.vmem %s5126_s11, 131072  ;;  %p5128_p0 = scmp.lt.s32.totalorder %s5463_s7, %s5126_s11 }
  0x2c   : > { %p5123_p9 = pnand %p5121_p7, %p5107_p8  ;;  %p5129_p11 = scmp.lt.s32.totalorder %s5127_s27, %s5120_s28 }
  0x2e   : > { %p5124_p2 = pneg %p5123_p9  ;;  %p5130_p12 = por %p5129_p11, %p5128_p0 }
  0x30   : > { %p5131_p13 = pnand %p5130_p12, %p5124_p2 }
  0x32   : > { %5134 = shalt.err (!%p5131_p13)
}
  0x33   : > { %s5352_s30 = smov 2048   ;;  %s5353_s4 = smov 1024  }
  0x34   : > { %s5354_s5 = smov 64   ;;  %p231_p0 = scmp.lt.s32.totalorder %s5349_s25, 99 }
  0x35   : > { %4975 = dma.hbm_to_vmem [thread:$0]  (!%p5467_p5), %s5474_s26, 65536, %s5463_s7, %s5477_s29, %s5352_s30, %s5353_s4, %s5354_s5  }
  0x36   : > { %p5508_p2 = pnand %p4429_p6, %p231_p0  ;;  %s5513_s8 = sadd.s32 4294967295, %s5349_s25  }
  0x37   : > { %s34_s28 = sadd.s32 1, %s5341_s23  ;;  %s50_s9 = sadd.s32 1, %s5329_s20 }
  0x38   : > { %s6405_s6 = scalar_select %p5508_p2, 1, 0 }
  0x39   : > { %p35_p4 = scmp.ge.s32.totalorder %s34_s28, 49  ;;  %p57_p5 = scmp.ne.s32.totalorder %s5329_s20, %s5325_s19 }
  0x3a   : > { %p63_p8 = scmp.ne.s32.totalorder %s5325_s19, %s5321_s18  ;;  %s6407_s26 = sadd.s32 1, %s5345_s24 }
  0x3b   : > { %s6453_s28 = smov (%p35_p4, %s34_s28), 0  ;;  %s6455_s26 = smov (!%p35_p4, %s6407_s26), %s5345_s24 }
  0x3c   : > { %6406 = sst [smem:[#allocation17_spill]] %s6453_s28  ;;  %s46_s7 = ssub.s32 %s5341_s23, %s6453_s28 }
  0x3d   : > { %p6408_p6 = scmp.eq.s32.totalorder %s5349_s25, 0  ;;  %p39_p1 = scmp.ge.s32.totalorder %s6455_s26, 2 }
  0x3e   : > { %p48_p3 = scmp.eq.s32.totalorder %s46_s7, 0  ;;  %p6390_p7 = scmp.eq.s32.totalorder %s5513_s8, 0 }
  0x3f   : > { %p5530_p10 = por %p6408_p6, %p57_p5  ;;  %s169_s18 = sand.u32 1, %s5329_s20  }
  0x40   : > { %s6457_s26 = smov (%p39_p1, %s6455_s26), 0  ;;  %p5543_p9 = por %p6390_p7, %p63_p8 }
  0x41   : > { %6410 = sst [smem:[#allocation18_spill]] %s6457_s26  ;;  %s5549_s30 = ssub.s32 %s5345_s24, %s6457_s26 }
  0x42   : > { %s5539_s11 = scalar_select %p48_p3, %s5329_s20, %s50_s9  }
  0x43   : > { %s6412_s27 = scalar_select %p5543_p9, 1, 0 }
  0x44   : > { %6411 = sst [smem:[#allocation19_spill]] %s5539_s11  ;;  %s75_s4 = sor.u32 %s5549_s30, %s46_s7 }
  0x45   : > { %p6413_p11 = scmp.ne.s32.totalorder %s5313_s16, %s5309_s15  ;;  %p76_p13 = scmp.eq.s32.totalorder %s75_s4, 0 }
  0x46   : > { %s4418_s1 = sshll.u32 %s169_s18, 4  ;;  %s4957_s28 = sshll.u32 %s5341_s23, 8 }
  0x47   : > { %p5557_p12 = por %p6413_p11, %p6390_p7  ;;  %s6415_s9 = sadd.s32 1, %s5317_s17 }
  0x48   : > { %s5565_s11 = scalar_select %p76_p13, %s5317_s17, %s6415_s9  }
  0x49   : > { %s6414_s5 = scalar_select %p5557_p12, 1, 0 }
  0x4a   : > { %s6416_s0 = sld [smem:[#allocation20_spill]]  ;;  %s173_s15 = scalar_lea.vmem [#allocation3], %s4418_s1 }
  0x4b   : > { %s183_s7 = sshll.u32 %s173_s15, 4  ;;  %p6417_p0 = scmp.lt.s32.totalorder %s5349_s25, 98  ;;  %s5580_s7 = int_to_ptr.vmem [resolvable:$true] %s183_s7 }
  0x4c   : > { %s170_s9 = scalar_lea.sflag [#allocation4], %s169_s18 }
  0x4d   : > { %p5576_p4 = pnand %p6417_p0, %p5530_p10 }
  0x4f   : > { %p5137_p8 = pneg %p5576_p4 }
  0x50   : > { %s5570_s22 = scalar_lea.hbm %s6416_s0, %s4957_s28  ;;  %s5140_s28 = scalar_lea.hbm %s6416_s0, 12544 }
  0x51   : > { %s5135_s3 = scalar_lea.hbm %s5570_s22, 256  ;;  %p5141_p10 = scmp.lt.u32.totalorder %s5570_s22, %s6416_s0 }
  0x52   : > { %p5136_p5 = scmp.ne.s32.totalorder %s5570_s22, %s5135_s3  ;;  %p5142_p3 = scmp.lt.u32.totalorder %s5140_s28, %s5135_s3 }
  0x53   : > { %p5144_p13 = scmp.lt.u32.totalorder %s5135_s3, %s5570_s22 }
  0x54   : > { %p5138_p6 = pnand %p5137_p8, %p5136_p5  ;;  %p5143_p11 = por %p5142_p3, %p5141_p10 }
  0x56   : > { %p5139_p1 = pneg %p5138_p6  ;;  %p5145_p0 = por %p5144_p13, %p5143_p11 }
  0x58   : > { %p5146_p7 = pnand %p5145_p0, %p5139_p1 }
  0x5a   : > { %5149 = shalt.err (!%p5146_p7)
}
  0x5b   : > { %s5150_s18 = scalar_lea.vmem %s5580_s7, 256  ;;  %s5355_s1 = smov [#allocation3]  }
  0x5c   : > { %p5151_p5 = scmp.ne.s32.totalorder %s5580_s7, %s5150_s18  ;;  %s5155_s20 = sshll.u32 %s5355_s1, 4  ;;  %s5156_s20 = int_to_ptr.vmem [resolvable:$false] %s5155_s20 }
  0x5d   : > { %s5157_s10 = scalar_lea.vmem %s5156_s20, 512  ;;  %p5158_p9 = scmp.lt.s32.totalorder %s5580_s7, %s5156_s20 }
  0x5e   : > { %p5153_p6 = pnand %p5151_p5, %p5137_p8  ;;  %p5159_p10 = scmp.lt.s32.totalorder %s5157_s10, %s5150_s18 }
  0x60   : > { %p5154_p12 = pneg %p5153_p6  ;;  %p5160_p3 = por %p5159_p10, %p5158_p9 }
  0x62   : > { %p5161_p11 = pnand %p5160_p3, %p5154_p12 }
  0x64   : > { %5164 = shalt.err (!%p5161_p11)
}
  0x65   : > { %4972 = dma.hbm_to_vmem [thread:$0]  (!%p5576_p4), %s5570_s22, 256, %s5580_s7, %s170_s9  }
  0x66   : > { %s4415_s3 = sadd.s32 4294967294, %s5349_s25   ;;  %p102_p7 = scmp.eq.s32.totalorder %s5549_s30, 0 }
  0x67   : > { %s104_s28 = sadd.s32 1, %s5305_s14  ;;  %p111_p9 = scmp.ne.s32.totalorder %s5305_s14, %s5301_s13 }
  0x68   : > { %s5613_s4 = scalar_select %p102_p7, %s5305_s14, %s104_s28  }
  0x69   : > { %p6419_p12 = scmp.eq.s32.totalorder %s5349_s25, 0  ;;  %p117_p1 = scmp.ne.s32.totalorder %s5301_s13, %s5297_s12 }
  0x6a   : > { %p143_p13 = scmp.eq.s32.totalorder %s5513_s8, 97  ;;  %p149_p0 = scmp.eq.s32.totalorder %s4415_s3, 97 }
  0x6b   : > { %p5617_p8 = por %p111_p9, %p6419_p12  ;;  %p6421_p5 = scmp.eq.s32.totalorder %s5513_s8, 0 }
  0x6c   : > { %s216_s22 = sand.u32 1, %s5305_s14   ;;  %p5631_p4 = por %p143_p13, %p111_p9 }
  0x6d   : > { %p5626_p6 = por %p117_p1, %p6421_p5  ;;  %p5635_p10 = por %p149_p0, %p117_p1 }
  0x6e   : > { %s6423_s30 = scalar_select %p5631_p4, 1, 0 }
  0x6f   : > { %s6422_s18 = scalar_select %p5626_p6, 1, 0 }
  0x70   : > { %s6424_s7 = scalar_select %p5635_p10, 1, 0 }
  0x71   : > { %s4426_s9 = sshll.u32 %s216_s22, 4  ;;  %s4959_s1 = sshll.u32 %s5345_s24, 8 }
  0x72   : > { %s5643_s3 = scalar_lea.hbm %s6383_s2, %s4959_s1  ;;  %s218_s28 = scalar_lea.vmem [#allocation8], %s4426_s9 }
  0x73   : > { %s226_s0 = sshll.u32 %s218_s28, 4  ;;  %p6425_p3 = scmp.lt.s32.totalorder %s5349_s25, 98  ;;  %s227_s0 = int_to_ptr.vmem [resolvable:$true] %s226_s0 }
  0x74   : > { %s5165_s22 = scalar_lea.hbm %s5643_s3, 256  ;;  %s5170_s15 = scalar_lea.hbm %s6383_s2, 512 }
  0x75   : > { %p5649_p11 = pnand %p6425_p3, %p5617_p8  ;;  %p5166_p7 = scmp.ne.s32.totalorder %s5643_s3, %s5165_s22 }
  0x76   : > { %p5171_p8 = scmp.lt.u32.totalorder %s5643_s3, %s6383_s2  ;;  %p5172_p13 = scmp.lt.u32.totalorder %s5170_s15, %s5165_s22 }
  0x77   : > { %p5167_p9 = pneg %p5649_p11  ;;  %p5174_p5 = scmp.lt.u32.totalorder %s5165_s22, %s5643_s3 }
  0x78   : > { %p5173_p0 = por %p5172_p13, %p5171_p8 }
  0x79   : > { %p5168_p12 = pnand %p5167_p9, %p5166_p7 }
  0x7a   : > { %p5175_p3 = por %p5174_p5, %p5173_p0 }
  0x7b   : > { %p5169_p1 = pneg %p5168_p12 }
  0x7d   : > { %p5176_p10 = pnand %p5175_p3, %p5169_p1 }
  0x7f   : > { %5179 = shalt.err (!%p5176_p10)
}
  0x80   : > { %s5180_s28 = scalar_lea.vmem %s227_s0, 256  ;;  %s5356_s24 = smov [#allocation8]  }
  0x81   : > { %p5181_p4 = scmp.ne.s32.totalorder %s227_s0, %s5180_s28  ;;  %s5185_s1 = sshll.u32 %s5356_s24, 4  ;;  %s5186_s1 = int_to_ptr.vmem [resolvable:$false] %s5185_s1 }
  0x82   : > { %s5187_s9 = scalar_lea.vmem %s5186_s1, 512  ;;  %p5188_p6 = scmp.lt.s32.totalorder %s227_s0, %s5186_s1 }
  0x83   : > { %p5183_p7 = pnand %p5181_p4, %p5167_p9  ;;  %p5189_p2 = scmp.lt.s32.totalorder %s5187_s9, %s5180_s28 }
  0x85   : > { %p5184_p12 = pneg %p5183_p7  ;;  %p5190_p8 = por %p5189_p2, %p5188_p6 }
  0x87   : > { %p5191_p13 = pnand %p5190_p8, %p5184_p12 }
  0x89   : > { %5194 = shalt.err (!%p5191_p13)
}
  0x8a   : > { %4978 = dma.hbm_to_vmem [thread:$0]  (!%p5649_p11), %s5643_s3, 256, %s227_s0, %s5477_s29  }
  0x8b   : > { %p6427_p10 = scmp.ne.s32.totalorder %s6405_s6, 0 }
  0x8c   : > { %s237_s22 = sand.u32 (!%p6427_p10), 1, %s5325_s19   ;;  %p6428_p4 = scmp.ne.s32.totalorder (!%p6427_p10), %s6412_s27, 0 }
  0x8d   : > { %235 = sbr.rel (%p6427_p10) target bundleno = 944 (0x3b0), region = 32  ;;  %s5678_s15 = sshll.u32 (!%p6427_p10), %s237_s22, 4 }
  0x8e   : > { %s238_s24 = scalar_lea.sflag (!%p6427_p10), [#allocation4], %s237_s22  ;;  %s241_s20 = scalar_lea.vmem (!%p6427_p10), [#allocation3], %s5678_s15 }
  0x94   : > { %5280 = dma.done.wait (%p6428_p4), %s238_s24, 256  }
  0x95   : > { %5282 = vsyncadd (%p6428_p4), %s238_s24, 4294967040  ;;  %s246_s0 = sand.u32 1, %s5513_s8   ;;  %s248_s29 = sand.u32 1, %s5313_s16  }
  0x96   : > { %s4431_s6 = sshll.u32 %s248_s29, 12  ;;  %s247_s26 = scalar_lea.sflag [#allocation7], %s246_s0 }
  0x97   : > { %s5687_s3 = scalar_lea.vmem [#allocation6], %s4431_s6  ;;  %p6429_p2 = scmp.ne.s32.totalorder %s6414_s5, 0 }
  0x99   : > { %5284 = dma.done.wait (%p6429_p2), %s247_s26, 65536  }
  0x9a   : > { %5286 = vsyncadd (%p6429_p2), %s247_s26, 4294901760  ;;  %s5694_s10 = sand.u32 1, %s5301_s13   ;;  %p6430_p6 = scmp.ne.s32.totalorder %s6422_s18, 0 }
  0x9b   : > { %s4432_s27 = sshll.u32 %s5694_s10, 4 }
  0x9c   : > { %s5697_s28 = scalar_lea.vmem [#allocation8], %s4432_s27 }
  0x9d   : > { %5288 = dma.done.wait (%p6430_p6), %s247_s26, 256  }
  0x9e   : > { %5290 = vsyncadd (%p6430_p6), %s247_s26, 4294967040  ;;  %s4433_s8 = sshll.u32 %s5694_s10, 7  ;;  %p4434_p11 = scmp.ne.s32.totalorder %s5333_s21, 0 }
  0x9f   : > { %s5704_s1 = scalar_lea.vmem [#allocation9], %s4433_s8  ;;  %v5357_v0 = vmov (!%p4434_p11), 0.0  }
  0xa0   : > { %300 = sbr.rel (%p4434_p11) target bundleno = 168 (0xa8), region = 48  ;;  %301 = vst [vmem:[#allocation2] sm:$0xff] (!%p4434_p11), %v5357_v0  ;;  %302 = vst [vmem:[#allocation2 + $0x8] sm:$0xff] (!%p4434_p11), %v5357_v0 }
  0xa1   : > { %303 = vst [vmem:[#allocation2 + $0x10] sm:$0xff] (!%p4434_p11), %v5357_v0  ;;  %304 = vst [vmem:[#allocation2 + $0x18] sm:$0xff] (!%p4434_p11), %v5357_v0 }
  0xa2   : > { %305 = vst [vmem:[#allocation2 + $0x20] sm:$0xff] (!%p4434_p11), %v5357_v0  ;;  %306 = vst [vmem:[#allocation2 + $0x28] sm:$0xff] (!%p4434_p11), %v5357_v0 }
  0xa3   : > { %307 = vst [vmem:[#allocation2 + $0x30] sm:$0xff] (!%p4434_p11), %v5357_v0  ;;  %308 = vst [vmem:[#allocation2 + $0x38] sm:$0xff] (!%p4434_p11), %v5357_v0 }
  0xa4   : > { %309 = vst [vmem:[#allocation2 + $0x40] sm:$0xff] (!%p4434_p11), %v5357_v0  ;;  %310 = vst [vmem:[#allocation2 + $0x48] sm:$0xff] (!%p4434_p11), %v5357_v0 }
  0xa5   : > { %311 = vst [vmem:[#allocation2 + $0x50] sm:$0xff] (!%p4434_p11), %v5357_v0  ;;  %312 = vst [vmem:[#allocation2 + $0x58] sm:$0xff] (!%p4434_p11), %v5357_v0 }
  0xa6   : > { %313 = vst [vmem:[#allocation2 + $0x60] sm:$0xff] (!%p4434_p11), %v5357_v0  ;;  %314 = vst [vmem:[#allocation2 + $0x68] sm:$0xff] (!%p4434_p11), %v5357_v0 }
  0xa7   : > { %315 = vst [vmem:[#allocation2 + $0x70] sm:$0xff] %v5357_v0  ;;  %316 = vst [vmem:[#allocation2 + $0x78] sm:$0xff] %v5357_v0 }
  0xa8 PF: > { %v335_v1 = vld [vmem:[%s5687_s3] sm:$0xff]  ;;  %v5741_v55 = vld [vmem:[%s241_s20 + $0x8] sm:$0xff]  ;;  %p4951_p9 = scmp.ne.s32.totalorder %s5333_s21, 48 }
  0xa9   : > { %v343_v2 = vld [vmem:[%s5687_s3 + $0x40] sm:$0xff]  ;;  %v5751_v60 = vcombine.high %v5741_v55, %v5741_v55 }
  0xaa   : > { %v591_v3 = vld [vmem:[%s5687_s3 + $0x800] sm:$0xff]  ;;  %v4440_v4 = vcombine.high %v335_v1, %v343_v2  ;;  %v4439_v6 = vcombine.low %v335_v1, %v343_v2 }
  0xab   : > { %v599_v5 = vld [vmem:[%s5687_s3 + $0x840] sm:$0xff]  ;;  %3494 = vmatprep.mubr.bf16.mxu1 %v5751_v60 }
  0xac   : > { %v351_v7 = vld [vmem:[%s5687_s3 + $0x80] sm:$0xff]  ;;  %v4696_v9 = vcombine.high %v591_v3, %v599_v5  ;;  %v4695_v10 = vcombine.low %v591_v3, %v599_v5  ;;  %3421 = vmatprep.subr.bf16.mxu0 %v4440_v4 }
  0xad   : > { %v359_v8 = vld [vmem:[%s5687_s3 + $0xc0] sm:$0xff]  ;;  %3422 = vmatpush1.bf16.msra.mxu0 %v4439_v6 }
  0xae   : > { %v4456_v11 = vcombine.high %v351_v7, %v359_v8  ;;  %v607_v12 = vld [vmem:[%s5687_s3 + $0x880] sm:$0xff]  ;;  %3462 = vmatprep.subr.bf16.mxu1 %v4696_v9  ;;  %v4455_v19 = vcombine.low %v351_v7, %v359_v8 }
  0xaf   : > { %v615_v13 = vld [vmem:[%s5687_s3 + $0x8c0] sm:$0xff]  ;;  %3463 = vmatpush1.bf16.msra.mxu1 %v4695_v10 }
  0xb0   : > { %v367_v14 = vld [vmem:[%s5687_s3 + $0x100] sm:$0xff]  ;;  %v4712_v15 = vcombine.high %v607_v12, %v615_v13  ;;  %3423 = vmatprep.subr.bf16.mxu0 %v4456_v11  ;;  %v4711_v20 = vcombine.low %v607_v12, %v615_v13 }
  0xb1   : > { %v375_v16 = vld [vmem:[%s5687_s3 + $0x140] sm:$0xff]  ;;  %3424 = vmatpush1.bf16.msra.mxu0 %v4455_v19 }
  0xb2   : > { %v623_v17 = vld [vmem:[%s5687_s3 + $0x900] sm:$0xff]  ;;  %v4472_v21 = vcombine.high %v367_v14, %v375_v16  ;;  %3464 = vmatprep.subr.bf16.mxu1 %v4712_v15  ;;  %v4471_v27 = vcombine.low %v367_v14, %v375_v16 }
  0xb3   : > { %v631_v18 = vld [vmem:[%s5687_s3 + $0x940] sm:$0xff]  ;;  %3465 = vmatpush1.bf16.msra.mxu1 %v4711_v20 }
  0xb4   : > { %v4728_v22 = vcombine.high %v623_v17, %v631_v18  ;;  %v383_v23 = vld [vmem:[%s5687_s3 + $0x180] sm:$0xff]  ;;  %3425 = vmatprep.subr.bf16.mxu0 %v4472_v21  ;;  %v4727_v28 = vcombine.low %v623_v17, %v631_v18 }
  0xb5   : > { %v391_v24 = vld [vmem:[%s5687_s3 + $0x1c0] sm:$0xff]  ;;  %3426 = vmatpush1.bf16.msra.mxu0 %v4471_v27 }
  0xb6   : > { %v639_v25 = vld [vmem:[%s5687_s3 + $0x980] sm:$0xff]  ;;  %v4488_v29 = vcombine.high %v383_v23, %v391_v24  ;;  %3466 = vmatprep.subr.bf16.mxu1 %v4728_v22  ;;  %v4487_v35 = vcombine.low %v383_v23, %v391_v24 }
  0xb7   : > { %v647_v26 = vld [vmem:[%s5687_s3 + $0x9c0] sm:$0xff]  ;;  %3467 = vmatpush1.bf16.msra.mxu1 %v4727_v28 }
  0xb8   : > { %v4744_v30 = vcombine.high %v639_v25, %v647_v26  ;;  %v399_v31 = vld [vmem:[%s5687_s3 + $0x200] sm:$0xff]  ;;  %3427 = vmatprep.subr.bf16.mxu0 %v4488_v29  ;;  %v4743_v36 = vcombine.low %v639_v25, %v647_v26 }
  0xb9   : > { %v407_v32 = vld [vmem:[%s5687_s3 + $0x240] sm:$0xff]  ;;  %3428 = vmatpush1.bf16.msra.mxu0 %v4487_v35 }
  0xba   : > { %v655_v33 = vld [vmem:[%s5687_s3 + $0xa00] sm:$0xff]  ;;  %v4504_v37 = vcombine.high %v399_v31, %v407_v32  ;;  %3468 = vmatprep.subr.bf16.mxu1 %v4744_v30  ;;  %v4503_v43 = vcombine.low %v399_v31, %v407_v32 }
  0xbb   : > { %v663_v34 = vld [vmem:[%s5687_s3 + $0xa40] sm:$0xff]  ;;  %3469 = vmatpush1.bf16.msra.mxu1 %v4743_v36 }
  0xbc   : > { %v4760_v38 = vcombine.high %v655_v33, %v663_v34  ;;  %v415_v39 = vld [vmem:[%s5687_s3 + $0x280] sm:$0xff]  ;;  %3429 = vmatprep.subr.bf16.mxu0 %v4504_v37  ;;  %v4759_v44 = vcombine.low %v655_v33, %v663_v34 }
  0xbd   : > { %v423_v40 = vld [vmem:[%s5687_s3 + $0x2c0] sm:$0xff]  ;;  %3430 = vmatpush1.bf16.msra.mxu0 %v4503_v43 }
  0xbe   : > { %v671_v41 = vld [vmem:[%s5687_s3 + $0xa80] sm:$0xff]  ;;  %v4520_v45 = vcombine.high %v415_v39, %v423_v40  ;;  %3470 = vmatprep.subr.bf16.mxu1 %v4760_v38  ;;  %v4519_v51 = vcombine.low %v415_v39, %v423_v40 }
  0xbf   : > { %v679_v42 = vld [vmem:[%s5687_s3 + $0xac0] sm:$0xff]  ;;  %3471 = vmatpush1.bf16.msra.mxu1 %v4759_v44 }
  0xc0   : > { %v4776_v46 = vcombine.high %v671_v41, %v679_v42  ;;  %v431_v47 = vld [vmem:[%s5687_s3 + $0x300] sm:$0xff]  ;;  %3431 = vmatprep.subr.bf16.mxu0 %v4520_v45  ;;  %v4775_v52 = vcombine.low %v671_v41, %v679_v42 }
  0xc1   : > { %v439_v48 = vld [vmem:[%s5687_s3 + $0x340] sm:$0xff]  ;;  %3432 = vmatpush1.bf16.msra.mxu0 %v4519_v51 }
  0xc2   : > { %v687_v49 = vld [vmem:[%s5687_s3 + $0xb00] sm:$0xff]  ;;  %v4536_v53 = vcombine.high %v431_v47, %v439_v48  ;;  %3472 = vmatprep.subr.bf16.mxu1 %v4776_v46  ;;  %v4535_v63 = vcombine.low %v431_v47, %v439_v48 }
  0xc3   : > { %v695_v50 = vld [vmem:[%s5687_s3 + $0xb40] sm:$0xff]  ;;  %3473 = vmatpush1.bf16.msra.mxu1 %v4775_v52 }
  0xc4   : > { %v5737_v54 = vld [vmem:[%s241_s20] sm:$0xff]  ;;  %v4792_v56 = vcombine.high %v687_v49, %v695_v50  ;;  %3433 = vmatprep.subr.bf16.mxu0 %v4536_v53  ;;  %v4791_v0 = vcombine.low %v687_v49, %v695_v50 }
  0xc5   : > { %v447_v57 = vld [vmem:[%s5687_s3 + $0x380] sm:$0xff]  ;;  %v5747_v59 = vcombine.high %v5737_v54, %v5737_v54  ;;  %3434 = vmatpush1.bf16.msra.mxu0 %v4535_v63 }
  0xc6   : > { %v455_v58 = vld [vmem:[%s5687_s3 + $0x3c0] sm:$0xff]  ;;  %3474 = vmatprep.subr.bf16.mxu1 %v4792_v56 }
  0xc7   : > { %v703_v61 = vld [vmem:[%s5687_s3 + $0xb80] sm:$0xff]  ;;  %3453 = vmatprep.mubr.bf16.mxu0 %v5747_v59  ;;  %v4552_v1 = vcombine.high %v447_v57, %v455_v58  ;;  %v4551_v7 = vcombine.low %v447_v57, %v455_v58  ;;  %3475 = vmatpush1.bf16.msra.mxu1 %v4791_v0 }
  0xc8   : > { %v711_v62 = vld [vmem:[%s5687_s3 + $0xbc0] sm:$0xff] }
  0xc9   : > { %v4808_v2 = vcombine.high %v703_v61, %v711_v62  ;;  %v463_v3 = vld [vmem:[%s5687_s3 + $0x400] sm:$0xff]  ;;  %3435 = vmatprep.subr.bf16.mxu0 %v4552_v1  ;;  %v4807_v8 = vcombine.low %v703_v61, %v711_v62 }
  0xca   : > { %v471_v4 = vld [vmem:[%s5687_s3 + $0x440] sm:$0xff]  ;;  %3436 = vmatpush1.bf16.msra.mxu0 %v4551_v7  ;;  %v336_v7 = vld [vmem:[%s5687_s3 + $0x8] sm:$0xff] }
  0xcb   : > { %v719_v5 = vld [vmem:[%s5687_s3 + $0xc00] sm:$0xff]  ;;  %v4568_v9 = vcombine.high %v463_v3, %v471_v4  ;;  %3476 = vmatprep.subr.bf16.mxu1 %v4808_v2  ;;  %v4567_v15 = vcombine.low %v463_v3, %v471_v4 }
  0xcc   : > { %v727_v6 = vld [vmem:[%s5687_s3 + $0xc40] sm:$0xff]  ;;  %3477 = vmatpush1.bf16.msra.mxu1 %v4807_v8  ;;  %v344_v8 = vld [vmem:[%s5687_s3 + $0x48] sm:$0xff] }
  0xcd   : > { %v4824_v10 = vcombine.high %v719_v5, %v727_v6  ;;  %v479_v11 = vld [vmem:[%s5687_s3 + $0x480] sm:$0xff]  ;;  %3437 = vmatprep.subr.bf16.mxu0 %v4568_v9  ;;  %v4823_v16 = vcombine.low %v719_v5, %v727_v6  ;;  %v592_v9 = vld [vmem:[%s5687_s3 + $0x808] sm:$0xff] }
  0xce   : > { %v487_v12 = vld [vmem:[%s5687_s3 + $0x4c0] sm:$0xff]  ;;  %3438 = vmatpush1.bf16.msra.mxu0 %v4567_v15  ;;  %v352_v15 = vld [vmem:[%s5687_s3 + $0x88] sm:$0xff] }
  0xcf   : > { %v735_v13 = vld [vmem:[%s5687_s3 + $0xc80] sm:$0xff]  ;;  %v4584_v17 = vcombine.high %v479_v11, %v487_v12  ;;  %3478 = vmatprep.subr.bf16.mxu1 %v4824_v10  ;;  %v4583_v23 = vcombine.low %v479_v11, %v487_v12  ;;  %v600_v10 = vld [vmem:[%s5687_s3 + $0x848] sm:$0xff] }
  0xd0   : > { %v743_v14 = vld [vmem:[%s5687_s3 + $0xcc0] sm:$0xff]  ;;  %3479 = vmatpush1.bf16.msra.mxu1 %v4823_v16  ;;  %v360_v16 = vld [vmem:[%s5687_s3 + $0xc8] sm:$0xff] }
  0xd1   : > { %v4840_v18 = vcombine.high %v735_v13, %v743_v14  ;;  %v495_v19 = vld [vmem:[%s5687_s3 + $0x500] sm:$0xff]  ;;  %3439 = vmatprep.subr.bf16.mxu0 %v4584_v17  ;;  %v4839_v24 = vcombine.low %v735_v13, %v743_v14  ;;  %v4442_v13 = vcombine.high %v336_v7, %v344_v8  ;;  %v4698_v14 = vcombine.high %v592_v9, %v600_v10 }
  0xd2   : > { %v503_v20 = vld [vmem:[%s5687_s3 + $0x540] sm:$0xff]  ;;  %3440 = vmatpush1.bf16.msra.mxu0 %v4583_v23  ;;  %v5797_v17 = vcombine.low %v5737_v54, %v5737_v54  ;;  %v4458_v23 = vcombine.high %v352_v15, %v360_v16  ;;  %v376_v54 = vld [vmem:[%s5687_s3 + $0x148] sm:$0xff] }
  0xd3   : > { %v751_v21 = vld [vmem:[%s5687_s3 + $0xd00] sm:$0xff]  ;;  %v4600_v25 = vcombine.high %v495_v19, %v503_v20  ;;  %3480 = vmatprep.subr.bf16.mxu1 %v4840_v18  ;;  %v4599_v31 = vcombine.low %v495_v19, %v503_v20  ;;  %v608_v18 = vld [vmem:[%s5687_s3 + $0x888] sm:$0xff]  ;;  %v5803_v20 = vcombine.low %v5741_v55, %v5741_v55  ;;  %v4457_v55 = vcombine.low %v352_v15, %v360_v16 }
  0xd4   : > { %v759_v22 = vld [vmem:[%s5687_s3 + $0xd40] sm:$0xff]  ;;  %3481 = vmatpush1.bf16.msra.mxu1 %v4839_v24  ;;  %v616_v19 = vld [vmem:[%s5687_s3 + $0x8c8] sm:$0xff] }
  0xd5   : > { %v4856_v26 = vcombine.high %v751_v21, %v759_v22  ;;  %v511_v27 = vld [vmem:[%s5687_s3 + $0x580] sm:$0xff]  ;;  %3441 = vmatprep.subr.bf16.mxu0 %v4600_v25  ;;  %v4855_v32 = vcombine.low %v751_v21, %v759_v22  ;;  %v4441_v21 = vcombine.low %v336_v7, %v344_v8  ;;  %v4697_v22 = vcombine.low %v592_v9, %v600_v10  ;;  %v368_v25 = vld [vmem:[%s5687_s3 + $0x108] sm:$0xff] }
  0xd6   : > { %v519_v28 = vld [vmem:[%s5687_s3 + $0x5c0] sm:$0xff]  ;;  %3442 = vmatpush1.bf16.msra.mxu0 %v4599_v31  ;;  %v4714_v24 = vcombine.high %v608_v18, %v616_v19  ;;  %v384_v31 = vld [vmem:[%s5687_s3 + $0x188] sm:$0xff] }
  0xd7   : > { %v767_v29 = vld [vmem:[%s5687_s3 + $0xd80] sm:$0xff]  ;;  %v4616_v33 = vcombine.high %v511_v27, %v519_v28  ;;  %3482 = vmatprep.subr.bf16.mxu1 %v4856_v26  ;;  %v4615_v39 = vcombine.low %v511_v27, %v519_v28  ;;  %v624_v26 = vld [vmem:[%s5687_s3 + $0x908] sm:$0xff]  ;;  %v4713_v28 = vcombine.low %v608_v18, %v616_v19 }
  0xd8   : > { %v775_v30 = vld [vmem:[%s5687_s3 + $0xdc0] sm:$0xff]  ;;  %3483 = vmatpush1.bf16.msra.mxu1 %v4855_v32  ;;  %v632_v27 = vld [vmem:[%s5687_s3 + $0x948] sm:$0xff] }
  0xd9   : > { %v4872_v34 = vcombine.high %v767_v29, %v775_v30  ;;  %v527_v35 = vld [vmem:[%s5687_s3 + $0x600] sm:$0xff]  ;;  %3443 = vmatprep.subr.bf16.mxu0 %v4616_v33  ;;  %v4871_v40 = vcombine.low %v767_v29, %v775_v30  ;;  %v4474_v29 = vcombine.high %v368_v25, %v376_v54  ;;  %v4730_v30 = vcombine.high %v624_v26, %v632_v27  ;;  %v392_v32 = vld [vmem:[%s5687_s3 + $0x1c8] sm:$0xff] }
  0xda   : > { %v535_v36 = vld [vmem:[%s5687_s3 + $0x640] sm:$0xff]  ;;  %3444 = vmatpush1.bf16.msra.mxu0 %v4615_v39  ;;  %v640_v33 = vld [vmem:[%s5687_s3 + $0x988] sm:$0xff] }
  0xdb   : > { %v783_v37 = vld [vmem:[%s5687_s3 + $0xe00] sm:$0xff]  ;;  %v4632_v41 = vcombine.high %v527_v35, %v535_v36  ;;  %3484 = vmatprep.subr.bf16.mxu1 %v4872_v34  ;;  %v4631_v47 = vcombine.low %v527_v35, %v535_v36  ;;  %v648_v34 = vld [vmem:[%s5687_s3 + $0x9c8] sm:$0xff]  ;;  %v4473_v35 = vcombine.low %v368_v25, %v376_v54  ;;  %v4729_v36 = vcombine.low %v624_v26, %v632_v27 }
  0xdc   : > { %v791_v38 = vld [vmem:[%s5687_s3 + $0xe40] sm:$0xff]  ;;  %3485 = vmatpush1.bf16.msra.mxu1 %v4871_v40  ;;  %v400_v39 = vld [vmem:[%s5687_s3 + $0x208] sm:$0xff] }
  0xdd   : > { %v4888_v42 = vcombine.high %v783_v37, %v791_v38  ;;  %v543_v43 = vld [vmem:[%s5687_s3 + $0x680] sm:$0xff]  ;;  %3445 = vmatprep.subr.bf16.mxu0 %v4632_v41  ;;  %v4887_v48 = vcombine.low %v783_v37, %v791_v38  ;;  %v4490_v37 = vcombine.high %v384_v31, %v392_v32  ;;  %v4746_v38 = vcombine.high %v640_v33, %v648_v34  ;;  %v408_v40 = vld [vmem:[%s5687_s3 + $0x248] sm:$0xff] }
  0xde   : > { %v551_v44 = vld [vmem:[%s5687_s3 + $0x6c0] sm:$0xff]  ;;  %3446 = vmatpush1.bf16.msra.mxu0 %v4631_v47  ;;  %v656_v41 = vld [vmem:[%s5687_s3 + $0xa08] sm:$0xff] }
  0xdf   : > { %v799_v45 = vld [vmem:[%s5687_s3 + $0xe80] sm:$0xff]  ;;  %v4648_v49 = vcombine.high %v543_v43, %v551_v44  ;;  %3486 = vmatprep.subr.bf16.mxu1 %v4888_v42  ;;  %v4647_v57 = vcombine.low %v543_v43, %v551_v44  ;;  %v664_v42 = vld [vmem:[%s5687_s3 + $0xa48] sm:$0xff]  ;;  %v4489_v43 = vcombine.low %v384_v31, %v392_v32  ;;  %v4745_v44 = vcombine.low %v640_v33, %v648_v34 }
  0xe0   : > { %v807_v46 = vld [vmem:[%s5687_s3 + $0xec0] sm:$0xff]  ;;  %3487 = vmatpush1.bf16.msra.mxu1 %v4887_v48  ;;  %v416_v47 = vld [vmem:[%s5687_s3 + $0x288] sm:$0xff] }
  0xe1   : > { %v4904_v50 = vcombine.high %v799_v45, %v807_v46  ;;  %v559_v51 = vld [vmem:[%s5687_s3 + $0x700] sm:$0xff]  ;;  %3447 = vmatprep.subr.bf16.mxu0 %v4648_v49  ;;  %v4903_v58 = vcombine.low %v799_v45, %v807_v46  ;;  %v4506_v45 = vcombine.high %v400_v39, %v408_v40  ;;  %v4762_v46 = vcombine.high %v656_v41, %v664_v42  ;;  %v424_v48 = vld [vmem:[%s5687_s3 + $0x2c8] sm:$0xff] }
  0xe2   : > { %v567_v52 = vld [vmem:[%s5687_s3 + $0x740] sm:$0xff]  ;;  %3448 = vmatpush1.bf16.msra.mxu0 %v4647_v57  ;;  %v672_v49 = vld [vmem:[%s5687_s3 + $0xa88] sm:$0xff] }
  0xe3   : > { %v815_v53 = vld [vmem:[%s5687_s3 + $0xf00] sm:$0xff]  ;;  %v4664_v61 = vcombine.high %v559_v51, %v567_v52  ;;  %3488 = vmatprep.subr.bf16.mxu1 %v4904_v50  ;;  %v4663_v3 = vcombine.low %v559_v51, %v567_v52  ;;  %v680_v50 = vld [vmem:[%s5687_s3 + $0xac8] sm:$0xff]  ;;  %v4505_v51 = vcombine.low %v400_v39, %v408_v40  ;;  %v4761_v52 = vcombine.low %v656_v41, %v664_v42 }
  0xe4   : > { %v823_v56 = vld [vmem:[%s5687_s3 + $0xf40] sm:$0xff]  ;;  %3489 = vmatpush1.bf16.msra.mxu1 %v4903_v58  ;;  %v432_v57 = vld [vmem:[%s5687_s3 + $0x308] sm:$0xff] }
  0xe5   : > { %v4920_v62 = vcombine.high %v815_v53, %v823_v56  ;;  %v575_v63 = vld [vmem:[%s5687_s3 + $0x780] sm:$0xff]  ;;  %3449 = vmatprep.subr.bf16.mxu0 %v4664_v61  ;;  %v4919_v4 = vcombine.low %v815_v53, %v823_v56  ;;  %v4522_v53 = vcombine.high %v416_v47, %v424_v48  ;;  %v4778_v56 = vcombine.high %v672_v49, %v680_v50  ;;  %v440_v58 = vld [vmem:[%s5687_s3 + $0x348] sm:$0xff] }
  0xe6   : > { %v583_v0 = vld [vmem:[%s5687_s3 + $0x7c0] sm:$0xff]  ;;  %3450 = vmatpush1.bf16.msra.mxu0 %v4663_v3  ;;  %v688_v61 = vld [vmem:[%s5687_s3 + $0xb08] sm:$0xff]  ;;  %v4537_v7 = vcombine.low %v432_v57, %v440_v58 }
  0xe7   : > { %v831_v1 = vld [vmem:[%s5687_s3 + $0xf80] sm:$0xff]  ;;  %v4680_v5 = vcombine.high %v575_v63, %v583_v0  ;;  %3490 = vmatprep.subr.bf16.mxu1 %v4920_v62  ;;  %v4679_v11 = vcombine.low %v575_v63, %v583_v0  ;;  %v696_v62 = vld [vmem:[%s5687_s3 + $0xb48] sm:$0xff]  ;;  %v4521_v63 = vcombine.low %v416_v47, %v424_v48  ;;  %v4777_v0 = vcombine.low %v672_v49, %v680_v50 }
  0xe8   : > { %v839_v2 = vld [vmem:[%s5687_s3 + $0xfc0] sm:$0xff]  ;;  %3491 = vmatpush1.bf16.msra.mxu1 %v4919_v4  ;;  %v448_v3 = vld [vmem:[%s5687_s3 + $0x388] sm:$0xff]  ;;  %v4793_v8 = vcombine.low %v688_v61, %v696_v62 }
  0xe9   : > { %v4936_v6 = vcombine.high %v831_v1, %v839_v2  ;;  %3451 = vmatprep.subr.bf16.mxu0 %v4680_v5  ;;  %v4935_v12 = vcombine.low %v831_v1, %v839_v2  ;;  %v4538_v1 = vcombine.high %v432_v57, %v440_v58  ;;  %v4794_v2 = vcombine.high %v688_v61, %v696_v62  ;;  %v456_v4 = vld [vmem:[%s5687_s3 + $0x3c8] sm:$0xff] }
  0xea   : > { %3452 = vmatpush1.bf16.msra.mxu0 %v4679_v11  ;;  %v704_v5 = vld [vmem:[%s5687_s3 + $0xb88] sm:$0xff]  ;;  %v4554_v9 = vcombine.high %v448_v3, %v456_v4  ;;  %v4553_v15 = vcombine.low %v448_v3, %v456_v4 }
  0xeb   : > { %3492 = vmatprep.subr.bf16.mxu1 %v4936_v6  ;;  %3503 = vmatprep.subr.bf16.mxu0 %v4442_v13  ;;  %v712_v6 = vld [vmem:[%s5687_s3 + $0xbc8] sm:$0xff] }
  0xec   : > { %3493 = vmatpush1.bf16.msra.mxu1 %v4935_v12  ;;  %v4810_v10 = vcombine.high %v704_v5, %v712_v6  ;;  %v464_v11 = vld [vmem:[%s5687_s3 + $0x408] sm:$0xff]  ;;  %v4809_v16 = vcombine.low %v704_v5, %v712_v6 }
  0xed   : > { %3544 = vmatprep.subr.bf16.mxu1 %v4698_v14  ;;  %3454 = vmatmul.mubr.bf16.vlgmr.msra.gmra.mrb[0].mxu0 %v5797_v17  ;;  %v472_v12 = vld [vmem:[%s5687_s3 + $0x448] sm:$0xff] }
  0xee   : > { %3504 = vmatpush1.bf16.msra.mxu0 %v4441_v21  ;;  %3535 = vmatprep.mubr.bf16.mxu0 %v5747_v59  ;;  %v720_v13 = vld [vmem:[%s5687_s3 + $0xc08] sm:$0xff]  ;;  %v4570_v18 = vcombine.high %v464_v11, %v472_v12  ;;  %v4569_v25 = vcombine.low %v464_v11, %v472_v12 }
  0xef   : > { %3495 = vmatmul.mubr.bf16.vlgmr.msra.gmra.mrb[0].mxu1 %v5803_v20  ;;  %3505 = vmatprep.subr.bf16.mxu0 %v4458_v23  ;;  %v728_v14 = vld [vmem:[%s5687_s3 + $0xc48] sm:$0xff] }
  0xf0   : > { %3545 = vmatpush1.bf16.msra.mxu1 %v4697_v22  ;;  %3576 = vmatprep.mubr.bf16.mxu1 %v5751_v60  ;;  %v4826_v19 = vcombine.high %v720_v13, %v728_v14  ;;  %v480_v21 = vld [vmem:[%s5687_s3 + $0x488] sm:$0xff]  ;;  %v4825_v54 = vcombine.low %v720_v13, %v728_v14 }
  0xf1   : > { %3546 = vmatprep.subr.bf16.mxu1 %v4714_v24  ;;  %v488_v22 = vld [vmem:[%s5687_s3 + $0x4c8] sm:$0xff] }
  0xf2   : > { %3506 = vmatpush1.bf16.msra.mxu0 %v4457_v55  ;;  %v736_v23 = vld [vmem:[%s5687_s3 + $0xc88] sm:$0xff]  ;;  %v4586_v26 = vcombine.high %v480_v21, %v488_v22  ;;  %v4585_v31 = vcombine.low %v480_v21, %v488_v22 }
  0xf3   : > { %3507 = vmatprep.subr.bf16.mxu0 %v4474_v29  ;;  %v744_v24 = vld [vmem:[%s5687_s3 + $0xcc8] sm:$0xff] }
  0xf4   : > { %3547 = vmatpush1.bf16.msra.mxu1 %v4713_v28  ;;  %v4842_v27 = vcombine.high %v736_v23, %v744_v24  ;;  %v496_v55 = vld [vmem:[%s5687_s3 + $0x508] sm:$0xff]  ;;  %v4841_v32 = vcombine.low %v736_v23, %v744_v24 }
  0xf5   : > { %3548 = vmatprep.subr.bf16.mxu1 %v4730_v30  ;;  %v504_v28 = vld [vmem:[%s5687_s3 + $0x548] sm:$0xff] }
  0xf6   : > { %3508 = vmatpush1.bf16.msra.mxu0 %v4473_v35  ;;  %v752_v29 = vld [vmem:[%s5687_s3 + $0xd08] sm:$0xff]  ;;  %v4602_v33 = vcombine.high %v496_v55, %v504_v28  ;;  %v4601_v39 = vcombine.low %v496_v55, %v504_v28 }
  0xf7   : > { %3509 = vmatprep.subr.bf16.mxu0 %v4490_v37  ;;  %v760_v30 = vld [vmem:[%s5687_s3 + $0xd48] sm:$0xff] }
  0xf8   : > { %3549 = vmatpush1.bf16.msra.mxu1 %v4729_v36  ;;  %v4858_v34 = vcombine.high %v752_v29, %v760_v30  ;;  %v512_v35 = vld [vmem:[%s5687_s3 + $0x588] sm:$0xff]  ;;  %v4857_v40 = vcombine.low %v752_v29, %v760_v30 }
  0xf9   : > { %3550 = vmatprep.subr.bf16.mxu1 %v4746_v38  ;;  %v520_v36 = vld [vmem:[%s5687_s3 + $0x5c8] sm:$0xff] }
  0xfa   : > { %3510 = vmatpush1.bf16.msra.mxu0 %v4489_v43  ;;  %v768_v37 = vld [vmem:[%s5687_s3 + $0xd88] sm:$0xff]  ;;  %v4618_v41 = vcombine.high %v512_v35, %v520_v36  ;;  %v4617_v47 = vcombine.low %v512_v35, %v520_v36 }
  0xfb   : > { %3511 = vmatprep.subr.bf16.mxu0 %v4506_v45  ;;  %v776_v38 = vld [vmem:[%s5687_s3 + $0xdc8] sm:$0xff] }
  0xfc   : > { %3551 = vmatpush1.bf16.msra.mxu1 %v4745_v44  ;;  %v4874_v42 = vcombine.high %v768_v37, %v776_v38  ;;  %v528_v43 = vld [vmem:[%s5687_s3 + $0x608] sm:$0xff]  ;;  %v4873_v48 = vcombine.low %v768_v37, %v776_v38 }
  0xfd   : > { %3552 = vmatprep.subr.bf16.mxu1 %v4762_v46  ;;  %v536_v44 = vld [vmem:[%s5687_s3 + $0x648] sm:$0xff] }
  0xfe   : > { %3512 = vmatpush1.bf16.msra.mxu0 %v4505_v51  ;;  %v784_v45 = vld [vmem:[%s5687_s3 + $0xe08] sm:$0xff]  ;;  %v4634_v49 = vcombine.high %v528_v43, %v536_v44  ;;  %v4633_v57 = vcombine.low %v528_v43, %v536_v44 }
  0xff   : > { %3513 = vmatprep.subr.bf16.mxu0 %v4522_v53  ;;  %v792_v46 = vld [vmem:[%s5687_s3 + $0xe48] sm:$0xff] }
 0x100   : > { %3553 = vmatpush1.bf16.msra.mxu1 %v4761_v52  ;;  %v4890_v50 = vcombine.high %v784_v45, %v792_v46  ;;  %v544_v51 = vld [vmem:[%s5687_s3 + $0x688] sm:$0xff]  ;;  %v4889_v58 = vcombine.low %v784_v45, %v792_v46 }
 0x101   : > { %3554 = vmatprep.subr.bf16.mxu1 %v4778_v56  ;;  %v552_v52 = vld [vmem:[%s5687_s3 + $0x6c8] sm:$0xff] }
 0x102   : > { %3514 = vmatpush1.bf16.msra.mxu0 %v4521_v63  ;;  %v800_v53 = vld [vmem:[%s5687_s3 + $0xe88] sm:$0xff]  ;;  %v4650_v61 = vcombine.high %v544_v51, %v552_v52  ;;  %v4649_v3 = vcombine.low %v544_v51, %v552_v52 }
 0x103   : > { %3515 = vmatprep.subr.bf16.mxu0 %v4538_v1  ;;  %v808_v56 = vld [vmem:[%s5687_s3 + $0xec8] sm:$0xff] }
 0x104   : > { %3555 = vmatpush1.bf16.msra.mxu1 %v4777_v0  ;;  %v4906_v62 = vcombine.high %v800_v53, %v808_v56  ;;  %v560_v63 = vld [vmem:[%s5687_s3 + $0x708] sm:$0xff]  ;;  %v4905_v4 = vcombine.low %v800_v53, %v808_v56 }
 0x105   : > { %3556 = vmatprep.subr.bf16.mxu1 %v4794_v2  ;;  %v568_v0 = vld [vmem:[%s5687_s3 + $0x748] sm:$0xff] }
 0x106   : > { %3516 = vmatpush1.bf16.msra.mxu0 %v4537_v7  ;;  %v816_v1 = vld [vmem:[%s5687_s3 + $0xf08] sm:$0xff]  ;;  %v4666_v5 = vcombine.high %v560_v63, %v568_v0  ;;  %v4665_v11 = vcombine.low %v560_v63, %v568_v0 }
 0x107   : > { %3517 = vmatprep.subr.bf16.mxu0 %v4554_v9  ;;  %v824_v2 = vld [vmem:[%s5687_s3 + $0xf48] sm:$0xff] }
 0x108   : > { %3557 = vmatpush1.bf16.msra.mxu1 %v4793_v8  ;;  %v4922_v6 = vcombine.high %v816_v1, %v824_v2  ;;  %v576_v7 = vld [vmem:[%s5687_s3 + $0x788] sm:$0xff]  ;;  %v4921_v12 = vcombine.low %v816_v1, %v824_v2 }
 0x109   : > { %3558 = vmatprep.subr.bf16.mxu1 %v4810_v10  ;;  %v584_v8 = vld [vmem:[%s5687_s3 + $0x7c8] sm:$0xff] }
 0x10a   : > { %3518 = vmatpush1.bf16.msra.mxu0 %v4553_v15  ;;  %v832_v9 = vld [vmem:[%s5687_s3 + $0xf88] sm:$0xff]  ;;  %v4682_v13 = vcombine.high %v576_v7, %v584_v8  ;;  %v337_v15 = vld [vmem:[%s5687_s3 + $0x10] sm:$0xff]  ;;  %v4681_v21 = vcombine.low %v576_v7, %v584_v8 }
 0x10b   : > { %3519 = vmatprep.subr.bf16.mxu0 %v4570_v18  ;;  %v840_v10 = vld [vmem:[%s5687_s3 + $0xfc8] sm:$0xff]  ;;  %v593_v18 = vld [vmem:[%s5687_s3 + $0x810] sm:$0xff] }
 0x10c   : > { %3559 = vmatpush1.bf16.msra.mxu1 %v4809_v16  ;;  %v4938_v14 = vcombine.high %v832_v9, %v840_v10  ;;  %v345_v16 = vld [vmem:[%s5687_s3 + $0x50] sm:$0xff]  ;;  %v4937_v22 = vcombine.low %v832_v9, %v840_v10 }
 0x10d   : > { %3560 = vmatprep.subr.bf16.mxu1 %v4826_v19  ;;  %v601_v19 = vld [vmem:[%s5687_s3 + $0x850] sm:$0xff]  ;;  %v4444_v23 = vcombine.high %v337_v15, %v345_v16  ;;  %v4443_v55 = vcombine.low %v337_v15, %v345_v16 }
 0x10e   : > { %3520 = vmatpush1.bf16.msra.mxu0 %v4569_v25  ;;  %v4700_v24 = vcombine.high %v593_v18, %v601_v19  ;;  %v353_v25 = vld [vmem:[%s5687_s3 + $0x90] sm:$0xff]  ;;  %v4699_v28 = vcombine.low %v593_v18, %v601_v19 }
 0x10f   : > { %3521 = vmatprep.subr.bf16.mxu0 %v4586_v26  ;;  %v609_v26 = vld [vmem:[%s5687_s3 + $0x890] sm:$0xff] }
 0x110   : > { %3561 = vmatpush1.bf16.msra.mxu1 %v4825_v54  ;;  %v361_v54 = vld [vmem:[%s5687_s3 + $0xd0] sm:$0xff] }
 0x111   : > { %3562 = vmatprep.subr.bf16.mxu1 %v4842_v27  ;;  %v617_v27 = vld [vmem:[%s5687_s3 + $0x8d0] sm:$0xff]  ;;  %v4460_v29 = vcombine.high %v353_v25, %v361_v54  ;;  %v4459_v35 = vcombine.low %v353_v25, %v361_v54 }
 0x112   : > { %3522 = vmatpush1.bf16.msra.mxu0 %v4585_v31  ;;  %v4716_v30 = vcombine.high %v609_v26, %v617_v27  ;;  %v369_v31 = vld [vmem:[%s5687_s3 + $0x110] sm:$0xff]  ;;  %v4715_v36 = vcombine.low %v609_v26, %v617_v27 }
 0x113   : > { %3523 = vmatprep.subr.bf16.mxu0 %v4602_v33  ;;  %v625_v33 = vld [vmem:[%s5687_s3 + $0x910] sm:$0xff] }
 0x114   : > { %3563 = vmatpush1.bf16.msra.mxu1 %v4841_v32  ;;  %v377_v32 = vld [vmem:[%s5687_s3 + $0x150] sm:$0xff] }
 0x115   : > { %3564 = vmatprep.subr.bf16.mxu1 %v4858_v34  ;;  %v633_v34 = vld [vmem:[%s5687_s3 + $0x950] sm:$0xff]  ;;  %v4476_v37 = vcombine.high %v369_v31, %v377_v32  ;;  %v4475_v43 = vcombine.low %v369_v31, %v377_v32 }
 0x116   : > { %3524 = vmatpush1.bf16.msra.mxu0 %v4601_v39  ;;  %v4732_v38 = vcombine.high %v625_v33, %v633_v34  ;;  %v385_v39 = vld [vmem:[%s5687_s3 + $0x190] sm:$0xff]  ;;  %v4731_v44 = vcombine.low %v625_v33, %v633_v34 }
 0x117   : > { %3525 = vmatprep.subr.bf16.mxu0 %v4618_v41  ;;  %v641_v41 = vld [vmem:[%s5687_s3 + $0x990] sm:$0xff] }
 0x118   : > { %3565 = vmatpush1.bf16.msra.mxu1 %v4857_v40  ;;  %v393_v40 = vld [vmem:[%s5687_s3 + $0x1d0] sm:$0xff] }
 0x119   : > { %3566 = vmatprep.subr.bf16.mxu1 %v4874_v42  ;;  %v649_v42 = vld [vmem:[%s5687_s3 + $0x9d0] sm:$0xff]  ;;  %v4492_v45 = vcombine.high %v385_v39, %v393_v40  ;;  %v4491_v51 = vcombine.low %v385_v39, %v393_v40 }
 0x11a   : > { %3526 = vmatpush1.bf16.msra.mxu0 %v4617_v47  ;;  %v4748_v46 = vcombine.high %v641_v41, %v649_v42  ;;  %v401_v47 = vld [vmem:[%s5687_s3 + $0x210] sm:$0xff]  ;;  %v4747_v52 = vcombine.low %v641_v41, %v649_v42 }
 0x11b   : > { %3527 = vmatprep.subr.bf16.mxu0 %v4634_v49  ;;  %v657_v49 = vld [vmem:[%s5687_s3 + $0xa10] sm:$0xff] }
 0x11c   : > { %3567 = vmatpush1.bf16.msra.mxu1 %v4873_v48  ;;  %v409_v48 = vld [vmem:[%s5687_s3 + $0x250] sm:$0xff] }
 0x11d   : > { %3568 = vmatprep.subr.bf16.mxu1 %v4890_v50  ;;  %v665_v50 = vld [vmem:[%s5687_s3 + $0xa50] sm:$0xff]  ;;  %v4508_v53 = vcombine.high %v401_v47, %v409_v48  ;;  %v4507_v63 = vcombine.low %v401_v47, %v409_v48 }
 0x11e   : > { %3528 = vmatpush1.bf16.msra.mxu0 %v4633_v57  ;;  %v4764_v56 = vcombine.high %v657_v49, %v665_v50  ;;  %v417_v57 = vld [vmem:[%s5687_s3 + $0x290] sm:$0xff]  ;;  %v4763_v0 = vcombine.low %v657_v49, %v665_v50 }
 0x11f   : > { %3529 = vmatprep.subr.bf16.mxu0 %v4650_v61  ;;  %v673_v61 = vld [vmem:[%s5687_s3 + $0xa90] sm:$0xff] }
 0x120   : > { %3569 = vmatpush1.bf16.msra.mxu1 %v4889_v58  ;;  %v425_v58 = vld [vmem:[%s5687_s3 + $0x2d0] sm:$0xff] }
 0x121   : > { %3570 = vmatprep.subr.bf16.mxu1 %v4906_v62  ;;  %v681_v62 = vld [vmem:[%s5687_s3 + $0xad0] sm:$0xff]  ;;  %v4524_v1 = vcombine.high %v417_v57, %v425_v58  ;;  %v4523_v7 = vcombine.low %v417_v57, %v425_v58 }
 0x122   : > { %3530 = vmatpush1.bf16.msra.mxu0 %v4649_v3  ;;  %v4780_v2 = vcombine.high %v673_v61, %v681_v62  ;;  %v433_v3 = vld [vmem:[%s5687_s3 + $0x310] sm:$0xff]  ;;  %v4779_v8 = vcombine.low %v673_v61, %v681_v62 }
 0x123   : > { %3531 = vmatprep.subr.bf16.mxu0 %v4666_v5  ;;  %v689_v5 = vld [vmem:[%s5687_s3 + $0xb10] sm:$0xff] }
 0x124   : > { %3571 = vmatpush1.bf16.msra.mxu1 %v4905_v4  ;;  %v441_v4 = vld [vmem:[%s5687_s3 + $0x350] sm:$0xff] }
 0x125   : > { %3572 = vmatprep.subr.bf16.mxu1 %v4922_v6  ;;  %v697_v6 = vld [vmem:[%s5687_s3 + $0xb50] sm:$0xff]  ;;  %v4540_v9 = vcombine.high %v433_v3, %v441_v4  ;;  %v4539_v15 = vcombine.low %v433_v3, %v441_v4 }
 0x126   : > { %3532 = vmatpush1.bf16.msra.mxu0 %v4665_v11  ;;  %v4796_v10 = vcombine.high %v689_v5, %v697_v6  ;;  %v449_v11 = vld [vmem:[%s5687_s3 + $0x390] sm:$0xff]  ;;  %v4795_v16 = vcombine.low %v689_v5, %v697_v6 }
 0x127   : > { %3533 = vmatprep.subr.bf16.mxu0 %v4682_v13  ;;  %v705_v13 = vld [vmem:[%s5687_s3 + $0xb90] sm:$0xff] }
 0x128   : > { %3573 = vmatpush1.bf16.msra.mxu1 %v4921_v12  ;;  %v457_v12 = vld [vmem:[%s5687_s3 + $0x3d0] sm:$0xff] }
 0x129   : > { %3574 = vmatprep.subr.bf16.mxu1 %v4938_v14  ;;  %v713_v14 = vld [vmem:[%s5687_s3 + $0xbd0] sm:$0xff]  ;;  %v4556_v18 = vcombine.high %v449_v11, %v457_v12  ;;  %v4555_v25 = vcombine.low %v449_v11, %v457_v12 }
 0x12a   : > { %3534 = vmatpush1.bf16.msra.mxu0 %v4681_v21  ;;  %v4812_v19 = vcombine.high %v705_v13, %v713_v14  ;;  %v465_v21 = vld [vmem:[%s5687_s3 + $0x410] sm:$0xff]  ;;  %v4811_v54 = vcombine.low %v705_v13, %v713_v14 }
 0x12b   : > { %3585 = vmatprep.subr.bf16.mxu0 %v4444_v23  ;;  %v721_v23 = vld [vmem:[%s5687_s3 + $0xc10] sm:$0xff] }
 0x12c   : > { %3575 = vmatpush1.bf16.msra.mxu1 %v4937_v22  ;;  %v473_v22 = vld [vmem:[%s5687_s3 + $0x450] sm:$0xff] }
 0x12d   : > { %3626 = vmatprep.subr.bf16.mxu1 %v4700_v24  ;;  %3536 = vmatmul.mubr.bf16.vlgmr.msra.gmra.mrb[4].mxu0 %v5797_v17  ;;  %v729_v24 = vld [vmem:[%s5687_s3 + $0xc50] sm:$0xff]  ;;  %v4572_v26 = vcombine.high %v465_v21, %v473_v22  ;;  %v4571_v31 = vcombine.low %v465_v21, %v473_v22 }
 0x12e   : > { %3586 = vmatpush1.bf16.msra.mxu0 %v4443_v55  ;;  %3617 = vmatprep.mubr.bf16.mxu0 %v5747_v59  ;;  %v4828_v27 = vcombine.high %v721_v23, %v729_v24  ;;  %v481_v55 = vld [vmem:[%s5687_s3 + $0x490] sm:$0xff]  ;;  %v4827_v32 = vcombine.low %v721_v23, %v729_v24 }
 0x12f   : > { %3577 = vmatmul.mubr.bf16.vlgmr.msra.gmra.mrb[4].mxu1 %v5803_v20  ;;  %3587 = vmatprep.subr.bf16.mxu0 %v4460_v29  ;;  %v737_v29 = vld [vmem:[%s5687_s3 + $0xc90] sm:$0xff] }
 0x130   : > { %3627 = vmatpush1.bf16.msra.mxu1 %v4699_v28  ;;  %3658 = vmatprep.mubr.bf16.mxu1 %v5751_v60  ;;  %v489_v28 = vld [vmem:[%s5687_s3 + $0x4d0] sm:$0xff] }
 0x131   : > { %3628 = vmatprep.subr.bf16.mxu1 %v4716_v30  ;;  %v745_v30 = vld [vmem:[%s5687_s3 + $0xcd0] sm:$0xff]  ;;  %v4588_v33 = vcombine.high %v481_v55, %v489_v28  ;;  %v4587_v39 = vcombine.low %v481_v55, %v489_v28 }
 0x132   : > { %3588 = vmatpush1.bf16.msra.mxu0 %v4459_v35  ;;  %v4844_v34 = vcombine.high %v737_v29, %v745_v30  ;;  %v497_v35 = vld [vmem:[%s5687_s3 + $0x510] sm:$0xff]  ;;  %v4843_v40 = vcombine.low %v737_v29, %v745_v30 }
 0x133   : > { %3589 = vmatprep.subr.bf16.mxu0 %v4476_v37  ;;  %v753_v37 = vld [vmem:[%s5687_s3 + $0xd10] sm:$0xff] }
 0x134   : > { %3629 = vmatpush1.bf16.msra.mxu1 %v4715_v36  ;;  %v505_v36 = vld [vmem:[%s5687_s3 + $0x550] sm:$0xff] }
 0x135   : > { %3630 = vmatprep.subr.bf16.mxu1 %v4732_v38  ;;  %v761_v38 = vld [vmem:[%s5687_s3 + $0xd50] sm:$0xff]  ;;  %v4604_v41 = vcombine.high %v497_v35, %v505_v36  ;;  %v4603_v47 = vcombine.low %v497_v35, %v505_v36 }
 0x136   : > { %3590 = vmatpush1.bf16.msra.mxu0 %v4475_v43  ;;  %v4860_v42 = vcombine.high %v753_v37, %v761_v38  ;;  %v513_v43 = vld [vmem:[%s5687_s3 + $0x590] sm:$0xff]  ;;  %v4859_v48 = vcombine.low %v753_v37, %v761_v38 }
 0x137   : > { %3591 = vmatprep.subr.bf16.mxu0 %v4492_v45  ;;  %v769_v45 = vld [vmem:[%s5687_s3 + $0xd90] sm:$0xff] }
 0x138   : > { %3631 = vmatpush1.bf16.msra.mxu1 %v4731_v44  ;;  %v521_v44 = vld [vmem:[%s5687_s3 + $0x5d0] sm:$0xff] }
 0x139   : > { %3632 = vmatprep.subr.bf16.mxu1 %v4748_v46  ;;  %v777_v46 = vld [vmem:[%s5687_s3 + $0xdd0] sm:$0xff]  ;;  %v4620_v49 = vcombine.high %v513_v43, %v521_v44  ;;  %v4619_v57 = vcombine.low %v513_v43, %v521_v44 }
 0x13a   : > { %3592 = vmatpush1.bf16.msra.mxu0 %v4491_v51  ;;  %v4876_v50 = vcombine.high %v769_v45, %v777_v46  ;;  %v529_v51 = vld [vmem:[%s5687_s3 + $0x610] sm:$0xff]  ;;  %v4875_v58 = vcombine.low %v769_v45, %v777_v46 }
 0x13b   : > { %3593 = vmatprep.subr.bf16.mxu0 %v4508_v53  ;;  %v785_v53 = vld [vmem:[%s5687_s3 + $0xe10] sm:$0xff] }
 0x13c   : > { %3633 = vmatpush1.bf16.msra.mxu1 %v4747_v52  ;;  %v537_v52 = vld [vmem:[%s5687_s3 + $0x650] sm:$0xff] }
 0x13d   : > { %3634 = vmatprep.subr.bf16.mxu1 %v4764_v56  ;;  %v793_v56 = vld [vmem:[%s5687_s3 + $0xe50] sm:$0xff]  ;;  %v4636_v61 = vcombine.high %v529_v51, %v537_v52  ;;  %v4635_v3 = vcombine.low %v529_v51, %v537_v52 }
 0x13e   : > { %3594 = vmatpush1.bf16.msra.mxu0 %v4507_v63  ;;  %v4892_v62 = vcombine.high %v785_v53, %v793_v56  ;;  %v545_v63 = vld [vmem:[%s5687_s3 + $0x690] sm:$0xff]  ;;  %v4891_v4 = vcombine.low %v785_v53, %v793_v56 }
 0x13f   : > { %3595 = vmatprep.subr.bf16.mxu0 %v4524_v1  ;;  %v801_v1 = vld [vmem:[%s5687_s3 + $0xe90] sm:$0xff] }
 0x140   : > { %3635 = vmatpush1.bf16.msra.mxu1 %v4763_v0  ;;  %v553_v0 = vld [vmem:[%s5687_s3 + $0x6d0] sm:$0xff] }
 0x141   : > { %3636 = vmatprep.subr.bf16.mxu1 %v4780_v2  ;;  %v809_v2 = vld [vmem:[%s5687_s3 + $0xed0] sm:$0xff]  ;;  %v4652_v5 = vcombine.high %v545_v63, %v553_v0  ;;  %v4651_v11 = vcombine.low %v545_v63, %v553_v0 }
 0x142   : > { %3596 = vmatpush1.bf16.msra.mxu0 %v4523_v7  ;;  %v4908_v6 = vcombine.high %v801_v1, %v809_v2  ;;  %v561_v7 = vld [vmem:[%s5687_s3 + $0x710] sm:$0xff]  ;;  %v4907_v12 = vcombine.low %v801_v1, %v809_v2 }
 0x143   : > { %3597 = vmatprep.subr.bf16.mxu0 %v4540_v9  ;;  %v817_v9 = vld [vmem:[%s5687_s3 + $0xf10] sm:$0xff] }
 0x144   : > { %3637 = vmatpush1.bf16.msra.mxu1 %v4779_v8  ;;  %v569_v8 = vld [vmem:[%s5687_s3 + $0x750] sm:$0xff] }
 0x145   : > { %3638 = vmatprep.subr.bf16.mxu1 %v4796_v10  ;;  %v825_v10 = vld [vmem:[%s5687_s3 + $0xf50] sm:$0xff]  ;;  %v4668_v13 = vcombine.high %v561_v7, %v569_v8  ;;  %v4667_v21 = vcombine.low %v561_v7, %v569_v8 }
 0x146   : > { %3598 = vmatpush1.bf16.msra.mxu0 %v4539_v15  ;;  %v4924_v14 = vcombine.high %v817_v9, %v825_v10  ;;  %v577_v15 = vld [vmem:[%s5687_s3 + $0x790] sm:$0xff]  ;;  %v4923_v22 = vcombine.low %v817_v9, %v825_v10 }
 0x147   : > { %3599 = vmatprep.subr.bf16.mxu0 %v4556_v18  ;;  %v833_v18 = vld [vmem:[%s5687_s3 + $0xf90] sm:$0xff] }
 0x148   : > { %3639 = vmatpush1.bf16.msra.mxu1 %v4795_v16  ;;  %v585_v16 = vld [vmem:[%s5687_s3 + $0x7d0] sm:$0xff] }
 0x149   : > { %3640 = vmatprep.subr.bf16.mxu1 %v4812_v19  ;;  %v841_v19 = vld [vmem:[%s5687_s3 + $0xfd0] sm:$0xff]  ;;  %v4684_v23 = vcombine.high %v577_v15, %v585_v16  ;;  %v4683_v55 = vcombine.low %v577_v15, %v585_v16 }
 0x14a   : > { %3600 = vmatpush1.bf16.msra.mxu0 %v4555_v25  ;;  %v4940_v24 = vcombine.high %v833_v18, %v841_v19  ;;  %v338_v25 = vld [vmem:[%s5687_s3 + $0x18] sm:$0xff]  ;;  %v4939_v28 = vcombine.low %v833_v18, %v841_v19 }
 0x14b   : > { %3601 = vmatprep.subr.bf16.mxu0 %v4572_v26  ;;  %v594_v26 = vld [vmem:[%s5687_s3 + $0x818] sm:$0xff] }
 0x14c   : > { %3641 = vmatpush1.bf16.msra.mxu1 %v4811_v54  ;;  %v346_v54 = vld [vmem:[%s5687_s3 + $0x58] sm:$0xff] }
 0x14d   : > { %3642 = vmatprep.subr.bf16.mxu1 %v4828_v27  ;;  %v602_v27 = vld [vmem:[%s5687_s3 + $0x858] sm:$0xff]  ;;  %v4446_v29 = vcombine.high %v338_v25, %v346_v54  ;;  %v4445_v35 = vcombine.low %v338_v25, %v346_v54 }
 0x14e   : > { %3602 = vmatpush1.bf16.msra.mxu0 %v4571_v31  ;;  %v4702_v30 = vcombine.high %v594_v26, %v602_v27  ;;  %v354_v31 = vld [vmem:[%s5687_s3 + $0x98] sm:$0xff]  ;;  %v4701_v36 = vcombine.low %v594_v26, %v602_v27 }
 0x14f   : > { %3603 = vmatprep.subr.bf16.mxu0 %v4588_v33  ;;  %v610_v33 = vld [vmem:[%s5687_s3 + $0x898] sm:$0xff] }
 0x150   : > { %3643 = vmatpush1.bf16.msra.mxu1 %v4827_v32  ;;  %v362_v32 = vld [vmem:[%s5687_s3 + $0xd8] sm:$0xff] }
 0x151   : > { %3644 = vmatprep.subr.bf16.mxu1 %v4844_v34  ;;  %v618_v34 = vld [vmem:[%s5687_s3 + $0x8d8] sm:$0xff]  ;;  %v4462_v37 = vcombine.high %v354_v31, %v362_v32  ;;  %v4461_v43 = vcombine.low %v354_v31, %v362_v32 }
 0x152   : > { %3604 = vmatpush1.bf16.msra.mxu0 %v4587_v39  ;;  %v4718_v38 = vcombine.high %v610_v33, %v618_v34  ;;  %v370_v39 = vld [vmem:[%s5687_s3 + $0x118] sm:$0xff]  ;;  %v4717_v44 = vcombine.low %v610_v33, %v618_v34 }
 0x153   : > { %3605 = vmatprep.subr.bf16.mxu0 %v4604_v41  ;;  %v626_v41 = vld [vmem:[%s5687_s3 + $0x918] sm:$0xff] }
 0x154   : > { %3645 = vmatpush1.bf16.msra.mxu1 %v4843_v40  ;;  %v378_v40 = vld [vmem:[%s5687_s3 + $0x158] sm:$0xff] }
 0x155   : > { %3646 = vmatprep.subr.bf16.mxu1 %v4860_v42  ;;  %v634_v42 = vld [vmem:[%s5687_s3 + $0x958] sm:$0xff]  ;;  %v4478_v45 = vcombine.high %v370_v39, %v378_v40  ;;  %v4477_v51 = vcombine.low %v370_v39, %v378_v40 }
 0x156   : > { %3606 = vmatpush1.bf16.msra.mxu0 %v4603_v47  ;;  %v4734_v46 = vcombine.high %v626_v41, %v634_v42  ;;  %v386_v47 = vld [vmem:[%s5687_s3 + $0x198] sm:$0xff]  ;;  %v4733_v52 = vcombine.low %v626_v41, %v634_v42 }
 0x157   : > { %3607 = vmatprep.subr.bf16.mxu0 %v4620_v49  ;;  %v642_v49 = vld [vmem:[%s5687_s3 + $0x998] sm:$0xff] }
 0x158   : > { %3647 = vmatpush1.bf16.msra.mxu1 %v4859_v48  ;;  %v394_v48 = vld [vmem:[%s5687_s3 + $0x1d8] sm:$0xff] }
 0x159   : > { %3648 = vmatprep.subr.bf16.mxu1 %v4876_v50  ;;  %v650_v50 = vld [vmem:[%s5687_s3 + $0x9d8] sm:$0xff]  ;;  %v4494_v53 = vcombine.high %v386_v47, %v394_v48  ;;  %v4493_v63 = vcombine.low %v386_v47, %v394_v48 }
 0x15a   : > { %3608 = vmatpush1.bf16.msra.mxu0 %v4619_v57  ;;  %v4750_v56 = vcombine.high %v642_v49, %v650_v50  ;;  %v402_v57 = vld [vmem:[%s5687_s3 + $0x218] sm:$0xff]  ;;  %v4749_v0 = vcombine.low %v642_v49, %v650_v50 }
 0x15b   : > { %3609 = vmatprep.subr.bf16.mxu0 %v4636_v61  ;;  %v658_v61 = vld [vmem:[%s5687_s3 + $0xa18] sm:$0xff] }
 0x15c   : > { %3649 = vmatpush1.bf16.msra.mxu1 %v4875_v58  ;;  %v410_v58 = vld [vmem:[%s5687_s3 + $0x258] sm:$0xff] }
 0x15d   : > { %3650 = vmatprep.subr.bf16.mxu1 %v4892_v62  ;;  %v666_v62 = vld [vmem:[%s5687_s3 + $0xa58] sm:$0xff]  ;;  %v4510_v1 = vcombine.high %v402_v57, %v410_v58  ;;  %v4509_v7 = vcombine.low %v402_v57, %v410_v58 }
 0x15e   : > { %3610 = vmatpush1.bf16.msra.mxu0 %v4635_v3  ;;  %v4766_v2 = vcombine.high %v658_v61, %v666_v62  ;;  %v418_v3 = vld [vmem:[%s5687_s3 + $0x298] sm:$0xff]  ;;  %v4765_v8 = vcombine.low %v658_v61, %v666_v62 }
 0x15f   : > { %3611 = vmatprep.subr.bf16.mxu0 %v4652_v5  ;;  %v674_v5 = vld [vmem:[%s5687_s3 + $0xa98] sm:$0xff] }
 0x160   : > { %3651 = vmatpush1.bf16.msra.mxu1 %v4891_v4  ;;  %v426_v4 = vld [vmem:[%s5687_s3 + $0x2d8] sm:$0xff] }
 0x161   : > { %3652 = vmatprep.subr.bf16.mxu1 %v4908_v6  ;;  %v682_v6 = vld [vmem:[%s5687_s3 + $0xad8] sm:$0xff]  ;;  %v4526_v9 = vcombine.high %v418_v3, %v426_v4  ;;  %v4525_v15 = vcombine.low %v418_v3, %v426_v4 }
 0x162   : > { %3612 = vmatpush1.bf16.msra.mxu0 %v4651_v11  ;;  %v4782_v10 = vcombine.high %v674_v5, %v682_v6  ;;  %v434_v11 = vld [vmem:[%s5687_s3 + $0x318] sm:$0xff]  ;;  %v4781_v16 = vcombine.low %v674_v5, %v682_v6 }
 0x163   : > { %3613 = vmatprep.subr.bf16.mxu0 %v4668_v13  ;;  %v690_v13 = vld [vmem:[%s5687_s3 + $0xb18] sm:$0xff] }
 0x164   : > { %3653 = vmatpush1.bf16.msra.mxu1 %v4907_v12  ;;  %v442_v12 = vld [vmem:[%s5687_s3 + $0x358] sm:$0xff] }
 0x165   : > { %3654 = vmatprep.subr.bf16.mxu1 %v4924_v14  ;;  %v698_v14 = vld [vmem:[%s5687_s3 + $0xb58] sm:$0xff]  ;;  %v4542_v18 = vcombine.high %v434_v11, %v442_v12  ;;  %v4541_v25 = vcombine.low %v434_v11, %v442_v12 }
 0x166   : > { %3614 = vmatpush1.bf16.msra.mxu0 %v4667_v21  ;;  %v4798_v19 = vcombine.high %v690_v13, %v698_v14  ;;  %v450_v21 = vld [vmem:[%s5687_s3 + $0x398] sm:$0xff]  ;;  %v4797_v54 = vcombine.low %v690_v13, %v698_v14 }
 0x167   : > { %3615 = vmatprep.subr.bf16.mxu0 %v4684_v23  ;;  %v706_v23 = vld [vmem:[%s5687_s3 + $0xb98] sm:$0xff] }
 0x168   : > { %3655 = vmatpush1.bf16.msra.mxu1 %v4923_v22  ;;  %v458_v22 = vld [vmem:[%s5687_s3 + $0x3d8] sm:$0xff] }
 0x169   : > { %3656 = vmatprep.subr.bf16.mxu1 %v4940_v24  ;;  %v714_v24 = vld [vmem:[%s5687_s3 + $0xbd8] sm:$0xff]  ;;  %v4558_v26 = vcombine.high %v450_v21, %v458_v22  ;;  %v4557_v31 = vcombine.low %v450_v21, %v458_v22 }
 0x16a   : > { %3616 = vmatpush1.bf16.msra.mxu0 %v4683_v55  ;;  %v4814_v27 = vcombine.high %v706_v23, %v714_v24  ;;  %v466_v55 = vld [vmem:[%s5687_s3 + $0x418] sm:$0xff]  ;;  %v4813_v32 = vcombine.low %v706_v23, %v714_v24 }
 0x16b   : > { %3667 = vmatprep.subr.bf16.mxu0 %v4446_v29  ;;  %v722_v29 = vld [vmem:[%s5687_s3 + $0xc18] sm:$0xff] }
 0x16c   : > { %3657 = vmatpush1.bf16.msra.mxu1 %v4939_v28  ;;  %v474_v28 = vld [vmem:[%s5687_s3 + $0x458] sm:$0xff] }
 0x16d   : > { %3708 = vmatprep.subr.bf16.mxu1 %v4702_v30  ;;  %3618 = vmatmul.mubr.bf16.vlgmr.msra.gmra.mrb[8].mxu0 %v5797_v17  ;;  %v730_v30 = vld [vmem:[%s5687_s3 + $0xc58] sm:$0xff]  ;;  %v4574_v33 = vcombine.high %v466_v55, %v474_v28  ;;  %v4573_v39 = vcombine.low %v466_v55, %v474_v28 }
 0x16e   : > { %3668 = vmatpush1.bf16.msra.mxu0 %v4445_v35  ;;  %3699 = vmatprep.mubr.bf16.mxu0 %v5747_v59  ;;  %v4830_v34 = vcombine.high %v722_v29, %v730_v30  ;;  %v482_v35 = vld [vmem:[%s5687_s3 + $0x498] sm:$0xff]  ;;  %v4829_v40 = vcombine.low %v722_v29, %v730_v30 }
 0x16f   : > { %3659 = vmatmul.mubr.bf16.vlgmr.msra.gmra.mrb[8].mxu1 %v5803_v20  ;;  %3669 = vmatprep.subr.bf16.mxu0 %v4462_v37  ;;  %v738_v37 = vld [vmem:[%s5687_s3 + $0xc98] sm:$0xff] }
 0x170   : > { %3709 = vmatpush1.bf16.msra.mxu1 %v4701_v36  ;;  %3740 = vmatprep.mubr.bf16.mxu1 %v5751_v60  ;;  %v490_v36 = vld [vmem:[%s5687_s3 + $0x4d8] sm:$0xff] }
 0x171   : > { %3710 = vmatprep.subr.bf16.mxu1 %v4718_v38  ;;  %v746_v38 = vld [vmem:[%s5687_s3 + $0xcd8] sm:$0xff]  ;;  %v4590_v41 = vcombine.high %v482_v35, %v490_v36  ;;  %v4589_v47 = vcombine.low %v482_v35, %v490_v36 }
 0x172   : > { %3670 = vmatpush1.bf16.msra.mxu0 %v4461_v43  ;;  %v4846_v42 = vcombine.high %v738_v37, %v746_v38  ;;  %v498_v43 = vld [vmem:[%s5687_s3 + $0x518] sm:$0xff]  ;;  %v4845_v48 = vcombine.low %v738_v37, %v746_v38 }
 0x173   : > { %3671 = vmatprep.subr.bf16.mxu0 %v4478_v45  ;;  %v754_v45 = vld [vmem:[%s5687_s3 + $0xd18] sm:$0xff] }
 0x174   : > { %3711 = vmatpush1.bf16.msra.mxu1 %v4717_v44  ;;  %v506_v44 = vld [vmem:[%s5687_s3 + $0x558] sm:$0xff] }
 0x175   : > { %3712 = vmatprep.subr.bf16.mxu1 %v4734_v46  ;;  %v762_v46 = vld [vmem:[%s5687_s3 + $0xd58] sm:$0xff]  ;;  %v4606_v49 = vcombine.high %v498_v43, %v506_v44  ;;  %v4605_v57 = vcombine.low %v498_v43, %v506_v44 }
 0x176   : > { %3672 = vmatpush1.bf16.msra.mxu0 %v4477_v51  ;;  %v4862_v50 = vcombine.high %v754_v45, %v762_v46  ;;  %v514_v51 = vld [vmem:[%s5687_s3 + $0x598] sm:$0xff]  ;;  %v4861_v58 = vcombine.low %v754_v45, %v762_v46 }
 0x177   : > { %3673 = vmatprep.subr.bf16.mxu0 %v4494_v53  ;;  %v770_v53 = vld [vmem:[%s5687_s3 + $0xd98] sm:$0xff] }
 0x178   : > { %3713 = vmatpush1.bf16.msra.mxu1 %v4733_v52  ;;  %v522_v52 = vld [vmem:[%s5687_s3 + $0x5d8] sm:$0xff] }
 0x179   : > { %3714 = vmatprep.subr.bf16.mxu1 %v4750_v56  ;;  %v778_v56 = vld [vmem:[%s5687_s3 + $0xdd8] sm:$0xff]  ;;  %v4622_v61 = vcombine.high %v514_v51, %v522_v52  ;;  %v4621_v3 = vcombine.low %v514_v51, %v522_v52 }
 0x17a   : > { %3674 = vmatpush1.bf16.msra.mxu0 %v4493_v63  ;;  %v4878_v62 = vcombine.high %v770_v53, %v778_v56  ;;  %v530_v63 = vld [vmem:[%s5687_s3 + $0x618] sm:$0xff]  ;;  %v4877_v4 = vcombine.low %v770_v53, %v778_v56 }
 0x17b   : > { %3675 = vmatprep.subr.bf16.mxu0 %v4510_v1  ;;  %v786_v1 = vld [vmem:[%s5687_s3 + $0xe18] sm:$0xff] }
 0x17c   : > { %3715 = vmatpush1.bf16.msra.mxu1 %v4749_v0  ;;  %v538_v0 = vld [vmem:[%s5687_s3 + $0x658] sm:$0xff] }
 0x17d   : > { %3716 = vmatprep.subr.bf16.mxu1 %v4766_v2  ;;  %v794_v2 = vld [vmem:[%s5687_s3 + $0xe58] sm:$0xff]  ;;  %v4638_v5 = vcombine.high %v530_v63, %v538_v0  ;;  %v4637_v11 = vcombine.low %v530_v63, %v538_v0 }
 0x17e   : > { %3676 = vmatpush1.bf16.msra.mxu0 %v4509_v7  ;;  %v4894_v6 = vcombine.high %v786_v1, %v794_v2  ;;  %v546_v7 = vld [vmem:[%s5687_s3 + $0x698] sm:$0xff]  ;;  %v4893_v12 = vcombine.low %v786_v1, %v794_v2 }
 0x17f   : > { %3677 = vmatprep.subr.bf16.mxu0 %v4526_v9  ;;  %v802_v9 = vld [vmem:[%s5687_s3 + $0xe98] sm:$0xff] }
 0x180   : > { %3717 = vmatpush1.bf16.msra.mxu1 %v4765_v8  ;;  %v554_v8 = vld [vmem:[%s5687_s3 + $0x6d8] sm:$0xff] }
 0x181   : > { %3718 = vmatprep.subr.bf16.mxu1 %v4782_v10  ;;  %v810_v10 = vld [vmem:[%s5687_s3 + $0xed8] sm:$0xff]  ;;  %v4654_v13 = vcombine.high %v546_v7, %v554_v8  ;;  %v4653_v21 = vcombine.low %v546_v7, %v554_v8 }
 0x182   : > { %3678 = vmatpush1.bf16.msra.mxu0 %v4525_v15  ;;  %v4910_v14 = vcombine.high %v802_v9, %v810_v10  ;;  %v562_v15 = vld [vmem:[%s5687_s3 + $0x718] sm:$0xff]  ;;  %v4909_v22 = vcombine.low %v802_v9, %v810_v10 }
 0x183   : > { %3679 = vmatprep.subr.bf16.mxu0 %v4542_v18  ;;  %v818_v18 = vld [vmem:[%s5687_s3 + $0xf18] sm:$0xff] }
 0x184   : > { %3719 = vmatpush1.bf16.msra.mxu1 %v4781_v16  ;;  %v570_v16 = vld [vmem:[%s5687_s3 + $0x758] sm:$0xff] }
 0x185   : > { %3720 = vmatprep.subr.bf16.mxu1 %v4798_v19  ;;  %v826_v19 = vld [vmem:[%s5687_s3 + $0xf58] sm:$0xff]  ;;  %v4670_v23 = vcombine.high %v562_v15, %v570_v16  ;;  %v4669_v55 = vcombine.low %v562_v15, %v570_v16 }
 0x186   : > { %3680 = vmatpush1.bf16.msra.mxu0 %v4541_v25  ;;  %v4926_v24 = vcombine.high %v818_v18, %v826_v19  ;;  %v578_v25 = vld [vmem:[%s5687_s3 + $0x798] sm:$0xff]  ;;  %v4925_v28 = vcombine.low %v818_v18, %v826_v19 }
 0x187   : > { %3681 = vmatprep.subr.bf16.mxu0 %v4558_v26  ;;  %v834_v26 = vld [vmem:[%s5687_s3 + $0xf98] sm:$0xff] }
 0x188   : > { %3721 = vmatpush1.bf16.msra.mxu1 %v4797_v54  ;;  %v586_v54 = vld [vmem:[%s5687_s3 + $0x7d8] sm:$0xff] }
 0x189   : > { %3722 = vmatprep.subr.bf16.mxu1 %v4814_v27  ;;  %v842_v27 = vld [vmem:[%s5687_s3 + $0xfd8] sm:$0xff]  ;;  %v4686_v29 = vcombine.high %v578_v25, %v586_v54  ;;  %v4685_v35 = vcombine.low %v578_v25, %v586_v54 }
 0x18a   : > { %3682 = vmatpush1.bf16.msra.mxu0 %v4557_v31  ;;  %v4942_v30 = vcombine.high %v834_v26, %v842_v27  ;;  %v339_v31 = vld [vmem:[%s5687_s3 + $0x20] sm:$0xff]  ;;  %v4941_v36 = vcombine.low %v834_v26, %v842_v27 }
 0x18b   : > { %3683 = vmatprep.subr.bf16.mxu0 %v4574_v33  ;;  %v595_v33 = vld [vmem:[%s5687_s3 + $0x820] sm:$0xff] }
 0x18c   : > { %3723 = vmatpush1.bf16.msra.mxu1 %v4813_v32  ;;  %v347_v32 = vld [vmem:[%s5687_s3 + $0x60] sm:$0xff] }
 0x18d   : > { %3724 = vmatprep.subr.bf16.mxu1 %v4830_v34  ;;  %v603_v34 = vld [vmem:[%s5687_s3 + $0x860] sm:$0xff]  ;;  %v4448_v37 = vcombine.high %v339_v31, %v347_v32  ;;  %v4447_v43 = vcombine.low %v339_v31, %v347_v32 }
 0x18e   : > { %3684 = vmatpush1.bf16.msra.mxu0 %v4573_v39  ;;  %v4704_v38 = vcombine.high %v595_v33, %v603_v34  ;;  %v355_v39 = vld [vmem:[%s5687_s3 + $0xa0] sm:$0xff]  ;;  %v4703_v44 = vcombine.low %v595_v33, %v603_v34 }
 0x18f   : > { %3685 = vmatprep.subr.bf16.mxu0 %v4590_v41  ;;  %v611_v41 = vld [vmem:[%s5687_s3 + $0x8a0] sm:$0xff] }
 0x190   : > { %3725 = vmatpush1.bf16.msra.mxu1 %v4829_v40  ;;  %v363_v40 = vld [vmem:[%s5687_s3 + $0xe0] sm:$0xff] }
 0x191   : > { %3726 = vmatprep.subr.bf16.mxu1 %v4846_v42  ;;  %v619_v42 = vld [vmem:[%s5687_s3 + $0x8e0] sm:$0xff]  ;;  %v4464_v45 = vcombine.high %v355_v39, %v363_v40  ;;  %v4463_v51 = vcombine.low %v355_v39, %v363_v40 }
 0x192   : > { %3686 = vmatpush1.bf16.msra.mxu0 %v4589_v47  ;;  %v4720_v46 = vcombine.high %v611_v41, %v619_v42  ;;  %v371_v47 = vld [vmem:[%s5687_s3 + $0x120] sm:$0xff]  ;;  %v4719_v52 = vcombine.low %v611_v41, %v619_v42 }
 0x193   : > { %3687 = vmatprep.subr.bf16.mxu0 %v4606_v49  ;;  %v627_v49 = vld [vmem:[%s5687_s3 + $0x920] sm:$0xff] }
 0x194   : > { %3727 = vmatpush1.bf16.msra.mxu1 %v4845_v48  ;;  %v379_v48 = vld [vmem:[%s5687_s3 + $0x160] sm:$0xff] }
 0x195   : > { %3728 = vmatprep.subr.bf16.mxu1 %v4862_v50  ;;  %v635_v50 = vld [vmem:[%s5687_s3 + $0x960] sm:$0xff]  ;;  %v4480_v53 = vcombine.high %v371_v47, %v379_v48  ;;  %v4479_v63 = vcombine.low %v371_v47, %v379_v48 }
 0x196   : > { %3688 = vmatpush1.bf16.msra.mxu0 %v4605_v57  ;;  %v4736_v56 = vcombine.high %v627_v49, %v635_v50  ;;  %v387_v57 = vld [vmem:[%s5687_s3 + $0x1a0] sm:$0xff]  ;;  %v4735_v0 = vcombine.low %v627_v49, %v635_v50 }
 0x197   : > { %3689 = vmatprep.subr.bf16.mxu0 %v4622_v61  ;;  %v643_v61 = vld [vmem:[%s5687_s3 + $0x9a0] sm:$0xff] }
 0x198   : > { %3729 = vmatpush1.bf16.msra.mxu1 %v4861_v58  ;;  %v395_v58 = vld [vmem:[%s5687_s3 + $0x1e0] sm:$0xff] }
 0x199   : > { %3730 = vmatprep.subr.bf16.mxu1 %v4878_v62  ;;  %v651_v62 = vld [vmem:[%s5687_s3 + $0x9e0] sm:$0xff]  ;;  %v4496_v1 = vcombine.high %v387_v57, %v395_v58  ;;  %v4495_v7 = vcombine.low %v387_v57, %v395_v58 }
 0x19a   : > { %3690 = vmatpush1.bf16.msra.mxu0 %v4621_v3  ;;  %v4752_v2 = vcombine.high %v643_v61, %v651_v62  ;;  %v403_v3 = vld [vmem:[%s5687_s3 + $0x220] sm:$0xff]  ;;  %v4751_v8 = vcombine.low %v643_v61, %v651_v62 }
 0x19b   : > { %3691 = vmatprep.subr.bf16.mxu0 %v4638_v5  ;;  %v659_v5 = vld [vmem:[%s5687_s3 + $0xa20] sm:$0xff] }
 0x19c   : > { %3731 = vmatpush1.bf16.msra.mxu1 %v4877_v4  ;;  %v411_v4 = vld [vmem:[%s5687_s3 + $0x260] sm:$0xff] }
 0x19d   : > { %3732 = vmatprep.subr.bf16.mxu1 %v4894_v6  ;;  %v667_v6 = vld [vmem:[%s5687_s3 + $0xa60] sm:$0xff]  ;;  %v4512_v9 = vcombine.high %v403_v3, %v411_v4  ;;  %v4511_v15 = vcombine.low %v403_v3, %v411_v4 }
 0x19e   : > { %3692 = vmatpush1.bf16.msra.mxu0 %v4637_v11  ;;  %v4768_v10 = vcombine.high %v659_v5, %v667_v6  ;;  %v419_v11 = vld [vmem:[%s5687_s3 + $0x2a0] sm:$0xff]  ;;  %v4767_v16 = vcombine.low %v659_v5, %v667_v6 }
 0x19f   : > { %3693 = vmatprep.subr.bf16.mxu0 %v4654_v13  ;;  %v675_v13 = vld [vmem:[%s5687_s3 + $0xaa0] sm:$0xff] }
 0x1a0   : > { %3733 = vmatpush1.bf16.msra.mxu1 %v4893_v12  ;;  %v427_v12 = vld [vmem:[%s5687_s3 + $0x2e0] sm:$0xff] }
 0x1a1   : > { %3734 = vmatprep.subr.bf16.mxu1 %v4910_v14  ;;  %v683_v14 = vld [vmem:[%s5687_s3 + $0xae0] sm:$0xff]  ;;  %v4528_v18 = vcombine.high %v419_v11, %v427_v12  ;;  %v4527_v25 = vcombine.low %v419_v11, %v427_v12 }
 0x1a2   : > { %3694 = vmatpush1.bf16.msra.mxu0 %v4653_v21  ;;  %v4784_v19 = vcombine.high %v675_v13, %v683_v14  ;;  %v435_v21 = vld [vmem:[%s5687_s3 + $0x320] sm:$0xff]  ;;  %v4783_v54 = vcombine.low %v675_v13, %v683_v14 }
 0x1a3   : > { %3695 = vmatprep.subr.bf16.mxu0 %v4670_v23  ;;  %v691_v23 = vld [vmem:[%s5687_s3 + $0xb20] sm:$0xff] }
 0x1a4   : > { %3735 = vmatpush1.bf16.msra.mxu1 %v4909_v22  ;;  %v443_v22 = vld [vmem:[%s5687_s3 + $0x360] sm:$0xff] }
 0x1a5   : > { %3736 = vmatprep.subr.bf16.mxu1 %v4926_v24  ;;  %v699_v24 = vld [vmem:[%s5687_s3 + $0xb60] sm:$0xff]  ;;  %v4544_v26 = vcombine.high %v435_v21, %v443_v22  ;;  %v4543_v39 = vcombine.low %v435_v21, %v443_v22 }
 0x1a6   : > { %3696 = vmatpush1.bf16.msra.mxu0 %v4669_v55  ;;  %v4800_v55 = vcombine.high %v691_v23, %v699_v24  ;;  %v707_v33 = vld [vmem:[%s5687_s3 + $0xba0] sm:$0xff] }
 0x1a7   : > { %3697 = vmatprep.subr.bf16.mxu0 %v4686_v29  ;;  %v459_v29 = vld [vmem:[%s5687_s3 + $0x3e0] sm:$0xff] }
 0x1a8   : > { %3737 = vmatpush1.bf16.msra.mxu1 %v4925_v28  ;;  %v451_v28 = vld [vmem:[%s5687_s3 + $0x3a0] sm:$0xff] }
 0x1a9   : > { %3738 = vmatprep.subr.bf16.mxu1 %v4942_v30  ;;  %v317_v30 = vld [vmem:[#allocation2] sm:$0xff] }
 0x1aa   : > { %3698 = vmatpush1.bf16.msra.mxu0 %v4685_v35  ;;  %v715_v34 = vld [vmem:[%s5687_s3 + $0xbe0] sm:$0xff] }
 0x1ab   : > { %3749 = vmatprep.subr.bf16.mxu0 %v4448_v37  ;;  %v4816_v47 = vcombine.high %v707_v33, %v715_v34  ;;  %v467_v48 = vld [vmem:[%s5687_s3 + $0x420] sm:$0xff] }
 0x1ac   : > { %3739 = vmatpush1.bf16.msra.mxu1 %v4941_v36  ;;  %v318_v36 = vld [vmem:[#allocation2 + $0x8] sm:$0xff]  ;;  %v475_v49 = vld [vmem:[%s5687_s3 + $0x460] sm:$0xff] }
 0x1ad   : > { %3790 = vmatprep.subr.bf16.mxu1 %v4704_v38  ;;  %3700 = vmatmul.mubr.bf16.vlgmr.msra.gmra.mrb[12].mxu0 %v5797_v17  ;;  %v4576_v57 = vcombine.high %v467_v48, %v475_v49  ;;  %v483_v61 = vld [vmem:[%s5687_s3 + $0x4a0] sm:$0xff] }
 0x1ae   : > { %3750 = vmatpush1.bf16.msra.mxu0 %v4447_v43  ;;  %3781 = vmatprep.mubr.bf16.mxu0 %v5747_v59  ;;  %v4799_v43 = vcombine.low %v691_v23, %v699_v24  ;;  %v491_v62 = vld [vmem:[%s5687_s3 + $0x4e0] sm:$0xff] }
 0x1af   : > { %3741 = vmatmul.mubr.bf16.vlgmr.msra.gmra.mrb[12].mxu1 %v5803_v20  ;;  %3751 = vmatprep.subr.bf16.mxu0 %v4464_v45  ;;  %v4592_v3 = vcombine.high %v483_v61, %v491_v62  ;;  %v499_v5 = vld [vmem:[%s5687_s3 + $0x520] sm:$0xff] }
 0x1b0   : > { %3791 = vmatpush1.bf16.msra.mxu1 %v4703_v44  ;;  %3822 = vmatprep.mubr.bf16.mxu1 %v5751_v60  ;;  %v4560_v44 = vcombine.high %v451_v28, %v459_v29  ;;  %v507_v6 = vld [vmem:[%s5687_s3 + $0x560] sm:$0xff] }
 0x1b1   : > { %3792 = vmatprep.subr.bf16.mxu1 %v4720_v46  ;;  %v4608_v11 = vcombine.high %v499_v5, %v507_v6  ;;  %v515_v13 = vld [vmem:[%s5687_s3 + $0x5a0] sm:$0xff] }
 0x1b2   : > { %3752 = vmatpush1.bf16.msra.mxu0 %v4463_v51  ;;  %v723_v51 = vld [vmem:[%s5687_s3 + $0xc20] sm:$0xff] }
 0x1b3   : > { %3753 = vmatprep.subr.bf16.mxu0 %v4480_v53  ;;  %v4559_v53 = vcombine.low %v451_v28, %v459_v29  ;;  %v523_v14 = vld [vmem:[%s5687_s3 + $0x5e0] sm:$0xff] }
 0x1b4   : > { %3793 = vmatpush1.bf16.msra.mxu1 %v4719_v52  ;;  %v731_v52 = vld [vmem:[%s5687_s3 + $0xc60] sm:$0xff]  ;;  %v4624_v21 = vcombine.high %v515_v13, %v523_v14 }
 0x1b5   : > { %3794 = vmatprep.subr.bf16.mxu1 %v4736_v56  ;;  %v4815_v56 = vcombine.low %v707_v33, %v715_v34  ;;  %v4832_v58 = vcombine.high %v723_v51, %v731_v52  ;;  %v531_v23 = vld [vmem:[%s5687_s3 + $0x620] sm:$0xff] }
 0x1b6   : > { %3754 = vmatpush1.bf16.msra.mxu0 %v4479_v63  ;;  %v739_v63 = vld [vmem:[%s5687_s3 + $0xca0] sm:$0xff] }
 0x1b7   : > { %3755 = vmatprep.subr.bf16.mxu0 %v4496_v1  ;;  %v4575_v1 = vcombine.low %v467_v48, %v475_v49  ;;  %v539_v24 = vld [vmem:[%s5687_s3 + $0x660] sm:$0xff] }
 0x1b8   : > { %3795 = vmatpush1.bf16.msra.mxu1 %v4735_v0  ;;  %v747_v0 = vld [vmem:[%s5687_s3 + $0xce0] sm:$0xff]  ;;  %v4639_v33 = vcombine.low %v531_v23, %v539_v24 }
 0x1b9   : > { %3796 = vmatprep.subr.bf16.mxu1 %v4752_v2  ;;  %v4831_v2 = vcombine.low %v723_v51, %v731_v52  ;;  %v4848_v4 = vcombine.high %v739_v63, %v747_v0  ;;  %v547_v29 = vld [vmem:[%s5687_s3 + $0x6a0] sm:$0xff] }
 0x1ba   : > { %3756 = vmatpush1.bf16.msra.mxu0 %v4495_v7  ;;  %v755_v7 = vld [vmem:[%s5687_s3 + $0xd20] sm:$0xff] }
 0x1bb   : > { %3757 = vmatprep.subr.bf16.mxu0 %v4512_v9  ;;  %v4591_v9 = vcombine.low %v483_v61, %v491_v62  ;;  %v843_v48 = vld [vmem:[%s5687_s3 + $0xfe0] sm:$0xff] }
 0x1bc   : > { %3797 = vmatpush1.bf16.msra.mxu1 %v4751_v8  ;;  %v763_v8 = vld [vmem:[%s5687_s3 + $0xd60] sm:$0xff] }
 0x1bd   : > { %3798 = vmatprep.subr.bf16.mxu1 %v4768_v10  ;;  %v4847_v10 = vcombine.low %v739_v63, %v747_v0  ;;  %v4864_v12 = vcombine.high %v755_v7, %v763_v8 }
 0x1be   : > { %3758 = vmatpush1.bf16.msra.mxu0 %v4511_v15  ;;  %v771_v15 = vld [vmem:[%s5687_s3 + $0xda0] sm:$0xff] }
 0x1bf   : > { %3759 = vmatprep.subr.bf16.mxu0 %v4528_v18  ;;  %v4607_v18 = vcombine.low %v499_v5, %v507_v6 }
 0x1c0   : > { %3799 = vmatpush1.bf16.msra.mxu1 %v4767_v16  ;;  %v3455_v27 = vpop.f32.mrb[0].mxu0  ;;  %v779_v16 = vld [vmem:[%s5687_s3 + $0xde0] sm:$0xff] }
 0x1c1   : > { %3800 = vmatprep.subr.bf16.mxu1 %v4784_v19  ;;  %v3457_v32 = vpop.f32.mrb[1].mxu0  ;;  %v4863_v19 = vcombine.low %v755_v7, %v763_v8  ;;  %v4880_v22 = vcombine.high %v771_v15, %v779_v16 }
 0x1c2   : > { %v3496_v31 = vpop.f32.mrb[0].mxu1  ;;  %v3459_v38 = vpop.f32.mrb[2].mxu0  ;;  %3760 = vmatpush1.bf16.msra.mxu0 %v4527_v25  ;;  %v787_v25 = vld [vmem:[%s5687_s3 + $0xe20] sm:$0xff] }
 0x1c3   : > { %v3497_v35 = vadd.f32 %v3496_v31, %v3455_v27  ;;  %v3498_v37 = vpop.f32.mrb[1].mxu1  ;;  %v3460_v42 = vpop.f32.mrb[3].mxu0  ;;  %3761 = vmatprep.subr.bf16.mxu0 %v4544_v26  ;;  %v4623_v26 = vcombine.low %v515_v13, %v523_v14  ;;  %v4879_v27 = vcombine.low %v771_v15, %v779_v16  ;;  %v803_v31 = vld [vmem:[%s5687_s3 + $0xea0] sm:$0xff] }
 0x1c4   : > { %v3499_v40 = vadd.f32 %v3498_v37, %v3457_v32  ;;  %v3500_v41 = vpop.f32.mrb[2].mxu1  ;;  %3801 = vmatpush1.bf16.msra.mxu1 %v4783_v54  ;;  %v795_v54 = vld [vmem:[%s5687_s3 + $0xe60] sm:$0xff] }
 0x1c5   : > { %v4077_v45 = vadd.f32 %v3497_v35, %v317_v30  ;;  %v3501_v46 = vpop.f32.mrb[3].mxu1  ;;  %3802 = vmatprep.subr.bf16.mxu1 %v4800_v55  ;;  %v4640_v55 = vcombine.high %v531_v23, %v539_v24  ;;  %v4896_v28 = vcombine.high %v787_v25, %v795_v54  ;;  %v555_v30 = vld [vmem:[%s5687_s3 + $0x6e0] sm:$0xff]  ;;  %v4895_v34 = vcombine.low %v787_v25, %v795_v54 }
 0x1c6   : > { %v4078_v50 = vadd.f32 %v3499_v40, %v318_v36  ;;  %3762 = vmatpush1.bf16.msra.mxu0 %v4543_v39  ;;  %v811_v32 = vld [vmem:[%s5687_s3 + $0xee0] sm:$0xff]  ;;  %v4656_v35 = vcombine.high %v547_v29, %v555_v30  ;;  %v4655_v41 = vcombine.low %v547_v29, %v555_v30 }
 0x1c7   : > { %4093 = vst [vmem:[#allocation2] sm:$0xff] %v4077_v45  ;;  %3763 = vmatprep.subr.bf16.mxu0 %v4560_v44  ;;  %v4912_v36 = vcombine.high %v803_v31, %v811_v32  ;;  %v563_v37 = vld [vmem:[%s5687_s3 + $0x720] sm:$0xff]  ;;  %v4911_v42 = vcombine.low %v803_v31, %v811_v32 }
 0x1c8   : > { %4094 = vst [vmem:[#allocation2 + $0x8] sm:$0xff] %v4078_v50  ;;  %3803 = vmatpush1.bf16.msra.mxu1 %v4799_v43  ;;  %v571_v38 = vld [vmem:[%s5687_s3 + $0x760] sm:$0xff] }
 0x1c9   : > { %3804 = vmatprep.subr.bf16.mxu1 %v4816_v47  ;;  %v819_v39 = vld [vmem:[%s5687_s3 + $0xf20] sm:$0xff]  ;;  %v4672_v43 = vcombine.high %v563_v37, %v571_v38  ;;  %v4671_v49 = vcombine.low %v563_v37, %v571_v38 }
 0x1ca   : > { %3764 = vmatpush1.bf16.msra.mxu0 %v4559_v53  ;;  %v827_v40 = vld [vmem:[%s5687_s3 + $0xf60] sm:$0xff]  ;;  %v340_v53 = vld [vmem:[%s5687_s3 + $0x28] sm:$0xff] }
 0x1cb   : > { %3765 = vmatprep.subr.bf16.mxu0 %v4576_v57  ;;  %v4928_v44 = vcombine.high %v819_v39, %v827_v40  ;;  %v579_v45 = vld [vmem:[%s5687_s3 + $0x7a0] sm:$0xff]  ;;  %v4927_v50 = vcombine.low %v819_v39, %v827_v40  ;;  %v596_v57 = vld [vmem:[%s5687_s3 + $0x828] sm:$0xff] }
 0x1cc   : > { %3805 = vmatpush1.bf16.msra.mxu1 %v4815_v56  ;;  %v587_v46 = vld [vmem:[%s5687_s3 + $0x7e0] sm:$0xff]  ;;  %v348_v56 = vld [vmem:[%s5687_s3 + $0x68] sm:$0xff] }
 0x1cd   : > { %3806 = vmatprep.subr.bf16.mxu1 %v4832_v58  ;;  %v835_v47 = vld [vmem:[%s5687_s3 + $0xfa0] sm:$0xff]  ;;  %v4688_v51 = vcombine.high %v579_v45, %v587_v46  ;;  %v604_v58 = vld [vmem:[%s5687_s3 + $0x868] sm:$0xff]  ;;  %v4687_v61 = vcombine.low %v579_v45, %v587_v46  ;;  %v4450_v63 = vcombine.high %v340_v53, %v348_v56  ;;  %v4449_v5 = vcombine.low %v340_v53, %v348_v56 }
 0x1ce   : > { %3766 = vmatpush1.bf16.msra.mxu0 %v4575_v1  ;;  %v4944_v52 = vcombine.high %v835_v47, %v843_v48  ;;  %v4943_v62 = vcombine.low %v835_v47, %v843_v48  ;;  %v4706_v0 = vcombine.high %v596_v57, %v604_v58  ;;  %v356_v1 = vld [vmem:[%s5687_s3 + $0xa8] sm:$0xff]  ;;  %v4705_v6 = vcombine.low %v596_v57, %v604_v58 }
 0x1cf   : > { %3767 = vmatprep.subr.bf16.mxu0 %v4592_v3  ;;  %v612_v3 = vld [vmem:[%s5687_s3 + $0x8a8] sm:$0xff] }
 0x1d0   : > { %3807 = vmatpush1.bf16.msra.mxu1 %v4831_v2  ;;  %v364_v2 = vld [vmem:[%s5687_s3 + $0xe8] sm:$0xff] }
 0x1d1   : > { %3808 = vmatprep.subr.bf16.mxu1 %v4848_v4  ;;  %v620_v4 = vld [vmem:[%s5687_s3 + $0x8e8] sm:$0xff]  ;;  %v4466_v7 = vcombine.high %v356_v1, %v364_v2  ;;  %v4465_v13 = vcombine.low %v356_v1, %v364_v2 }
 0x1d2   : > { %3768 = vmatpush1.bf16.msra.mxu0 %v4591_v9  ;;  %v4722_v8 = vcombine.high %v612_v3, %v620_v4  ;;  %v372_v9 = vld [vmem:[%s5687_s3 + $0x128] sm:$0xff]  ;;  %v4721_v14 = vcombine.low %v612_v3, %v620_v4 }
 0x1d3   : > { %3769 = vmatprep.subr.bf16.mxu0 %v4608_v11  ;;  %v628_v11 = vld [vmem:[%s5687_s3 + $0x928] sm:$0xff] }
 0x1d4   : > { %3809 = vmatpush1.bf16.msra.mxu1 %v4847_v10  ;;  %v380_v10 = vld [vmem:[%s5687_s3 + $0x168] sm:$0xff] }
 0x1d5   : > { %3810 = vmatprep.subr.bf16.mxu1 %v4864_v12  ;;  %v636_v12 = vld [vmem:[%s5687_s3 + $0x968] sm:$0xff]  ;;  %v4482_v15 = vcombine.high %v372_v9, %v380_v10  ;;  %v4481_v23 = vcombine.low %v372_v9, %v380_v10 }
 0x1d6   : > { %3770 = vmatpush1.bf16.msra.mxu0 %v4607_v18  ;;  %v4738_v16 = vcombine.high %v628_v11, %v636_v12  ;;  %v388_v18 = vld [vmem:[%s5687_s3 + $0x1a8] sm:$0xff]  ;;  %v4737_v24 = vcombine.low %v628_v11, %v636_v12 }
 0x1d7   : > { %3771 = vmatprep.subr.bf16.mxu0 %v4624_v21  ;;  %v644_v21 = vld [vmem:[%s5687_s3 + $0x9a8] sm:$0xff] }
 0x1d8   : > { %3811 = vmatpush1.bf16.msra.mxu1 %v4863_v19  ;;  %v396_v19 = vld [vmem:[%s5687_s3 + $0x1e8] sm:$0xff] }
 0x1d9   : > { %3812 = vmatprep.subr.bf16.mxu1 %v4880_v22  ;;  %v652_v22 = vld [vmem:[%s5687_s3 + $0x9e8] sm:$0xff]  ;;  %v4498_v25 = vcombine.high %v388_v18, %v396_v19  ;;  %v4497_v29 = vcombine.low %v388_v18, %v396_v19 }
 0x1da   : > { %3772 = vmatpush1.bf16.msra.mxu0 %v4623_v26  ;;  %v4754_v54 = vcombine.high %v644_v21, %v652_v22  ;;  %v404_v26 = vld [vmem:[%s5687_s3 + $0x228] sm:$0xff]  ;;  %v4753_v30 = vcombine.low %v644_v21, %v652_v22 }
 0x1db   : > { %3773 = vmatprep.subr.bf16.mxu0 %v4640_v55  ;;  %v660_v55 = vld [vmem:[%s5687_s3 + $0xa28] sm:$0xff] }
 0x1dc   : > { %3813 = vmatpush1.bf16.msra.mxu1 %v4879_v27  ;;  %v412_v27 = vld [vmem:[%s5687_s3 + $0x268] sm:$0xff] }
 0x1dd   : > { %3814 = vmatprep.subr.bf16.mxu1 %v4896_v28  ;;  %v668_v28 = vld [vmem:[%s5687_s3 + $0xa68] sm:$0xff]  ;;  %v4514_v31 = vcombine.high %v404_v26, %v412_v27  ;;  %v4513_v37 = vcombine.low %v404_v26, %v412_v27 }
 0x1de   : > { %3774 = vmatpush1.bf16.msra.mxu0 %v4639_v33  ;;  %v4770_v32 = vcombine.high %v660_v55, %v668_v28  ;;  %v420_v33 = vld [vmem:[%s5687_s3 + $0x2a8] sm:$0xff]  ;;  %v4769_v38 = vcombine.low %v660_v55, %v668_v28 }
 0x1df   : > { %3775 = vmatprep.subr.bf16.mxu0 %v4656_v35  ;;  %v676_v35 = vld [vmem:[%s5687_s3 + $0xaa8] sm:$0xff] }
 0x1e0   : > { %3815 = vmatpush1.bf16.msra.mxu1 %v4895_v34  ;;  %v428_v34 = vld [vmem:[%s5687_s3 + $0x2e8] sm:$0xff] }
 0x1e1   : > { %3816 = vmatprep.subr.bf16.mxu1 %v4912_v36  ;;  %v684_v36 = vld [vmem:[%s5687_s3 + $0xae8] sm:$0xff]  ;;  %v4530_v39 = vcombine.high %v420_v33, %v428_v34  ;;  %v4529_v45 = vcombine.low %v420_v33, %v428_v34 }
 0x1e2   : > { %3776 = vmatpush1.bf16.msra.mxu0 %v4655_v41  ;;  %v4786_v40 = vcombine.high %v676_v35, %v684_v36  ;;  %v436_v41 = vld [vmem:[%s5687_s3 + $0x328] sm:$0xff]  ;;  %v4785_v46 = vcombine.low %v676_v35, %v684_v36 }
 0x1e3   : > { %3777 = vmatprep.subr.bf16.mxu0 %v4672_v43  ;;  %v692_v43 = vld [vmem:[%s5687_s3 + $0xb28] sm:$0xff] }
 0x1e4   : > { %3817 = vmatpush1.bf16.msra.mxu1 %v4911_v42  ;;  %v444_v42 = vld [vmem:[%s5687_s3 + $0x368] sm:$0xff] }
 0x1e5   : > { %3818 = vmatprep.subr.bf16.mxu1 %v4928_v44  ;;  %v700_v44 = vld [vmem:[%s5687_s3 + $0xb68] sm:$0xff]  ;;  %v4546_v47 = vcombine.high %v436_v41, %v444_v42  ;;  %v4545_v1 = vcombine.low %v436_v41, %v444_v42 }
 0x1e6   : > { %3778 = vmatpush1.bf16.msra.mxu0 %v4671_v49  ;;  %v4802_v49 = vcombine.high %v692_v43, %v700_v44  ;;  %v708_v57 = vld [vmem:[%s5687_s3 + $0xba8] sm:$0xff] }
 0x1e7   : > { %3779 = vmatprep.subr.bf16.mxu0 %v4688_v51  ;;  %v460_v51 = vld [vmem:[%s5687_s3 + $0x3e8] sm:$0xff] }
 0x1e8   : > { %3819 = vmatpush1.bf16.msra.mxu1 %v4927_v50  ;;  %v452_v50 = vld [vmem:[%s5687_s3 + $0x3a8] sm:$0xff] }
 0x1e9   : > { %3820 = vmatprep.subr.bf16.mxu1 %v4944_v52  ;;  %v319_v52 = vld [vmem:[#allocation2 + $0x10] sm:$0xff]  ;;  %v716_v58 = vld [vmem:[%s5687_s3 + $0xbe8] sm:$0xff] }
 0x1ea   : > { %3780 = vmatpush1.bf16.msra.mxu0 %v4687_v61  ;;  %v4818_v9 = vcombine.high %v708_v57, %v716_v58  ;;  %v468_v10 = vld [vmem:[%s5687_s3 + $0x428] sm:$0xff] }
 0x1eb   : > { %3831 = vmatprep.subr.bf16.mxu0 %v4450_v63  ;;  %v476_v11 = vld [vmem:[%s5687_s3 + $0x468] sm:$0xff] }
 0x1ec   : > { %3821 = vmatpush1.bf16.msra.mxu1 %v4943_v62  ;;  %v320_v62 = vld [vmem:[#allocation2 + $0x18] sm:$0xff]  ;;  %v4578_v18 = vcombine.high %v468_v10, %v476_v11  ;;  %v484_v21 = vld [vmem:[%s5687_s3 + $0x4a8] sm:$0xff] }
 0x1ed   : > { %3872 = vmatprep.subr.bf16.mxu1 %v4706_v0  ;;  %3782 = vmatmul.mubr.bf16.vlgmr.msra.gmra.mrb[16].mxu0 %v5797_v17  ;;  %v492_v22 = vld [vmem:[%s5687_s3 + $0x4e8] sm:$0xff] }
 0x1ee   : > { %3832 = vmatpush1.bf16.msra.mxu0 %v4449_v5  ;;  %3863 = vmatprep.mubr.bf16.mxu0 %v5747_v59  ;;  %v4801_v5 = vcombine.low %v692_v43, %v700_v44  ;;  %v4594_v26 = vcombine.high %v484_v21, %v492_v22  ;;  %v500_v55 = vld [vmem:[%s5687_s3 + $0x528] sm:$0xff] }
 0x1ef   : > { %3823 = vmatmul.mubr.bf16.vlgmr.msra.gmra.mrb[16].mxu1 %v5803_v20  ;;  %3833 = vmatprep.subr.bf16.mxu0 %v4466_v7  ;;  %v508_v28 = vld [vmem:[%s5687_s3 + $0x568] sm:$0xff] }
 0x1f0   : > { %3873 = vmatpush1.bf16.msra.mxu1 %v4705_v6  ;;  %3904 = vmatprep.mubr.bf16.mxu1 %v5751_v60  ;;  %v4562_v6 = vcombine.high %v452_v50, %v460_v51  ;;  %v4610_v33 = vcombine.high %v500_v55, %v508_v28  ;;  %v516_v35 = vld [vmem:[%s5687_s3 + $0x5a8] sm:$0xff] }
 0x1f1   : > { %3874 = vmatprep.subr.bf16.mxu1 %v4722_v8  ;;  %v524_v36 = vld [vmem:[%s5687_s3 + $0x5e8] sm:$0xff] }
 0x1f2   : > { %3834 = vmatpush1.bf16.msra.mxu0 %v4465_v13  ;;  %v724_v13 = vld [vmem:[%s5687_s3 + $0xc28] sm:$0xff]  ;;  %v4626_v41 = vcombine.high %v516_v35, %v524_v36 }
 0x1f3   : > { %3835 = vmatprep.subr.bf16.mxu0 %v4482_v15  ;;  %v4561_v15 = vcombine.low %v452_v50, %v460_v51  ;;  %v532_v43 = vld [vmem:[%s5687_s3 + $0x628] sm:$0xff] }
 0x1f4   : > { %3875 = vmatpush1.bf16.msra.mxu1 %v4721_v14  ;;  %v732_v14 = vld [vmem:[%s5687_s3 + $0xc68] sm:$0xff] }
 0x1f5   : > { %3876 = vmatprep.subr.bf16.mxu1 %v4738_v16  ;;  %v4817_v16 = vcombine.low %v708_v57, %v716_v58  ;;  %v4834_v19 = vcombine.high %v724_v13, %v732_v14  ;;  %v540_v44 = vld [vmem:[%s5687_s3 + $0x668] sm:$0xff] }
 0x1f6   : > { %3836 = vmatpush1.bf16.msra.mxu0 %v4481_v23  ;;  %v740_v23 = vld [vmem:[%s5687_s3 + $0xca8] sm:$0xff]  ;;  %v4641_v57 = vcombine.low %v532_v43, %v540_v44 }
 0x1f7   : > { %3837 = vmatprep.subr.bf16.mxu0 %v4498_v25  ;;  %v4577_v25 = vcombine.low %v468_v10, %v476_v11  ;;  %v548_v51 = vld [vmem:[%s5687_s3 + $0x6a8] sm:$0xff] }
 0x1f8   : > { %3877 = vmatpush1.bf16.msra.mxu1 %v4737_v24  ;;  %v748_v24 = vld [vmem:[%s5687_s3 + $0xce8] sm:$0xff] }
 0x1f9   : > { %3878 = vmatprep.subr.bf16.mxu1 %v4754_v54  ;;  %v4833_v54 = vcombine.low %v724_v13, %v732_v14  ;;  %v4850_v27 = vcombine.high %v740_v23, %v748_v24  ;;  %v844_v10 = vld [vmem:[%s5687_s3 + $0xfe8] sm:$0xff] }
 0x1fa   : > { %3838 = vmatpush1.bf16.msra.mxu0 %v4497_v29  ;;  %v756_v29 = vld [vmem:[%s5687_s3 + $0xd28] sm:$0xff] }
 0x1fb   : > { %3839 = vmatprep.subr.bf16.mxu0 %v4514_v31  ;;  %v4593_v31 = vcombine.low %v484_v21, %v492_v22 }
 0x1fc   : > { %3879 = vmatpush1.bf16.msra.mxu1 %v4753_v30  ;;  %v764_v30 = vld [vmem:[%s5687_s3 + $0xd68] sm:$0xff] }
 0x1fd   : > { %3880 = vmatprep.subr.bf16.mxu1 %v4770_v32  ;;  %v4849_v32 = vcombine.low %v740_v23, %v748_v24  ;;  %v4866_v34 = vcombine.high %v756_v29, %v764_v30 }
 0x1fe   : > { %3840 = vmatpush1.bf16.msra.mxu0 %v4513_v37  ;;  %v772_v37 = vld [vmem:[%s5687_s3 + $0xda8] sm:$0xff] }
 0x1ff   : > { %3841 = vmatprep.subr.bf16.mxu0 %v4530_v39  ;;  %v4609_v39 = vcombine.low %v500_v55, %v508_v28 }
 0x200   : > { %3881 = vmatpush1.bf16.msra.mxu1 %v4769_v38  ;;  %v3537_v48 = vpop.f32.mrb[4].mxu0  ;;  %v780_v38 = vld [vmem:[%s5687_s3 + $0xde8] sm:$0xff] }
 0x201   : > { %3882 = vmatprep.subr.bf16.mxu1 %v4786_v40  ;;  %v3539_v56 = vpop.f32.mrb[5].mxu0  ;;  %v4865_v40 = vcombine.low %v756_v29, %v764_v30  ;;  %v4882_v42 = vcombine.high %v772_v37, %v780_v38 }
 0x202   : > { %v3578_v53 = vpop.f32.mrb[4].mxu1  ;;  %v3541_v0 = vpop.f32.mrb[6].mxu0  ;;  %3842 = vmatpush1.bf16.msra.mxu0 %v4529_v45  ;;  %v788_v45 = vld [vmem:[%s5687_s3 + $0xe28] sm:$0xff] }
 0x203   : > { %v3579_v61 = vadd.f32 %v3578_v53, %v3537_v48  ;;  %v3580_v63 = vpop.f32.mrb[5].mxu1  ;;  %v3542_v4 = vpop.f32.mrb[7].mxu0  ;;  %3843 = vmatprep.subr.bf16.mxu0 %v4546_v47  ;;  %v4625_v47 = vcombine.low %v516_v35, %v524_v36  ;;  %v4881_v48 = vcombine.low %v772_v37, %v780_v38  ;;  %v804_v53 = vld [vmem:[%s5687_s3 + $0xea8] sm:$0xff] }
 0x204   : > { %v3581_v2 = vadd.f32 %v3580_v63, %v3539_v56  ;;  %v3582_v3 = vpop.f32.mrb[6].mxu1  ;;  %3883 = vmatpush1.bf16.msra.mxu1 %v4785_v46  ;;  %v796_v46 = vld [vmem:[%s5687_s3 + $0xe68] sm:$0xff] }
 0x205   : > { %v4079_v7 = vadd.f32 %v3579_v61, %v319_v52  ;;  %v3583_v8 = vpop.f32.mrb[7].mxu1  ;;  %3884 = vmatprep.subr.bf16.mxu1 %v4802_v49  ;;  %v4642_v49 = vcombine.high %v532_v43, %v540_v44  ;;  %v4898_v50 = vcombine.high %v788_v45, %v796_v46  ;;  %v556_v52 = vld [vmem:[%s5687_s3 + $0x6e8] sm:$0xff]  ;;  %v4897_v58 = vcombine.low %v788_v45, %v796_v46 }
 0x206   : > { %v4080_v12 = vadd.f32 %v3581_v2, %v320_v62  ;;  %3844 = vmatpush1.bf16.msra.mxu0 %v4545_v1  ;;  %v812_v56 = vld [vmem:[%s5687_s3 + $0xee8] sm:$0xff]  ;;  %v4658_v61 = vcombine.high %v548_v51, %v556_v52  ;;  %v4657_v3 = vcombine.low %v548_v51, %v556_v52 }
 0x207   : > { %4095 = vst [vmem:[#allocation2 + $0x10] sm:$0xff] %v4079_v7  ;;  %3845 = vmatprep.subr.bf16.mxu0 %v4562_v6  ;;  %v4914_v62 = vcombine.high %v804_v53, %v812_v56  ;;  %v564_v63 = vld [vmem:[%s5687_s3 + $0x728] sm:$0xff]  ;;  %v4913_v4 = vcombine.low %v804_v53, %v812_v56 }
 0x208   : > { %4096 = vst [vmem:[#allocation2 + $0x18] sm:$0xff] %v4080_v12  ;;  %3885 = vmatpush1.bf16.msra.mxu1 %v4801_v5  ;;  %v572_v0 = vld [vmem:[%s5687_s3 + $0x768] sm:$0xff] }
 0x209   : > { %3886 = vmatprep.subr.bf16.mxu1 %v4818_v9  ;;  %v820_v1 = vld [vmem:[%s5687_s3 + $0xf28] sm:$0xff]  ;;  %v4674_v5 = vcombine.high %v564_v63, %v572_v0  ;;  %v4673_v11 = vcombine.low %v564_v63, %v572_v0 }
 0x20a   : > { %3846 = vmatpush1.bf16.msra.mxu0 %v4561_v15  ;;  %v828_v2 = vld [vmem:[%s5687_s3 + $0xf68] sm:$0xff]  ;;  %v341_v15 = vld [vmem:[%s5687_s3 + $0x30] sm:$0xff] }
 0x20b   : > { %3847 = vmatprep.subr.bf16.mxu0 %v4578_v18  ;;  %v4930_v6 = vcombine.high %v820_v1, %v828_v2  ;;  %v580_v7 = vld [vmem:[%s5687_s3 + $0x7a8] sm:$0xff]  ;;  %v4929_v12 = vcombine.low %v820_v1, %v828_v2  ;;  %v597_v18 = vld [vmem:[%s5687_s3 + $0x830] sm:$0xff] }
 0x20c   : > { %3887 = vmatpush1.bf16.msra.mxu1 %v4817_v16  ;;  %v588_v8 = vld [vmem:[%s5687_s3 + $0x7e8] sm:$0xff]  ;;  %v349_v16 = vld [vmem:[%s5687_s3 + $0x70] sm:$0xff] }
 0x20d   : > { %3888 = vmatprep.subr.bf16.mxu1 %v4834_v19  ;;  %v836_v9 = vld [vmem:[%s5687_s3 + $0xfa8] sm:$0xff]  ;;  %v4690_v13 = vcombine.high %v580_v7, %v588_v8  ;;  %v605_v19 = vld [vmem:[%s5687_s3 + $0x870] sm:$0xff]  ;;  %v4689_v21 = vcombine.low %v580_v7, %v588_v8  ;;  %v4452_v23 = vcombine.high %v341_v15, %v349_v16  ;;  %v4451_v55 = vcombine.low %v341_v15, %v349_v16 }
 0x20e   : > { %3848 = vmatpush1.bf16.msra.mxu0 %v4577_v25  ;;  %v4946_v14 = vcombine.high %v836_v9, %v844_v10  ;;  %v4945_v22 = vcombine.low %v836_v9, %v844_v10  ;;  %v4708_v24 = vcombine.high %v597_v18, %v605_v19  ;;  %v357_v25 = vld [vmem:[%s5687_s3 + $0xb0] sm:$0xff]  ;;  %v4707_v28 = vcombine.low %v597_v18, %v605_v19 }
 0x20f   : > { %3849 = vmatprep.subr.bf16.mxu0 %v4594_v26  ;;  %v613_v26 = vld [vmem:[%s5687_s3 + $0x8b0] sm:$0xff] }
 0x210   : > { %3889 = vmatpush1.bf16.msra.mxu1 %v4833_v54  ;;  %v365_v54 = vld [vmem:[%s5687_s3 + $0xf0] sm:$0xff] }
 0x211   : > { %3890 = vmatprep.subr.bf16.mxu1 %v4850_v27  ;;  %v621_v27 = vld [vmem:[%s5687_s3 + $0x8f0] sm:$0xff]  ;;  %v4468_v29 = vcombine.high %v357_v25, %v365_v54  ;;  %v4467_v35 = vcombine.low %v357_v25, %v365_v54 }
 0x212   : > { %3850 = vmatpush1.bf16.msra.mxu0 %v4593_v31  ;;  %v4724_v30 = vcombine.high %v613_v26, %v621_v27  ;;  %v373_v31 = vld [vmem:[%s5687_s3 + $0x130] sm:$0xff]  ;;  %v4723_v36 = vcombine.low %v613_v26, %v621_v27 }
 0x213   : > { %3851 = vmatprep.subr.bf16.mxu0 %v4610_v33  ;;  %v629_v33 = vld [vmem:[%s5687_s3 + $0x930] sm:$0xff] }
 0x214   : > { %3891 = vmatpush1.bf16.msra.mxu1 %v4849_v32  ;;  %v381_v32 = vld [vmem:[%s5687_s3 + $0x170] sm:$0xff] }
 0x215   : > { %3892 = vmatprep.subr.bf16.mxu1 %v4866_v34  ;;  %v637_v34 = vld [vmem:[%s5687_s3 + $0x970] sm:$0xff]  ;;  %v4484_v37 = vcombine.high %v373_v31, %v381_v32  ;;  %v4483_v43 = vcombine.low %v373_v31, %v381_v32 }
 0x216   : > { %3852 = vmatpush1.bf16.msra.mxu0 %v4609_v39  ;;  %v4740_v38 = vcombine.high %v629_v33, %v637_v34  ;;  %v389_v39 = vld [vmem:[%s5687_s3 + $0x1b0] sm:$0xff]  ;;  %v4739_v44 = vcombine.low %v629_v33, %v637_v34 }
 0x217   : > { %3853 = vmatprep.subr.bf16.mxu0 %v4626_v41  ;;  %v645_v41 = vld [vmem:[%s5687_s3 + $0x9b0] sm:$0xff] }
 0x218   : > { %3893 = vmatpush1.bf16.msra.mxu1 %v4865_v40  ;;  %v397_v40 = vld [vmem:[%s5687_s3 + $0x1f0] sm:$0xff] }
 0x219   : > { %3894 = vmatprep.subr.bf16.mxu1 %v4882_v42  ;;  %v653_v42 = vld [vmem:[%s5687_s3 + $0x9f0] sm:$0xff]  ;;  %v4500_v45 = vcombine.high %v389_v39, %v397_v40  ;;  %v4499_v51 = vcombine.low %v389_v39, %v397_v40 }
 0x21a   : > { %3854 = vmatpush1.bf16.msra.mxu0 %v4625_v47  ;;  %v4756_v46 = vcombine.high %v645_v41, %v653_v42  ;;  %v405_v47 = vld [vmem:[%s5687_s3 + $0x230] sm:$0xff]  ;;  %v4755_v52 = vcombine.low %v645_v41, %v653_v42 }
 0x21b   : > { %3855 = vmatprep.subr.bf16.mxu0 %v4642_v49  ;;  %v661_v49 = vld [vmem:[%s5687_s3 + $0xa30] sm:$0xff] }
 0x21c   : > { %3895 = vmatpush1.bf16.msra.mxu1 %v4881_v48  ;;  %v413_v48 = vld [vmem:[%s5687_s3 + $0x270] sm:$0xff] }
 0x21d   : > { %3896 = vmatprep.subr.bf16.mxu1 %v4898_v50  ;;  %v669_v50 = vld [vmem:[%s5687_s3 + $0xa70] sm:$0xff]  ;;  %v4516_v53 = vcombine.high %v405_v47, %v413_v48  ;;  %v4515_v63 = vcombine.low %v405_v47, %v413_v48 }
 0x21e   : > { %3856 = vmatpush1.bf16.msra.mxu0 %v4641_v57  ;;  %v4772_v56 = vcombine.high %v661_v49, %v669_v50  ;;  %v421_v57 = vld [vmem:[%s5687_s3 + $0x2b0] sm:$0xff]  ;;  %v4771_v0 = vcombine.low %v661_v49, %v669_v50 }
 0x21f   : > { %3857 = vmatprep.subr.bf16.mxu0 %v4658_v61  ;;  %v677_v61 = vld [vmem:[%s5687_s3 + $0xab0] sm:$0xff] }
 0x220   : > { %3897 = vmatpush1.bf16.msra.mxu1 %v4897_v58  ;;  %v429_v58 = vld [vmem:[%s5687_s3 + $0x2f0] sm:$0xff] }
 0x221   : > { %3898 = vmatprep.subr.bf16.mxu1 %v4914_v62  ;;  %v685_v62 = vld [vmem:[%s5687_s3 + $0xaf0] sm:$0xff]  ;;  %v4532_v1 = vcombine.high %v421_v57, %v429_v58  ;;  %v4531_v7 = vcombine.low %v421_v57, %v429_v58 }
 0x222   : > { %3858 = vmatpush1.bf16.msra.mxu0 %v4657_v3  ;;  %v4788_v2 = vcombine.high %v677_v61, %v685_v62  ;;  %v437_v3 = vld [vmem:[%s5687_s3 + $0x330] sm:$0xff]  ;;  %v4787_v8 = vcombine.low %v677_v61, %v685_v62 }
 0x223   : > { %3859 = vmatprep.subr.bf16.mxu0 %v4674_v5  ;;  %v693_v5 = vld [vmem:[%s5687_s3 + $0xb30] sm:$0xff] }
 0x224   : > { %3899 = vmatpush1.bf16.msra.mxu1 %v4913_v4  ;;  %v445_v4 = vld [vmem:[%s5687_s3 + $0x370] sm:$0xff] }
 0x225   : > { %3900 = vmatprep.subr.bf16.mxu1 %v4930_v6  ;;  %v701_v6 = vld [vmem:[%s5687_s3 + $0xb70] sm:$0xff]  ;;  %v4548_v9 = vcombine.high %v437_v3, %v445_v4  ;;  %v4547_v25 = vcombine.low %v437_v3, %v445_v4 }
 0x226   : > { %3860 = vmatpush1.bf16.msra.mxu0 %v4673_v11  ;;  %v4804_v11 = vcombine.high %v693_v5, %v701_v6  ;;  %v709_v18 = vld [vmem:[%s5687_s3 + $0xbb0] sm:$0xff] }
 0x227   : > { %3861 = vmatprep.subr.bf16.mxu0 %v4690_v13  ;;  %v461_v13 = vld [vmem:[%s5687_s3 + $0x3f0] sm:$0xff] }
 0x228   : > { %3901 = vmatpush1.bf16.msra.mxu1 %v4929_v12  ;;  %v453_v12 = vld [vmem:[%s5687_s3 + $0x3b0] sm:$0xff] }
 0x229   : > { %3902 = vmatprep.subr.bf16.mxu1 %v4946_v14  ;;  %v321_v14 = vld [vmem:[#allocation2 + $0x20] sm:$0xff]  ;;  %v717_v19 = vld [vmem:[%s5687_s3 + $0xbf0] sm:$0xff] }
 0x22a   : > { %3862 = vmatpush1.bf16.msra.mxu0 %v4689_v21  ;;  %v4820_v31 = vcombine.high %v709_v18, %v717_v19  ;;  %v469_v32 = vld [vmem:[%s5687_s3 + $0x430] sm:$0xff] }
 0x22b   : > { %3913 = vmatprep.subr.bf16.mxu0 %v4452_v23  ;;  %v477_v33 = vld [vmem:[%s5687_s3 + $0x470] sm:$0xff] }
 0x22c   : > { %3903 = vmatpush1.bf16.msra.mxu1 %v4945_v22  ;;  %v322_v22 = vld [vmem:[#allocation2 + $0x28] sm:$0xff]  ;;  %v4580_v39 = vcombine.high %v469_v32, %v477_v33  ;;  %v485_v41 = vld [vmem:[%s5687_s3 + $0x4b0] sm:$0xff] }
 0x22d   : > { %3954 = vmatprep.subr.bf16.mxu1 %v4708_v24  ;;  %3864 = vmatmul.mubr.bf16.vlgmr.msra.gmra.mrb[20].mxu0 %v5797_v17  ;;  %v493_v42 = vld [vmem:[%s5687_s3 + $0x4f0] sm:$0xff] }
 0x22e   : > { %3914 = vmatpush1.bf16.msra.mxu0 %v4451_v55  ;;  %3945 = vmatprep.mubr.bf16.mxu0 %v5747_v59  ;;  %v4803_v55 = vcombine.low %v693_v5, %v701_v6  ;;  %v4596_v47 = vcombine.high %v485_v41, %v493_v42  ;;  %v501_v49 = vld [vmem:[%s5687_s3 + $0x530] sm:$0xff] }
 0x22f   : > { %3905 = vmatmul.mubr.bf16.vlgmr.msra.gmra.mrb[20].mxu1 %v5803_v20  ;;  %3915 = vmatprep.subr.bf16.mxu0 %v4468_v29  ;;  %v509_v50 = vld [vmem:[%s5687_s3 + $0x570] sm:$0xff] }
 0x230   : > { %3955 = vmatpush1.bf16.msra.mxu1 %v4707_v28  ;;  %3986 = vmatprep.mubr.bf16.mxu1 %v5751_v60  ;;  %v4564_v28 = vcombine.high %v453_v12, %v461_v13  ;;  %v4612_v57 = vcombine.high %v501_v49, %v509_v50  ;;  %v517_v61 = vld [vmem:[%s5687_s3 + $0x5b0] sm:$0xff] }
 0x231   : > { %3956 = vmatprep.subr.bf16.mxu1 %v4724_v30  ;;  %v525_v62 = vld [vmem:[%s5687_s3 + $0x5f0] sm:$0xff] }
 0x232   : > { %3916 = vmatpush1.bf16.msra.mxu0 %v4467_v35  ;;  %v725_v35 = vld [vmem:[%s5687_s3 + $0xc30] sm:$0xff]  ;;  %v4628_v3 = vcombine.high %v517_v61, %v525_v62 }
 0x233   : > { %3917 = vmatprep.subr.bf16.mxu0 %v4484_v37  ;;  %v4563_v37 = vcombine.low %v453_v12, %v461_v13  ;;  %v533_v5 = vld [vmem:[%s5687_s3 + $0x630] sm:$0xff] }
 0x234   : > { %3957 = vmatpush1.bf16.msra.mxu1 %v4723_v36  ;;  %v733_v36 = vld [vmem:[%s5687_s3 + $0xc70] sm:$0xff] }
 0x235   : > { %3958 = vmatprep.subr.bf16.mxu1 %v4740_v38  ;;  %v4819_v38 = vcombine.low %v709_v18, %v717_v19  ;;  %v4836_v40 = vcombine.high %v725_v35, %v733_v36  ;;  %v541_v6 = vld [vmem:[%s5687_s3 + $0x670] sm:$0xff] }
 0x236   : > { %3918 = vmatpush1.bf16.msra.mxu0 %v4483_v43  ;;  %v741_v43 = vld [vmem:[%s5687_s3 + $0xcb0] sm:$0xff]  ;;  %v4643_v18 = vcombine.low %v533_v5, %v541_v6 }
 0x237   : > { %3919 = vmatprep.subr.bf16.mxu0 %v4500_v45  ;;  %v4579_v45 = vcombine.low %v469_v32, %v477_v33  ;;  %v549_v13 = vld [vmem:[%s5687_s3 + $0x6b0] sm:$0xff] }
 0x238   : > { %3959 = vmatpush1.bf16.msra.mxu1 %v4739_v44  ;;  %v749_v44 = vld [vmem:[%s5687_s3 + $0xcf0] sm:$0xff] }
 0x239   : > { %3960 = vmatprep.subr.bf16.mxu1 %v4756_v46  ;;  %v4835_v46 = vcombine.low %v725_v35, %v733_v36  ;;  %v4852_v48 = vcombine.high %v741_v43, %v749_v44  ;;  %v845_v32 = vld [vmem:[%s5687_s3 + $0xff0] sm:$0xff] }
 0x23a   : > { %3920 = vmatpush1.bf16.msra.mxu0 %v4499_v51  ;;  %v757_v51 = vld [vmem:[%s5687_s3 + $0xd30] sm:$0xff] }
 0x23b   : > { %3921 = vmatprep.subr.bf16.mxu0 %v4516_v53  ;;  %v4595_v53 = vcombine.low %v485_v41, %v493_v42 }
 0x23c   : > { %3961 = vmatpush1.bf16.msra.mxu1 %v4755_v52  ;;  %v765_v52 = vld [vmem:[%s5687_s3 + $0xd70] sm:$0xff] }
 0x23d   : > { %3962 = vmatprep.subr.bf16.mxu1 %v4772_v56  ;;  %v4851_v56 = vcombine.low %v741_v43, %v749_v44  ;;  %v4868_v58 = vcombine.high %v757_v51, %v765_v52 }
 0x23e   : > { %3922 = vmatpush1.bf16.msra.mxu0 %v4515_v63  ;;  %v773_v63 = vld [vmem:[%s5687_s3 + $0xdb0] sm:$0xff] }
 0x23f   : > { %3923 = vmatprep.subr.bf16.mxu0 %v4532_v1  ;;  %v4611_v1 = vcombine.low %v501_v49, %v509_v50 }
 0x240   : > { %3963 = vmatpush1.bf16.msra.mxu1 %v4771_v0  ;;  %v3619_v10 = vpop.f32.mrb[8].mxu0  ;;  %v781_v0 = vld [vmem:[%s5687_s3 + $0xdf0] sm:$0xff] }
 0x241   : > { %3964 = vmatprep.subr.bf16.mxu1 %v4788_v2  ;;  %v3621_v16 = vpop.f32.mrb[9].mxu0  ;;  %v4867_v2 = vcombine.low %v757_v51, %v765_v52  ;;  %v4884_v4 = vcombine.high %v773_v63, %v781_v0 }
 0x242   : > { %v3660_v15 = vpop.f32.mrb[8].mxu1  ;;  %v3623_v24 = vpop.f32.mrb[10].mxu0  ;;  %3924 = vmatpush1.bf16.msra.mxu0 %v4531_v7  ;;  %v789_v7 = vld [vmem:[%s5687_s3 + $0xe30] sm:$0xff] }
 0x243   : > { %v3661_v21 = vadd.f32 %v3660_v15, %v3619_v10  ;;  %v3662_v23 = vpop.f32.mrb[9].mxu1  ;;  %v3624_v27 = vpop.f32.mrb[11].mxu0  ;;  %3925 = vmatprep.subr.bf16.mxu0 %v4548_v9  ;;  %v4627_v9 = vcombine.low %v517_v61, %v525_v62  ;;  %v4883_v10 = vcombine.low %v773_v63, %v781_v0  ;;  %v805_v15 = vld [vmem:[%s5687_s3 + $0xeb0] sm:$0xff] }
 0x244   : > { %v3663_v54 = vadd.f32 %v3662_v23, %v3621_v16  ;;  %v3664_v26 = vpop.f32.mrb[10].mxu1  ;;  %3965 = vmatpush1.bf16.msra.mxu1 %v4787_v8  ;;  %v797_v8 = vld [vmem:[%s5687_s3 + $0xe70] sm:$0xff] }
 0x245   : > { %v4081_v29 = vadd.f32 %v3661_v21, %v321_v14  ;;  %v3665_v30 = vpop.f32.mrb[11].mxu1  ;;  %3966 = vmatprep.subr.bf16.mxu1 %v4804_v11  ;;  %v4644_v11 = vcombine.high %v533_v5, %v541_v6  ;;  %v4900_v12 = vcombine.high %v789_v7, %v797_v8  ;;  %v557_v14 = vld [vmem:[%s5687_s3 + $0x6f0] sm:$0xff]  ;;  %v4899_v19 = vcombine.low %v789_v7, %v797_v8 }
 0x246   : > { %v4082_v34 = vadd.f32 %v3663_v54, %v322_v22  ;;  %3926 = vmatpush1.bf16.msra.mxu0 %v4547_v25  ;;  %v813_v16 = vld [vmem:[%s5687_s3 + $0xef0] sm:$0xff]  ;;  %v4660_v21 = vcombine.high %v549_v13, %v557_v14  ;;  %v4659_v26 = vcombine.low %v549_v13, %v557_v14 }
 0x247   : > { %4097 = vst [vmem:[#allocation2 + $0x20] sm:$0xff] %v4081_v29  ;;  %3927 = vmatprep.subr.bf16.mxu0 %v4564_v28  ;;  %v4916_v22 = vcombine.high %v805_v15, %v813_v16  ;;  %v565_v23 = vld [vmem:[%s5687_s3 + $0x730] sm:$0xff]  ;;  %v4915_v27 = vcombine.low %v805_v15, %v813_v16  ;;  %v422_v15 = vld [vmem:[%s5687_s3 + $0x2b8] sm:$0xff] }
 0x248   : > { %4098 = vst [vmem:[#allocation2 + $0x28] sm:$0xff] %v4082_v34  ;;  %3967 = vmatpush1.bf16.msra.mxu1 %v4803_v55  ;;  %v573_v24 = vld [vmem:[%s5687_s3 + $0x770] sm:$0xff]  ;;  %v430_v16 = vld [vmem:[%s5687_s3 + $0x2f8] sm:$0xff] }
 0x249   : > { %3968 = vmatprep.subr.bf16.mxu1 %v4820_v31  ;;  %v821_v25 = vld [vmem:[%s5687_s3 + $0xf30] sm:$0xff]  ;;  %v4676_v55 = vcombine.high %v565_v23, %v573_v24  ;;  %v4675_v33 = vcombine.low %v565_v23, %v573_v24  ;;  %v4534_v23 = vcombine.high %v422_v15, %v430_v16 }
 0x24a   : > { %3928 = vmatpush1.bf16.msra.mxu0 %v4563_v37  ;;  %v829_v54 = vld [vmem:[%s5687_s3 + $0xf70] sm:$0xff]  ;;  %v342_v37 = vld [vmem:[%s5687_s3 + $0x38] sm:$0xff] }
 0x24b   : > { %3929 = vmatprep.subr.bf16.mxu0 %v4580_v39  ;;  %v4932_v28 = vcombine.high %v821_v25, %v829_v54  ;;  %v581_v29 = vld [vmem:[%s5687_s3 + $0x7b0] sm:$0xff]  ;;  %v4931_v34 = vcombine.low %v821_v25, %v829_v54  ;;  %v598_v39 = vld [vmem:[%s5687_s3 + $0x838] sm:$0xff] }
 0x24c   : > { %3969 = vmatpush1.bf16.msra.mxu1 %v4819_v38  ;;  %v589_v30 = vld [vmem:[%s5687_s3 + $0x7f0] sm:$0xff]  ;;  %v350_v38 = vld [vmem:[%s5687_s3 + $0x78] sm:$0xff] }
 0x24d   : > { %3970 = vmatprep.subr.bf16.mxu1 %v4836_v40  ;;  %v837_v31 = vld [vmem:[%s5687_s3 + $0xfb0] sm:$0xff]  ;;  %v4692_v35 = vcombine.high %v581_v29, %v589_v30  ;;  %v606_v40 = vld [vmem:[%s5687_s3 + $0x878] sm:$0xff]  ;;  %v4691_v41 = vcombine.low %v581_v29, %v589_v30  ;;  %v4454_v43 = vcombine.high %v342_v37, %v350_v38  ;;  %v4453_v49 = vcombine.low %v342_v37, %v350_v38 }
 0x24e   : > { %3930 = vmatpush1.bf16.msra.mxu0 %v4579_v45  ;;  %v4948_v36 = vcombine.high %v837_v31, %v845_v32  ;;  %v4947_v42 = vcombine.low %v837_v31, %v845_v32  ;;  %v4710_v44 = vcombine.high %v598_v39, %v606_v40  ;;  %v358_v45 = vld [vmem:[%s5687_s3 + $0xb8] sm:$0xff]  ;;  %v4709_v50 = vcombine.low %v598_v39, %v606_v40 }
 0x24f   : > { %3931 = vmatprep.subr.bf16.mxu0 %v4596_v47  ;;  %v614_v47 = vld [vmem:[%s5687_s3 + $0x8b8] sm:$0xff] }
 0x250   : > { %3971 = vmatpush1.bf16.msra.mxu1 %v4835_v46  ;;  %v366_v46 = vld [vmem:[%s5687_s3 + $0xf8] sm:$0xff] }
 0x251   : > { %3972 = vmatprep.subr.bf16.mxu1 %v4852_v48  ;;  %v622_v48 = vld [vmem:[%s5687_s3 + $0x8f8] sm:$0xff]  ;;  %v4470_v51 = vcombine.high %v358_v45, %v366_v46  ;;  %v4469_v61 = vcombine.low %v358_v45, %v366_v46 }
 0x252   : > { %3932 = vmatpush1.bf16.msra.mxu0 %v4595_v53  ;;  %v4726_v52 = vcombine.high %v614_v47, %v622_v48  ;;  %v374_v53 = vld [vmem:[%s5687_s3 + $0x138] sm:$0xff]  ;;  %v4725_v62 = vcombine.low %v614_v47, %v622_v48 }
 0x253   : > { %3933 = vmatprep.subr.bf16.mxu0 %v4612_v57  ;;  %v630_v57 = vld [vmem:[%s5687_s3 + $0x938] sm:$0xff] }
 0x254   : > { %3973 = vmatpush1.bf16.msra.mxu1 %v4851_v56  ;;  %v382_v56 = vld [vmem:[%s5687_s3 + $0x178] sm:$0xff] }
 0x255   : > { %3974 = vmatprep.subr.bf16.mxu1 %v4868_v58  ;;  %v638_v58 = vld [vmem:[%s5687_s3 + $0x978] sm:$0xff]  ;;  %v4486_v63 = vcombine.high %v374_v53, %v382_v56  ;;  %v4485_v5 = vcombine.low %v374_v53, %v382_v56 }
 0x256   : > { %3934 = vmatpush1.bf16.msra.mxu0 %v4611_v1  ;;  %v4742_v0 = vcombine.high %v630_v57, %v638_v58  ;;  %v390_v1 = vld [vmem:[%s5687_s3 + $0x1b8] sm:$0xff]  ;;  %v4741_v6 = vcombine.low %v630_v57, %v638_v58 }
 0x257   : > { %3935 = vmatprep.subr.bf16.mxu0 %v4628_v3  ;;  %v646_v3 = vld [vmem:[%s5687_s3 + $0x9b8] sm:$0xff] }
 0x258   : > { %3975 = vmatpush1.bf16.msra.mxu1 %v4867_v2  ;;  %v398_v2 = vld [vmem:[%s5687_s3 + $0x1f8] sm:$0xff] }
 0x259   : > { %3976 = vmatprep.subr.bf16.mxu1 %v4884_v4  ;;  %v654_v4 = vld [vmem:[%s5687_s3 + $0x9f8] sm:$0xff]  ;;  %v4502_v7 = vcombine.high %v390_v1, %v398_v2 }
 0x25a   : > { %3936 = vmatpush1.bf16.msra.mxu0 %v4627_v9  ;;  %v4758_v8 = vcombine.high %v646_v3, %v654_v4  ;;  %v406_v9 = vld [vmem:[%s5687_s3 + $0x238] sm:$0xff] }
 0x25b   : > { %3937 = vmatprep.subr.bf16.mxu0 %v4644_v11  ;;  %v662_v11 = vld [vmem:[%s5687_s3 + $0xa38] sm:$0xff] }
 0x25c   : > { %3977 = vmatpush1.bf16.msra.mxu1 %v4883_v10  ;;  %v414_v10 = vld [vmem:[%s5687_s3 + $0x278] sm:$0xff] }
 0x25d   : > { %3978 = vmatprep.subr.bf16.mxu1 %v4900_v12  ;;  %v4501_v12 = vcombine.low %v390_v1, %v398_v2  ;;  %v4518_v13 = vcombine.high %v406_v9, %v414_v10  ;;  %v438_v25 = vld [vmem:[%s5687_s3 + $0x338] sm:$0xff] }
 0x25e   : > { %3938 = vmatpush1.bf16.msra.mxu0 %v4643_v18  ;;  %v678_v18 = vld [vmem:[%s5687_s3 + $0xab8] sm:$0xff] }
 0x25f   : > { %3939 = vmatprep.subr.bf16.mxu0 %v4660_v21  ;;  %v4517_v21 = vcombine.low %v406_v9, %v414_v10  ;;  %v446_v54 = vld [vmem:[%s5687_s3 + $0x378] sm:$0xff] }
 0x260   : > { %3979 = vmatpush1.bf16.msra.mxu1 %v4899_v19  ;;  %v686_v19 = vld [vmem:[%s5687_s3 + $0xaf8] sm:$0xff]  ;;  %v4550_v29 = vcombine.high %v438_v25, %v446_v54 }
 0x261   : > { %3980 = vmatprep.subr.bf16.mxu1 %v4916_v22  ;;  %v4790_v24 = vcombine.high %v678_v18, %v686_v19  ;;  %v454_v32 = vld [vmem:[%s5687_s3 + $0x3b8] sm:$0xff] }
 0x262   : > { %3940 = vmatpush1.bf16.msra.mxu0 %v4659_v26  ;;  %v694_v26 = vld [vmem:[%s5687_s3 + $0xb38] sm:$0xff] }
 0x263   : > { %3941 = vmatprep.subr.bf16.mxu0 %v4676_v55  ;;  %v4533_v55 = vcombine.low %v422_v15, %v430_v16  ;;  %v710_v37 = vld [vmem:[%s5687_s3 + $0xbb8] sm:$0xff] }
 0x264   : > { %3981 = vmatpush1.bf16.msra.mxu1 %v4915_v27  ;;  %v702_v27 = vld [vmem:[%s5687_s3 + $0xb78] sm:$0xff] }
 0x265   : > { %3982 = vmatprep.subr.bf16.mxu1 %v4932_v28  ;;  %v4789_v28 = vcombine.low %v678_v18, %v686_v19  ;;  %v4806_v31 = vcombine.high %v694_v26, %v702_v27  ;;  %v718_v38 = vld [vmem:[%s5687_s3 + $0xbf8] sm:$0xff]  ;;  %v4805_v47 = vcombine.low %v694_v26, %v702_v27 }
 0x266   : > { %3942 = vmatpush1.bf16.msra.mxu0 %v4675_v33  ;;  %v462_v33 = vld [vmem:[%s5687_s3 + $0x3f8] sm:$0xff] }
 0x267   : > { %3943 = vmatprep.subr.bf16.mxu0 %v4692_v35  ;;  %v324_v40 = vld [vmem:[#allocation2 + $0x38] sm:$0xff]  ;;  %v4566_v48 = vcombine.high %v454_v32, %v462_v33 }
 0x268   : > { %3983 = vmatpush1.bf16.msra.mxu1 %v4931_v34  ;;  %v323_v34 = vld [vmem:[#allocation2 + $0x30] sm:$0xff]  ;;  %v478_v53 = vld [vmem:[%s5687_s3 + $0x478] sm:$0xff] }
 0x269   : > { %3984 = vmatprep.subr.bf16.mxu1 %v4948_v36  ;;  %v726_v57 = vld [vmem:[%s5687_s3 + $0xc38] sm:$0xff] }
 0x26a   : > { %3944 = vmatpush1.bf16.msra.mxu0 %v4691_v41  ;;  %v734_v58 = vld [vmem:[%s5687_s3 + $0xc78] sm:$0xff] }
 0x26b   : > { %3995 = vmatprep.subr.bf16.mxu0 %v4454_v43  ;;  %v4549_v43 = vcombine.low %v438_v25, %v446_v54  ;;  %v486_v1 = vld [vmem:[%s5687_s3 + $0x4b8] sm:$0xff] }
 0x26c   : > { %3985 = vmatpush1.bf16.msra.mxu1 %v4947_v42  ;;  %v494_v2 = vld [vmem:[%s5687_s3 + $0x4f8] sm:$0xff] }
 0x26d   : > { %4036 = vmatprep.subr.bf16.mxu1 %v4710_v44  ;;  %3946 = vmatmul.mubr.bf16.vlgmr.msra.gmra.mrb[24].mxu0 %v5797_v17  ;;  %v502_v9 = vld [vmem:[%s5687_s3 + $0x538] sm:$0xff] }
 0x26e   : > { %3996 = vmatpush1.bf16.msra.mxu0 %v4453_v49  ;;  %4027 = vmatprep.mubr.bf16.mxu0 %v5747_v59  ;;  %v670_v59 = vld [vmem:[%s5687_s3 + $0xa78] sm:$0xff] }
 0x26f   : > { %3987 = vmatmul.mubr.bf16.vlgmr.msra.gmra.mrb[24].mxu1 %v5803_v20  ;;  %3997 = vmatprep.subr.bf16.mxu0 %v4470_v51  ;;  %v4774_v14 = vcombine.high %v662_v11, %v670_v59  ;;  %v4773_v22 = vcombine.low %v662_v11, %v670_v59  ;;  %v4822_v51 = vcombine.high %v710_v37, %v718_v38  ;;  %v510_v10 = vld [vmem:[%s5687_s3 + $0x578] sm:$0xff] }
 0x270   : > { %4037 = vmatpush1.bf16.msra.mxu1 %v4709_v50  ;;  %4068 = vmatprep.mubr.bf16.mxu1 %v5751_v60  ;;  %v4757_v60 = vcombine.low %v646_v3, %v654_v4  ;;  %v742_v3 = vld [vmem:[%s5687_s3 + $0xcb8] sm:$0xff] }
 0x271   : > { %4038 = vmatprep.subr.bf16.mxu1 %v4726_v52  ;;  %v470_v52 = vld [vmem:[%s5687_s3 + $0x438] sm:$0xff] }
 0x272   : > { %3998 = vmatpush1.bf16.msra.mxu0 %v4469_v61  ;;  %v4565_v61 = vcombine.low %v454_v32, %v462_v33  ;;  %v750_v4 = vld [vmem:[%s5687_s3 + $0xcf8] sm:$0xff] }
 0x273   : > { %3999 = vmatprep.subr.bf16.mxu0 %v4486_v63  ;;  %v4582_v63 = vcombine.high %v470_v52, %v478_v53  ;;  %v758_v11 = vld [vmem:[%s5687_s3 + $0xd38] sm:$0xff] }
 0x274   : > { %4039 = vmatpush1.bf16.msra.mxu1 %v4725_v62  ;;  %v4821_v62 = vcombine.low %v710_v37, %v718_v38  ;;  %v766_v59 = vld [vmem:[%s5687_s3 + $0xd78] sm:$0xff] }
 0x275   : > { %4040 = vmatprep.subr.bf16.mxu1 %v4742_v0  ;;  %v4838_v0 = vcombine.high %v726_v57, %v734_v58  ;;  %v518_v15 = vld [vmem:[%s5687_s3 + $0x5b8] sm:$0xff] }
 0x276   : > { %4000 = vmatpush1.bf16.msra.mxu0 %v4485_v5  ;;  %v4581_v5 = vcombine.low %v470_v52, %v478_v53  ;;  %v526_v16 = vld [vmem:[%s5687_s3 + $0x5f8] sm:$0xff] }
 0x277   : > { %4001 = vmatprep.subr.bf16.mxu0 %v4502_v7  ;;  %v4598_v7 = vcombine.high %v486_v1, %v494_v2  ;;  %v774_v18 = vld [vmem:[%s5687_s3 + $0xdb8] sm:$0xff] }
 0x278   : > { %4041 = vmatpush1.bf16.msra.mxu1 %v4741_v6  ;;  %v4837_v6 = vcombine.low %v726_v57, %v734_v58  ;;  %v782_v19 = vld [vmem:[%s5687_s3 + $0xdf8] sm:$0xff] }
 0x279   : > { %4042 = vmatprep.subr.bf16.mxu1 %v4758_v8  ;;  %v4854_v8 = vcombine.high %v742_v3, %v750_v4  ;;  %v534_v25 = vld [vmem:[%s5687_s3 + $0x638] sm:$0xff] }
 0x27a   : > { %4002 = vmatpush1.bf16.msra.mxu0 %v4501_v12  ;;  %v4597_v12 = vcombine.low %v486_v1, %v494_v2  ;;  %v542_v54 = vld [vmem:[%s5687_s3 + $0x678] sm:$0xff]  ;;  %v326_v2 = vld [vmem:[#allocation2 + $0x48] sm:$0xff] }
 0x27b   : > { %4003 = vmatprep.subr.bf16.mxu0 %v4518_v13  ;;  %v4614_v13 = vcombine.high %v502_v9, %v510_v10  ;;  %v790_v26 = vld [vmem:[%s5687_s3 + $0xe38] sm:$0xff] }
 0x27c   : > { %4043 = vmatpush1.bf16.msra.mxu1 %v4757_v60  ;;  %v4853_v60 = vcombine.low %v742_v3, %v750_v4  ;;  %v798_v27 = vld [vmem:[%s5687_s3 + $0xe78] sm:$0xff] }
 0x27d   : > { %4044 = vmatprep.subr.bf16.mxu1 %v4774_v14  ;;  %v4870_v14 = vcombine.high %v758_v11, %v766_v59  ;;  %v558_v32 = vld [vmem:[%s5687_s3 + $0x6f8] sm:$0xff] }
 0x27e   : > { %4004 = vmatpush1.bf16.msra.mxu0 %v4517_v21  ;;  %v4613_v21 = vcombine.low %v502_v9, %v510_v10  ;;  %v806_v33 = vld [vmem:[%s5687_s3 + $0xeb8] sm:$0xff] }
 0x27f   : > { %4005 = vmatprep.subr.bf16.mxu0 %v4534_v23  ;;  %v4630_v23 = vcombine.high %v518_v15, %v526_v16 }
 0x280   : > { %4045 = vmatpush1.bf16.msra.mxu1 %v4773_v22  ;;  %v3701_v30 = vpop.f32.mrb[12].mxu0  ;;  %v4869_v22 = vcombine.low %v758_v11, %v766_v59 }
 0x281   : > { %4046 = vmatprep.subr.bf16.mxu1 %v4790_v24  ;;  %v3703_v36 = vpop.f32.mrb[13].mxu0  ;;  %v4886_v24 = vcombine.high %v774_v18, %v782_v19 }
 0x282   : > { %v3742_v35 = vpop.f32.mrb[12].mxu1  ;;  %v3705_v42 = vpop.f32.mrb[14].mxu0  ;;  %4006 = vmatpush1.bf16.msra.mxu0 %v4533_v55  ;;  %v4629_v55 = vcombine.low %v518_v15, %v526_v16 }
 0x283   : > { %v3743_v39 = vadd.f32 %v3742_v35, %v3701_v30  ;;  %v3744_v41 = vpop.f32.mrb[13].mxu1  ;;  %v3706_v46 = vpop.f32.mrb[15].mxu0  ;;  %4007 = vmatprep.subr.bf16.mxu0 %v4550_v29  ;;  %v4646_v29 = vcombine.high %v534_v25, %v542_v54  ;;  %v4902_v30 = vcombine.high %v790_v26, %v798_v27  ;;  %v4645_v35 = vcombine.low %v534_v25, %v542_v54  ;;  %v830_v42 = vld [vmem:[%s5687_s3 + $0xf78] sm:$0xff] }
 0x284   : > { %v3745_v44 = vadd.f32 %v3744_v41, %v3703_v36  ;;  %v3746_v45 = vpop.f32.mrb[14].mxu1  ;;  %4047 = vmatpush1.bf16.msra.mxu1 %v4789_v28  ;;  %v4885_v28 = vcombine.low %v774_v18, %v782_v19  ;;  %v4901_v36 = vcombine.low %v790_v26, %v798_v27  ;;  %v822_v41 = vld [vmem:[%s5687_s3 + $0xf38] sm:$0xff]  ;;  %v330_v27 = vld [vmem:[#allocation2 + $0x68] sm:$0xff] }
 0x285   : > { %v4083_v49 = vadd.f32 %v3743_v39, %v323_v34  ;;  %v3747_v50 = vpop.f32.mrb[15].mxu1  ;;  %4048 = vmatprep.subr.bf16.mxu1 %v4806_v31  ;;  %v550_v31 = vld [vmem:[%s5687_s3 + $0x6b8] sm:$0xff]  ;;  %v4934_v46 = vcombine.high %v822_v41, %v830_v42  ;;  %v4933_v52 = vcombine.low %v822_v41, %v830_v42 }
 0x286   : > { %v4084_v56 = vadd.f32 %v3745_v44, %v324_v40  ;;  %4008 = vmatpush1.bf16.msra.mxu0 %v4549_v43  ;;  %v814_v34 = vld [vmem:[%s5687_s3 + $0xef8] sm:$0xff]  ;;  %v4662_v37 = vcombine.high %v550_v31, %v558_v32  ;;  %v4661_v43 = vcombine.low %v550_v31, %v558_v32 }
 0x287   : > { %4099 = vst [vmem:[#allocation2 + $0x30] sm:$0xff] %v4083_v49  ;;  %4009 = vmatprep.subr.bf16.mxu0 %v4566_v48  ;;  %v4918_v38 = vcombine.high %v806_v33, %v814_v34  ;;  %v566_v39 = vld [vmem:[%s5687_s3 + $0x738] sm:$0xff]  ;;  %v4917_v44 = vcombine.low %v806_v33, %v814_v34 }
 0x288   : > { %4100 = vst [vmem:[#allocation2 + $0x38] sm:$0xff] %v4084_v56  ;;  %4049 = vmatpush1.bf16.msra.mxu1 %v4805_v47  ;;  %v574_v40 = vld [vmem:[%s5687_s3 + $0x778] sm:$0xff] }
 0x289   : > { %4050 = vmatprep.subr.bf16.mxu1 %v4822_v51  ;;  %v4678_v45 = vcombine.high %v566_v39, %v574_v40  ;;  %v582_v47 = vld [vmem:[%s5687_s3 + $0x7b8] sm:$0xff]  ;;  %v4677_v51 = vcombine.low %v566_v39, %v574_v40 }
 0x28a   : > { %4010 = vmatpush1.bf16.msra.mxu0 %v4565_v61  ;;  %v590_v48 = vld [vmem:[%s5687_s3 + $0x7f8] sm:$0xff] }
 0x28b   : > { %4011 = vmatprep.subr.bf16.mxu0 %v4582_v63  ;;  %v838_v49 = vld [vmem:[%s5687_s3 + $0xfb8] sm:$0xff]  ;;  %v4694_v53 = vcombine.high %v582_v47, %v590_v48  ;;  %v4693_v57 = vcombine.low %v582_v47, %v590_v48 }
 0x28c   : > { %4051 = vmatpush1.bf16.msra.mxu1 %v4821_v62  ;;  %v846_v50 = vld [vmem:[%s5687_s3 + $0xff8] sm:$0xff]  ;;  %v325_v62 = vld [vmem:[#allocation2 + $0x40] sm:$0xff] }
 0x28d   : > { %4052 = vmatprep.subr.bf16.mxu1 %v4838_v0  ;;  %v4950_v56 = vcombine.high %v838_v49, %v846_v50  ;;  %v4949_v58 = vcombine.low %v838_v49, %v846_v50  ;;  %v332_v40 = vld [vmem:[#allocation2 + $0x78] sm:$0xff]  ;;  %v4133_v49 = vlaneseq (!%p4951_p9) }
 0x28e   : > { %4012 = vmatpush1.bf16.msra.mxu0 %v4581_v5 }
 0x28f   : > { %4013 = vmatprep.subr.bf16.mxu0 %v4598_v7  ;;  %v6276_v50 = vshrl.u32 (!%p4951_p9), %v4133_v49, 7 }
 0x290   : > { %4053 = vmatpush1.bf16.msra.mxu1 %v4837_v6 }
 0x291   : > { %4054 = vmatprep.subr.bf16.mxu1 %v4854_v8 }
 0x292   : > { %4014 = vmatpush1.bf16.msra.mxu0 %v4597_v12 }
 0x293   : > { %4015 = vmatprep.subr.bf16.mxu0 %v4614_v13 }
 0x294   : > { %4055 = vmatpush1.bf16.msra.mxu1 %v4853_v60  ;;  %v328_v60 = vld [vmem:[#allocation2 + $0x58] sm:$0xff] }
 0x295   : > { %4056 = vmatprep.subr.bf16.mxu1 %v4870_v14 }
 0x296   : > { %4016 = vmatpush1.bf16.msra.mxu0 %v4613_v21 }
 0x297   : > { %4017 = vmatprep.subr.bf16.mxu0 %v4630_v23 }
 0x298   : > { %4057 = vmatpush1.bf16.msra.mxu1 %v4869_v22 }
 0x299   : > { %4058 = vmatprep.subr.bf16.mxu1 %v4886_v24  ;;  %v329_v24 = vld [vmem:[#allocation2 + $0x60] sm:$0xff] }
 0x29a   : > { %4018 = vmatpush1.bf16.msra.mxu0 %v4629_v55 }
 0x29b   : > { %4019 = vmatprep.subr.bf16.mxu0 %v4646_v29 }
 0x29c   : > { %4059 = vmatpush1.bf16.msra.mxu1 %v4885_v28 }
 0x29d   : > { %4060 = vmatprep.subr.bf16.mxu1 %v4902_v30 }
 0x29e   : > { %4020 = vmatpush1.bf16.msra.mxu0 %v4645_v35 }
 0x29f   : > { %4021 = vmatprep.subr.bf16.mxu0 %v4662_v37 }
 0x2a0   : > { %4061 = vmatpush1.bf16.msra.mxu1 %v4901_v36  ;;  %v331_v36 = vld [vmem:[#allocation2 + $0x70] sm:$0xff] }
 0x2a1   : > { %4062 = vmatprep.subr.bf16.mxu1 %v4918_v38 }
 0x2a2   : > { %4022 = vmatpush1.bf16.msra.mxu0 %v4661_v43 }
 0x2a3   : > { %4023 = vmatprep.subr.bf16.mxu0 %v4678_v45 }
 0x2a4   : > { %4063 = vmatpush1.bf16.msra.mxu1 %v4917_v44 }
 0x2a5   : > { %4064 = vmatprep.subr.bf16.mxu1 %v4934_v46 }
 0x2a6   : > { %4024 = vmatpush1.bf16.msra.mxu0 %v4677_v51  ;;  %v4113_v51 = vld [vmem:[#allocation2] sm:$0xff] (!%p4951_p9) }
 0x2a7   : > { %4025 = vmatprep.subr.bf16.mxu0 %v4694_v53  ;;  %v4135_v53 = vsub.s32 (!%p4951_p9), 0, %v6276_v50 }
 0x2a8   : > { %4065 = vmatpush1.bf16.msra.mxu1 %v4933_v52  ;;  %v4129_v52 = vld [vmem:[%s5697_s28] sm:$0xff] (!%p4951_p9) }
 0x2a9   : > { %4066 = vmatprep.subr.bf16.mxu1 %v4950_v56  ;;  %v4114_v56 = vld [vmem:[#allocation2 + $0x8] sm:$0xff] (!%p4951_p9) }
 0x2aa   : > { %4026 = vmatpush1.bf16.msra.mxu0 %v4693_v57  ;;  %v4139_v57 = vsub.s32 (!%p4951_p9), 1, %v6276_v50 }
 0x2ac   : > { %4067 = vmatpush1.bf16.msra.mxu1 %v4949_v58  ;;  %v4115_v58 = vld [vmem:[#allocation2 + $0x10] sm:$0xff] (!%p4951_p9) }
 0x2ad   : > { %4028 = vmatmul.mubr.bf16.vlgmr.msra.gmra.mrb[28].mxu0 %v5797_v17  ;;  %v327_v17 = vld [vmem:[#allocation2 + $0x50] sm:$0xff] }
 0x2af   : > { %4069 = vmatmul.mubr.bf16.vlgmr.msra.gmra.mrb[28].mxu1 %v5803_v20 }
 0x2c0   : > { %v3783_v61 = vpop.f32.mrb[16].mxu0 }
 0x2c1   : > { %v3785_v0 = vpop.f32.mrb[17].mxu0 }
 0x2c2   : > { %v3824_v63 = vpop.f32.mrb[16].mxu1  ;;  %v3787_v4 = vpop.f32.mrb[18].mxu0 }
 0x2c3   : > { %v3825_v1 = vadd.f32 %v3824_v63, %v3783_v61  ;;  %v3826_v3 = vpop.f32.mrb[17].mxu1  ;;  %v3788_v7 = vpop.f32.mrb[19].mxu0  ;;  %v4143_v61 = vsub.s32 (!%p4951_p9), 2, %v6276_v50  ;;  %v4116_v63 = vld [vmem:[#allocation2 + $0x18] sm:$0xff] (!%p4951_p9)  ;;  %v4163_v4 = vsub.s32 (!%p4951_p9), 7, %v6276_v50 }
 0x2c4   : > { %v3827_v5 = vadd.f32 %v3826_v3, %v3785_v0  ;;  %v3828_v6 = vpop.f32.mrb[18].mxu1  ;;  %v4117_v0 = vld [vmem:[#allocation2 + $0x20] sm:$0xff] (!%p4951_p9)  ;;  %v4159_v3 = vsub.s32 (!%p4951_p9), 6, %v6276_v50 }
 0x2c5   : > { %v4085_v8 = vadd.f32 %v3825_v1, %v325_v62  ;;  %v3829_v9 = vpop.f32.mrb[19].mxu1  ;;  %v4147_v62 = vsub.s32 (!%p4951_p9), 3, %v6276_v50  ;;  %v4151_v1 = vsub.s32 (!%p4951_p9), 4, %v6276_v50  ;;  %v4140_v6 = vrot.slane (!%p4951_p9), %v4129_v52, %v4139_v57 }
 0x2c6   : > { %v4086_v10 = vadd.f32 %v3827_v5, %v326_v2  ;;  %v4155_v2 = vsub.s32 (!%p4951_p9), 5, %v6276_v50  ;;  %v4136_v5 = vrot.slane (!%p4951_p9), %v4129_v52, %v4135_v53  ;;  %v4144_v7 = vrot.slane (!%p4951_p9), %v4129_v52, %v4143_v61  ;;  %v4118_v9 = vld [vmem:[#allocation2 + $0x28] sm:$0xff] (!%p4951_p9) }
 0x2c7   : > { %4101 = vst [vmem:[#allocation2 + $0x40] sm:$0xff] %v4085_v8  ;;  %v4148_v8 = vrot.slane (!%p4951_p9), %v4129_v52, %v4147_v62 }
 0x2c8   : > { %4102 = vst [vmem:[#allocation2 + $0x48] sm:$0xff] %v4086_v10  ;;  %v4119_v10 = vld [vmem:[#allocation2 + $0x30] sm:$0xff] (!%p4951_p9) }
 0x300   : > { %v3865_v11 = vpop.f32.mrb[20].mxu0 }
 0x301   : > { %v3867_v20 = vpop.f32.mrb[21].mxu0 }
 0x302   : > { %v3906_v59 = vpop.f32.mrb[20].mxu1  ;;  %v3869_v14 = vpop.f32.mrb[22].mxu0 }
 0x303   : > { %v3907_v12 = vadd.f32 %v3906_v59, %v3865_v11  ;;  %v3908_v13 = vpop.f32.mrb[21].mxu1  ;;  %v3870_v18 = vpop.f32.mrb[23].mxu0  ;;  %v4120_v11 = vld [vmem:[#allocation2 + $0x38] sm:$0xff] (!%p4951_p9)  ;;  %v4156_v59 = vrot.slane (!%p4951_p9), %v4129_v52, %v4155_v2  ;;  %v4215_v14 = vadd.f32 (!%p4951_p9), %v4144_v7, %v4115_v58 }
 0x304   : > { %v3909_v15 = vadd.f32 %v3908_v13, %v3867_v20  ;;  %v3910_v16 = vpop.f32.mrb[22].mxu1  ;;  %v4160_v20 = vrot.slane (!%p4951_p9), %v4129_v52, %v4159_v3  ;;  %v4214_v13 = vadd.f32 (!%p4951_p9), %v4140_v6, %v4114_v56 }
 0x305   : > { %v4087_v19 = vadd.f32 %v3907_v12, %v327_v17  ;;  %v3911_v21 = vpop.f32.mrb[23].mxu1  ;;  %v4152_v17 = vrot.slane (!%p4951_p9), %v4129_v52, %v4151_v1  ;;  %v4164_v12 = vrot.slane (!%p4951_p9), %v4129_v52, %v4163_v4  ;;  %v4218_v18 = vadd.f32 (!%p4951_p9), %v4156_v59, %v4118_v9 }
 0x306   : > { %v4088_v22 = vadd.f32 %v3909_v15, %v328_v60  ;;  %v4213_v60 = vadd.f32 (!%p4951_p9), %v4136_v5, %v4113_v51  ;;  %v4216_v15 = vadd.f32 (!%p4951_p9), %v4148_v8, %v4116_v63 }
 0x307   : > { %4103 = vst [vmem:[#allocation2 + $0x50] sm:$0xff] %v4087_v19  ;;  %v4217_v16 = vadd.f32 (!%p4951_p9), %v4152_v17, %v4117_v0  ;;  %v4219_v19 = vadd.f32 (!%p4951_p9), %v4160_v20, %v4119_v10  ;;  %v4220_v21 = vadd.f32 (!%p4951_p9), %v4164_v12, %v4120_v11 }
 0x308   : > { %4104 = vst [vmem:[#allocation2 + $0x58] sm:$0xff] %v4088_v22  ;;  %v4121_v22 = vld [vmem:[#allocation2 + $0x40] sm:$0xff] (!%p4951_p9) }
 0x340   : > { %v3947_v23 = vpop.f32.mrb[24].mxu0 }
 0x341   : > { %v3949_v54 = vpop.f32.mrb[25].mxu0 }
 0x342   : > { %v3988_v25 = vpop.f32.mrb[24].mxu1  ;;  %v3951_v28 = vpop.f32.mrb[26].mxu0 }
 0x343   : > { %v3989_v26 = vadd.f32 %v3988_v25, %v3947_v23  ;;  %v3990_v55 = vpop.f32.mrb[25].mxu1  ;;  %v3952_v31 = vpop.f32.mrb[27].mxu0  ;;  %v4130_v23 = vld [vmem:[%s5697_s28 + $0x8] sm:$0xff] (!%p4951_p9)  ;;  %v4230_v25 = vmax.f32 (!%p4951_p9), %v4214_v13, 0.0  ;;  %v4233_v28 = vmax.f32 (!%p4951_p9), %v4217_v16, 0.0 }
 0x344   : > { %v3991_v29 = vadd.f32 %v3990_v55, %v3949_v54  ;;  %v3992_v30 = vpop.f32.mrb[26].mxu1  ;;  %v4231_v54 = vmax.f32 (!%p4951_p9), %v4215_v14, 0.0  ;;  %v4123_v55 = vld [vmem:[#allocation2 + $0x50] sm:$0xff] (!%p4951_p9)  ;;  %v4236_v31 = vmax.f32 (!%p4951_p9), %v4220_v21, 0.0 }
 0x345   : > { %v4089_v32 = vadd.f32 %v3989_v26, %v329_v24  ;;  %v3993_v33 = vpop.f32.mrb[27].mxu1  ;;  %v4229_v24 = vmax.f32 (!%p4951_p9), %v4213_v60, 0.0  ;;  %v4232_v26 = vmax.f32 (!%p4951_p9), %v4216_v15, 0.0  ;;  %v4235_v30 = vmax.f32 (!%p4951_p9), %v4219_v19, 0.0  ;;  %4246 = vst [vmem:[%s5704_s1 + $0x8] sm:$0xff] (!%p4951_p9), %v4230_v25  ;;  %4249 = vst [vmem:[%s5704_s1 + $0x20] sm:$0xff] (!%p4951_p9), %v4233_v28 }
 0x346   : > { %v4090_v34 = vadd.f32 %v3991_v29, %v330_v27  ;;  %v4122_v27 = vld [vmem:[#allocation2 + $0x48] sm:$0xff] (!%p4951_p9)  ;;  %v4234_v29 = vmax.f32 (!%p4951_p9), %v4218_v18, 0.0  ;;  %4247 = vst [vmem:[%s5704_s1 + $0x10] sm:$0xff] (!%p4951_p9), %v4231_v54  ;;  %4252 = vst [vmem:[%s5704_s1 + $0x38] sm:$0xff] (!%p4951_p9), %v4236_v31 }
 0x347   : > { %4105 = vst [vmem:[#allocation2 + $0x60] sm:$0xff] %v4089_v32  ;;  %v4124_v32 = vld [vmem:[#allocation2 + $0x58] sm:$0xff] (!%p4951_p9)  ;;  %4245 = vst [vmem:[%s5704_s1] sm:$0xff] (!%p4951_p9), %v4229_v24 }
 0x348   : > { %4106 = vst [vmem:[#allocation2 + $0x68] sm:$0xff] %v4090_v34  ;;  %4248 = vst [vmem:[%s5704_s1 + $0x18] sm:$0xff] (!%p4951_p9), %v4232_v26  ;;  %v4168_v34 = vrot.slane (!%p4951_p9), %v4130_v23, %v4135_v53 }
 0x349   : > { %4250 = vst [vmem:[%s5704_s1 + $0x28] sm:$0xff] (!%p4951_p9), %v4234_v29  ;;  %4251 = vst [vmem:[%s5704_s1 + $0x30] sm:$0xff] (!%p4951_p9), %v4235_v30 }
 0x34e   : > { %v4125_v33 = vld [vmem:[#allocation2 + $0x60] sm:$0xff] (!%p4951_p9) }
 0x380   : > { %v4029_v35 = vpop.f32.mrb[28].mxu0 }
 0x381   : > { %v4031_v38 = vpop.f32.mrb[29].mxu0 }
 0x382   : > { %v4070_v37 = vpop.f32.mrb[28].mxu1  ;;  %v4033_v42 = vpop.f32.mrb[30].mxu0  ;;  %4112 = sbr.rel (%p4951_p9) target bundleno = 917 (0x395), region = 52 }
 0x383   : > { %v4071_v39 = vadd.f32 %v4070_v37, %v4029_v35  ;;  %v4072_v41 = vpop.f32.mrb[29].mxu1  ;;  %v4034_v45 = vpop.f32.mrb[31].mxu0  ;;  %v4172_v35 = vrot.slane (!%p4951_p9), %v4130_v23, %v4139_v57  ;;  %v4180_v37 = vrot.slane (!%p4951_p9), %v4130_v23, %v4147_v62  ;;  %v4188_v42 = vrot.slane (!%p4951_p9), %v4130_v23, %v4155_v2 }
 0x384   : > { %v4073_v43 = vadd.f32 %v4072_v41, %v4031_v38  ;;  %v4074_v44 = vpop.f32.mrb[30].mxu1  ;;  %v4126_v38 = vld [vmem:[#allocation2 + $0x68] sm:$0xff] (!%p4951_p9)  ;;  %v4184_v41 = vrot.slane (!%p4951_p9), %v4130_v23, %v4151_v1  ;;  %v4221_v45 = vadd.f32 (!%p4951_p9), %v4168_v34, %v4121_v22 }
 0x385   : > { %v4091_v46 = vadd.f32 %v4071_v39, %v331_v36  ;;  %v4075_v47 = vpop.f32.mrb[31].mxu1  ;;  %v4176_v36 = vrot.slane (!%p4951_p9), %v4130_v23, %v4143_v61  ;;  %v4196_v44 = vrot.slane (!%p4951_p9), %v4130_v23, %v4163_v4  ;;  %v4226_v50 = vadd.f32 (!%p4951_p9), %v4188_v42, %v4126_v38 }
 0x386   : > { %v4092_v48 = vadd.f32 %v4073_v43, %v332_v40  ;;  %v4192_v43 = vrot.slane (!%p4951_p9), %v4130_v23, %v4159_v3  ;;  %v4225_v49 = vadd.f32 (!%p4951_p9), %v4184_v41, %v4125_v33  ;;  %v4237_v53 = vmax.f32 (!%p4951_p9), %v4221_v45, 0.0 }
 0x387   : > { %4107 = vst [vmem:[#allocation2 + $0x70] sm:$0xff] %v4091_v46  ;;  %v4222_v46 = vadd.f32 (!%p4951_p9), %v4172_v35, %v4122_v27  ;;  %v4223_v47 = vadd.f32 (!%p4951_p9), %v4176_v36, %v4123_v55  ;;  %v4242_v62 = vmax.f32 (!%p4951_p9), %v4226_v50, 0.0 }
 0x388   : > { %4108 = vst [vmem:[#allocation2 + $0x78] sm:$0xff] %v4092_v48  ;;  %v4224_v48 = vadd.f32 (!%p4951_p9), %v4180_v37, %v4124_v32  ;;  %v4241_v61 = vmax.f32 (!%p4951_p9), %v4225_v49, 0.0  ;;  %4253 = vst [vmem:[%s5704_s1 + $0x40] sm:$0xff] (!%p4951_p9), %v4237_v53 }
 0x389   : > { %v4238_v56 = vmax.f32 %v4222_v46, 0.0  ;;  %v4239_v57 = vmax.f32 %v4223_v47, 0.0  ;;  %4258 = vst [vmem:[%s5704_s1 + $0x68] sm:$0xff] %v4242_v62 }
 0x38a   : > { %v4240_v58 = vmax.f32 %v4224_v48, 0.0  ;;  %4257 = vst [vmem:[%s5704_s1 + $0x60] sm:$0xff] %v4241_v61 }
 0x38b   : > { %4254 = vst [vmem:[%s5704_s1 + $0x48] sm:$0xff] %v4238_v56  ;;  %4255 = vst [vmem:[%s5704_s1 + $0x50] sm:$0xff] %v4239_v57 }
 0x38c   : > { %4256 = vst [vmem:[%s5704_s1 + $0x58] sm:$0xff] %v4240_v58 }
 0x38e   : > { %v4127_v39 = vld [vmem:[#allocation2 + $0x70] sm:$0xff] }
 0x38f   : > { %v4128_v40 = vld [vmem:[#allocation2 + $0x78] sm:$0xff]  ;;  %v4227_v51 = vadd.f32 %v4192_v43, %v4127_v39 }
 0x390   : > { %v4228_v52 = vadd.f32 %v4196_v44, %v4128_v40 }
 0x391   : > { %v4243_v63 = vmax.f32 %v4227_v51, 0.0 }
 0x392   : > { %v4244_v0 = vmax.f32 %v4228_v52, 0.0 }
 0x393   : > { %4259 = vst [vmem:[%s5704_s1 + $0x70] sm:$0xff] %v4243_v63 }
 0x394   : > { %4260 = vst [vmem:[%s5704_s1 + $0x78] sm:$0xff] %v4244_v0 }
 0x395 PF: > { %s6431_s21 = sld [smem:[#allocation15_spill]]  ;;  %s6432_s22 = sld [smem:[#allocation22_spill]] }
 0x396   : > { %s4278_s24 = sshll.u32 %s5704_s1, 4  ;;  %s4262_s20 = scalar_lea.sflag [#allocation5], %s5694_s10  ;;  %s4279_s24 = int_to_ptr.vmem [resolvable:$true] %s4278_s24 }
 0x397   : > { %s5195_s29 = scalar_lea.vmem %s4279_s24, 2048  ;;  %p6434_p0 = scmp.ne.s32.totalorder %s6423_s30, 0 }
 0x398   : > { %p5196_p1 = scmp.ne.s32.totalorder %s4279_s24, %s5195_s29  ;;  %s5358_s6 = smov [#allocation9]  }
 0x399   : > { %s5199_s26 = sshll.u32 %s5358_s6, 4  ;;  %s5200_s26 = int_to_ptr.vmem [resolvable:$false] %s5199_s26 }
 0x39a   : > { %p5197_p5 = pnand %p5196_p1, %p6434_p0  ;;  %s5201_s3 = scalar_lea.vmem %s5200_s26, 4096 }
 0x39b   : > { %s4960_s5 = sshll.u32 %s6431_s21, 11  ;;  %s6433_s0 = smov %s6432_s22 }
 0x39c   : > { %s6308_s15 = scalar_lea.hbm %s6432_s22, %s4960_s5  ;;  %p5198_p3 = pneg %p5197_p5 }
 0x39d   : > { %p5202_p7 = scmp.lt.s32.totalorder %s4279_s24, %s5200_s26  ;;  %p5203_p12 = scmp.lt.s32.totalorder %s5201_s3, %s5195_s29 }
 0x39f   : > { %p5204_p8 = por %p5203_p12, %p5202_p7 }
 0x3a1   : > { %p5205_p13 = pnand %p5204_p8, %p5198_p3 }
 0x3a3   : > { %5208 = shalt.err (!%p5205_p13)
}
 0x3a4   : > { %s5209_s10 = scalar_lea.hbm %s6308_s15, 2048  ;;  %s5213_s8 = scalar_lea.hbm %s6433_s0, 4096 }
 0x3a5   : > { %p5210_p10 = scmp.ne.s32.totalorder %s6308_s15, %s5209_s10  ;;  %p5214_p6 = scmp.lt.u32.totalorder %s6308_s15, %s6433_s0 }
 0x3a6   : > { %p5215_p11 = scmp.lt.u32.totalorder %s5213_s8, %s5209_s10  ;;  %p5217_p1 = scmp.lt.u32.totalorder %s5209_s10, %s6308_s15 }
 0x3a7   : > { %p5211_p4 = pnand %p5210_p10, %p6434_p0 }
 0x3a8   : > { %p5216_p9 = por %p5215_p11, %p5214_p6 }
 0x3a9   : > { %p5212_p2 = pneg %p5211_p4 }
 0x3aa   : > { %p5218_p5 = por %p5217_p1, %p5216_p9 }
 0x3ac   : > { %p5219_p3 = pnand %p5218_p5, %p5212_p2 }
 0x3ae   : > { %5222 = shalt.err (!%p5219_p3)
}
 0x3af   : > { %4967 = dma.vmem_to_hbm [thread:$0]  (%p6434_p0), %s4279_s24, 2048, %s6308_s15, %s4262_s20  }
 0x3b0 PF: > { %p4984_p7 = scmp.ge.s32.totalorder %s5349_s25, 2  ;;  %s4290_s5 = sand.u32 1, %s5297_s12  }
 0x3b1   : > { %p6435_p12 = scmp.ne.s32.totalorder %s6424_s7, 0  ;;  %s4291_s18 = scalar_lea.sflag [#allocation5], %s4290_s5 }
 0x3b3   : > { %p4980_p8 = pnand %p4984_p7, %p6435_p12 }
 0x3b5   : > { %5292 = dma.done.wait (!%p4980_p8), %s4291_s18, 2048  }
 0x3b6   : > { %5294 = vsyncadd (!%p4980_p8), %s4291_s18, 4294965248  ;;  %s22_s25 = sadd.s32 1, %s5349_s25   ;;  %s6437_s30 = sld [smem:[#allocation14_spill]] }
 0x3b7   : > { %p6334_p13 = scmp.ge.s32.totalorder %s22_s25, 100   ;;  %s6438_s20 = sld [smem:[#allocation19_spill]] }
 0x3b8   : > { %s6439_s22 = sld [smem:[#allocation16_spill]]  ;;  %s6440_s7 = sld [smem:[#allocation17_spill]] }
 0x3b9   : > { %s6441_s24 = sld [smem:[#allocation18_spill]]  ;;  %s6442_s12 = smov %s5301_s13 }
 0x3ba   : > { %s6443_s13 = smov %s5305_s14  ;;  %s6444_s14 = smov %s5613_s4 }
 0x3bb   : > { %s6445_s15 = smov %s5313_s16  ;;  %s6446_s16 = smov %s5317_s17 }
 0x3bc   : > { %s6447_s17 = smov %s5565_s11  ;;  %s6448_s18 = smov %s5325_s19 }
 0x3bd   : > { %s6449_s19 = smov %s6437_s30  ;;  %s6450_s21 = smov %s5341_s23 }
 0x3be   : > { %s6451_s23 = smov %s6440_s7  ;;  %21 = sbr.rel (!%p6334_p13) target bundleno = 16 (0x10), region = 109 }
 0x3c5   :  { %4296 = vsyncpa [#allocation4], 1 }
 0x3c6   :  { %4298 = vsyncpa [#allocation4 + $0x1], 1 }
 0x3c7   :  { %4299 = vsyncpa [#allocation7], 1 }
 0x3c8   :  { %4301 = vsyncpa [#allocation7 + $0x1], 1 }
 0x3c9   :  { %4302 = vsyncpa [#allocation5], 1 }
 0x3ca   :  { %4304 = vsyncpa [#allocation5 + $0x1], 1 }

// kernel: vgg_forward.5
= control target key start
LH: loop header
LB: loop body
LE: loop exit
PB: predicated region body
PF: predicated region fallthrough
CT: control target
= control target key end

     0   :  { %s940_s12 = smov 0   ;;  %s942_s13 = smov 0   ;;  %s1023_s0 = inlined_call_operand.vmem [shape: bf16[8,4096], index: 0, kind: input, shape index: {}]   ;;  %s1024_s1 = inlined_call_operand.vmem [shape: bf16[4096,128], index: 1, kind: input, shape index: {}]   ;;  %s1025_s2 = inlined_call_operand.vmem [shape: f32[1,128], index: 2, kind: input, shape index: {}]   ;;  %s1026_s3 = inlined_call_operand.vmem [shape: f32[8,128], index: 3, kind: output, shape index: {}]  }
   0x1   :  { %s944_s14 = smov 0  }
   0x2 LB: > { %s25_s15 = sadd.s32 1, %s913_s13  ;;  %p743_p0 = scmp.ge.s32.totalorder %s917_s14, 1  ;;  %s917_s14 = sphi %s944_s14, %s13_s14   ;;  %s913_s13 = sphi %s942_s13, %s1028_s13   ;;  %s909_s12 = sphi %s940_s12, %s1027_s12  }
   0x3   : > { %p26_p1 = scmp.ge.s32.totalorder %s25_s15, 8  ;;  %p189_p2 = scmp.lt.s32.totalorder %s917_s14, 9 }
   0x5   : > { %s1030_s15 = smov (%p26_p1, %s25_s15), 0  ;;  %p190_p3 = pnand %p743_p0, %p189_p2 }
   0x6   : > { %s744_s16 = sshll.u32 (!%p190_p3), %s909_s12, 2  ;;  %s746_s17 = sshll.u32 (!%p190_p3), %s909_s12, 6 }
   0x7   : > { %193 = sbr.rel (%p190_p3) target bundleno = 289 (0x121), region = 32  ;;  %p233_p4 = scmp.lt.s32.totalorder (!%p190_p3), %s744_s16, 31 }
   0x8   : > { %p241_p5 = scmp.lt.s32.totalorder (!%p190_p3), %s746_s17, 511  ;;  %p748_p6 = scmp.ne.s32.totalorder (!%p190_p3), %s909_s12, 0 }
   0xe   : > { %s1032_s16 = smov (!%p233_p4, %s744_s16), 31  ;;  %s1034_s17 = smov (!%p241_p5, %s746_s17), 511 }
   0xf   : > { %s745_s18 = sshll.u32 %s1032_s16, 2  ;;  %s747_s22 = sshll.u32 %s1034_s17, 2  ;;  %v919_v0 = vmov (!%p748_p6), 0.0  }
  0x10   : > { %s965_s21 = scalar_lea.vmem %s1023_s0, %s745_s18  ;;  %s970_s25 = scalar_lea.vmem %s1024_s1, %s747_s22  ;;  %264 = vst [vmem:[#allocation2] sm:$0xff] (!%p748_p6), %v919_v0 }
  0x11   : > { %263 = sbr.rel (%p748_p6) target bundleno = 24 (0x18), region = 36 }
  0x18 PF: > { %v859_v1 = vld [vmem:[%s970_s25 + $0x40] sm:$0xff]   ;;  %v863_v5 = vld [vmem:[%s970_s25 + $0x48] sm:$0xff]   ;;  %v867_v9 = vld [vmem:[%s970_s25 + $0x50] sm:$0xff]   ;;  %p785_p7 = scmp.ne.s32.totalorder %s909_s12, 7 }
  0x19   : > { %v860_v2 = vld [vmem:[%s970_s25 + $0xc0] sm:$0xff]   ;;  %790 = vmatprep.subr.bf16.mxu0 %v859_v1  ;;  %v864_v6 = vld [vmem:[%s970_s25 + $0xc8] sm:$0xff]   ;;  %v868_v10 = vld [vmem:[%s970_s25 + $0xd0] sm:$0xff]  }
  0x1a   : > { %v861_v3 = vld [vmem:[%s970_s25] sm:$0xff]   ;;  %812 = vmatprep.subr.bf16.mxu1 %v860_v2  ;;  %v865_v7 = vld [vmem:[%s970_s25 + $0x8] sm:$0xff]   ;;  %v869_v11 = vld [vmem:[%s970_s25 + $0x10] sm:$0xff]  }
  0x1b   : > { %v862_v4 = vld [vmem:[%s970_s25 + $0x80] sm:$0xff]   ;;  %791 = vmatpush3.bf16.msra.mxu0 %v861_v3  ;;  %v866_v8 = vld [vmem:[%s970_s25 + $0x88] sm:$0xff]   ;;  %v870_v12 = vld [vmem:[%s970_s25 + $0x90] sm:$0xff]  }
  0x1c   : > { %813 = vmatpush3.bf16.msra.mxu1 %v862_v4  ;;  %792 = vmatprep.subr.bf16.mxu0 %v863_v5  ;;  %v871_v13 = vld [vmem:[%s970_s25 + $0x58] sm:$0xff]   ;;  %v875_v17 = vld [vmem:[%s970_s25 + $0x60] sm:$0xff]   ;;  %v879_v21 = vld [vmem:[%s970_s25 + $0x68] sm:$0xff]  }
  0x1d   : > { %814 = vmatprep.subr.bf16.mxu1 %v864_v6  ;;  %v872_v14 = vld [vmem:[%s970_s25 + $0xd8] sm:$0xff]   ;;  %v876_v18 = vld [vmem:[%s970_s25 + $0xe0] sm:$0xff]   ;;  %v880_v22 = vld [vmem:[%s970_s25 + $0xe8] sm:$0xff]  }
  0x1e   : > { %v873_v15 = vld [vmem:[%s970_s25 + $0x18] sm:$0xff]   ;;  %v877_v19 = vld [vmem:[%s970_s25 + $0x20] sm:$0xff]   ;;  %v881_v23 = vld [vmem:[%s970_s25 + $0x28] sm:$0xff]  }
  0x1f   : > { %793 = vmatpush3.bf16.msra.mxu0 %v865_v7  ;;  %v874_v16 = vld [vmem:[%s970_s25 + $0x98] sm:$0xff]   ;;  %v878_v20 = vld [vmem:[%s970_s25 + $0xa0] sm:$0xff]   ;;  %v882_v24 = vld [vmem:[%s970_s25 + $0xa8] sm:$0xff]  }
  0x20   : > { %815 = vmatpush3.bf16.msra.mxu1 %v866_v8  ;;  %794 = vmatprep.subr.bf16.mxu0 %v867_v9  ;;  %v883_v25 = vld [vmem:[%s970_s25 + $0x70] sm:$0xff]   ;;  %v887_v29 = vld [vmem:[%s970_s25 + $0x78] sm:$0xff]   ;;  %v266_v33 = vld [vmem:[%s965_s21] sm:$0xff] }
  0x21   : > { %816 = vmatprep.subr.bf16.mxu1 %v868_v10  ;;  %v884_v26 = vld [vmem:[%s970_s25 + $0xf0] sm:$0xff]   ;;  %v888_v30 = vld [vmem:[%s970_s25 + $0xf8] sm:$0xff]   ;;  %v267_v34 = vld [vmem:[%s965_s21 + $0x8] sm:$0xff]  ;;  %v749_v35 = vcombine.low %v266_v33, %v266_v33  ;;  %v750_v36 = vcombine.high %v266_v33, %v266_v33 }
  0x22   : > { %v885_v27 = vld [vmem:[%s970_s25 + $0x30] sm:$0xff]   ;;  %v889_v31 = vld [vmem:[%s970_s25 + $0x38] sm:$0xff]   ;;  %v751_v37 = vcombine.low %v267_v34, %v267_v34  ;;  %v752_v38 = vcombine.high %v267_v34, %v267_v34  ;;  %v265_v47 = vld [vmem:[#allocation2] sm:$0xff] }
  0x23   : > { %795 = vmatpush3.bf16.msra.mxu0 %v869_v11  ;;  %v886_v28 = vld [vmem:[%s970_s25 + $0xb0] sm:$0xff]   ;;  %v890_v32 = vld [vmem:[%s970_s25 + $0xb8] sm:$0xff]   ;;  %570 = vmatprep.mubr.bf16.mxu0 %v750_v36  ;;  %v786_v53 = vld [vmem:[%s1025_s2] ss:$0 sm:$0xff] (!%p785_p7) }
  0x24   : > { %817 = vmatpush3.bf16.msra.mxu1 %v870_v12  ;;  %796 = vmatprep.subr.bf16.mxu0 %v871_v13 }
  0x25   : > { %818 = vmatprep.subr.bf16.mxu1 %v872_v14  ;;  %610 = vmatprep.mubr.bf16.mxu1 %v752_v38 }
  0x27   : > { %797 = vmatpush3.bf16.msra.mxu0 %v873_v15 }
  0x28   : > { %819 = vmatpush3.bf16.msra.mxu1 %v874_v16  ;;  %798 = vmatprep.subr.bf16.mxu0 %v875_v17 }
  0x29   : > { %820 = vmatprep.subr.bf16.mxu1 %v876_v18 }
  0x2b   : > { %799 = vmatpush3.bf16.msra.mxu0 %v877_v19 }
  0x2c   : > { %821 = vmatpush3.bf16.msra.mxu1 %v878_v20  ;;  %800 = vmatprep.subr.bf16.mxu0 %v879_v21 }
  0x2d   : > { %822 = vmatprep.subr.bf16.mxu1 %v880_v22 }
  0x2f   : > { %801 = vmatpush3.bf16.msra.mxu0 %v881_v23 }
  0x30   : > { %823 = vmatpush3.bf16.msra.mxu1 %v882_v24  ;;  %802 = vmatprep.subr.bf16.mxu0 %v883_v25 }
  0x31   : > { %824 = vmatprep.subr.bf16.mxu1 %v884_v26 }
  0x33   : > { %803 = vmatpush3.bf16.msra.mxu0 %v885_v27 }
  0x34   : > { %825 = vmatpush3.bf16.msra.mxu1 %v886_v28  ;;  %804 = vmatprep.subr.bf16.mxu0 %v887_v29 }
  0x35   : > { %826 = vmatprep.subr.bf16.mxu1 %v888_v30 }
  0x37   : > { %805 = vmatpush3.bf16.msra.mxu0 %v889_v31 }
  0x38   : > { %827 = vmatpush3.bf16.msra.mxu1 %v890_v32 }
  0x3a   : > { %571 = vmatmul.mubr.bf16.vlgmr.msra.gmra.mrb[0].mxu0 %v749_v35 }
  0x3b   : > { %611 = vmatmul.mubr.bf16.vlgmr.msra.gmra.mrb[0].mxu1 %v751_v37 }
 0x10d   : > { %v806_v39 = vpop.f32.mrb[0].mxu0 }
 0x10e   : > { %v828_v40 = vpop.f32.mrb[0].mxu1  ;;  %v807_v41 = vpop.f32.mrb[1].mxu0 }
 0x10f   : > { %v829_v42 = vpop.f32.mrb[1].mxu1  ;;  %v808_v43 = vadd.f32 %v807_v41, %v806_v39  ;;  %v809_v45 = vpop.f32.mrb[2].mxu0 }
 0x110   : > { %v830_v44 = vadd.f32 %v829_v42, %v828_v40  ;;  %v831_v46 = vpop.f32.mrb[2].mxu1  ;;  %v810_v48 = vpop.f32.mrb[3].mxu0  ;;  %623 = sbr.rel (%p785_p7) target bundleno = 289 (0x121), region = 40 }
 0x111   : > { %v832_v49 = vpop.f32.mrb[3].mxu1 }
 0x112   : > { %v613_v50 = vadd.f32 %v830_v44, %v808_v43 }
 0x114   : > { %v618_v51 = vadd.f32 %v613_v50, %v265_v47 }
 0x116   : > { %619 = vst [vmem:[#allocation2] sm:$0xff] %v618_v51 }
 0x11d   : > { %v624_v52 = vld [vmem:[#allocation2] sm:$0xff] }
 0x11e   : > { %v632_v54 = vadd.f32 %v786_v53, %v624_v52 }
 0x120   : > { %633 = vst [vmem:[%s1026_s3] sm:$0xff] %v632_v54 }
 0x121 PF: > { %s13_s14 = sadd.s32 1, %s917_s14   ;;  %s1027_s12 = smov %s913_s13 }
 0x122   : > { %p10_p8 = scmp.ge.s32.totalorder %s13_s14, 10   ;;  %s1028_s13 = smov %s1030_s15 }
 0x124   :  { %12 = sbr.rel (!%p10_p8) target bundleno = 2 (0x2), region = 76 }

</bundles_post_ra>
